<compile_context>
chip_gen: v6e
topology: v6e:2x2x1
jax: 0.10.0
libtpu: 0.0.40
codegen_flags: <defaults>
</compile_context>

<pallas_src>
import functools

import jax
import jax.numpy as jnp
from jax.experimental import pallas as pl
from jax.experimental.pallas import tpu as pltpu

EPS = 1e-5
BF16 = jnp.bfloat16
VMEM_LIMIT = 32 * 1024 * 1024   # safe on v5e (16 MiB default) .. v7x (64 MiB phys)


def round_up(x, m):
    return (x + m - 1) // m * m


def best_divisor(n, base, cap):
    """Largest multiple of `base` that divides n and is <= cap (None if none)."""
    best = None
    d = base
    limit = min(n, cap)
    while d <= limit:
        if n % d == 0:
            best = d
        d += base
    return best


# ----------------------------- GEMM (+bias, +stats) --------------------------

def _gemm_kernel(x_ref, w_ref, b_ref, o_ref, acc_ref, *, nk):
    k = pl.program_id(2)

    @pl.when(k == 0)
    def _():
        acc_ref[...] = jnp.zeros_like(acc_ref)

    acc_ref[...] += jnp.dot(x_ref[...], w_ref[...],
                            preferred_element_type=jnp.float32)

    @pl.when(k == nk - 1)
    def _():
        o_ref[...] = (acc_ref[...] + b_ref[...]).astype(o_ref.dtype)


def _gemm_stats_kernel(x_ref, w_ref, b_ref, o_ref, sum_ref, sq_ref, acc_ref,
                       *, nk):
    k = pl.program_id(2)

    @pl.when(k == 0)
    def _():
        acc_ref[...] = jnp.zeros_like(acc_ref)

    acc_ref[...] += jnp.dot(x_ref[...], w_ref[...],
                            preferred_element_type=jnp.float32)

    @pl.when(k == nk - 1)
    def _():
        a = acc_ref[...]                                  # (tm, tn) f32, pre-bias
        o_ref[...] = (a + b_ref[...]).astype(o_ref.dtype)
        # Per-channel sum / sum-of-squares of the pre-bias accumulator.  Rows
        # coming from zero padding contribute exactly zero, so no row mask
        # (and no pl.program_id inside this body) is required.
        sum_ref[...] = jnp.sum(a, axis=0).reshape(1, 1, -1)
        sq_ref[...] = jnp.sum(a * a, axis=0).reshape(1, 1, -1)


def _gemm_tiles(M, K, N):
    Mp = round_up(M, 8)
    tm = best_divisor(Mp, 8, 2048) or Mp
    if K <= 1024:
        Kp, tk = K, K
    else:
        tk = best_divisor(K, 128, 1024)
        if tk is None:
            Kp, tk = round_up(K, 512), 512
        else:
            Kp = K
    if N <= 512:
        Np, tn = N, N
    else:
        tn = best_divisor(N, 128, 512) or 512
        Np = round_up(N, tn)
    return Mp, tm, Kp, tk, Np, tn


def gemm_bias(x, w, b, *, with_stats=False, out_dtype=BF16):
    """out = x @ w + b with bf16 MXU inputs and f32 accumulation.

    Returns out of shape (Mp, N) (Mp = M rounded up to 8; padded rows carry
    bias only and are sliced off by the caller).  If with_stats, also returns
    per-column sum and sum-of-squares of the *pre-bias* product over the valid
    rows (padded input rows are exactly zero).
    """
    M, K = x.shape
    N = w.shape[1]
    x = x.astype(BF16)
    w = w.astype(BF16)
    Mp, tm, Kp, tk, Np, tn = _gemm_tiles(M, K, N)

    if Mp != M or Kp != K:
        x = jnp.pad(x, ((0, Mp - M), (0, Kp - K)))
    if Kp != K or Np != N:
        w = jnp.pad(w, ((0, Kp - K), (0, Np - N)))
    bb = b.astype(jnp.float32)
    if Np != N:
        bb = jnp.pad(bb, (0, Np - N))
    bb = bb.reshape(1, Np)

    ni, nj, nk = Mp // tm, Np // tn, Kp // tk
    x_spec = pl.BlockSpec((tm, tk), lambda i, j, k: (i, k))
    w_spec = pl.BlockSpec((tk, tn), lambda i, j, k: (k, j))
    b_spec = pl.BlockSpec((1, tn), lambda i, j, k: (0, j))
    o_spec = pl.BlockSpec((tm, tn), lambda i, j, k: (i, j))
    params = pltpu.CompilerParams(
        dimension_semantics=("parallel", "parallel", "arbitrary"),
        vmem_limit_bytes=VMEM_LIMIT)
    scratch = [pltpu.VMEM((tm, tn), jnp.float32)]

    if with_stats:
        kern = functools.partial(_gemm_stats_kernel, nk=nk)
        out, sums, sqs = pl.pallas_call(
            kern,
            out_shape=(jax.ShapeDtypeStruct((Mp, Np), out_dtype),
                       jax.ShapeDtypeStruct((ni, 1, Np), jnp.float32),
                       jax.ShapeDtypeStruct((ni, 1, Np), jnp.float32)),
            grid_spec=pltpu.PrefetchScalarGridSpec(
                num_scalar_prefetch=0,
                grid=(ni, nj, nk),
                in_specs=[x_spec, w_spec, b_spec],
                out_specs=(o_spec,
                           pl.BlockSpec((1, 1, tn), lambda i, j, k: (i, 0, j)),
                           pl.BlockSpec((1, 1, tn), lambda i, j, k: (i, 0, j))),
                scratch_shapes=scratch),
            compiler_params=params,
        )(x, w, bb)
        sums = sums.reshape(ni, Np).sum(axis=0)[:N]
        sqs = sqs.reshape(ni, Np).sum(axis=0)[:N]
        if Np != N:
            out = out[:, :N]
        return out, sums, sqs

    kern = functools.partial(_gemm_kernel, nk=nk)
    out = pl.pallas_call(
        kern,
        out_shape=jax.ShapeDtypeStruct((Mp, Np), out_dtype),
        grid_spec=pltpu.PrefetchScalarGridSpec(
            num_scalar_prefetch=0,
            grid=(ni, nj, nk),
            in_specs=[x_spec, w_spec, b_spec],
            out_specs=o_spec,
            scratch_shapes=scratch),
        compiler_params=params,
    )(x, w, bb)
    if Np != N:
        out = out[:, :N]
    return out


# ------------------------------ direct convolution ---------------------------

def _direct_conv_kernel(x_ref, w_ref, b_ref, o_ref, sum_ref, sq_ref,
                        *, KH, Ho, tw):
    """One image x one column-tile of the output; KH shifted MXU matmuls.

    x_ref: (1, Hp, tw, KW*Cin) width-unrolled input (bf16)
    w_ref: (KH, KW*Cin, Cout)  b_ref: (1, Cout)
    o_ref: (1, Ho, tw, Cout)   sum/sq_ref: (1, 1, 1, Cout)
    """
    _, Hp, _, KWC = x_ref.shape
    Cout = w_ref.shape[2]
    xf = x_ref[...].reshape(Hp * tw, KWC)                 # contraction = KW*Cin
    acc = jnp.dot(xf, w_ref[0], preferred_element_type=jnp.float32)[:Ho * tw, :]
    for kh in range(1, KH):                               # unrolled tap loop
        y = jnp.dot(xf, w_ref[kh], preferred_element_type=jnp.float32)
        acc = acc + y[kh * tw:(kh + Ho) * tw, :]
    acc = acc + b_ref[...]
    o_ref[...] = acc.astype(o_ref.dtype).reshape(1, Ho, tw, Cout)
    sum_ref[...] = jnp.sum(acc, axis=0).reshape(1, 1, 1, Cout)
    sq_ref[...] = jnp.sum(acc * acc, axis=0).reshape(1, 1, 1, Cout)


def _pick_tw(Wo, Hp, KWC, budget=3_000_000):
    """Column-tile width: multiple-of-8 divisor of Wo (or Wo) within VMEM budget."""
    divs = [d for d in range(8, Wo + 1, 8) if Wo % d == 0]
    fit = [d for d in divs if Hp * d * KWC * 2 <= budget]
    if fit:
        return max(fit)
    if divs:
        return min(divs)
    return Wo


def conv_direct(x, w, b, padding):
    """Conv2d without HBM im2col: only a KWx width-unroll of the input is
    materialized; kh taps accumulate as shifted matmuls on VMEM tiles."""
    N, H, W, Cin = x.shape
    KH, KW, _, Cout = w.shape
    Ho = H + 2 * padding - KH + 1
    Wo = W + 2 * padding - KW + 1
    Hp = Ho + KH - 1
    KWC = KW * Cin

    xpad = jnp.pad(x.astype(BF16),
                   ((0, 0), (padding, padding), (padding, padding), (0, 0)))
    # Width-unroll: x_wide[n, h, w, kw*Cin + c] = x_pad[n, h, w + kw, c].
    x_wide = jnp.concatenate([xpad[:, :, kw:kw + Wo, :] for kw in range(KW)],
                             axis=-1)                      # (N, Hp, Wo, KW*Cin)
    wr = w.astype(BF16).reshape(KH, KWC, Cout)
    bb = b.astype(jnp.float32).reshape(1, Cout)

    tw = _pick_tw(Wo, Hp, KWC)
    nj = Wo // tw
    kern = functools.partial(_direct_conv_kernel, KH=KH, Ho=Ho, tw=tw)
    conv4d, sums, sqs = pl.pallas_call(
        kern,
        out_shape=(jax.ShapeDtypeStruct((N, Ho, Wo, Cout), BF16),
                   jax.ShapeDtypeStruct((N, nj, 1, Cout), jnp.float32),
                   jax.ShapeDtypeStruct((N, nj, 1, Cout), jnp.float32)),
        grid_spec=pltpu.PrefetchScalarGridSpec(
            num_scalar_prefetch=0,
            grid=(N, nj),
            in_specs=[pl.BlockSpec((1, Hp, tw, KWC), lambda n, j: (n, 0, j, 0)),
                      pl.BlockSpec((KH, KWC, Cout), lambda n, j: (0, 0, 0)),
                      pl.BlockSpec((1, Cout), lambda n, j: (0, 0))],
            out_specs=(pl.BlockSpec((1, Ho, tw, Cout), lambda n, j: (n, 0, j, 0)),
                       pl.BlockSpec((1, 1, 1, Cout), lambda n, j: (n, j, 0, 0)),
                       pl.BlockSpec((1, 1, 1, Cout), lambda n, j: (n, j, 0, 0)))),
        compiler_params=pltpu.CompilerParams(
            dimension_semantics=("parallel", "parallel"),
            vmem_limit_bytes=VMEM_LIMIT),
    )(x_wide, wr, bb)
    sums = sums.reshape(N * nj, Cout).sum(axis=0)
    sqs = sqs.reshape(N * nj, Cout).sum(axis=0)
    return conv4d, sums, sqs


# ----------------------------- BN + ReLU (+ pool) ----------------------------

def _bn_relu_kernel(x_ref, s_ref, t_ref, o_ref):
    y = x_ref[...].astype(jnp.float32) * s_ref[...] + t_ref[...]
    o_ref[...] = jnp.maximum(y, 0.0).astype(o_ref.dtype)


def _bn_relu_2d(x2d, scale_row, shift_row):
    R, C = x2d.shape
    tm = best_divisor(R, 8, 4096) or R
    return pl.pallas_call(
        _bn_relu_kernel,
        out_shape=jax.ShapeDtypeStruct((R, C), BF16),
        grid_spec=pltpu.PrefetchScalarGridSpec(
            num_scalar_prefetch=0,
            grid=(R // tm,),
            in_specs=[pl.BlockSpec((tm, C), lambda i: (i, 0)),
                      pl.BlockSpec((1, C), lambda i: (0, 0)),
                      pl.BlockSpec((1, C), lambda i: (0, 0))],
            out_specs=pl.BlockSpec((tm, C), lambda i: (i, 0))),
        compiler_params=pltpu.CompilerParams(
            dimension_semantics=("parallel",),
            vmem_limit_bytes=VMEM_LIMIT),
    )(x2d, scale_row, shift_row)


def bn_relu(x2d, scale, shift):
    """Fused BN affine + ReLU on (M, C); lane-dense 128-wide view when C < 128."""
    M, C = x2d.shape
    scale = scale.astype(jnp.float32)
    shift = shift.astype(jnp.float32)
    if C < 128 and 128 % C == 0 and M % (128 // C) == 0:
        rep = 128 // C
        out = _bn_relu_2d(x2d.reshape(M // rep, 128),
                          jnp.tile(scale, rep).reshape(1, 128),
                          jnp.tile(shift, rep).reshape(1, 128))
        return out.reshape(M, C)
    return _bn_relu_2d(x2d, scale.reshape(1, C), shift.reshape(1, C))


def _bn_relu_pool_kernel(x_ref, s_ref, t_ref, o_ref):
    C = o_ref.shape[-1]
    s = s_ref[...]
    t = t_ref[...]
    x = x_ref[...]                                        # (tb, 2, Wo2, 2*C) bf16

    def aff(v):
        return v.astype(jnp.float32) * s + t

    m = jnp.maximum(jnp.maximum(aff(x[:, 0, :, :C]), aff(x[:, 0, :, C:])),
                    jnp.maximum(aff(x[:, 1, :, :C]), aff(x[:, 1, :, C:])))
    o_ref[...] = jnp.maximum(m, 0.0).astype(o_ref.dtype)


def bn_relu_maxpool(conv4d, scale, shift):
    """Fused BN affine + ReLU + MaxPool2d(2,2); the conv output is read once
    (2x2 window expressed by a free reshape + BlockSpec, no strided slices)."""
    N, Ho, Wo, C = conv4d.shape
    Ho2, Wo2 = Ho // 2, Wo // 2
    R = N * Ho2
    xv = conv4d.reshape(R, 2, Wo2, 2 * C)                 # free reshape
    row_bytes = 2 * Wo2 * 2 * C * 2
    tb = best_divisor(R, 1, max(1, (2 * 1024 * 1024) // row_bytes)) or 1
    out = pl.pallas_call(
        _bn_relu_pool_kernel,
        out_shape=jax.ShapeDtypeStruct((R, Wo2, C), BF16),
        grid_spec=pltpu.PrefetchScalarGridSpec(
            num_scalar_prefetch=0,
            grid=(R // tb,),
            in_specs=[pl.BlockSpec((tb, 2, Wo2, 2 * C), lambda i: (i, 0, 0, 0)),
                      pl.BlockSpec((1, C), lambda i: (0, 0)),
                      pl.BlockSpec((1, C), lambda i: (0, 0))],
            out_specs=pl.BlockSpec((tb, Wo2, C), lambda i: (i, 0, 0))),
        compiler_params=pltpu.CompilerParams(
            dimension_semantics=("parallel",),
            vmem_limit_bytes=VMEM_LIMIT),
    )(xv, scale.astype(jnp.float32).reshape(1, C),
      shift.astype(jnp.float32).reshape(1, C))
    return out.reshape(N, Ho2, Wo2, C)


# --------------------------------- softmax -----------------------------------

def _softmax_kernel(x_ref, o_ref):
    x = x_ref[...].astype(jnp.float32)
    m = jnp.max(x, axis=-1, keepdims=True)
    e = jnp.exp(x - m)
    o_ref[...] = e / jnp.sum(e, axis=-1, keepdims=True)


def softmax_rows(x):
    N, C = x.shape
    Nr = round_up(N, 8)
    xp = jnp.pad(x.astype(jnp.float32), ((0, Nr - N), (0, 0)))
    out = pl.pallas_call(
        _softmax_kernel,
        out_shape=jax.ShapeDtypeStruct((Nr, C), jnp.float32),
        grid_spec=pltpu.PrefetchScalarGridSpec(
            num_scalar_prefetch=0,
            grid=(1,),
            in_specs=[pl.BlockSpec((Nr, C), lambda i: (0, 0))],
            out_specs=pl.BlockSpec((Nr, C), lambda i: (0, 0))),
        compiler_params=pltpu.CompilerParams(vmem_limit_bytes=VMEM_LIMIT),
    )(xp)
    return out[:N]


# ----------------------------- layer composition ------------------------------

def conv_bn_relu(x, w, b, gamma, beta, padding, pool):
    """Conv2d(+bias) -> BatchNorm2d (batch stats) -> ReLU [-> MaxPool2d(2,2)]."""
    N, H, W, Cin = x.shape
    KH, KW, _, Cout = w.shape
    Ho = H + 2 * padding - KH + 1
    Wo = W + 2 * padding - KW + 1
    M = N * Ho * Wo

    use_direct = (Cin >= 8) and (KH * KW * Cin * Cout * 2 <= 4 * 1024 * 1024)
    if use_direct:
        conv4d, sums, sqs = conv_direct(x, w, b, padding)
        mean = sums / M
        var = jnp.maximum(sqs / M - mean * mean, 0.0)
    else:
        # im2col + GEMM (only tiny-Cin / huge-weight layers: b1c1, blocks 6-7).
        K = KH * KW * Cin
        xpad = jnp.pad(x.astype(BF16),
                       ((0, 0), (padding, padding), (padding, padding), (0, 0)))
        cols = [xpad[:, kh:kh + Ho, kw:kw + Wo, :]
                for kh in range(KH) for kw in range(KW)]
        patches = jnp.concatenate(cols, axis=-1).reshape(M, K)
        out2d, sums, sqs = gemm_bias(patches, w.reshape(K, Cout), b,
                                     with_stats=True)
        mean_acc = sums / M
        mean = mean_acc + b.astype(jnp.float32)    # bias only shifts the mean
        var = jnp.maximum(sqs / M - mean_acc * mean_acc, 0.0)
        conv4d = out2d[:M].reshape(N, Ho, Wo, Cout)

    scale = gamma.astype(jnp.float32) * jax.lax.rsqrt(var + EPS)
    shift = beta.astype(jnp.float32) - mean * scale

    if pool:
        return bn_relu_maxpool(conv4d, scale, shift)
    y = bn_relu(conv4d.reshape(M, Cout), scale, shift)
    return y.reshape(N, Ho, Wo, Cout)


BLOCK_CFG = [  # (in_channels, out_channels, kernel_size, padding)
    (2, 16, 7, 3), (16, 32, 5, 2), (32, 64, 5, 2), (64, 128, 5, 2),
    (128, 256, 5, 2), (256, 512, 5, 1), (512, 1024, 5, 1),
]


def init_params(key):
    params = {}

    def nxt():
        nonlocal key
        key, sub = jax.random.split(key)
        return sub

    for bi, (cin, cout, k, _pad) in enumerate(BLOCK_CFG):
        c_in = cin
        for ci in range(2):  # BasicBlock has convs=2
            fan_in = k * k * c_in
            w = jax.random.normal(nxt(), (k, k, c_in, cout),
                                  jnp.float32) / jnp.sqrt(fan_in)
            b = 0.01 * jax.random.normal(nxt(), (cout,), jnp.float32)
            g = 1.0 + 0.1 * jax.random.normal(nxt(), (cout,), jnp.float32)
            be = 0.1 * jax.random.normal(nxt(), (cout,), jnp.float32)
            params[f"b{bi + 1}c{ci + 1}"] = (w, b, g, be)
            c_in = cout
    params["fc1"] = (
        jax.random.normal(nxt(), (1024, 4096), jnp.float32) / jnp.sqrt(1024.0),
        0.01 * jax.random.normal(nxt(), (4096,), jnp.float32))
    params["fc2"] = (
        jax.random.normal(nxt(), (4096, 10), jnp.float32) / jnp.sqrt(4096.0),
        0.01 * jax.random.normal(nxt(), (10,), jnp.float32))
    return params


def robnet_light_forward(x, params):
    batch = x.shape[0]
    x = x.astype(BF16)
    # blocks 1..7; 2x2 max-pool fused into the 2nd conv's output pass for 1..6
    for bi, (_cin, _cout, _k, pad) in enumerate(BLOCK_CFG):
        for ci in range(2):
            w, b, g, be = params[f"b{bi + 1}c{ci + 1}"]
            do_pool = (ci == 1) and (bi < 6)
            x = conv_bn_relu(x, w, b, g, be, padding=pad, pool=do_pool)
    # AdaptiveAvgPool2d((1,1)) + flatten (spatial is 1x1 at this point).
    x = jnp.mean(x.astype(jnp.float32), axis=(1, 2)).astype(BF16)  # (N, 1024)
    w1, b1 = params["fc1"]
    h = gemm_bias(x, w1, b1)                  # (8, 4096), no stats epilogue
    w2, b2 = params["fc2"]
    logits = gemm_bias(h, w2, b2)             # (8, 10)
    probs = softmax_rows(logits)
    return probs[:batch]


if __name__ == "__main__":
    key = jax.random.PRNGKey(0)
    pkey, xkey = jax.random.split(key)
    params = init_params(pkey)

    # Smallest spatial size the architecture supports: six stride-2 max-pools
    # plus the two k=5/pad=1 blocks require H = W = 448 (1x1 feature map before
    # the adaptive avg pool).  NHWC layout; PyTorch NCHW equivalent (2,2,448,448).
    x = jax.random.normal(xkey, (2, 448, 448, 2), jnp.float32)

    out = robnet_light_forward(x, params)
    out = jax.block_until_ready(out)

    assert out.shape == (2, 10)
    assert bool(jnp.all(jnp.isfinite(out)))
    row_sums = jnp.sum(out, axis=1)
    assert bool(jnp.all(jnp.abs(row_sums - 1.0) < 1e-3))
    print("KERNEL_OK")
</pallas_src>

<mosaic_0001>
module attributes {stable_mosaic.version = 11 : i64} {
  func.func @_gemm_stats_kernel(%arg0: i32, %arg1: i32, %arg2: i32, %arg3: memref<2048x98xbf16, #tpu.memory_space<vmem>>, %arg4: memref<98x16xbf16, #tpu.memory_space<vmem>>, %arg5: memref<1x16xf32, #tpu.memory_space<vmem>>, %arg6: memref<2048x16xbf16, #tpu.memory_space<vmem>>, %arg7: memref<1x1x16xf32, #tpu.memory_space<vmem>>, %arg8: memref<1x1x16xf32, #tpu.memory_space<vmem>>, %arg9: memref<2048x16xf32, #tpu.memory_space<vmem>>) attributes {dimension_semantics = [#tpu.dimension_semantics<parallel>, #tpu.dimension_semantics<parallel>, #tpu.dimension_semantics<arbitrary>], iteration_bounds = array<i64: 196, 1, 1>, scalar_prefetch = 0 : i64, scratch_operands = 1 : i64, tpu.core_type = #tpu.core_type<tc>, window_params = [{transform_indices = @transform_0, window_bounds = array<i64: 2048, 98>}, {transform_indices = @transform_1, window_bounds = array<i64: 98, 16>}, {transform_indices = @transform_2, window_bounds = array<i64: 1, 16>}, {transform_indices = @transform_3, window_bounds = array<i64: 2048, 16>}, {transform_indices = @transform_4, window_bounds = array<i64: 1, 1, 16>}, {transform_indices = @transform_5, window_bounds = array<i64: 1, 1, 16>}]} {
    %c0_i32 = arith.constant 0 : i32
    %0 = arith.cmpi eq, %arg2, %c0_i32 : i32
    %1 = arith.extui %0 : i1 to i32
    %c0_i32_0 = arith.constant 0 : i32
    %2 = arith.cmpi ne, %1, %c0_i32_0 : i32
    scf.if %2 {
      %cst_10 = arith.constant 0.000000e+00 : f32
      %12 = vector.broadcast %cst_10 : f32 to vector<2048x16xf32>
      %c0_11 = arith.constant 0 : index
      %c0_12 = arith.constant 0 : index
      %13 = vector.load %arg9[%c0_11, %c0_12] : memref<2048x16xf32, #tpu.memory_space<vmem>>, vector<2048x16xf32>
      tpu.vector_store %arg9[%c0_11, %c0_12], %12 {strides = array<i32>} : memref<2048x16xf32, #tpu.memory_space<vmem>>, vector<2048x16xf32>,
    } else {
    }
    %c0 = arith.constant 0 : index
    %c0_1 = arith.constant 0 : index
    %3 = vector.load %arg9[%c0, %c0_1] : memref<2048x16xf32, #tpu.memory_space<vmem>>, vector<2048x16xf32>
    %c0_2 = arith.constant 0 : index
    %c0_3 = arith.constant 0 : index
    %4 = vector.load %arg3[%c0_2, %c0_3] : memref<2048x98xbf16, #tpu.memory_space<vmem>>, vector<2048x98xbf16>
    %c0_4 = arith.constant 0 : index
    %c0_5 = arith.constant 0 : index
    %5 = vector.load %arg4[%c0_4, %c0_5] : memref<98x16xbf16, #tpu.memory_space<vmem>>, vector<98x16xbf16>
    %cst = arith.constant dense<0.000000e+00> : vector<2048x16xf32>
    %6 = tpu.matmul %4, %5, %cst {dimension_numbers = #tpu.dot_dimension_numbers<[1], [0], [0], [1], [0, 0, 1, 1], [], []>} : vector<2048x98xbf16>, vector<98x16xbf16>, vector<2048x16xf32> -> vector<2048x16xf32>
    %7 = arith.addf %3, %6 : vector<2048x16xf32>
    %c0_6 = arith.constant 0 : index
    %c0_7 = arith.constant 0 : index
    %8 = vector.load %arg9[%c0_6, %c0_7] : memref<2048x16xf32, #tpu.memory_space<vmem>>, vector<2048x16xf32>
    tpu.vector_store %arg9[%c0_6, %c0_7], %7 {strides = array<i32>} : memref<2048x16xf32, #tpu.memory_space<vmem>>, vector<2048x16xf32>,
    %c0_i32_8 = arith.constant 0 : i32
    %9 = arith.cmpi eq, %arg2, %c0_i32_8 : i32
    %10 = arith.extui %9 : i1 to i32
    %c0_i32_9 = arith.constant 0 : i32
    %11 = arith.cmpi ne, %10, %c0_i32_9 : i32
    scf.if %11 {
      %c0_10 = arith.constant 0 : index
      %c0_11 = arith.constant 0 : index
      %12 = vector.load %arg9[%c0_10, %c0_11] : memref<2048x16xf32, #tpu.memory_space<vmem>>, vector<2048x16xf32>
      %c0_12 = arith.constant 0 : index
      %c0_13 = arith.constant 0 : index
      %13 = vector.load %arg5[%c0_12, %c0_13] : memref<1x16xf32, #tpu.memory_space<vmem>>, vector<1x16xf32>
      %14 = vector.broadcast %13 : vector<1x16xf32> to vector<2048x16xf32>
      %15 = arith.addf %12, %14 : vector<2048x16xf32>
      %16 = arith.truncf %15 : vector<2048x16xf32> to vector<2048x16xbf16>
      %c0_14 = arith.constant 0 : index
      %c0_15 = arith.constant 0 : index
      %17 = vector.load %arg6[%c0_14, %c0_15] : memref<2048x16xbf16, #tpu.memory_space<vmem>>, vector<2048x16xbf16>
      tpu.vector_store %arg6[%c0_14, %c0_15], %16 {strides = array<i32>} : memref<2048x16xbf16, #tpu.memory_space<vmem>>, vector<2048x16xbf16>,
      %cst_16 = arith.constant dense<0.000000e+00> : vector<16xf32>
      %18 = vector.multi_reduction <add>, %12, %cst_16 [0] : vector<2048x16xf32> to vector<16xf32>
      %19 = vector.shape_cast %18 : vector<16xf32> to vector<1x1x16xf32>
      %c0_17 = arith.constant 0 : index
      %c0_18 = arith.constant 0 : index
      %c0_19 = arith.constant 0 : index
      %20 = vector.load %arg7[%c0_17, %c0_18, %c0_19] : memref<1x1x16xf32, #tpu.memory_space<vmem>>, vector<1x1x16xf32>
      tpu.vector_store %arg7[%c0_17, %c0_18, %c0_19], %19 {strides = array<i32>} : memref<1x1x16xf32, #tpu.memory_space<vmem>>, vector<1x1x16xf32>,
      %21 = arith.mulf %12, %12 : vector<2048x16xf32>
      %cst_20 = arith.constant dense<0.000000e+00> : vector<16xf32>
      %22 = vector.multi_reduction <add>, %21, %cst_20 [0] : vector<2048x16xf32> to vector<16xf32>
      %23 = vector.shape_cast %22 : vector<16xf32> to vector<1x1x16xf32>
      %c0_21 = arith.constant 0 : index
      %c0_22 = arith.constant 0 : index
      %c0_23 = arith.constant 0 : index
      %24 = vector.load %arg8[%c0_21, %c0_22, %c0_23] : memref<1x1x16xf32, #tpu.memory_space<vmem>>, vector<1x1x16xf32>
      tpu.vector_store %arg8[%c0_21, %c0_22, %c0_23], %23 {strides = array<i32>} : memref<1x1x16xf32, #tpu.memory_space<vmem>>, vector<1x1x16xf32>,
    } else {
    }
    return
  }
  func.func @transform_0(%arg0: i32, %arg1: i32, %arg2: i32) -> (i32, i32) {
    %c0_i32 = arith.constant 0 : i32
    return %arg0, %arg2 : i32, i32
  }
  func.func @transform_1(%arg0: i32, %arg1: i32, %arg2: i32) -> (i32, i32) {
    %c0_i32 = arith.constant 0 : i32
    return %arg2, %arg1 : i32, i32
  }
  func.func @transform_2(%arg0: i32, %arg1: i32, %arg2: i32) -> (i32, i32) {
    %c0_i32 = arith.constant 0 : i32
    %c0_i32_0 = arith.constant 0 : i32
    return %c0_i32, %arg1 : i32, i32
  }
  func.func @transform_3(%arg0: i32, %arg1: i32, %arg2: i32) -> (i32, i32) {
    %c0_i32 = arith.constant 0 : i32
    return %arg0, %arg1 : i32, i32
  }
  func.func @transform_4(%arg0: i32, %arg1: i32, %arg2: i32) -> (i32, i32, i32) {
    %c0_i32 = arith.constant 0 : i32
    %c0_i32_0 = arith.constant 0 : i32
    return %arg0, %c0_i32, %arg1 : i32, i32, i32
  }
  func.func @transform_5(%arg0: i32, %arg1: i32, %arg2: i32) -> (i32, i32, i32) {
    %c0_i32 = arith.constant 0 : i32
    %c0_i32_0 = arith.constant 0 : i32
    return %arg0, %c0_i32, %arg1 : i32, i32, i32
  }
}

</mosaic_0001>

<bundles_post_ra>
// kernel: tpu_custom_call.1
= control target key start
LH: loop header
LB: loop body
LE: loop exit
PB: predicated region body
PF: predicated region fallthrough
CT: control target
= control target key end

     0   :  { %11 = vsyncpa [#allocation4], 0  ;;  %s12759_s0 = inlined_call_operand.hbm [shape: bf16[401408,98], index: 0, kind: input, shape index: {}]   ;;  %s12760_s1 = inlined_call_operand.vmem [shape: bf16[98,16], index: 1, kind: input, shape index: {}]   ;;  %s12761_s2 = inlined_call_operand.vmem [shape: f32[1,16], index: 2, kind: input, shape index: {}]   ;;  %s12762_s3 = inlined_call_operand.hbm [shape: bf16[401408,16], index: 3, kind: output, shape index: {0}]   ;;  %s12763_s4 = inlined_call_operand.vmem [shape: f32[196,1,16], index: 4, kind: output, shape index: {1}]   ;;  %s12764_s5 = inlined_call_operand.vmem [shape: f32[196,1,16], index: 5, kind: output, shape index: {2}]  }
   0x1   :  { %13 = vsyncpa [#allocation4 + $0x1], 0 }
   0x2   :  { %14 = vsyncpa [#allocation5], 0 }
   0x3   :  { %16 = vsyncpa [#allocation5 + $0x1], 0  ;;  %s8644_s18 = smov 0   ;;  %s8646_s19 = smov 0  }
   0x4   :  { %s8648_s20 = smov 0   ;;  %s8650_s21 = smov 0  }
   0x5   :  { %s8652_s22 = smov 0   ;;  %s8654_s23 = smov 0  }
   0x6 LB: > { %s7073_s24 = sadd.s32 4294967295, %s8605_s23   ;;  %s7074_s25 = sadd.s32 4294967294, %s8605_s23   ;;  %s8605_s23 = sphi %s8654_s23, %s22_s23   ;;  %s8601_s22 = sphi %s8652_s22, %s12890_s22   ;;  %s8597_s21 = sphi %s8650_s21, %s12889_s21   ;;  %s8593_s20 = sphi %s8648_s20, %s12888_s20   ;;  %s8589_s19 = sphi %s8646_s19, %s12887_s19   ;;  %s8585_s18 = sphi %s8644_s18, %s12886_s18  }
   0x7   : > { %s41_s26 = sadd.s32 1, %s8601_s22  ;;  %s50_s27 = sadd.s32 1, %s8593_s20 }
   0x8   : > { %p43_p0 = scmp.ge.s32.totalorder %s41_s26, 196  ;;  %p57_p1 = scmp.ne.s32.totalorder %s8593_s20, %s8589_s19 }
   0x9   : > { %p58_p2 = scmp.eq.s32.totalorder %s8605_s23, 0  ;;  %p63_p3 = scmp.ne.s32.totalorder %s8589_s19, %s8585_s18 }
   0xa   : > { %s12892_s26 = smov (%p43_p0, %s41_s26), 0  ;;  %p64_p5 = scmp.eq.s32.totalorder %s7073_s24, 0 }
   0xb   : > { %p8685_p4 = por %p58_p2, %p57_p1  ;;  %s45_s29 = ssub.s32 %s8601_s22, %s12892_s26 }
   0xc   : > { %p143_p6 = scmp.eq.s32.totalorder %s7073_s24, 195  ;;  %p48_p7 = scmp.eq.s32.totalorder %s45_s29, 0 }
   0xd   : > { %p8691_p8 = por %p64_p5, %p63_p3  ;;  %p149_p10 = scmp.eq.s32.totalorder %s7074_s25, 195 }
   0xe   : > { %p8695_p9 = por %p143_p6, %p57_p1  ;;  %p8301_p12 = scmp.lt.s32.totalorder %s8605_s23, 196 }
   0xf   : > { %s8700_s7 = scalar_select %p48_p7, %s8593_s20, %s50_s27  }
  0x10   : > { %p8702_p11 = por %p149_p10, %p63_p3  ;;  %s243_s9 = sand.u32 1, %s8593_s20  }
  0x11   : > { %s7079_s10 = sshll.u32 %s243_s9, 10  ;;  %s7610_s11 = sshll.u32 %s8601_s22, 14 }
  0x12   : > { %s254_s14 = scalar_lea.hbm %s12759_s0, %s7610_s11  ;;  %s247_s15 = scalar_lea.vmem [#allocation3], %s7079_s10 }
  0x13   : > { %s255_s16 = sshll.u32 %s247_s15, 4  ;;  %p8714_p13 = pnand %p8301_p12, %p8685_p4  ;;  %s256_s16 = int_to_ptr.vmem [resolvable:$true] %s255_s16 }
  0x14   : > { %p7082_p0 = scmp.ge.s32.totalorder %s8605_s23, 1  ;;  %s244_s24 = scalar_lea.sflag [#allocation4], %s243_s9 }
  0x15   : > { %p8499_p1 = pneg %p8714_p13  ;;  %s8510_s25 = scalar_lea.vmem %s256_s16, 16384 }
  0x16   : > { %p8511_p2 = scmp.ne.s32.totalorder %s256_s16, %s8510_s25  ;;  %s8607_s27 = smov [#allocation3]  }
  0x17   : > { %s8515_s29 = sshll.u32 %s8607_s27, 4  ;;  %s8516_s29 = int_to_ptr.vmem [resolvable:$false] %s8515_s29 }
  0x18   : > { %p8513_p3 = pnand %p8511_p2, %p8499_p1  ;;  %s8517_s10 = scalar_lea.vmem %s8516_s29, 32768 }
  0x19   : > { %p8518_p6 = scmp.lt.s32.totalorder %s256_s16, %s8516_s29  ;;  %p8519_p7 = scmp.lt.s32.totalorder %s8517_s10, %s8510_s25 }
  0x1a   : > { %p8514_p5 = pneg %p8513_p3 }
  0x1b   : > { %p8520_p10 = por %p8519_p7, %p8518_p6 }
  0x1d   : > { %p8521_p4 = pnand %p8520_p10, %p8514_p5 }
  0x1f   : > { %8524 = shalt.err (!%p8521_p4)
}
  0x20   : > { %s8608_s28 = smov 64   ;;  %s8609_s9 = smov 4  }
  0x21   : > { %8296 = dma.hbm_to_vmem [thread:$0]  (!%p8714_p13), %s254_s14, 16384, %s256_s16, %s244_s24, %s8608_s28, %s8608_s28, %s8609_s9  }
  0x22   : > { %p263_p12 = scmp.lt.s32.totalorder %s8605_s23, 197 }
  0x24   : > { %p264_p1 = pnand %p7082_p0, %p263_p12 }
  0x26   : > { %267 = sbr.rel (%p264_p1) target bundleno = 857 (0x359), region = 32 }
  0x2b   : > { %s8727_s11 = sand.u32 1, %s8589_s19  }
  0x2c   : > { %s7083_s12 = sshll.u32 %s8727_s11, 10  ;;  %s270_s13 = scalar_lea.sflag [#allocation4], %s8727_s11 }
  0x2d   : > { %s8733_s15 = scalar_lea.vmem [#allocation3], %s7083_s12 }
  0x2e   : > { %8576 = dma.done.wait (%p8691_p8), %s270_s13, 16384  }
  0x2f   : > { %8578 = vsyncadd (%p8691_p8), %s270_s13, 4294950912  ;;  %vm2200_vm0 = vcmask 1040384   ;;  %v8356_v0 = vld [vmem:[%s12760_s1 + $0x30] ss:$0 sps:$4 sm:$0x11]   ;;  %v8357_v1 = vld [vmem:[%s12760_s1 + $0x28] sm:$0xff]  }
  0x30   : > { %8287 = vmatprep.subr.msk.bf16.mxu0 %vm2200_vm0, %v8356_v0  ;;  %v2202_v2 = vsel %vm2200_vm0, %v8356_v0, 0  ;;  %8288 = vmatprep.subr.msk.bf16.mxu1 %vm2200_vm0, %v8356_v0  ;;  %v8358_v3 = vld [vmem:[%s12760_s1 + $0x20] sm:$0xff]   ;;  %vm1815_vm1 = vcmask 801792   ;;  %v8359_v5 = vld [vmem:[%s12760_s1 + $0x18] sm:$0xff]   ;;  %v8360_v6 = vld [vmem:[%s12760_s1 + $0x10] sm:$0xff]   ;;  %vm354_vm2 = vcmask 130048  }
  0x31   : > { %8004 = vmatpush3.bf16.msra.mxu0 %v2202_v2  ;;  %8280 = vmatpush3.bf16.msra.mxu1 %v2202_v2  ;;  %v8363_v4 = vld [vmem:[%s8733_s15] sm:$0xff]   ;;  %v8361_v7 = vld [vmem:[%s12760_s1 + $0x8] sm:$0xff]   ;;  %v8365_v10 = vld [vmem:[%s8733_s15 + $0x10] sm:$0xff]   ;;  %v8610_v25 = vmov 0.0   ;;  %vm5320_vm3 = vcmask 125952   ;;  %s9431_s25 = scalar_lea.vmem [#allocation6], %s7083_s12 }
  0x32   : > { %8005 = vmatprep.subr.bf16.mxu0 %v8357_v1  ;;  %8274 = vmatprep.subr.bf16.mxu1 %v8357_v1  ;;  %v8362_v8 = vld [vmem:[%s12760_s1] sm:$0xff]   ;;  %v8364_v9 = vld [vmem:[%s8733_s15 + $0x8] sm:$0xff]   ;;  %v8366_v11 = vld [vmem:[%s8733_s15 + $0x18] sm:$0xff]   ;;  %357 = vst.msk [vmem:[#allocation2 + $0x10] sm:$0xff] %vm354_vm2, %v8610_v25  ;;  %s7867_s24 = sshll.u32 %s8597_s21, 14  ;;  %s6897_s12 = sshll.u32 %s9431_s25, 4  ;;  %s12666_s12 = int_to_ptr.vmem [resolvable:$true] %s6897_s12 }
  0x33   : > { %8017 = vmatprep.mubr.msk.bf16.mxu0 %vm1815_vm1, %v8363_v4  ;;  %v8367_v12 = vld [vmem:[%s8733_s15 + $0x20] sm:$0xff]   ;;  %v8368_v13 = vld [vmem:[%s8733_s15 + $0x28] sm:$0xff]   ;;  %v8369_v14 = vld [vmem:[%s8733_s15 + $0x30] sm:$0xff]   ;;  %355 = vst.msk [vmem:[#allocation2] sm:$0xff] %vm354_vm2, %v8610_v25  ;;  %s12664_s29 = scalar_lea.hbm %s12762_s3, %s7867_s24  ;;  %s8525_s10 = scalar_lea.vmem %s12666_s12, 16384 }
  0x34   : > { %v8370_v15 = vld [vmem:[%s8733_s15 + $0x38] sm:$0xff]   ;;  %v8371_v16 = vld [vmem:[%s8733_s15 + $0x40] sm:$0xff]   ;;  %v8372_v17 = vld [vmem:[%s8733_s15 + $0x48] sm:$0xff]   ;;  %356 = vst.msk [vmem:[#allocation2 + $0x8] sm:$0xff] %vm354_vm2, %v8610_v25  ;;  %p8526_p8 = scmp.ne.s32.totalorder %s12666_s12, %s8525_s10  ;;  %s8611_s28 = smov [#allocation6]  }
  0x35   : > { %8006 = vmatpush3.bf16.msra.mxu0 %v8357_v1  ;;  %8281 = vmatpush3.bf16.msra.mxu1 %v8357_v1  ;;  %v8373_v18 = vld [vmem:[%s8733_s15 + $0x50] sm:$0xff]   ;;  %v8374_v19 = vld [vmem:[%s8733_s15 + $0x58] sm:$0xff]   ;;  %v8375_v20 = vld [vmem:[%s8733_s15 + $0x60] sm:$0xff]   ;;  %358 = vst.msk [vmem:[#allocation2 + $0x18] sm:$0xff] %vm354_vm2, %v8610_v25  ;;  %s8529_s9 = sshll.u32 %s8611_s28, 4  ;;  %s8530_s9 = int_to_ptr.vmem [resolvable:$false] %s8529_s9 }
  0x36   : > { %8007 = vmatprep.subr.bf16.mxu0 %v8358_v3  ;;  %8275 = vmatprep.subr.bf16.mxu1 %v8358_v3  ;;  %v8376_v21 = vld [vmem:[%s8733_s15 + $0x68] sm:$0xff]   ;;  %v8377_v22 = vld [vmem:[%s8733_s15 + $0x70] sm:$0xff]   ;;  %v8378_v23 = vld [vmem:[%s8733_s15 + $0x78] sm:$0xff]   ;;  %359 = vst.msk [vmem:[#allocation2 + $0x20] sm:$0xff] %vm354_vm2, %v8610_v25  ;;  %p8527_p13 = pnand %p8526_p8, %p8695_p9  ;;  %s8531_s13 = scalar_lea.vmem %s8530_s9, 32768 }
  0x37   : > { %v8379_v24 = vld [vmem:[%s8733_s15 + $0x80] sm:$0xff]   ;;  %360 = vst.msk [vmem:[#allocation2 + $0x28] sm:$0xff] %vm354_vm2, %v8610_v25  ;;  %361 = vst.msk [vmem:[#allocation2 + $0x30] sm:$0xff] %vm354_vm2, %v8610_v25  ;;  %v8380_v26 = vld [vmem:[%s8733_s15 + $0x88] sm:$0xff]   ;;  %p8532_p2 = scmp.lt.s32.totalorder %s12666_s12, %s8530_s9  ;;  %p8533_p3 = scmp.lt.s32.totalorder %s8531_s13, %s8525_s10 }
  0x38   : > { %362 = vst.msk [vmem:[#allocation2 + $0x38] sm:$0xff] %vm354_vm2, %v8610_v25  ;;  %363 = vst.msk [vmem:[#allocation2 + $0x40] sm:$0xff] %vm354_vm2, %v8610_v25  ;;  %v8381_v27 = vld [vmem:[%s8733_s15 + $0x90] sm:$0xff]   ;;  %v8382_v28 = vld [vmem:[%s8733_s15 + $0x98] sm:$0xff]   ;;  %p8528_p0 = pneg %p8527_p13 }
  0x39   : > { %8008 = vmatpush3.bf16.msra.mxu0 %v8358_v3  ;;  %8282 = vmatpush3.bf16.msra.mxu1 %v8358_v3  ;;  %364 = vst.msk [vmem:[#allocation2 + $0x48] sm:$0xff] %vm354_vm2, %v8610_v25  ;;  %365 = vst.msk [vmem:[#allocation2 + $0x50] sm:$0xff] %vm354_vm2, %v8610_v25  ;;  %v8383_v29 = vld [vmem:[%s8733_s15 + $0xa0] sm:$0xff]   ;;  %v8384_v30 = vld [vmem:[%s8733_s15 + $0xa8] sm:$0xff]   ;;  %p8534_p5 = por %p8533_p3, %p8532_p2 }
  0x3a   : > { %8009 = vmatprep.subr.bf16.mxu0 %v8359_v5  ;;  %8276 = vmatprep.subr.bf16.mxu1 %v8359_v5  ;;  %366 = vst.msk [vmem:[#allocation2 + $0x58] sm:$0xff] %vm354_vm2, %v8610_v25  ;;  %367 = vst.msk [vmem:[#allocation2 + $0x60] sm:$0xff] %vm354_vm2, %v8610_v25  ;;  %v8385_v31 = vld [vmem:[%s8733_s15 + $0xb0] sm:$0xff]   ;;  %v8386_v32 = vld [vmem:[%s8733_s15 + $0xb8] sm:$0xff]  }
  0x3b   : > { %368 = vst.msk [vmem:[#allocation2 + $0x68] sm:$0xff] %vm354_vm2, %v8610_v25  ;;  %369 = vst.msk [vmem:[#allocation2 + $0x70] sm:$0xff] %vm354_vm2, %v8610_v25  ;;  %v8387_v33 = vld [vmem:[%s8733_s15 + $0xc0] sm:$0xff]   ;;  %v8388_v34 = vld [vmem:[%s8733_s15 + $0xc8] sm:$0xff]   ;;  %p8535_p6 = pnand %p8534_p5, %p8528_p0 }
  0x3c   : > { %370 = vst.msk [vmem:[#allocation2 + $0x78] sm:$0xff] %vm354_vm2, %v8610_v25  ;;  %371 = vst.msk [vmem:[#allocation2 + $0x80] sm:$0xff] %vm354_vm2, %v8610_v25  ;;  %v8389_v35 = vld [vmem:[%s8733_s15 + $0xd0] sm:$0xff]   ;;  %v8390_v36 = vld [vmem:[%s8733_s15 + $0xd8] sm:$0xff]  }
  0x3d   : > { %8010 = vmatpush3.bf16.msra.mxu0 %v8359_v5  ;;  %8283 = vmatpush3.bf16.msra.mxu1 %v8359_v5  ;;  %372 = vst.msk [vmem:[#allocation2 + $0x88] sm:$0xff] %vm354_vm2, %v8610_v25  ;;  %373 = vst.msk [vmem:[#allocation2 + $0x90] sm:$0xff] %vm354_vm2, %v8610_v25  ;;  %v8391_v37 = vld [vmem:[%s8733_s15 + $0xe0] sm:$0xff]   ;;  %v8392_v38 = vld [vmem:[%s8733_s15 + $0xe8] sm:$0xff]  }
  0x3e   : > { %8011 = vmatprep.subr.bf16.mxu0 %v8360_v6  ;;  %8277 = vmatprep.subr.bf16.mxu1 %v8360_v6  ;;  %374 = vst.msk [vmem:[#allocation2 + $0x98] sm:$0xff] %vm354_vm2, %v8610_v25  ;;  %375 = vst.msk [vmem:[#allocation2 + $0xa0] sm:$0xff] %vm354_vm2, %v8610_v25  ;;  %v8393_v39 = vld [vmem:[%s8733_s15 + $0xf0] sm:$0xff]   ;;  %v8394_v40 = vld [vmem:[%s8733_s15 + $0xf8] sm:$0xff]  }
  0x3f   : > { %376 = vst.msk [vmem:[#allocation2 + $0xa8] sm:$0xff] %vm354_vm2, %v8610_v25  ;;  %377 = vst.msk [vmem:[#allocation2 + $0xb0] sm:$0xff] %vm354_vm2, %v8610_v25  ;;  %v8395_v41 = vld [vmem:[%s8733_s15 + $0x100] sm:$0xff]   ;;  %v8396_v42 = vld [vmem:[%s8733_s15 + $0x108] sm:$0xff]  }
  0x40   : > { %378 = vst.msk [vmem:[#allocation2 + $0xb8] sm:$0xff] %vm354_vm2, %v8610_v25  ;;  %379 = vst.msk [vmem:[#allocation2 + $0xc0] sm:$0xff] %vm354_vm2, %v8610_v25  ;;  %v8397_v43 = vld [vmem:[%s8733_s15 + $0x110] sm:$0xff]   ;;  %v8427_v44 = vld [vmem:[%s8733_s15 + $0x200] sm:$0xff]  }
  0x41   : > { %8012 = vmatpush3.bf16.msra.mxu0 %v8360_v6  ;;  %8284 = vmatpush3.bf16.msra.mxu1 %v8360_v6  ;;  %380 = vst.msk [vmem:[#allocation2 + $0xc8] sm:$0xff] %vm354_vm2, %v8610_v25  ;;  %381 = vst.msk [vmem:[#allocation2 + $0xd0] sm:$0xff] %vm354_vm2, %v8610_v25  ;;  %v8428_v45 = vld [vmem:[%s8733_s15 + $0x208] sm:$0xff]   ;;  %v8398_v46 = vld [vmem:[%s8733_s15 + $0x118] sm:$0xff]  }
  0x42   : > { %8013 = vmatprep.subr.bf16.mxu0 %v8361_v7  ;;  %8278 = vmatprep.subr.bf16.mxu1 %v8361_v7  ;;  %382 = vst.msk [vmem:[#allocation2 + $0xd8] sm:$0xff] %vm354_vm2, %v8610_v25  ;;  %383 = vst.msk [vmem:[#allocation2 + $0xe0] sm:$0xff] %vm354_vm2, %v8610_v25  ;;  %v8399_v47 = vld [vmem:[%s8733_s15 + $0x120] sm:$0xff]   ;;  %v8429_v48 = vld [vmem:[%s8733_s15 + $0x210] sm:$0xff]  }
  0x43   : > { %384 = vst.msk [vmem:[#allocation2 + $0xe8] sm:$0xff] %vm354_vm2, %v8610_v25  ;;  %385 = vst.msk [vmem:[#allocation2 + $0xf0] sm:$0xff] %vm354_vm2, %v8610_v25  ;;  %8145 = vmatprep.mubr.msk.bf16.mxu1 %vm1815_vm1, %v8427_v44  ;;  %v8430_v49 = vld [vmem:[%s8733_s15 + $0x218] sm:$0xff]   ;;  %v8400_v50 = vld [vmem:[%s8733_s15 + $0x128] sm:$0xff]  }
  0x44   : > { %386 = vst.msk [vmem:[#allocation2 + $0xf8] sm:$0xff] %vm354_vm2, %v8610_v25  ;;  %387 = vst.msk [vmem:[#allocation2 + $0x100] sm:$0xff] %vm354_vm2, %v8610_v25  ;;  %v8401_v51 = vld [vmem:[%s8733_s15 + $0x130] sm:$0xff]   ;;  %v8431_v52 = vld [vmem:[%s8733_s15 + $0x220] sm:$0xff]  }
  0x45   : > { %8014 = vmatpush3.bf16.msra.mxu0 %v8361_v7  ;;  %8285 = vmatpush3.bf16.msra.mxu1 %v8361_v7  ;;  %388 = vst.msk [vmem:[#allocation2 + $0x108] sm:$0xff] %vm354_vm2, %v8610_v25  ;;  %389 = vst.msk [vmem:[#allocation2 + $0x110] sm:$0xff] %vm354_vm2, %v8610_v25  ;;  %v8402_v53 = vld [vmem:[%s8733_s15 + $0x138] sm:$0xff]   ;;  %v8403_v54 = vld [vmem:[%s8733_s15 + $0x140] sm:$0xff]  }
  0x46   : > { %8015 = vmatprep.subr.bf16.mxu0 %v8362_v8  ;;  %8279 = vmatprep.subr.bf16.mxu1 %v8362_v8  ;;  %390 = vst.msk [vmem:[#allocation2 + $0x118] sm:$0xff] %vm354_vm2, %v8610_v25  ;;  %391 = vst.msk [vmem:[#allocation2 + $0x120] sm:$0xff] %vm354_vm2, %v8610_v25  ;;  %v8432_v55 = vld [vmem:[%s8733_s15 + $0x228] sm:$0xff]   ;;  %v8405_v57 = vld [vmem:[%s8733_s15 + $0x150] sm:$0xff]  }
  0x47   : > { %392 = vst.msk [vmem:[#allocation2 + $0x128] sm:$0xff] %vm354_vm2, %v8610_v25  ;;  %393 = vst.msk [vmem:[#allocation2 + $0x130] sm:$0xff] %vm354_vm2, %v8610_v25  ;;  %v8404_v56 = vld [vmem:[%s8733_s15 + $0x148] sm:$0xff]   ;;  %v8433_v58 = vld [vmem:[%s8733_s15 + $0x230] sm:$0xff]  }
  0x48   : > { %394 = vst.msk [vmem:[#allocation2 + $0x138] sm:$0xff] %vm354_vm2, %v8610_v25  ;;  %395 = vst.msk [vmem:[#allocation2 + $0x140] sm:$0xff] %vm354_vm2, %v8610_v25  ;;  %v8434_v59 = vld [vmem:[%s8733_s15 + $0x238] sm:$0xff]   ;;  %v8407_v61 = vld [vmem:[%s8733_s15 + $0x160] sm:$0xff]  }
  0x49   : > { %8016 = vmatpush3.bf16.msra.mxu0 %v8362_v8  ;;  %8286 = vmatpush3.bf16.msra.mxu1 %v8362_v8  ;;  %396 = vst.msk [vmem:[#allocation2 + $0x148] sm:$0xff] %vm354_vm2, %v8610_v25  ;;  %397 = vst.msk [vmem:[#allocation2 + $0x150] sm:$0xff] %vm354_vm2, %v8610_v25  ;;  %v8406_v60 = vld [vmem:[%s8733_s15 + $0x158] sm:$0xff]   ;;  %v8435_v62 = vld [vmem:[%s8733_s15 + $0x240] sm:$0xff]  }
  0x4a   : > { %398 = vst.msk [vmem:[#allocation2 + $0x158] sm:$0xff] %vm354_vm2, %v8610_v25  ;;  %399 = vst.msk [vmem:[#allocation2 + $0x160] sm:$0xff] %vm354_vm2, %v8610_v25  ;;  %v8436_v63 = vld [vmem:[%s8733_s15 + $0x248] sm:$0xff]   ;;  %v8409_v1 = vld [vmem:[%s8733_s15 + $0x170] sm:$0xff]  }
  0x4b   : > { %400 = vst.msk [vmem:[#allocation2 + $0x168] sm:$0xff] %vm354_vm2, %v8610_v25  ;;  %401 = vst.msk [vmem:[#allocation2 + $0x170] sm:$0xff] %vm354_vm2, %v8610_v25  ;;  %v8408_v0 = vld [vmem:[%s8733_s15 + $0x168] sm:$0xff]   ;;  %v8437_v2 = vld [vmem:[%s8733_s15 + $0x250] sm:$0xff]  }
  0x4c   : > { %8018 = vmatmul.mubr.msk.bf16.vlgmr.msra.gmra.mxu0 %vm1815_vm1, %v8364_v9  ;;  %402 = vst.msk [vmem:[#allocation2 + $0x178] sm:$0xff] %vm354_vm2, %v8610_v25  ;;  %403 = vst.msk [vmem:[#allocation2 + $0x180] sm:$0xff] %vm354_vm2, %v8610_v25  ;;  %8146 = vmatmul.mubr.msk.bf16.vlgmr.msra.gmra.mxu1 %vm1815_vm1, %v8428_v45  ;;  %v8438_v3 = vld [vmem:[%s8733_s15 + $0x258] sm:$0xff]   ;;  %v8411_v5 = vld [vmem:[%s8733_s15 + $0x180] sm:$0xff]  }
  0x4d   : > { %8021 = vmatprep.mubr.msk.bf16.mxu0 %vm1815_vm1, %v8365_v10  ;;  %404 = vst.msk [vmem:[#allocation2 + $0x188] sm:$0xff] %vm354_vm2, %v8610_v25  ;;  %405 = vst.msk [vmem:[#allocation2 + $0x190] sm:$0xff] %vm354_vm2, %v8610_v25  ;;  %8149 = vmatprep.mubr.msk.bf16.mxu1 %vm1815_vm1, %v8429_v48  ;;  %v8410_v4 = vld [vmem:[%s8733_s15 + $0x178] sm:$0xff]   ;;  %v8439_v6 = vld [vmem:[%s8733_s15 + $0x260] sm:$0xff]  }
  0x4e   : > { %406 = vst.msk [vmem:[#allocation2 + $0x198] sm:$0xff] %vm354_vm2, %v8610_v25  ;;  %407 = vst.msk [vmem:[#allocation2 + $0x1a0] sm:$0xff] %vm354_vm2, %v8610_v25  ;;  %v8440_v7 = vld [vmem:[%s8733_s15 + $0x268] sm:$0xff]   ;;  %v8413_v9 = vld [vmem:[%s8733_s15 + $0x190] sm:$0xff]  }
  0x4f   : > { %408 = vst.msk [vmem:[#allocation2 + $0x1a8] sm:$0xff] %vm354_vm2, %v8610_v25  ;;  %409 = vst.msk [vmem:[#allocation2 + $0x1b0] sm:$0xff] %vm354_vm2, %v8610_v25  ;;  %v8412_v8 = vld [vmem:[%s8733_s15 + $0x188] sm:$0xff]   ;;  %v613_v10 = vld [vmem:[#allocation2 + $0x10] sm:$0xff] }
  0x50   : > { %410 = vst.msk [vmem:[#allocation2 + $0x1b8] sm:$0xff] %vm354_vm2, %v8610_v25  ;;  %411 = vst.msk [vmem:[#allocation2 + $0x1c0] sm:$0xff] %vm354_vm2, %v8610_v25  ;;  %v8417_v44 = vld [vmem:[%s8733_s15 + $0x1b0] sm:$0xff]  }
  0x51   : > { %412 = vst.msk [vmem:[#allocation2 + $0x1c8] sm:$0xff] %vm354_vm2, %v8610_v25  ;;  %413 = vst.msk [vmem:[#allocation2 + $0x1d0] sm:$0xff] %vm354_vm2, %v8610_v25 }
  0x52   : > { %414 = vst.msk [vmem:[#allocation2 + $0x1d8] sm:$0xff] %vm354_vm2, %v8610_v25  ;;  %415 = vst.msk [vmem:[#allocation2 + $0x1e0] sm:$0xff] %vm354_vm2, %v8610_v25 }
  0x53   : > { %416 = vst.msk [vmem:[#allocation2 + $0x1e8] sm:$0xff] %vm354_vm2, %v8610_v25  ;;  %417 = vst.msk [vmem:[#allocation2 + $0x1f0] sm:$0xff] %vm354_vm2, %v8610_v25 }
  0x54   : > { %8022 = vmatmul.mubr.msk.bf16.gmra.mxu0 %vm1815_vm1, %v8366_v11  ;;  %418 = vst.msk [vmem:[#allocation2 + $0x1f8] sm:$0xff] %vm354_vm2, %v8610_v25  ;;  %419 = vst.msk [vmem:[#allocation2 + $0x200] sm:$0xff] %vm354_vm2, %v8610_v25  ;;  %8150 = vmatmul.mubr.msk.bf16.gmra.mxu1 %vm1815_vm1, %v8430_v49 }
  0x55   : > { %8025 = vmatprep.mubr.msk.bf16.mxu0 %vm1815_vm1, %v8367_v12  ;;  %420 = vst.msk [vmem:[#allocation2 + $0x208] sm:$0xff] %vm354_vm2, %v8610_v25  ;;  %421 = vst.msk [vmem:[#allocation2 + $0x210] sm:$0xff] %vm354_vm2, %v8610_v25  ;;  %8153 = vmatprep.mubr.msk.bf16.mxu1 %vm1815_vm1, %v8431_v52  ;;  %v611_v12 = vld [vmem:[#allocation2] sm:$0xff] }
  0x56   : > { %422 = vst.msk [vmem:[#allocation2 + $0x218] sm:$0xff] %vm354_vm2, %v8610_v25  ;;  %423 = vst.msk [vmem:[#allocation2 + $0x220] sm:$0xff] %vm354_vm2, %v8610_v25 }
  0x57   : > { %424 = vst.msk [vmem:[#allocation2 + $0x228] sm:$0xff] %vm354_vm2, %v8610_v25  ;;  %425 = vst.msk [vmem:[#allocation2 + $0x230] sm:$0xff] %vm354_vm2, %v8610_v25 }
  0x58   : > { %426 = vst.msk [vmem:[#allocation2 + $0x238] sm:$0xff] %vm354_vm2, %v8610_v25  ;;  %427 = vst.msk [vmem:[#allocation2 + $0x240] sm:$0xff] %vm354_vm2, %v8610_v25 }
  0x59   : > { %428 = vst.msk [vmem:[#allocation2 + $0x248] sm:$0xff] %vm354_vm2, %v8610_v25  ;;  %429 = vst.msk [vmem:[#allocation2 + $0x250] sm:$0xff] %vm354_vm2, %v8610_v25 }
  0x5a   : > { %430 = vst.msk [vmem:[#allocation2 + $0x258] sm:$0xff] %vm354_vm2, %v8610_v25  ;;  %431 = vst.msk [vmem:[#allocation2 + $0x260] sm:$0xff] %vm354_vm2, %v8610_v25 }
  0x5b   : > { %432 = vst.msk [vmem:[#allocation2 + $0x268] sm:$0xff] %vm354_vm2, %v8610_v25  ;;  %433 = vst.msk [vmem:[#allocation2 + $0x270] sm:$0xff] %vm354_vm2, %v8610_v25 }
  0x5c   : > { %8026 = vmatmul.mubr.msk.bf16.gmra.mxu0 %vm1815_vm1, %v8368_v13  ;;  %434 = vst.msk [vmem:[#allocation2 + $0x278] sm:$0xff] %vm354_vm2, %v8610_v25  ;;  %435 = vst.msk [vmem:[#allocation2 + $0x280] sm:$0xff] %vm354_vm2, %v8610_v25  ;;  %8154 = vmatmul.mubr.msk.bf16.gmra.mxu1 %vm1815_vm1, %v8432_v55 }
  0x5d   : > { %8029 = vmatprep.mubr.msk.bf16.mxu0 %vm1815_vm1, %v8369_v14  ;;  %436 = vst.msk [vmem:[#allocation2 + $0x288] sm:$0xff] %vm354_vm2, %v8610_v25  ;;  %437 = vst.msk [vmem:[#allocation2 + $0x290] sm:$0xff] %vm354_vm2, %v8610_v25  ;;  %8157 = vmatprep.mubr.msk.bf16.mxu1 %vm1815_vm1, %v8433_v58  ;;  %v8441_v14 = vld [vmem:[%s8733_s15 + $0x270] sm:$0xff]  }
  0x5e   : > { %438 = vst.msk [vmem:[#allocation2 + $0x298] sm:$0xff] %vm354_vm2, %v8610_v25  ;;  %439 = vst.msk [vmem:[#allocation2 + $0x2a0] sm:$0xff] %vm354_vm2, %v8610_v25 }
  0x5f   : > { %440 = vst.msk [vmem:[#allocation2 + $0x2a8] sm:$0xff] %vm354_vm2, %v8610_v25  ;;  %441 = vst.msk [vmem:[#allocation2 + $0x2b0] sm:$0xff] %vm354_vm2, %v8610_v25 }
  0x60   : > { %442 = vst.msk [vmem:[#allocation2 + $0x2b8] sm:$0xff] %vm354_vm2, %v8610_v25  ;;  %443 = vst.msk [vmem:[#allocation2 + $0x2c0] sm:$0xff] %vm354_vm2, %v8610_v25 }
  0x61   : > { %444 = vst.msk [vmem:[#allocation2 + $0x2c8] sm:$0xff] %vm354_vm2, %v8610_v25  ;;  %445 = vst.msk [vmem:[#allocation2 + $0x2d0] sm:$0xff] %vm354_vm2, %v8610_v25 }
  0x62   : > { %446 = vst.msk [vmem:[#allocation2 + $0x2d8] sm:$0xff] %vm354_vm2, %v8610_v25  ;;  %447 = vst.msk [vmem:[#allocation2 + $0x2e0] sm:$0xff] %vm354_vm2, %v8610_v25 }
  0x63   : > { %448 = vst.msk [vmem:[#allocation2 + $0x2e8] sm:$0xff] %vm354_vm2, %v8610_v25  ;;  %449 = vst.msk [vmem:[#allocation2 + $0x2f0] sm:$0xff] %vm354_vm2, %v8610_v25 }
  0x64   : > { %8030 = vmatmul.mubr.msk.bf16.gmra.mxu0 %vm1815_vm1, %v8370_v15  ;;  %450 = vst.msk [vmem:[#allocation2 + $0x2f8] sm:$0xff] %vm354_vm2, %v8610_v25  ;;  %451 = vst.msk [vmem:[#allocation2 + $0x300] sm:$0xff] %vm354_vm2, %v8610_v25  ;;  %8158 = vmatmul.mubr.msk.bf16.gmra.mxu1 %vm1815_vm1, %v8434_v59  ;;  %v619_v59 = vld [vmem:[#allocation2 + $0x40] sm:$0xff] }
  0x65   : > { %8033 = vmatprep.mubr.msk.bf16.mxu0 %vm1815_vm1, %v8371_v16  ;;  %452 = vst.msk [vmem:[#allocation2 + $0x308] sm:$0xff] %vm354_vm2, %v8610_v25  ;;  %453 = vst.msk [vmem:[#allocation2 + $0x310] sm:$0xff] %vm354_vm2, %v8610_v25  ;;  %8161 = vmatprep.mubr.msk.bf16.mxu1 %vm1815_vm1, %v8435_v62  ;;  %v614_v16 = vld [vmem:[#allocation2 + $0x18] sm:$0xff] }
  0x66   : > { %454 = vst.msk [vmem:[#allocation2 + $0x318] sm:$0xff] %vm354_vm2, %v8610_v25  ;;  %455 = vst.msk [vmem:[#allocation2 + $0x320] sm:$0xff] %vm354_vm2, %v8610_v25 }
  0x67   : > { %456 = vst.msk [vmem:[#allocation2 + $0x328] sm:$0xff] %vm354_vm2, %v8610_v25  ;;  %457 = vst.msk [vmem:[#allocation2 + $0x330] sm:$0xff] %vm354_vm2, %v8610_v25 }
  0x68   : > { %458 = vst.msk [vmem:[#allocation2 + $0x338] sm:$0xff] %vm354_vm2, %v8610_v25  ;;  %459 = vst.msk [vmem:[#allocation2 + $0x340] sm:$0xff] %vm354_vm2, %v8610_v25 }
  0x69   : > { %460 = vst.msk [vmem:[#allocation2 + $0x348] sm:$0xff] %vm354_vm2, %v8610_v25  ;;  %461 = vst.msk [vmem:[#allocation2 + $0x350] sm:$0xff] %vm354_vm2, %v8610_v25 }
  0x6a   : > { %462 = vst.msk [vmem:[#allocation2 + $0x358] sm:$0xff] %vm354_vm2, %v8610_v25  ;;  %463 = vst.msk [vmem:[#allocation2 + $0x360] sm:$0xff] %vm354_vm2, %v8610_v25 }
  0x6b   : > { %464 = vst.msk [vmem:[#allocation2 + $0x368] sm:$0xff] %vm354_vm2, %v8610_v25  ;;  %465 = vst.msk [vmem:[#allocation2 + $0x370] sm:$0xff] %vm354_vm2, %v8610_v25 }
  0x6c   : > { %8034 = vmatmul.mubr.msk.bf16.gmra.mxu0 %vm1815_vm1, %v8372_v17  ;;  %466 = vst.msk [vmem:[#allocation2 + $0x378] sm:$0xff] %vm354_vm2, %v8610_v25  ;;  %467 = vst.msk [vmem:[#allocation2 + $0x380] sm:$0xff] %vm354_vm2, %v8610_v25  ;;  %8162 = vmatmul.mubr.msk.bf16.gmra.mxu1 %vm1815_vm1, %v8436_v63  ;;  %v8442_v17 = vld [vmem:[%s8733_s15 + $0x278] sm:$0xff]  }
  0x6d   : > { %8037 = vmatprep.mubr.msk.bf16.mxu0 %vm1815_vm1, %v8373_v18  ;;  %468 = vst.msk [vmem:[#allocation2 + $0x388] sm:$0xff] %vm354_vm2, %v8610_v25  ;;  %469 = vst.msk [vmem:[#allocation2 + $0x390] sm:$0xff] %vm354_vm2, %v8610_v25  ;;  %8165 = vmatprep.mubr.msk.bf16.mxu1 %vm1815_vm1, %v8437_v2 }
  0x6e   : > { %470 = vst.msk [vmem:[#allocation2 + $0x398] sm:$0xff] %vm354_vm2, %v8610_v25  ;;  %471 = vst.msk [vmem:[#allocation2 + $0x3a0] sm:$0xff] %vm354_vm2, %v8610_v25 }
  0x6f   : > { %472 = vst.msk [vmem:[#allocation2 + $0x3a8] sm:$0xff] %vm354_vm2, %v8610_v25  ;;  %473 = vst.msk [vmem:[#allocation2 + $0x3b0] sm:$0xff] %vm354_vm2, %v8610_v25 }
  0x70   : > { %474 = vst.msk [vmem:[#allocation2 + $0x3b8] sm:$0xff] %vm354_vm2, %v8610_v25  ;;  %475 = vst.msk [vmem:[#allocation2 + $0x3c0] sm:$0xff] %vm354_vm2, %v8610_v25 }
  0x71   : > { %476 = vst.msk [vmem:[#allocation2 + $0x3c8] sm:$0xff] %vm354_vm2, %v8610_v25  ;;  %477 = vst.msk [vmem:[#allocation2 + $0x3d0] sm:$0xff] %vm354_vm2, %v8610_v25 }
  0x72   : > { %478 = vst.msk [vmem:[#allocation2 + $0x3d8] sm:$0xff] %vm354_vm2, %v8610_v25  ;;  %479 = vst.msk [vmem:[#allocation2 + $0x3e0] sm:$0xff] %vm354_vm2, %v8610_v25 }
  0x73   : > { %480 = vst.msk [vmem:[#allocation2 + $0x3e8] sm:$0xff] %vm354_vm2, %v8610_v25  ;;  %481 = vst.msk [vmem:[#allocation2 + $0x3f0] sm:$0xff] %vm354_vm2, %v8610_v25 }
  0x74   : > { %8038 = vmatmul.mubr.msk.bf16.gmra.mxu0 %vm1815_vm1, %v8374_v19  ;;  %482 = vst.msk [vmem:[#allocation2 + $0x3f8] sm:$0xff] %vm354_vm2, %v8610_v25  ;;  %483 = vst.msk [vmem:[#allocation2 + $0x400] sm:$0xff] %vm354_vm2, %v8610_v25  ;;  %8166 = vmatmul.mubr.msk.bf16.gmra.mxu1 %vm1815_vm1, %v8438_v3 }
  0x75   : > { %8041 = vmatprep.mubr.msk.bf16.mxu0 %vm1815_vm1, %v8375_v20  ;;  %484 = vst.msk [vmem:[#allocation2 + $0x408] sm:$0xff] %vm354_vm2, %v8610_v25  ;;  %485 = vst.msk [vmem:[#allocation2 + $0x410] sm:$0xff] %vm354_vm2, %v8610_v25  ;;  %8169 = vmatprep.mubr.msk.bf16.mxu1 %vm1815_vm1, %v8439_v6  ;;  %v612_v20 = vld [vmem:[#allocation2 + $0x8] sm:$0xff] }
  0x76   : > { %486 = vst.msk [vmem:[#allocation2 + $0x418] sm:$0xff] %vm354_vm2, %v8610_v25  ;;  %487 = vst.msk [vmem:[#allocation2 + $0x420] sm:$0xff] %vm354_vm2, %v8610_v25 }
  0x77   : > { %488 = vst.msk [vmem:[#allocation2 + $0x428] sm:$0xff] %vm354_vm2, %v8610_v25  ;;  %489 = vst.msk [vmem:[#allocation2 + $0x430] sm:$0xff] %vm354_vm2, %v8610_v25 }
  0x78   : > { %490 = vst.msk [vmem:[#allocation2 + $0x438] sm:$0xff] %vm354_vm2, %v8610_v25  ;;  %491 = vst.msk [vmem:[#allocation2 + $0x440] sm:$0xff] %vm354_vm2, %v8610_v25 }
  0x79   : > { %492 = vst.msk [vmem:[#allocation2 + $0x448] sm:$0xff] %vm354_vm2, %v8610_v25  ;;  %493 = vst.msk [vmem:[#allocation2 + $0x450] sm:$0xff] %vm354_vm2, %v8610_v25 }
  0x7a   : > { %494 = vst.msk [vmem:[#allocation2 + $0x458] sm:$0xff] %vm354_vm2, %v8610_v25  ;;  %495 = vst.msk [vmem:[#allocation2 + $0x460] sm:$0xff] %vm354_vm2, %v8610_v25 }
  0x7b   : > { %496 = vst.msk [vmem:[#allocation2 + $0x468] sm:$0xff] %vm354_vm2, %v8610_v25  ;;  %497 = vst.msk [vmem:[#allocation2 + $0x470] sm:$0xff] %vm354_vm2, %v8610_v25 }
  0x7c   : > { %8042 = vmatmul.mubr.msk.bf16.gmra.mxu0 %vm1815_vm1, %v8376_v21  ;;  %498 = vst.msk [vmem:[#allocation2 + $0x478] sm:$0xff] %vm354_vm2, %v8610_v25  ;;  %499 = vst.msk [vmem:[#allocation2 + $0x480] sm:$0xff] %vm354_vm2, %v8610_v25  ;;  %8170 = vmatmul.mubr.msk.bf16.gmra.mxu1 %vm1815_vm1, %v8440_v7  ;;  %v8414_v21 = vld [vmem:[%s8733_s15 + $0x198] sm:$0xff]  }
  0x7d   : > { %8045 = vmatprep.mubr.msk.bf16.mxu0 %vm1815_vm1, %v8377_v22  ;;  %500 = vst.msk [vmem:[#allocation2 + $0x488] sm:$0xff] %vm354_vm2, %v8610_v25  ;;  %501 = vst.msk [vmem:[#allocation2 + $0x490] sm:$0xff] %vm354_vm2, %v8610_v25  ;;  %8173 = vmatprep.mubr.msk.bf16.mxu1 %vm1815_vm1, %v8441_v14  ;;  %v622_v7 = vld [vmem:[#allocation2 + $0x58] sm:$0xff]  ;;  %v620_v14 = vld [vmem:[#allocation2 + $0x48] sm:$0xff] }
  0x7e   : > { %502 = vst.msk [vmem:[#allocation2 + $0x498] sm:$0xff] %vm354_vm2, %v8610_v25  ;;  %503 = vst.msk [vmem:[#allocation2 + $0x4a0] sm:$0xff] %vm354_vm2, %v8610_v25 }
  0x7f   : > { %504 = vst.msk [vmem:[#allocation2 + $0x4a8] sm:$0xff] %vm354_vm2, %v8610_v25  ;;  %505 = vst.msk [vmem:[#allocation2 + $0x4b0] sm:$0xff] %vm354_vm2, %v8610_v25 }
  0x80   : > { %506 = vst.msk [vmem:[#allocation2 + $0x4b8] sm:$0xff] %vm354_vm2, %v8610_v25  ;;  %507 = vst.msk [vmem:[#allocation2 + $0x4c0] sm:$0xff] %vm354_vm2, %v8610_v25 }
  0x81   : > { %508 = vst.msk [vmem:[#allocation2 + $0x4c8] sm:$0xff] %vm354_vm2, %v8610_v25  ;;  %509 = vst.msk [vmem:[#allocation2 + $0x4d0] sm:$0xff] %vm354_vm2, %v8610_v25 }
  0x82   : > { %510 = vst.msk [vmem:[#allocation2 + $0x4d8] sm:$0xff] %vm354_vm2, %v8610_v25  ;;  %511 = vst.msk [vmem:[#allocation2 + $0x4e0] sm:$0xff] %vm354_vm2, %v8610_v25 }
  0x83   : > { %512 = vst.msk [vmem:[#allocation2 + $0x4e8] sm:$0xff] %vm354_vm2, %v8610_v25  ;;  %513 = vst.msk [vmem:[#allocation2 + $0x4f0] sm:$0xff] %vm354_vm2, %v8610_v25 }
  0x84   : > { %8046 = vmatmul.mubr.msk.bf16.gmra.mxu0 %vm1815_vm1, %v8378_v23  ;;  %514 = vst.msk [vmem:[#allocation2 + $0x4f8] sm:$0xff] %vm354_vm2, %v8610_v25  ;;  %515 = vst.msk [vmem:[#allocation2 + $0x500] sm:$0xff] %vm354_vm2, %v8610_v25  ;;  %8174 = vmatmul.mubr.msk.bf16.gmra.mxu1 %vm1815_vm1, %v8442_v17  ;;  %v8415_v23 = vld [vmem:[%s8733_s15 + $0x1a0] sm:$0xff]  }
  0x85   : > { %8049 = vmatprep.mubr.msk.bf16.mxu0 %vm1815_vm1, %v8379_v24  ;;  %516 = vst.msk [vmem:[#allocation2 + $0x508] sm:$0xff] %vm354_vm2, %v8610_v25  ;;  %517 = vst.msk [vmem:[#allocation2 + $0x510] sm:$0xff] %vm354_vm2, %v8610_v25 }
  0x86   : > { %518 = vst.msk [vmem:[#allocation2 + $0x518] sm:$0xff] %vm354_vm2, %v8610_v25  ;;  %519 = vst.msk [vmem:[#allocation2 + $0x520] sm:$0xff] %vm354_vm2, %v8610_v25 }
  0x87   : > { %520 = vst.msk [vmem:[#allocation2 + $0x528] sm:$0xff] %vm354_vm2, %v8610_v25  ;;  %521 = vst.msk [vmem:[#allocation2 + $0x530] sm:$0xff] %vm354_vm2, %v8610_v25 }
  0x88   : > { %522 = vst.msk [vmem:[#allocation2 + $0x538] sm:$0xff] %vm354_vm2, %v8610_v25  ;;  %523 = vst.msk [vmem:[#allocation2 + $0x540] sm:$0xff] %vm354_vm2, %v8610_v25 }
  0x89   : > { %524 = vst.msk [vmem:[#allocation2 + $0x548] sm:$0xff] %vm354_vm2, %v8610_v25  ;;  %525 = vst.msk [vmem:[#allocation2 + $0x550] sm:$0xff] %vm354_vm2, %v8610_v25 }
  0x8a   : > { %526 = vst.msk [vmem:[#allocation2 + $0x558] sm:$0xff] %vm354_vm2, %v8610_v25  ;;  %527 = vst.msk [vmem:[#allocation2 + $0x560] sm:$0xff] %vm354_vm2, %v8610_v25 }
  0x8b   : > { %528 = vst.msk [vmem:[#allocation2 + $0x568] sm:$0xff] %vm354_vm2, %v8610_v25  ;;  %529 = vst.msk [vmem:[#allocation2 + $0x570] sm:$0xff] %vm354_vm2, %v8610_v25 }
  0x8c   : > { %530 = vst.msk [vmem:[#allocation2 + $0x578] sm:$0xff] %vm354_vm2, %v8610_v25  ;;  %531 = vst.msk [vmem:[#allocation2 + $0x580] sm:$0xff] %vm354_vm2, %v8610_v25  ;;  %8050 = vmatmul.mubr.msk.bf16.gmra.mxu0 %vm1815_vm1, %v8380_v26 }
  0x8d   : > { %532 = vst.msk [vmem:[#allocation2 + $0x588] sm:$0xff] %vm354_vm2, %v8610_v25  ;;  %533 = vst.msk [vmem:[#allocation2 + $0x590] sm:$0xff] %vm354_vm2, %v8610_v25  ;;  %8053 = vmatprep.mubr.msk.bf16.mxu0 %vm1815_vm1, %v8381_v27  ;;  %v9414_v27 = vld [vmem:[%s12761_s2] ss:$0 sm:$0xff] }
  0x8e   : > { %534 = vst.msk [vmem:[#allocation2 + $0x598] sm:$0xff] %vm354_vm2, %v8610_v25  ;;  %535 = vst.msk [vmem:[#allocation2 + $0x5a0] sm:$0xff] %vm354_vm2, %v8610_v25 }
  0x8f   : > { %536 = vst.msk [vmem:[#allocation2 + $0x5a8] sm:$0xff] %vm354_vm2, %v8610_v25  ;;  %537 = vst.msk [vmem:[#allocation2 + $0x5b0] sm:$0xff] %vm354_vm2, %v8610_v25 }
  0x90   : > { %538 = vst.msk [vmem:[#allocation2 + $0x5b8] sm:$0xff] %vm354_vm2, %v8610_v25  ;;  %539 = vst.msk [vmem:[#allocation2 + $0x5c0] sm:$0xff] %vm354_vm2, %v8610_v25 }
  0x91   : > { %540 = vst.msk [vmem:[#allocation2 + $0x5c8] sm:$0xff] %vm354_vm2, %v8610_v25  ;;  %541 = vst.msk [vmem:[#allocation2 + $0x5d0] sm:$0xff] %vm354_vm2, %v8610_v25 }
  0x92   : > { %542 = vst.msk [vmem:[#allocation2 + $0x5d8] sm:$0xff] %vm354_vm2, %v8610_v25  ;;  %543 = vst.msk [vmem:[#allocation2 + $0x5e0] sm:$0xff] %vm354_vm2, %v8610_v25 }
  0x93   : > { %544 = vst.msk [vmem:[#allocation2 + $0x5e8] sm:$0xff] %vm354_vm2, %v8610_v25  ;;  %545 = vst.msk [vmem:[#allocation2 + $0x5f0] sm:$0xff] %vm354_vm2, %v8610_v25 }
  0x94   : > { %546 = vst.msk [vmem:[#allocation2 + $0x5f8] sm:$0xff] %vm354_vm2, %v8610_v25  ;;  %547 = vst.msk [vmem:[#allocation2 + $0x600] sm:$0xff] %vm354_vm2, %v8610_v25  ;;  %8054 = vmatmul.mubr.msk.bf16.gmra.mxu0 %vm1815_vm1, %v8382_v28 }
  0x95   : > { %548 = vst.msk [vmem:[#allocation2 + $0x608] sm:$0xff] %vm354_vm2, %v8610_v25  ;;  %549 = vst.msk [vmem:[#allocation2 + $0x610] sm:$0xff] %vm354_vm2, %v8610_v25  ;;  %8057 = vmatprep.mubr.msk.bf16.mxu0 %vm1815_vm1, %v8383_v29  ;;  %v615_v29 = vld [vmem:[#allocation2 + $0x20] sm:$0xff] }
  0x96   : > { %550 = vst.msk [vmem:[#allocation2 + $0x618] sm:$0xff] %vm354_vm2, %v8610_v25  ;;  %551 = vst.msk [vmem:[#allocation2 + $0x620] sm:$0xff] %vm354_vm2, %v8610_v25 }
  0x97   : > { %552 = vst.msk [vmem:[#allocation2 + $0x628] sm:$0xff] %vm354_vm2, %v8610_v25  ;;  %553 = vst.msk [vmem:[#allocation2 + $0x630] sm:$0xff] %vm354_vm2, %v8610_v25 }
  0x98   : > { %554 = vst.msk [vmem:[#allocation2 + $0x638] sm:$0xff] %vm354_vm2, %v8610_v25  ;;  %555 = vst.msk [vmem:[#allocation2 + $0x640] sm:$0xff] %vm354_vm2, %v8610_v25 }
  0x99   : > { %556 = vst.msk [vmem:[#allocation2 + $0x648] sm:$0xff] %vm354_vm2, %v8610_v25  ;;  %557 = vst.msk [vmem:[#allocation2 + $0x650] sm:$0xff] %vm354_vm2, %v8610_v25 }
  0x9a   : > { %558 = vst.msk [vmem:[#allocation2 + $0x658] sm:$0xff] %vm354_vm2, %v8610_v25  ;;  %559 = vst.msk [vmem:[#allocation2 + $0x660] sm:$0xff] %vm354_vm2, %v8610_v25 }
  0x9b   : > { %560 = vst.msk [vmem:[#allocation2 + $0x668] sm:$0xff] %vm354_vm2, %v8610_v25  ;;  %561 = vst.msk [vmem:[#allocation2 + $0x670] sm:$0xff] %vm354_vm2, %v8610_v25 }
  0x9c   : > { %562 = vst.msk [vmem:[#allocation2 + $0x678] sm:$0xff] %vm354_vm2, %v8610_v25  ;;  %563 = vst.msk [vmem:[#allocation2 + $0x680] sm:$0xff] %vm354_vm2, %v8610_v25  ;;  %8058 = vmatmul.mubr.msk.bf16.gmra.mxu0 %vm1815_vm1, %v8384_v30 }
  0x9d   : > { %564 = vst.msk [vmem:[#allocation2 + $0x688] sm:$0xff] %vm354_vm2, %v8610_v25  ;;  %565 = vst.msk [vmem:[#allocation2 + $0x690] sm:$0xff] %vm354_vm2, %v8610_v25  ;;  %8061 = vmatprep.mubr.msk.bf16.mxu0 %vm1815_vm1, %v8385_v31  ;;  %v8443_v31 = vld [vmem:[%s8733_s15 + $0x280] sm:$0xff]  }
  0x9e   : > { %566 = vst.msk [vmem:[#allocation2 + $0x698] sm:$0xff] %vm354_vm2, %v8610_v25  ;;  %567 = vst.msk [vmem:[#allocation2 + $0x6a0] sm:$0xff] %vm354_vm2, %v8610_v25  ;;  %8177 = vmatprep.mubr.msk.bf16.mxu1 %vm1815_vm1, %v8443_v31 }
  0x9f   : > { %568 = vst.msk [vmem:[#allocation2 + $0x6a8] sm:$0xff] %vm354_vm2, %v8610_v25  ;;  %569 = vst.msk [vmem:[#allocation2 + $0x6b0] sm:$0xff] %vm354_vm2, %v8610_v25 }
  0xa0   : > { %570 = vst.msk [vmem:[#allocation2 + $0x6b8] sm:$0xff] %vm354_vm2, %v8610_v25  ;;  %571 = vst.msk [vmem:[#allocation2 + $0x6c0] sm:$0xff] %vm354_vm2, %v8610_v25 }
  0xa1   : > { %572 = vst.msk [vmem:[#allocation2 + $0x6c8] sm:$0xff] %vm354_vm2, %v8610_v25  ;;  %573 = vst.msk [vmem:[#allocation2 + $0x6d0] sm:$0xff] %vm354_vm2, %v8610_v25 }
  0xa2   : > { %574 = vst.msk [vmem:[#allocation2 + $0x6d8] sm:$0xff] %vm354_vm2, %v8610_v25  ;;  %575 = vst.msk [vmem:[#allocation2 + $0x6e0] sm:$0xff] %vm354_vm2, %v8610_v25 }
  0xa3   : > { %576 = vst.msk [vmem:[#allocation2 + $0x6e8] sm:$0xff] %vm354_vm2, %v8610_v25  ;;  %577 = vst.msk [vmem:[#allocation2 + $0x6f0] sm:$0xff] %vm354_vm2, %v8610_v25 }
  0xa4   : > { %578 = vst.msk [vmem:[#allocation2 + $0x6f8] sm:$0xff] %vm354_vm2, %v8610_v25  ;;  %579 = vst.msk [vmem:[#allocation2 + $0x700] sm:$0xff] %vm354_vm2, %v8610_v25  ;;  %8062 = vmatmul.mubr.msk.bf16.gmra.mxu0 %vm1815_vm1, %v8386_v32 }
  0xa5   : > { %580 = vst.msk [vmem:[#allocation2 + $0x708] sm:$0xff] %vm354_vm2, %v8610_v25  ;;  %581 = vst.msk [vmem:[#allocation2 + $0x710] sm:$0xff] %vm354_vm2, %v8610_v25  ;;  %8065 = vmatprep.mubr.msk.bf16.mxu0 %vm1815_vm1, %v8387_v33 }
  0xa6   : > { %582 = vst.msk [vmem:[#allocation2 + $0x718] sm:$0xff] %vm354_vm2, %v8610_v25  ;;  %583 = vst.msk [vmem:[#allocation2 + $0x720] sm:$0xff] %vm354_vm2, %v8610_v25 }
  0xa7   : > { %584 = vst.msk [vmem:[#allocation2 + $0x728] sm:$0xff] %vm354_vm2, %v8610_v25  ;;  %585 = vst.msk [vmem:[#allocation2 + $0x730] sm:$0xff] %vm354_vm2, %v8610_v25 }
  0xa8   : > { %586 = vst.msk [vmem:[#allocation2 + $0x738] sm:$0xff] %vm354_vm2, %v8610_v25  ;;  %587 = vst.msk [vmem:[#allocation2 + $0x740] sm:$0xff] %vm354_vm2, %v8610_v25 }
  0xa9   : > { %588 = vst.msk [vmem:[#allocation2 + $0x748] sm:$0xff] %vm354_vm2, %v8610_v25  ;;  %589 = vst.msk [vmem:[#allocation2 + $0x750] sm:$0xff] %vm354_vm2, %v8610_v25 }
  0xaa   : > { %590 = vst.msk [vmem:[#allocation2 + $0x758] sm:$0xff] %vm354_vm2, %v8610_v25  ;;  %591 = vst.msk [vmem:[#allocation2 + $0x760] sm:$0xff] %vm354_vm2, %v8610_v25 }
  0xab   : > { %592 = vst.msk [vmem:[#allocation2 + $0x768] sm:$0xff] %vm354_vm2, %v8610_v25  ;;  %593 = vst.msk [vmem:[#allocation2 + $0x770] sm:$0xff] %vm354_vm2, %v8610_v25 }
  0xac   : > { %594 = vst.msk [vmem:[#allocation2 + $0x778] sm:$0xff] %vm354_vm2, %v8610_v25  ;;  %595 = vst.msk [vmem:[#allocation2 + $0x780] sm:$0xff] %vm354_vm2, %v8610_v25  ;;  %8066 = vmatmul.mubr.msk.bf16.gmra.mxu0 %vm1815_vm1, %v8388_v34  ;;  %v8444_v34 = vld [vmem:[%s8733_s15 + $0x288] sm:$0xff]  }
  0xad   : > { %596 = vst.msk [vmem:[#allocation2 + $0x788] sm:$0xff] %vm354_vm2, %v8610_v25  ;;  %597 = vst.msk [vmem:[#allocation2 + $0x790] sm:$0xff] %vm354_vm2, %v8610_v25  ;;  %8069 = vmatprep.mubr.msk.bf16.mxu0 %vm1815_vm1, %v8389_v35  ;;  %8178 = vmatmul.mubr.msk.bf16.gmra.mxu1 %vm1815_vm1, %v8444_v34 }
  0xae   : > { %598 = vst.msk [vmem:[#allocation2 + $0x798] sm:$0xff] %vm354_vm2, %v8610_v25  ;;  %599 = vst.msk [vmem:[#allocation2 + $0x7a0] sm:$0xff] %vm354_vm2, %v8610_v25 }
  0xaf   : > { %600 = vst.msk [vmem:[#allocation2 + $0x7a8] sm:$0xff] %vm354_vm2, %v8610_v25  ;;  %601 = vst.msk [vmem:[#allocation2 + $0x7b0] sm:$0xff] %vm354_vm2, %v8610_v25 }
  0xb0   : > { %602 = vst.msk [vmem:[#allocation2 + $0x7b8] sm:$0xff] %vm354_vm2, %v8610_v25  ;;  %603 = vst.msk [vmem:[#allocation2 + $0x7c0] sm:$0xff] %vm354_vm2, %v8610_v25 }
  0xb1   : > { %604 = vst.msk [vmem:[#allocation2 + $0x7c8] sm:$0xff] %vm354_vm2, %v8610_v25  ;;  %605 = vst.msk [vmem:[#allocation2 + $0x7d0] sm:$0xff] %vm354_vm2, %v8610_v25 }
  0xb2   : > { %606 = vst.msk [vmem:[#allocation2 + $0x7d8] sm:$0xff] %vm354_vm2, %v8610_v25  ;;  %607 = vst.msk [vmem:[#allocation2 + $0x7e0] sm:$0xff] %vm354_vm2, %v8610_v25 }
  0xb3   : > { %608 = vst.msk [vmem:[#allocation2 + $0x7e8] sm:$0xff] %vm354_vm2, %v8610_v25  ;;  %609 = vst.msk [vmem:[#allocation2 + $0x7f0] sm:$0xff] %vm354_vm2, %v8610_v25 }
  0xb4   : > { %610 = vst.msk [vmem:[#allocation2 + $0x7f8] sm:$0xff] %vm354_vm2, %v8610_v25  ;;  %8070 = vmatmul.mubr.msk.bf16.gmra.mxu0 %vm1815_vm1, %v8390_v36  ;;  %v617_v25 = vld [vmem:[#allocation2 + $0x30] sm:$0xff] }
  0xb5   : > { %8073 = vmatprep.mubr.msk.bf16.mxu0 %vm1815_vm1, %v8391_v37  ;;  %v618_v37 = vld [vmem:[#allocation2 + $0x38] sm:$0xff] }
  0xbc   : > { %8074 = vmatmul.mubr.msk.bf16.gmra.mxu0 %vm1815_vm1, %v8392_v38 }
  0xbd   : > { %8077 = vmatprep.mubr.msk.bf16.mxu0 %vm1815_vm1, %v8393_v39 }
  0xc4   : > { %8078 = vmatmul.mubr.msk.bf16.gmra.mxu0 %vm1815_vm1, %v8394_v40  ;;  %v8416_v40 = vld [vmem:[%s8733_s15 + $0x1a8] sm:$0xff]  }
  0xc5   : > { %8081 = vmatprep.mubr.msk.bf16.mxu0 %vm1815_vm1, %v8395_v41 }
  0xcc   : > { %8082 = vmatmul.mubr.msk.bf16.gmra.mxu0 %vm1815_vm1, %v8396_v42 }
  0xcd   : > { %8085 = vmatprep.mubr.msk.bf16.mxu0 %vm1815_vm1, %v8397_v43  ;;  %v616_v43 = vld [vmem:[#allocation2 + $0x28] sm:$0xff] }
  0xd4   : > { %8086 = vmatmul.mubr.msk.bf16.gmra.mxu0 %vm1815_vm1, %v8398_v46 }
  0xd5   : > { %8089 = vmatprep.mubr.msk.bf16.mxu0 %vm1815_vm1, %v8399_v47 }
  0xdc   : > { %8090 = vmatmul.mubr.msk.bf16.gmra.mxu0 %vm1815_vm1, %v8400_v50  ;;  %v621_v50 = vld [vmem:[#allocation2 + $0x50] sm:$0xff] }
  0xdd   : > { %8093 = vmatprep.mubr.msk.bf16.mxu0 %vm1815_vm1, %v8401_v51 }
  0xe4   : > { %8094 = vmatmul.mubr.msk.bf16.gmra.mxu0 %vm1815_vm1, %v8402_v53 }
  0xe5   : > { %8097 = vmatprep.mubr.msk.bf16.mxu0 %vm1815_vm1, %v8403_v54 }
  0xec   : > { %8098 = vmatmul.mubr.msk.bf16.gmra.mxu0 %vm1815_vm1, %v8404_v56 }
  0xed   : > { %8101 = vmatprep.mubr.msk.bf16.mxu0 %vm1815_vm1, %v8405_v57 }
  0xf4   : > { %8102 = vmatmul.mubr.msk.bf16.gmra.mxu0 %vm1815_vm1, %v8406_v60  ;;  %v8445_v60 = vld [vmem:[%s8733_s15 + $0x290] sm:$0xff]  }
  0xf5   : > { %8105 = vmatprep.mubr.msk.bf16.mxu0 %vm1815_vm1, %v8407_v61  ;;  %8181 = vmatprep.mubr.msk.bf16.mxu1 %vm1815_vm1, %v8445_v60  ;;  %v624_v60 = vld [vmem:[#allocation2 + $0x68] sm:$0xff] }
  0xfc   : > { %8106 = vmatmul.mubr.msk.bf16.gmra.mxu0 %vm1815_vm1, %v8408_v0 }
  0xfd   : > { %8109 = vmatprep.mubr.msk.bf16.mxu0 %vm1815_vm1, %v8409_v1 }
 0x104   : > { %8110 = vmatmul.mubr.msk.bf16.gmra.mxu0 %vm1815_vm1, %v8410_v4 }
 0x105   : > { %8113 = vmatprep.mubr.msk.bf16.mxu0 %vm1815_vm1, %v8411_v5 }
 0x10c   : > { %v8019_v11 = vpop.f32.mrf.mxu0  ;;  %8114 = vmatmul.mubr.msk.bf16.gmra.mxu0 %vm1815_vm1, %v8412_v8 }
 0x10d   : > { %v3263_v13 = vadd.f32 %v8019_v11, %v613_v10  ;;  %8117 = vmatprep.mubr.msk.bf16.mxu0 %vm1815_vm1, %v8413_v9 }
 0x10e   : > { %v2238_v15 = vpop.f32.mrf.mxu0 }
 0x10f   : > { %3520 = vst.msk [vmem:[#allocation2 + $0x10] sm:$0xff] %vm354_vm2, %v3263_v13  ;;  %v3261_v18 = vadd.f32 %v2238_v15, %v611_v12  ;;  %v8418_v15 = vld [vmem:[%s8733_s15 + $0x1b8] sm:$0xff]  }
 0x110   : > { %v8020_v19 = vpop.f32.mrf.mxu0 }
 0x111   : > { %3518 = vst.msk [vmem:[#allocation2] sm:$0xff] %vm354_vm2, %v3261_v18  ;;  %v3264_v22 = vadd.f32 %v8020_v19, %v614_v16 }
 0x112   : > { %v2241_v24 = vpop.f32.mrf.mxu0 }
 0x113   : > { %3521 = vst.msk [vmem:[#allocation2 + $0x18] sm:$0xff] %vm354_vm2, %v3264_v22  ;;  %v3262_v26 = vadd.f32 %v2241_v24, %v612_v20  ;;  %v8419_v20 = vld [vmem:[%s8733_s15 + $0x1c0] sm:$0xff]  }
 0x114   : > { %v8023_v28 = vpop.f32.mrf.mxu0  ;;  %8118 = vmatmul.mubr.msk.bf16.gmra.mxu0 %vm1815_vm1, %v8414_v21  ;;  %v8446_v21 = vld [vmem:[%s8733_s15 + $0x298] sm:$0xff]  }
 0x115   : > { %3519 = vst.msk [vmem:[#allocation2 + $0x8] sm:$0xff] %vm354_vm2, %v3262_v26  ;;  %v3267_v30 = vadd.f32 %v8023_v28, %v617_v25  ;;  %8121 = vmatprep.mubr.msk.bf16.mxu0 %vm1815_vm1, %v8415_v23  ;;  %v625_v28 = vld [vmem:[#allocation2 + $0x70] sm:$0xff]  ;;  %8182 = vmatmul.mubr.msk.bf16.gmra.mxu1 %vm1815_vm1, %v8446_v21 }
 0x116   : > { %v3779_v32 = vld [vmem:[#allocation2 + $0x10] sm:$0xff]  ;;  %v2254_v33 = vpop.f32.mrf.mxu0 }
 0x117   : > { %v4042_v35 = vadd.f32 %v9414_v27, %v3779_v32  ;;  %3524 = vst.msk [vmem:[#allocation2 + $0x30] sm:$0xff] %vm354_vm2, %v3267_v30  ;;  %v3265_v36 = vadd.f32 %v2254_v33, %v615_v29  ;;  %v6098_v61 = vmul.f32 %v3779_v32, %v3779_v32  ;;  %v5580_v3 = vsel %vm354_vm2, %v3779_v32, 0.0 }
 0x118   : > { %v3777_v38 = vld [vmem:[#allocation2] sm:$0xff]  ;;  %v8024_v39 = vpop.f32.mrf.mxu0 }
 0x119   : > { %v7613_v41 = vpack.c.bf16 %v4042_v35, %v4042_v35  ;;  %v4040_v42 = vadd.f32 %v9414_v27, %v3777_v38  ;;  %3522 = vst.msk [vmem:[#allocation2 + $0x20] sm:$0xff] %vm354_vm2, %v3265_v36  ;;  %v3268_v46 = vadd.f32 %v8024_v39, %v618_v37  ;;  %v6096_v51 = vmul.f32 %v3777_v38, %v3777_v38 }
 0x11a   : > { %v3780_v45 = vld [vmem:[#allocation2 + $0x18] sm:$0xff]  ;;  %v2257_v47 = vpop.f32.mrf.mxu0  ;;  %v5577_v55 = vsel %vm354_vm2, %v3777_v38, 0.0  ;;  %v6355_v22 = vsel %vm354_vm2, %v6098_v61, 0.0  ;;  %v623_v38 = vld [vmem:[#allocation2 + $0x60] sm:$0xff]  ;;  %v8420_v61 = vld [vmem:[%s8733_s15 + $0x1c8] sm:$0xff]  }
 0x11b   : > { %5323 = vst.msk [vmem:[%s9431_s25 + $0x8] sm:$0xf] %vm5320_vm3, %v7613_v41  ;;  %v7611_v48 = vpack.c.bf16 %v4040_v42, %v4040_v42  ;;  %v4043_v49 = vadd.f32 %v9414_v27, %v3780_v45  ;;  %v3266_v53 = vadd.f32 %v2257_v47, %v616_v43  ;;  %v6099_v4 = vmul.f32 %v3780_v45, %v3780_v45 }
 0x11c   : > { %v3778_v52 = vld [vmem:[#allocation2 + $0x8] sm:$0xff]  ;;  %3525 = vst.msk [vmem:[#allocation2 + $0x38] sm:$0xff] %vm354_vm2, %v3268_v46  ;;  %v8027_v54 = vpop.f32.mrf.mxu0  ;;  %8122 = vmatmul.mubr.msk.bf16.gmra.mxu0 %vm1815_vm1, %v8416_v40  ;;  %v6352_v8 = vsel %vm354_vm2, %v6096_v51, 0.0  ;;  %v5582_v16 = vsel %vm354_vm2, %v3780_v45, 0.0 }
 0x11d   : > { %5321 = vst.msk [vmem:[%s9431_s25] sm:$0xf] %vm5320_vm3, %v7611_v48  ;;  %v7614_v56 = vpack.c.bf16 %v4043_v49, %v4043_v49  ;;  %v4041_v57 = vadd.f32 %v9414_v27, %v3778_v52  ;;  %v5578_v58 = vsel %vm354_vm2, %v3778_v52, 0.0  ;;  %8125 = vmatprep.mubr.msk.bf16.mxu0 %vm1815_vm1, %v8417_v44  ;;  %v6097_v63 = vmul.f32 %v3778_v52, %v3778_v52  ;;  %v626_v49 = vld [vmem:[#allocation2 + $0x78] sm:$0xff] }
 0x11e   : > { %v5579_v62 = vadd.f32 %v5578_v58, %v5577_v55  ;;  %v9445_v0 = vld [vmem:[#allocation2 + $0x30] sm:$0xff]  ;;  %3523 = vst.msk [vmem:[#allocation2 + $0x28] sm:$0xff] %vm354_vm2, %v3266_v53  ;;  %v3271_v1 = vadd.f32 %v8027_v54, %v621_v50  ;;  %v2270_v2 = vpop.f32.mrf.mxu0  ;;  %v6357_v34 = vsel %vm354_vm2, %v6099_v4, 0.0 }
 0x11f   : > { %5324 = vst.msk [vmem:[%s9431_s25 + $0xc] sm:$0xf] %vm5320_vm3, %v7614_v56  ;;  %v7612_v5 = vpack.c.bf16 %v4041_v57, %v4041_v57  ;;  %v4046_v6 = vadd.f32 %v9414_v27, %v9445_v0  ;;  %v6353_v10 = vsel %vm354_vm2, %v6097_v63, 0.0  ;;  %v3269_v12 = vadd.f32 %v2270_v2, %v619_v59  ;;  %v8421_v4 = vld [vmem:[%s8733_s15 + $0x1d0] sm:$0xff]  }
 0x120   : > { %v5581_v9 = vadd.f32 %v5580_v3, %v5579_v62  ;;  %v3781_v11 = vld [vmem:[#allocation2 + $0x20] sm:$0xff]  ;;  %3528 = vst.msk [vmem:[#allocation2 + $0x50] sm:$0xff] %vm354_vm2, %v3271_v1  ;;  %v8028_v13 = vpop.f32.mrf.mxu0  ;;  %v6354_v17 = vadd.f32 %v6353_v10, %v6352_v8  ;;  %v6102_v40 = vmul.f32 %v9445_v0, %v9445_v0  ;;  %v5588_v55 = vsel %vm354_vm2, %v9445_v0, 0.0 }
 0x121   : > { %5322 = vst.msk [vmem:[%s9431_s25 + $0x4] sm:$0xf] %vm5320_vm3, %v7612_v5  ;;  %v7617_v18 = vpack.c.bf16 %v4046_v6, %v4046_v6  ;;  %v4044_v19 = vadd.f32 %v9414_v27, %v3781_v11  ;;  %v6100_v24 = vmul.f32 %v3781_v11, %v3781_v11  ;;  %v3272_v25 = vadd.f32 %v8028_v13, %v622_v7  ;;  %v8447_v62 = vld [vmem:[%s8733_s15 + $0x2a0] sm:$0xff]   ;;  %v8448_v5 = vld [vmem:[%s8733_s15 + $0x2a8] sm:$0xff]  }
 0x122   : > { %v5583_v23 = vadd.f32 %v5582_v16, %v5581_v9  ;;  %3526 = vst.msk [vmem:[#allocation2 + $0x40] sm:$0xff] %vm354_vm2, %v3269_v12  ;;  %v2273_v26 = vpop.f32.mrf.mxu0  ;;  %v6356_v29 = vadd.f32 %v6355_v22, %v6354_v17  ;;  %v5584_v31 = vsel %vm354_vm2, %v3781_v11, 0.0  ;;  %v6363_v63 = vsel %vm354_vm2, %v6102_v40, 0.0  ;;  %8185 = vmatprep.mubr.msk.bf16.mxu1 %vm1815_vm1, %v8447_v62  ;;  %v629_v16 = vld [vmem:[#allocation2 + $0x90] sm:$0xff] }
 0x123   : > { %5327 = vst.msk [vmem:[%s9431_s25 + $0x18] sm:$0xf] %vm5320_vm3, %v7617_v18  ;;  %v7615_v30 = vpack.c.bf16 %v4044_v19, %v4044_v19  ;;  %v3784_v32 = vld [vmem:[#allocation2 + $0x38] sm:$0xff]  ;;  %v3270_v33 = vadd.f32 %v2273_v26, %v620_v14  ;;  %v6359_v41 = vsel %vm354_vm2, %v6100_v24, 0.0  ;;  %8186 = vmatmul.mubr.msk.bf16.gmra.mxu1 %vm1815_vm1, %v8448_v5  ;;  %v633_v5 = vld [vmem:[#allocation2 + $0xb0] sm:$0xff] }
 0x124   : > { %v5585_v35 = vadd.f32 %v5584_v31, %v5583_v23  ;;  %v4047_v36 = vadd.f32 %v9414_v27, %v3784_v32  ;;  %3529 = vst.msk [vmem:[#allocation2 + $0x58] sm:$0xff] %vm354_vm2, %v3272_v25  ;;  %v8031_v37 = vpop.f32.mrf.mxu0  ;;  %8126 = vmatmul.mubr.msk.bf16.gmra.mxu0 %vm1815_vm1, %v8418_v15  ;;  %v6358_v39 = vadd.f32 %v6357_v34, %v6356_v29  ;;  %v5590_v6 = vsel %vm354_vm2, %v3784_v32, 0.0 }
 0x125   : > { %5325 = vst.msk [vmem:[%s9431_s25 + $0x10] sm:$0xf] %vm5320_vm3, %v7615_v30  ;;  %v3782_v42 = vld [vmem:[#allocation2 + $0x28] sm:$0xff]  ;;  %v3275_v43 = vadd.f32 %v8031_v37, %v625_v28  ;;  %8129 = vmatprep.mubr.msk.bf16.mxu0 %vm1815_vm1, %v8419_v20  ;;  %v6103_v51 = vmul.f32 %v3784_v32, %v3784_v32  ;;  %v627_v37 = vld [vmem:[#allocation2 + $0x80] sm:$0xff] }
 0x126   : > { %3527 = vst.msk [vmem:[#allocation2 + $0x48] sm:$0xff] %vm354_vm2, %v3270_v33  ;;  %v7618_v44 = vpack.c.bf16 %v4047_v36, %v4047_v36  ;;  %v4045_v45 = vadd.f32 %v9414_v27, %v3782_v42  ;;  %v5586_v46 = vsel %vm354_vm2, %v3782_v42, 0.0  ;;  %v6101_v47 = vmul.f32 %v3782_v42, %v3782_v42  ;;  %v2286_v48 = vpop.f32.mrf.mxu0 }
 0x127   : > { %v6360_v50 = vadd.f32 %v6359_v41, %v6358_v39  ;;  %v5587_v52 = vadd.f32 %v5586_v46, %v5585_v35  ;;  %v3787_v53 = vld [vmem:[#allocation2 + $0x50] sm:$0xff]  ;;  %3532 = vst.msk [vmem:[#allocation2 + $0x70] sm:$0xff] %vm354_vm2, %v3275_v43  ;;  %v3273_v54 = vadd.f32 %v2286_v48, %v623_v38  ;;  %v6365_v11 = vsel %vm354_vm2, %v6103_v51, 0.0  ;;  %v8423_v51 = vld [vmem:[%s8733_s15 + $0x1e0] sm:$0xff]  }
 0x128   : > { %5328 = vst.msk [vmem:[%s9431_s25 + $0x1c] sm:$0xf] %vm5320_vm3, %v7618_v44  ;;  %v7616_v56 = vpack.c.bf16 %v4045_v45, %v4045_v45  ;;  %v6361_v57 = vsel %vm354_vm2, %v6101_v47, 0.0  ;;  %v4050_v58 = vadd.f32 %v9414_v27, %v3787_v53  ;;  %v8032_v59 = vpop.f32.mrf.mxu0  ;;  %v6106_v17 = vmul.f32 %v3787_v53, %v3787_v53  ;;  %v8422_v44 = vld [vmem:[%s8733_s15 + $0x1d8] sm:$0xff]   ;;  %v8449_v45 = vld [vmem:[%s8733_s15 + $0x2b0] sm:$0xff]  }
 0x129   : > { %v5589_v1 = vadd.f32 %v5588_v55, %v5587_v52  ;;  %v6362_v2 = vadd.f32 %v6361_v57, %v6360_v50  ;;  %v3785_v3 = vld [vmem:[#allocation2 + $0x40] sm:$0xff]  ;;  %3530 = vst.msk [vmem:[#allocation2 + $0x60] sm:$0xff] %vm354_vm2, %v3273_v54  ;;  %v3276_v0 = vadd.f32 %v8032_v59, %v626_v49  ;;  %v5596_v38 = vsel %vm354_vm2, %v3787_v53, 0.0  ;;  %v630_v50 = vld [vmem:[#allocation2 + $0x98] sm:$0xff]  ;;  %8189 = vmatprep.mubr.msk.bf16.mxu1 %vm1815_vm1, %v8449_v45 }
 0x12a   : > { %5326 = vst.msk [vmem:[%s9431_s25 + $0x14] sm:$0xf] %vm5320_vm3, %v7616_v56  ;;  %v7621_v7 = vpack.c.bf16 %v4050_v58, %v4050_v58  ;;  %v4048_v8 = vadd.f32 %v9414_v27, %v3785_v3  ;;  %v6104_v9 = vmul.f32 %v3785_v3, %v3785_v3  ;;  %v2289_v10 = vpop.f32.mrf.mxu0  ;;  %v5592_v19 = vsel %vm354_vm2, %v3785_v3, 0.0  ;;  %v8450_v52 = vld [vmem:[%s8733_s15 + $0x2b8] sm:$0xff]  }
 0x12b   : > { %v5591_v12 = vadd.f32 %v5590_v6, %v5589_v1  ;;  %v6364_v13 = vadd.f32 %v6363_v63, %v6362_v2  ;;  %v3788_v14 = vld [vmem:[#allocation2 + $0x58] sm:$0xff]  ;;  %3533 = vst.msk [vmem:[#allocation2 + $0x78] sm:$0xff] %vm354_vm2, %v3276_v0  ;;  %v3274_v15 = vadd.f32 %v2289_v10, %v624_v60  ;;  %v6371_v46 = vsel %vm354_vm2, %v6106_v17, 0.0  ;;  %v628_v63 = vld [vmem:[#allocation2 + $0x88] sm:$0xff]  ;;  %8190 = vmatmul.mubr.msk.bf16.gmra.mxu1 %vm1815_vm1, %v8450_v52  ;;  %v635_v52 = vld [vmem:[#allocation2 + $0xc0] sm:$0xff] }
 0x12c   : > { %5331 = vst.msk [vmem:[%s9431_s25 + $0x28] sm:$0xf] %vm5320_vm3, %v7621_v7  ;;  %v7619_v18 = vpack.c.bf16 %v4048_v8, %v4048_v8  ;;  %v4051_v20 = vadd.f32 %v9414_v27, %v3788_v14  ;;  %v8035_v22 = vpop.f32.mrf.mxu0  ;;  %8130 = vmatmul.mubr.msk.bf16.gmra.mxu0 %vm1815_vm1, %v8420_v61  ;;  %v6367_v25 = vsel %vm354_vm2, %v6104_v9, 0.0  ;;  %v6107_v39 = vmul.f32 %v3788_v14, %v3788_v14  ;;  %v634_v17 = vld [vmem:[#allocation2 + $0xb8] sm:$0xff] }
 0x12d   : > { %v3786_v21 = vld [vmem:[#allocation2 + $0x48] sm:$0xff]  ;;  %v6366_v23 = vadd.f32 %v6365_v11, %v6364_v13  ;;  %v5593_v24 = vadd.f32 %v5592_v19, %v5591_v12  ;;  %3531 = vst.msk [vmem:[#allocation2 + $0x68] sm:$0xff] %vm354_vm2, %v3274_v15  ;;  %8133 = vmatprep.mubr.msk.bf16.mxu0 %vm1815_vm1, %v8421_v4  ;;  %v3279_v32 = vadd.f32 %v8035_v22, %v629_v16  ;;  %v5598_v53 = vsel %vm354_vm2, %v3788_v14, 0.0  ;;  %v631_v15 = vld [vmem:[#allocation2 + $0xa0] sm:$0xff] }
 0x12e   : > { %v4049_v26 = vadd.f32 %v9414_v27, %v3786_v21  ;;  %5329 = vst.msk [vmem:[%s9431_s25 + $0x20] sm:$0xf] %vm5320_vm3, %v7619_v18  ;;  %v7622_v28 = vpack.c.bf16 %v4051_v20, %v4051_v20  ;;  %v5594_v29 = vsel %vm354_vm2, %v3786_v21, 0.0  ;;  %v6105_v30 = vmul.f32 %v3786_v21, %v3786_v21  ;;  %v9516_v31 = vld [vmem:[#allocation2 + $0x70] sm:$0xff]  ;;  %v2302_v33 = vpop.f32.mrf.mxu0 }
 0x12f   : > { %v6368_v34 = vadd.f32 %v6367_v25, %v6366_v23  ;;  %v5595_v36 = vadd.f32 %v5594_v29, %v5593_v24  ;;  %v4054_v41 = vadd.f32 %v9414_v27, %v9516_v31  ;;  %3536 = vst.msk [vmem:[#allocation2 + $0x90] sm:$0xff] %vm354_vm2, %v3279_v32  ;;  %v3277_v57 = vadd.f32 %v2302_v33, %v627_v37  ;;  %v632_v29 = vld [vmem:[#allocation2 + $0xa8] sm:$0xff]  ;;  %v8451_v32 = vld [vmem:[%s8733_s15 + $0x2c0] sm:$0xff]  }
 0x130   : > { %v7620_v35 = vpack.c.bf16 %v4049_v26, %v4049_v26  ;;  %5332 = vst.msk [vmem:[%s9431_s25 + $0x2c] sm:$0xf] %vm5320_vm3, %v7622_v28  ;;  %v6369_v40 = vsel %vm354_vm2, %v6105_v30, 0.0  ;;  %v3789_v42 = vld [vmem:[#allocation2 + $0x60] sm:$0xff]  ;;  %v8036_v43 = vpop.f32.mrf.mxu0  ;;  %v6373_v1 = vsel %vm354_vm2, %v6107_v39, 0.0  ;;  %v6110_v2 = vmul.f32 %v9516_v31, %v9516_v31  ;;  %v8424_v30 = vld [vmem:[%s8733_s15 + $0x1e8] sm:$0xff]   ;;  %8193 = vmatprep.mubr.msk.bf16.mxu1 %vm1815_vm1, %v8451_v32 }
 0x131   : > { %v5597_v47 = vadd.f32 %v5596_v38, %v5595_v36  ;;  %v6370_v48 = vadd.f32 %v6369_v40, %v6368_v34  ;;  %v4052_v49 = vadd.f32 %v9414_v27, %v3789_v42  ;;  %v7625_v54 = vpack.c.bf16 %v4054_v41, %v4054_v41  ;;  %3534 = vst.msk [vmem:[#allocation2 + $0x80] sm:$0xff] %vm354_vm2, %v3277_v57  ;;  %v8425_v36 = vld [vmem:[%s8733_s15 + $0x1f0] sm:$0xff]   ;;  %v8452_v37 = vld [vmem:[%s8733_s15 + $0x2c8] sm:$0xff]   ;;  %v8454_v32 = vld [vmem:[%s8733_s15 + $0x2d8] sm:$0xff]  }
 0x132   : > { %5330 = vst.msk [vmem:[%s9431_s25 + $0x24] sm:$0xf] %vm5320_vm3, %v7620_v35  ;;  %v6108_v55 = vmul.f32 %v3789_v42, %v3789_v42  ;;  %v3792_v56 = vld [vmem:[#allocation2 + $0x78] sm:$0xff]  ;;  %v2305_v58 = vpop.f32.mrf.mxu0  ;;  %v5600_v3 = vsel %vm354_vm2, %v3789_v42, 0.0  ;;  %v3280_v4 = vadd.f32 %v8036_v43, %v630_v50  ;;  %v5604_v23 = vsel %vm354_vm2, %v9516_v31, 0.0  ;;  %v637_v42 = vld [vmem:[#allocation2 + $0xd0] sm:$0xff] }
 0x133   : > { %v5599_v59 = vadd.f32 %v5598_v53, %v5597_v47  ;;  %v6372_v60 = vadd.f32 %v6371_v46, %v6370_v48  ;;  %v7623_v61 = vpack.c.bf16 %v4052_v49, %v4052_v49  ;;  %v4055_v62 = vadd.f32 %v9414_v27, %v3792_v56  ;;  %5335 = vst.msk [vmem:[%s9431_s25 + $0x38] sm:$0xf] %vm5320_vm3, %v7625_v54 }
 0x134   : > { %v3790_v0 = vld [vmem:[#allocation2 + $0x68] sm:$0xff]  ;;  %v8039_v6 = vpop.f32.mrf.mxu0  ;;  %8134 = vmatmul.mubr.msk.bf16.gmra.mxu0 %vm1815_vm1, %v8422_v44  ;;  %v6375_v11 = vsel %vm354_vm2, %v6108_v55, 0.0  ;;  %3537 = vst.msk [vmem:[#allocation2 + $0x98] sm:$0xff] %vm354_vm2, %v3280_v4  ;;  %v3278_v14 = vadd.f32 %v2305_v58, %v628_v63  ;;  %v6111_v24 = vmul.f32 %v3792_v56, %v3792_v56  ;;  %v6379_v38 = vsel %vm354_vm2, %v6110_v2, 0.0  ;;  %8194 = vmatmul.mubr.msk.bf16.gmra.mxu1 %vm1815_vm1, %v8452_v37  ;;  %v638_v2 = vld [vmem:[#allocation2 + $0xd8] sm:$0xff] }
 0x135   : > { %v6374_v7 = vadd.f32 %v6373_v1, %v6372_v60  ;;  %5333 = vst.msk [vmem:[%s9431_s25 + $0x30] sm:$0xf] %vm5320_vm3, %v7623_v61  ;;  %v5601_v8 = vadd.f32 %v5600_v3, %v5599_v59  ;;  %v7626_v9 = vpack.c.bf16 %v4055_v62, %v4055_v62  ;;  %v4053_v10 = vadd.f32 %v9414_v27, %v3790_v0 }
 0x136   : > { %8137 = vmatprep.mubr.msk.bf16.mxu0 %vm1815_vm1, %v8423_v51  ;;  %v5602_v12 = vsel %vm354_vm2, %v3790_v0, 0.0  ;;  %v6109_v13 = vmul.f32 %v3790_v0, %v3790_v0  ;;  %v2318_v16 = vpop.f32.mrf.mxu0  ;;  %v9554_v21 = vld [vmem:[#allocation2 + $0x90] sm:$0xff]  ;;  %v3283_v22 = vadd.f32 %v8039_v6, %v633_v5  ;;  %3535 = vst.msk [vmem:[#allocation2 + $0x88] sm:$0xff] %vm354_vm2, %v3278_v14  ;;  %v5606_v39 = vsel %vm354_vm2, %v3792_v56, 0.0 }
 0x137   : > { %v6376_v18 = vadd.f32 %v6375_v11, %v6374_v7  ;;  %5336 = vst.msk [vmem:[%s9431_s25 + $0x3c] sm:$0xf] %vm5320_vm3, %v7626_v9  ;;  %v7624_v19 = vpack.c.bf16 %v4053_v10, %v4053_v10  ;;  %v5603_v20 = vadd.f32 %v5602_v12, %v5601_v8  ;;  %v4058_v26 = vadd.f32 %v9414_v27, %v9554_v21  ;;  %v8426_v8 = vld [vmem:[%s8733_s15 + $0x1f8] sm:$0xff]   ;;  %v8453_v9 = vld [vmem:[%s8733_s15 + $0x2d0] sm:$0xff]  }
 0x138   : > { %v6377_v25 = vsel %vm354_vm2, %v6109_v13, 0.0  ;;  %v8040_v28 = vpop.f32.mrf.mxu0  ;;  %3540 = vst.msk [vmem:[#allocation2 + $0xb0] sm:$0xff] %vm354_vm2, %v3283_v22  ;;  %v3281_v31 = vadd.f32 %v2318_v16, %v631_v15  ;;  %v3793_v45 = vld [vmem:[#allocation2 + $0x80] sm:$0xff]  ;;  %v6381_v47 = vsel %vm354_vm2, %v6111_v24, 0.0  ;;  %v6114_v61 = vmul.f32 %v9554_v21, %v9554_v21  ;;  %8197 = vmatprep.mubr.msk.bf16.mxu1 %vm1815_vm1, %v8453_v9  ;;  %v645_v9 = vld [vmem:[#allocation2 + $0x110] sm:$0xff] }
 0x139   : > { %5334 = vst.msk [vmem:[%s9431_s25 + $0x34] sm:$0xf] %vm5320_vm3, %v7624_v19  ;;  %v5605_v33 = vadd.f32 %v5604_v23, %v5603_v20  ;;  %v6378_v34 = vadd.f32 %v6377_v25, %v6376_v18  ;;  %v3284_v35 = vadd.f32 %v8040_v28, %v634_v17  ;;  %v7629_v40 = vpack.c.bf16 %v4058_v26, %v4058_v26 }
 0x13a   : > { %v2321_v41 = vpop.f32.mrf.mxu0  ;;  %3538 = vst.msk [vmem:[#allocation2 + $0xa0] sm:$0xff] %vm354_vm2, %v3281_v31  ;;  %v4056_v48 = vadd.f32 %v9414_v27, %v3793_v45  ;;  %v5608_v49 = vsel %vm354_vm2, %v3793_v45, 0.0  ;;  %v6112_v50 = vmul.f32 %v3793_v45, %v3793_v45  ;;  %v5612_v10 = vsel %vm354_vm2, %v9554_v21, 0.0 }
 0x13b   : > { %v5607_v43 = vadd.f32 %v5606_v39, %v5605_v33  ;;  %v6380_v44 = vadd.f32 %v6379_v38, %v6378_v34  ;;  %3541 = vst.msk [vmem:[#allocation2 + $0xb8] sm:$0xff] %vm354_vm2, %v3284_v35  ;;  %v3282_v46 = vadd.f32 %v2321_v41, %v632_v29  ;;  %v3796_v55 = vld [vmem:[#allocation2 + $0x98] sm:$0xff]  ;;  %v6387_v24 = vsel %vm354_vm2, %v6114_v61, 0.0 }
 0x13c   : > { %5339 = vst.msk [vmem:[%s9431_s25 + $0x48] sm:$0xf] %vm5320_vm3, %v7629_v40  ;;  %v8043_v51 = vpop.f32.mrf.mxu0  ;;  %8138 = vmatmul.mubr.msk.bf16.gmra.mxu0 %vm1815_vm1, %v8424_v30  ;;  %v7627_v57 = vpack.c.bf16 %v4056_v48, %v4056_v48  ;;  %v6383_v58 = vsel %vm354_vm2, %v6112_v50, 0.0  ;;  %v4059_v59 = vadd.f32 %v9414_v27, %v3796_v55  ;;  %v6115_v13 = vmul.f32 %v3796_v55, %v3796_v55  ;;  %v636_v50 = vld [vmem:[#allocation2 + $0xc8] sm:$0xff] }
 0x13d   : > { %v6382_v53 = vadd.f32 %v6381_v47, %v6380_v44  ;;  %v5609_v54 = vadd.f32 %v5608_v49, %v5607_v43  ;;  %3539 = vst.msk [vmem:[#allocation2 + $0xa8] sm:$0xff] %vm354_vm2, %v3282_v46  ;;  %v3287_v56 = vadd.f32 %v8043_v51, %v637_v42  ;;  %8141 = vmatprep.mubr.msk.bf16.mxu0 %vm1815_vm1, %v8425_v36  ;;  %v3794_v63 = vld [vmem:[#allocation2 + $0x88] sm:$0xff]  ;;  %v5614_v25 = vsel %vm354_vm2, %v3796_v55, 0.0 }
 0x13e   : > { %v2334_v60 = vpop.f32.mrf.mxu0  ;;  %5337 = vst.msk [vmem:[%s9431_s25 + $0x40] sm:$0xf] %vm5320_vm3, %v7627_v57  ;;  %v7630_v3 = vpack.c.bf16 %v4059_v59, %v4059_v59  ;;  %v4057_v0 = vadd.f32 %v9414_v27, %v3794_v63  ;;  %v5610_v4 = vsel %vm354_vm2, %v3794_v63, 0.0  ;;  %v6113_v5 = vmul.f32 %v3794_v63, %v3794_v63  ;;  %8198 = vmatmul.mubr.msk.bf16.gmra.mxu1 %vm1815_vm1, %v8454_v32  ;;  %v639_v59 = vld [vmem:[#allocation2 + $0xe0] sm:$0xff] }
 0x13f   : > { %v6384_v62 = vadd.f32 %v6383_v58, %v6382_v53  ;;  %3544 = vst.msk [vmem:[#allocation2 + $0xd0] sm:$0xff] %vm354_vm2, %v3287_v56  ;;  %v3285_v1 = vadd.f32 %v2334_v60, %v635_v52  ;;  %v3799_v6 = vld [vmem:[#allocation2 + $0xb0] sm:$0xff]  ;;  %v5611_v11 = vadd.f32 %v5610_v4, %v5609_v54  ;;  %v6389_v35 = vsel %vm354_vm2, %v6115_v13, 0.0  ;;  %v642_v60 = vld [vmem:[#allocation2 + $0xf8] sm:$0xff]  ;;  %v8455_v4 = vld [vmem:[%s8733_s15 + $0x2e0] sm:$0xff]  }
 0x140   : > { %v8044_v7 = vpop.f32.mrf.mxu0  ;;  %v4062_v12 = vadd.f32 %v9414_v27, %v3799_v6  ;;  %5340 = vst.msk [vmem:[%s9431_s25 + $0x4c] sm:$0xf] %vm5320_vm3, %v7630_v3  ;;  %v7628_v14 = vpack.c.bf16 %v4057_v0, %v4057_v0  ;;  %v6385_v15 = vsel %vm354_vm2, %v6113_v5, 0.0  ;;  %v6118_v45 = vmul.f32 %v3799_v6, %v3799_v6  ;;  %v641_v58 = vld [vmem:[#allocation2 + $0xf0] sm:$0xff]  ;;  %v640_v0 = vld [vmem:[#allocation2 + $0xe8] sm:$0xff]  ;;  %8201 = vmatprep.mubr.msk.bf16.mxu1 %vm1815_vm1, %v8455_v4 }
 0x141   : > { %3542 = vst.msk [vmem:[#allocation2 + $0xc0] sm:$0xff] %vm354_vm2, %v3285_v1  ;;  %v3797_v16 = vld [vmem:[#allocation2 + $0xa0] sm:$0xff]  ;;  %v3288_v18 = vadd.f32 %v8044_v7, %v638_v2  ;;  %v5613_v20 = vadd.f32 %v5612_v10, %v5611_v11  ;;  %v6386_v21 = vadd.f32 %v6385_v15, %v6384_v62  ;;  %v5620_v55 = vsel %vm354_vm2, %v3799_v6, 0.0  ;;  %v8456_v11 = vld [vmem:[%s8733_s15 + $0x2e8] sm:$0xff]  }
 0x142   : > { %v3800_v17 = vld [vmem:[#allocation2 + $0xb8] sm:$0xff]  ;;  %v2337_v19 = vpop.f32.mrf.mxu0  ;;  %v7633_v22 = vpack.c.bf16 %v4062_v12, %v4062_v12  ;;  %v4060_v23 = vadd.f32 %v9414_v27, %v3797_v16  ;;  %5338 = vst.msk [vmem:[%s9431_s25 + $0x44] sm:$0xf] %vm5320_vm3, %v7628_v14  ;;  %v6116_v26 = vmul.f32 %v3797_v16, %v3797_v16  ;;  %v5616_v36 = vsel %vm354_vm2, %v3797_v16, 0.0  ;;  %v643_v15 = vld [vmem:[#allocation2 + $0x100] sm:$0xff] }
 0x143   : > { %v4063_v28 = vadd.f32 %v9414_v27, %v3800_v17  ;;  %3545 = vst.msk [vmem:[#allocation2 + $0xd8] sm:$0xff] %vm354_vm2, %v3288_v18  ;;  %v5615_v33 = vadd.f32 %v5614_v25, %v5613_v20  ;;  %v6388_v34 = vadd.f32 %v6387_v24, %v6386_v21  ;;  %v6119_v62 = vmul.f32 %v3800_v17, %v3800_v17  ;;  %v646_v21 = vld [vmem:[#allocation2 + $0x118] sm:$0xff] }
 0x144   : > { %v3798_v29 = vld [vmem:[#allocation2 + $0xa8] sm:$0xff]  ;;  %v8047_v30 = vpop.f32.mrf.mxu0  ;;  %8142 = vmatmul.mubr.msk.bf16.gmra.mxu0 %vm1815_vm1, %v8426_v8  ;;  %5343 = vst.msk [vmem:[%s9431_s25 + $0x58] sm:$0xf] %vm5320_vm3, %v7633_v22  ;;  %v7631_v31 = vpack.c.bf16 %v4060_v23, %v4060_v23  ;;  %v6391_v46 = vsel %vm354_vm2, %v6116_v26, 0.0  ;;  %v3286_v3 = vadd.f32 %v2337_v19, %v636_v50  ;;  %v6395_v5 = vsel %vm354_vm2, %v6118_v45, 0.0 }
 0x145   : > { %v7634_v37 = vpack.c.bf16 %v4063_v28, %v4063_v28  ;;  %v4061_v38 = vadd.f32 %v9414_v27, %v3798_v29  ;;  %v6390_v41 = vadd.f32 %v6389_v35, %v6388_v34  ;;  %v5617_v42 = vadd.f32 %v5616_v36, %v5615_v33 }
 0x146   : > { %v9616_v39 = vld [vmem:[#allocation2 + $0xd0] sm:$0xff]  ;;  %v2350_v40 = vpop.f32.mrf.mxu0  ;;  %5341 = vst.msk [vmem:[%s9431_s25 + $0x50] sm:$0xf] %vm5320_vm3, %v7631_v31  ;;  %v5618_v43 = vsel %vm354_vm2, %v3798_v29, 0.0  ;;  %v6117_v44 = vmul.f32 %v3798_v29, %v3798_v29  ;;  %v5622_v6 = vsel %vm354_vm2, %v3800_v17, 0.0  ;;  %v3291_v14 = vadd.f32 %v8047_v30, %v641_v58  ;;  %8202 = vmatmul.mubr.msk.bf16.gmra.mxu1 %vm1815_vm1, %v8456_v11  ;;  %v644_v29 = vld [vmem:[#allocation2 + $0x108] sm:$0xff] }
 0x147   : > { %5344 = vst.msk [vmem:[%s9431_s25 + $0x5c] sm:$0xf] %vm5320_vm3, %v7634_v37  ;;  %v7632_v47 = vpack.c.bf16 %v4061_v38, %v4061_v38  ;;  %v4066_v48 = vadd.f32 %v9414_v27, %v9616_v39  ;;  %v6392_v52 = vadd.f32 %v6391_v46, %v6390_v41  ;;  %v5619_v53 = vadd.f32 %v5618_v43, %v5617_v42  ;;  %v649_v31 = vld [vmem:[#allocation2 + $0x130] sm:$0xff]  ;;  %v8458_v43 = vld [vmem:[%s8733_s15 + $0x2f8] sm:$0xff]  }
 0x148   : > { %v3801_v49 = vld [vmem:[#allocation2 + $0xc0] sm:$0xff]  ;;  %v8048_v51 = vpop.f32.mrf.mxu0  ;;  %v6393_v54 = vsel %vm354_vm2, %v6117_v44, 0.0  ;;  %3543 = vst.msk [vmem:[#allocation2 + $0xc8] sm:$0xff] %vm354_vm2, %v3286_v3  ;;  %v3289_v17 = vadd.f32 %v2350_v40, %v639_v59  ;;  %v6397_v22 = vsel %vm354_vm2, %v6119_v62, 0.0  ;;  %3548 = vst.msk [vmem:[#allocation2 + $0xf0] sm:$0xff] %vm354_vm2, %v3291_v14  ;;  %v8457_v37 = vld [vmem:[%s8733_s15 + $0x2f0] sm:$0xff]   ;;  %v6122_v38 = vmul.f32 %v9616_v39, %v9616_v39 }
 0x149   : > { %5342 = vst.msk [vmem:[%s9431_s25 + $0x54] sm:$0xf] %vm5320_vm3, %v7632_v47  ;;  %v7637_v56 = vpack.c.bf16 %v4066_v48, %v4066_v48  ;;  %v4064_v57 = vadd.f32 %v9414_v27, %v3801_v49  ;;  %v5621_v63 = vadd.f32 %v5620_v55, %v5619_v53  ;;  %v6394_v1 = vadd.f32 %v6393_v54, %v6392_v52 }
 0x14a   : > { %v2353_v61 = vpop.f32.mrf.mxu0  ;;  %v9632_v2 = vld [vmem:[#allocation2 + $0xd8] sm:$0xff]  ;;  %v3292_v18 = vadd.f32 %v8048_v51, %v642_v60  ;;  %v6120_v23 = vmul.f32 %v3801_v49, %v3801_v49  ;;  %3546 = vst.msk [vmem:[#allocation2 + $0xe0] sm:$0xff] %vm354_vm2, %v3289_v17  ;;  %v5624_v30 = vsel %vm354_vm2, %v3801_v49, 0.0  ;;  %8205 = vmatprep.mubr.msk.bf16.mxu1 %vm1815_vm1, %v8457_v37  ;;  %v5628_v48 = vsel %vm354_vm2, %v9616_v39, 0.0 }
 0x14b   : > { %5347 = vst.msk [vmem:[%s9431_s25 + $0x68] sm:$0xf] %vm5320_vm3, %v7637_v56  ;;  %v7635_v7 = vpack.c.bf16 %v4064_v57, %v4064_v57  ;;  %v4067_v8 = vadd.f32 %v9414_v27, %v9632_v2  ;;  %v5623_v12 = vadd.f32 %v5622_v6, %v5621_v63  ;;  %v6396_v13 = vadd.f32 %v6395_v5, %v6394_v1 }
 0x14c   : > { %v8051_v10 = vpop.f32.mrf.mxu0  ;;  %v3290_v19 = vadd.f32 %v2353_v61, %v640_v0  ;;  %3549 = vst.msk [vmem:[#allocation2 + $0xf8] sm:$0xff] %vm354_vm2, %v3292_v18  ;;  %v6399_v35 = vsel %vm354_vm2, %v6120_v23, 0.0  ;;  %v6123_v52 = vmul.f32 %v9632_v2, %v9632_v2  ;;  %v6403_v39 = vsel %vm354_vm2, %v6122_v38, 0.0 }
 0x14d   : > { %5345 = vst.msk [vmem:[%s9431_s25 + $0x60] sm:$0xf] %vm5320_vm3, %v7635_v7  ;;  %v7638_v16 = vpack.c.bf16 %v4067_v8, %v4067_v8  ;;  %v3295_v24 = vadd.f32 %v8051_v10, %v645_v9  ;;  %v6398_v25 = vadd.f32 %v6397_v22, %v6396_v13  ;;  %v5625_v33 = vadd.f32 %v5624_v30, %v5623_v12  ;;  %v8459_v12 = vld [vmem:[%s8733_s15 + $0x300] sm:$0xff]  }
 0x14e   : > { %v2366_v20 = vpop.f32.mrf.mxu0  ;;  %3547 = vst.msk [vmem:[#allocation2 + $0xe8] sm:$0xff] %vm354_vm2, %v3290_v19  ;;  %8206 = vmatmul.mubr.msk.bf16.gmra.mxu1 %vm1815_vm1, %v8458_v43  ;;  %v5630_v62 = vsel %vm354_vm2, %v9632_v2, 0.0  ;;  %v6405_v2 = vsel %vm354_vm2, %v6123_v52, 0.0  ;;  %v8460_v19 = vld [vmem:[%s8733_s15 + $0x308] sm:$0xff]  }
 0x14f   : > { %5348 = vst.msk [vmem:[%s9431_s25 + $0x6c] sm:$0xf] %vm5320_vm3, %v7638_v16  ;;  %v3293_v26 = vadd.f32 %v2366_v20, %v643_v15  ;;  %v6400_v40 = vadd.f32 %v6399_v35, %v6398_v25  ;;  %v3802_v41 = vld [vmem:[#allocation2 + $0xc8] sm:$0xff]  ;;  %v3807_v50 = vld [vmem:[#allocation2 + $0xf0] sm:$0xff]  ;;  %8209 = vmatprep.mubr.msk.bf16.mxu1 %vm1815_vm1, %v8459_v12 }
 0x150   : > { %v8052_v28 = vpop.f32.mrf.mxu0  ;;  %3552 = vst.msk [vmem:[#allocation2 + $0x110] sm:$0xff] %vm354_vm2, %v3295_v24  ;;  %v4065_v44 = vadd.f32 %v9414_v27, %v3802_v41  ;;  %v5626_v45 = vsel %vm354_vm2, %v3802_v41, 0.0  ;;  %v6121_v46 = vmul.f32 %v3802_v41, %v3802_v41  ;;  %v4070_v55 = vadd.f32 %v9414_v27, %v3807_v50 }
 0x151   : > { %v3296_v32 = vadd.f32 %v8052_v28, %v646_v21  ;;  %3550 = vst.msk [vmem:[#allocation2 + $0x100] sm:$0xff] %vm354_vm2, %v3293_v26  ;;  %v5627_v49 = vadd.f32 %v5626_v45, %v5625_v33  ;;  %v3805_v56 = vld [vmem:[#allocation2 + $0xe0] sm:$0xff]  ;;  %v6126_v9 = vmul.f32 %v3807_v50, %v3807_v50  ;;  %v5636_v30 = vsel %vm354_vm2, %v3807_v50, 0.0 }
 0x152   : > { %v2369_v34 = vpop.f32.mrf.mxu0  ;;  %v7636_v53 = vpack.c.bf16 %v4065_v44, %v4065_v44  ;;  %v6401_v54 = vsel %vm354_vm2, %v6121_v46, 0.0  ;;  %v4068_v60 = vadd.f32 %v9414_v27, %v3805_v56  ;;  %v7641_v63 = vpack.c.bf16 %v4070_v55, %v4070_v55  ;;  %v647_v50 = vld [vmem:[#allocation2 + $0x120] sm:$0xff] }
 0x153   : > { %3553 = vst.msk [vmem:[#allocation2 + $0x118] sm:$0xff] %vm354_vm2, %v3296_v32  ;;  %v3294_v36 = vadd.f32 %v2369_v34, %v644_v29  ;;  %v3808_v57 = vld [vmem:[#allocation2 + $0xf8] sm:$0xff]  ;;  %v5629_v58 = vadd.f32 %v5628_v48, %v5627_v49  ;;  %v6402_v59 = vadd.f32 %v6401_v54, %v6400_v40  ;;  %v6124_v1 = vmul.f32 %v3805_v56, %v3805_v56 }
 0x154   : > { %v8055_v42 = vpop.f32.mrf.mxu0  ;;  %5346 = vst.msk [vmem:[%s9431_s25 + $0x64] sm:$0xf] %vm5320_vm3, %v7636_v53  ;;  %v4071_v3 = vadd.f32 %v9414_v27, %v3808_v57  ;;  %v7639_v6 = vpack.c.bf16 %v4068_v60, %v4068_v60  ;;  %5351 = vst.msk [vmem:[%s9431_s25 + $0x78] sm:$0xf] %vm5320_vm3, %v7641_v63  ;;  %v5632_v10 = vsel %vm354_vm2, %v3805_v56, 0.0  ;;  %v6127_v21 = vmul.f32 %v3808_v57, %v3808_v57 }
 0x155   : > { %3551 = vst.msk [vmem:[#allocation2 + $0x108] sm:$0xff] %vm354_vm2, %v3294_v36  ;;  %v3299_v47 = vadd.f32 %v8055_v42, %v649_v31  ;;  %v3806_v0 = vld [vmem:[#allocation2 + $0xe8] sm:$0xff]  ;;  %v5631_v4 = vadd.f32 %v5630_v62, %v5629_v58  ;;  %v6404_v5 = vadd.f32 %v6403_v39, %v6402_v59  ;;  %v6407_v20 = vsel %vm354_vm2, %v6124_v1, 0.0  ;;  %v8461_v58 = vld [vmem:[%s8733_s15 + $0x310] sm:$0xff]  }
 0x156   : > { %v9669_v51 = vpop.f32.mrf.mxu0  ;;  %v7642_v11 = vpack.c.bf16 %v4071_v3, %v4071_v3  ;;  %5349 = vst.msk [vmem:[%s9431_s25 + $0x70] sm:$0xf] %vm5320_vm3, %v7639_v6  ;;  %v4069_v15 = vadd.f32 %v9414_v27, %v3806_v0  ;;  %v5634_v16 = vsel %vm354_vm2, %v3806_v0, 0.0  ;;  %v6125_v22 = vmul.f32 %v3806_v0, %v3806_v0  ;;  %8210 = vmatmul.mubr.msk.bf16.gmra.mxu1 %vm1815_vm1, %v8460_v19  ;;  %v648_v39 = vld [vmem:[#allocation2 + $0x128] sm:$0xff]  ;;  %v653_v1 = vld [vmem:[#allocation2 + $0x150] sm:$0xff]  ;;  %v651_v3 = vld [vmem:[#allocation2 + $0x140] sm:$0xff] }
 0x157   : > { %3556 = vst.msk [vmem:[#allocation2 + $0x130] sm:$0xff] %vm354_vm2, %v3299_v47  ;;  %v9686_v7 = vld [vmem:[#allocation2 + $0x110] sm:$0xff]  ;;  %v6406_v13 = vadd.f32 %v6405_v2, %v6404_v5  ;;  %v5633_v14 = vadd.f32 %v5632_v10, %v5631_v4  ;;  %v6411_v35 = vsel %vm354_vm2, %v6126_v9, 0.0  ;;  %v5638_v36 = vsel %vm354_vm2, %v3808_v57, 0.0  ;;  %v650_v57 = vld [vmem:[#allocation2 + $0x138] sm:$0xff]  ;;  %8213 = vmatprep.mubr.msk.bf16.mxu1 %vm1815_vm1, %v8461_v58 }
 0x158   : > { %v9679_v61 = vpop.f32.mrf.mxu0  ;;  %v3809_v17 = vld [vmem:[#allocation2 + $0x100] sm:$0xff]  ;;  %5352 = vst.msk [vmem:[%s9431_s25 + $0x7c] sm:$0xf] %vm5320_vm3, %v7642_v11  ;;  %v4074_v23 = vadd.f32 %v9414_v27, %v9686_v7  ;;  %v7640_v25 = vpack.c.bf16 %v4069_v15, %v4069_v15  ;;  %v6409_v32 = vsel %vm354_vm2, %v6125_v22, 0.0  ;;  %v6413_v41 = vsel %vm354_vm2, %v6127_v21, 0.0  ;;  %v8462_v4 = vld [vmem:[%s8733_s15 + $0x318] sm:$0xff]  }
 0x159   : > { %v6408_v24 = vadd.f32 %v6407_v20, %v6406_v13  ;;  %v5635_v26 = vadd.f32 %v5634_v16, %v5633_v14  ;;  %v4072_v34 = vadd.f32 %v9414_v27, %v3809_v17  ;;  %v6128_v43 = vmul.f32 %v3809_v17, %v3809_v17  ;;  %v654_v10 = vld [vmem:[#allocation2 + $0x158] sm:$0xff]  ;;  %v652_v11 = vld [vmem:[#allocation2 + $0x148] sm:$0xff]  ;;  %v657_v15 = vld [vmem:[#allocation2 + $0x170] sm:$0xff] }
 0x15a   : > { %v9688_v8 = vpop.f32.mrf.mxu0  ;;  %v9708_v28 = vld [vmem:[#allocation2 + $0x118] sm:$0xff]  ;;  %v7645_v33 = vpack.c.bf16 %v4074_v23, %v4074_v23  ;;  %5350 = vst.msk [vmem:[%s9431_s25 + $0x74] sm:$0xf] %vm5320_vm3, %v7640_v25  ;;  %v6130_v48 = vmul.f32 %v9686_v7, %v9686_v7  ;;  %v5640_v53 = vsel %vm354_vm2, %v3809_v17, 0.0  ;;  %v5644_v5 = vsel %vm354_vm2, %v9686_v7, 0.0  ;;  %v655_v16 = vld [vmem:[#allocation2 + $0x160] sm:$0xff] }
 0x15b   : > { %v5637_v37 = vadd.f32 %v5636_v30, %v5635_v26  ;;  %v6410_v38 = vadd.f32 %v6409_v32, %v6408_v24  ;;  %v7643_v42 = vpack.c.bf16 %v4072_v34, %v4072_v34  ;;  %v4075_v44 = vadd.f32 %v9414_v27, %v9708_v28  ;;  %v658_v19 = vld [vmem:[#allocation2 + $0x178] sm:$0xff]  ;;  %v656_v30 = vld [vmem:[#allocation2 + $0x168] sm:$0xff] }
 0x15c   : > { %v9699_v18 = vpop.f32.mrf.mxu0  ;;  %v3810_v31 = vld [vmem:[#allocation2 + $0x108] sm:$0xff]  ;;  %5355 = vst.msk [vmem:[%s9431_s25 + $0x88] sm:$0xf] %vm5320_vm3, %v7645_v33  ;;  %v6415_v6 = vsel %vm354_vm2, %v6128_v43, 0.0  ;;  %v3297_v9 = vadd.f32 %v9669_v51, %v647_v50  ;;  %v3300_v7 = vadd.f32 %v9679_v61, %v650_v57  ;;  %v6419_v51 = vsel %vm354_vm2, %v6130_v48, 0.0 }
 0x15d   : > { %v5639_v46 = vadd.f32 %v5638_v36, %v5637_v37  ;;  %v6412_v47 = vadd.f32 %v6411_v35, %v6410_v38  ;;  %v4073_v49 = vadd.f32 %v9414_v27, %v3810_v31  ;;  %5353 = vst.msk [vmem:[%s9431_s25 + $0x80] sm:$0xf] %vm5320_vm3, %v7643_v42  ;;  %v7646_v54 = vpack.c.bf16 %v4075_v44, %v4075_v44  ;;  %v9738_v27 = vld [vmem:[%s12761_s2] ss:$0 sm:$0xff] }
 0x15e   : > { %v9710_v29 = vpop.f32.mrf.mxu0  ;;  %v9725_v45 = vld [vmem:[#allocation2 + $0x130] sm:$0xff]  ;;  %v5642_v55 = vsel %vm354_vm2, %v3810_v31, 0.0  ;;  %v6129_v56 = vmul.f32 %v3810_v31, %v3810_v31  ;;  %8214 = vmatmul.mubr.msk.bf16.gmra.mxu1 %vm1815_vm1, %v8462_v4  ;;  %3554 = vst.msk [vmem:[#allocation2 + $0x120] sm:$0xff] %vm354_vm2, %v3297_v9  ;;  %v3298_v20 = vadd.f32 %v9688_v8, %v648_v39  ;;  %v3303_v21 = vadd.f32 %v9699_v18, %v653_v1 }
 0x15f   : > { %v6414_v59 = vadd.f32 %v6413_v41, %v6412_v47  ;;  %v5641_v60 = vadd.f32 %v5640_v53, %v5639_v46  ;;  %v7644_v62 = vpack.c.bf16 %v4073_v49, %v4073_v49  ;;  %v4078_v63 = vadd.f32 %v9738_v27, %v9725_v45  ;;  %5356 = vst.msk [vmem:[%s9431_s25 + $0x8c] sm:$0xf] %vm5320_vm3, %v7646_v54  ;;  %v661_v31 = vld [vmem:[#allocation2 + $0x190] sm:$0xff]  ;;  %v8464_v53 = vld [vmem:[%s8733_s15 + $0x328] sm:$0xff]  }
 0x160   : > { %v8060_v40 = vpop.f32.mrf.mxu0  ;;  %v6417_v2 = vsel %vm354_vm2, %v6129_v56, 0.0  ;;  %v3301_v22 = vadd.f32 %v9710_v29, %v651_v3  ;;  %3557 = vst.msk [vmem:[#allocation2 + $0x138] sm:$0xff] %vm354_vm2, %v3300_v7  ;;  %v6131_v32 = vmul.f32 %v9708_v28, %v9708_v28  ;;  %3555 = vst.msk [vmem:[#allocation2 + $0x128] sm:$0xff] %vm354_vm2, %v3298_v20  ;;  %v5646_v35 = vsel %vm354_vm2, %v9708_v28, 0.0  ;;  %v8463_v28 = vld [vmem:[%s8733_s15 + $0x320] sm:$0xff]  }
 0x161   : > { %v6416_v12 = vadd.f32 %v6415_v6, %v6414_v59  ;;  %5354 = vst.msk [vmem:[%s9431_s25 + $0x84] sm:$0xf] %vm5320_vm3, %v7644_v62  ;;  %v5643_v13 = vadd.f32 %v5642_v55, %v5641_v60  ;;  %v7649_v14 = vpack.c.bf16 %v4078_v63, %v4078_v63  ;;  %v3304_v61 = vadd.f32 %v8060_v40, %v654_v10  ;;  %v659_v40 = vld [vmem:[#allocation2 + $0x180] sm:$0xff] }
 0x162   : > { %v2401_v52 = vpop.f32.mrf.mxu0  ;;  %3560 = vst.msk [vmem:[#allocation2 + $0x150] sm:$0xff] %vm354_vm2, %v3303_v21  ;;  %3558 = vst.msk [vmem:[#allocation2 + $0x140] sm:$0xff] %vm354_vm2, %v3301_v22  ;;  %v6421_v41 = vsel %vm354_vm2, %v6131_v32, 0.0  ;;  %8217 = vmatprep.mubr.msk.bf16.mxu1 %vm1815_vm1, %v8463_v28  ;;  %v6134_v1 = vmul.f32 %v9725_v45, %v9725_v45 }
 0x163   : > { %v5645_v23 = vadd.f32 %v5644_v5, %v5643_v13  ;;  %v6418_v24 = vadd.f32 %v6417_v2, %v6416_v12  ;;  %5359 = vst.msk [vmem:[%s9431_s25 + $0x98] sm:$0xf] %vm5320_vm3, %v7649_v14  ;;  %v3302_v25 = vadd.f32 %v2401_v52, %v652_v11  ;;  %v5652_v2 = vsel %vm354_vm2, %v9725_v45, 0.0 }
 0x164   : > { %v8063_v0 = vpop.f32.mrf.mxu0  ;;  %3561 = vst.msk [vmem:[#allocation2 + $0x158] sm:$0xff] %vm354_vm2, %v3304_v61  ;;  %v8465_v61 = vld [vmem:[%s8733_s15 + $0x330] sm:$0xff]  }
 0x165   : > { %v3307_v8 = vadd.f32 %v8063_v0, %v657_v15  ;;  %v6420_v33 = vadd.f32 %v6419_v51, %v6418_v24  ;;  %3559 = vst.msk [vmem:[#allocation2 + $0x148] sm:$0xff] %vm354_vm2, %v3302_v25  ;;  %v5647_v37 = vadd.f32 %v5646_v35, %v5645_v23  ;;  %v3813_v44 = vld [vmem:[#allocation2 + $0x120] sm:$0xff]  ;;  %v6427_v51 = vsel %vm354_vm2, %v6134_v1, 0.0 }
 0x166   : > { %v2414_v17 = vpop.f32.mrf.mxu0  ;;  %v4076_v47 = vadd.f32 %v9738_v27, %v3813_v44  ;;  %v5648_v48 = vsel %vm354_vm2, %v3813_v44, 0.0  ;;  %v6132_v49 = vmul.f32 %v3813_v44, %v3813_v44  ;;  %8218 = vmatmul.mubr.msk.bf16.gmra.mxu1 %vm1815_vm1, %v8464_v53 }
 0x167   : > { %v3305_v18 = vadd.f32 %v2414_v17, %v655_v16  ;;  %3564 = vst.msk [vmem:[#allocation2 + $0x170] sm:$0xff] %vm354_vm2, %v3307_v8  ;;  %v6422_v43 = vadd.f32 %v6421_v41, %v6420_v33  ;;  %v3816_v50 = vld [vmem:[#allocation2 + $0x138] sm:$0xff]  ;;  %v5649_v54 = vadd.f32 %v5648_v48, %v5647_v37  ;;  %v3814_v56 = vld [vmem:[#allocation2 + $0x128] sm:$0xff]  ;;  %8221 = vmatprep.mubr.msk.bf16.mxu1 %vm1815_vm1, %v8465_v61 }
 0x168   : > { %v8064_v26 = vpop.f32.mrf.mxu0  ;;  %v4079_v55 = vadd.f32 %v9738_v27, %v3816_v50  ;;  %v7647_v58 = vpack.c.bf16 %v4076_v47, %v4076_v47  ;;  %v6423_v59 = vsel %vm354_vm2, %v6132_v49, 0.0  ;;  %v4077_v60 = vadd.f32 %v9738_v27, %v3814_v56  ;;  %v8466_v8 = vld [vmem:[%s8733_s15 + $0x338] sm:$0xff]   ;;  %v660_v61 = vld [vmem:[#allocation2 + $0x188] sm:$0xff] }
 0x169   : > { %v3308_v29 = vadd.f32 %v8064_v26, %v658_v19  ;;  %3562 = vst.msk [vmem:[#allocation2 + $0x160] sm:$0xff] %vm354_vm2, %v3305_v18  ;;  %v3819_v57 = vld [vmem:[#allocation2 + $0x150] sm:$0xff]  ;;  %v5650_v62 = vsel %vm354_vm2, %v3814_v56, 0.0  ;;  %v3817_v63 = vld [vmem:[#allocation2 + $0x140] sm:$0xff]  ;;  %v6424_v3 = vadd.f32 %v6423_v59, %v6422_v43  ;;  %v6133_v10 = vmul.f32 %v3814_v56, %v3814_v56 }
 0x16a   : > { %v2417_v34 = vpop.f32.mrf.mxu0  ;;  %v7650_v0 = vpack.c.bf16 %v4079_v55, %v4079_v55  ;;  %v5651_v4 = vadd.f32 %v5650_v62, %v5649_v54  ;;  %5357 = vst.msk [vmem:[%s9431_s25 + $0x90] sm:$0xf] %vm5320_vm3, %v7647_v58  ;;  %v7648_v9 = vpack.c.bf16 %v4077_v60, %v4077_v60  ;;  %v4082_v11 = vadd.f32 %v9738_v27, %v3819_v57 }
 0x16b   : > { %3565 = vst.msk [vmem:[#allocation2 + $0x178] sm:$0xff] %vm354_vm2, %v3308_v29  ;;  %v3306_v36 = vadd.f32 %v2417_v34, %v656_v30  ;;  %v3820_v5 = vld [vmem:[#allocation2 + $0x158] sm:$0xff]  ;;  %v5654_v12 = vsel %vm354_vm2, %v3816_v50, 0.0  ;;  %v4080_v14 = vadd.f32 %v9738_v27, %v3817_v63  ;;  %v6135_v15 = vmul.f32 %v3816_v50, %v3816_v50 }
 0x16c   : > { %v8067_v38 = vpop.f32.mrf.mxu0  ;;  %5360 = vst.msk [vmem:[%s9431_s25 + $0x9c] sm:$0xf] %vm5320_vm3, %v7650_v0  ;;  %v5653_v13 = vadd.f32 %v5652_v2, %v5651_v4  ;;  %5358 = vst.msk [vmem:[%s9431_s25 + $0x94] sm:$0xf] %vm5320_vm3, %v7648_v9  ;;  %v6425_v45 = vsel %vm354_vm2, %v6133_v10, 0.0  ;;  %v7653_v16 = vpack.c.bf16 %v4082_v11, %v4082_v11  ;;  %v4083_v17 = vadd.f32 %v9738_v27, %v3820_v5  ;;  %v3818_v19 = vld [vmem:[#allocation2 + $0x148] sm:$0xff] }
 0x16d   : > { %3563 = vst.msk [vmem:[#allocation2 + $0x168] sm:$0xff] %vm354_vm2, %v3306_v36  ;;  %v3311_v42 = vadd.f32 %v8067_v38, %v661_v31  ;;  %v6426_v21 = vadd.f32 %v6425_v45, %v6424_v3  ;;  %v7651_v22 = vpack.c.bf16 %v4080_v14, %v4080_v14  ;;  %v6138_v25 = vmul.f32 %v3819_v57, %v3819_v57  ;;  %v8467_v2 = vld [vmem:[%s8733_s15 + $0x340] sm:$0xff]  }
 0x16e   : > { %v2430_v46 = vpop.f32.mrf.mxu0  ;;  %v5655_v20 = vadd.f32 %v5654_v12, %v5653_v13  ;;  %v9811_v23 = vld [vmem:[#allocation2 + $0x170] sm:$0xff]  ;;  %5363 = vst.msk [vmem:[%s9431_s25 + $0xa8] sm:$0xf] %vm5320_vm3, %v7653_v16  ;;  %v5656_v26 = vsel %vm354_vm2, %v3817_v63, 0.0  ;;  %v6136_v30 = vmul.f32 %v3817_v63, %v3817_v63  ;;  %v7654_v32 = vpack.c.bf16 %v4083_v17, %v4083_v17  ;;  %8222 = vmatmul.mubr.msk.bf16.gmra.mxu1 %vm1815_vm1, %v8466_v8  ;;  %v8468_v13 = vld [vmem:[%s8733_s15 + $0x348] sm:$0xff]   ;;  %v662_v17 = vld [vmem:[#allocation2 + $0x198] sm:$0xff] }
 0x16f   : > { %3568 = vst.msk [vmem:[#allocation2 + $0x190] sm:$0xff] %vm354_vm2, %v3311_v42  ;;  %v3309_v52 = vadd.f32 %v2430_v46, %v659_v40  ;;  %v6428_v18 = vadd.f32 %v6427_v51, %v6426_v21  ;;  %v4081_v33 = vadd.f32 %v9738_v27, %v3818_v19  ;;  %v5658_v34 = vsel %vm354_vm2, %v3818_v19, 0.0  ;;  %8225 = vmatprep.mubr.msk.bf16.mxu1 %vm1815_vm1, %v8467_v2  ;;  %v663_v8 = vld [vmem:[#allocation2 + $0x1a0] sm:$0xff] }
 0x170   : > { %v9783_v39 = vpop.f32.mrf.mxu0  ;;  %5361 = vst.msk [vmem:[%s9431_s25 + $0xa0] sm:$0xf] %vm5320_vm3, %v7651_v22  ;;  %v5657_v29 = vadd.f32 %v5656_v26, %v5655_v20  ;;  %v3821_v31 = vld [vmem:[#allocation2 + $0x160] sm:$0xff]  ;;  %v6429_v36 = vsel %vm354_vm2, %v6135_v15, 0.0  ;;  %5364 = vst.msk [vmem:[%s9431_s25 + $0xac] sm:$0xf] %vm5320_vm3, %v7654_v32  ;;  %v6137_v37 = vmul.f32 %v3818_v19, %v3818_v19  ;;  %v4086_v38 = vadd.f32 %v9738_v27, %v9811_v23 }
 0x171   : > { %3566 = vst.msk [vmem:[#allocation2 + $0x180] sm:$0xff] %vm354_vm2, %v3309_v52  ;;  %v6430_v40 = vadd.f32 %v6429_v36, %v6428_v18  ;;  %v5660_v41 = vsel %vm354_vm2, %v3819_v57, 0.0  ;;  %v7652_v42 = vpack.c.bf16 %v4081_v33, %v4081_v33  ;;  %v6431_v28 = vsel %vm354_vm2, %v6136_v30, 0.0  ;;  %v666_v18 = vld [vmem:[#allocation2 + $0x1b8] sm:$0xff] }
 0x172   : > { %v9793_v6 = vpop.f32.mrf.mxu0  ;;  %v5659_v43 = vadd.f32 %v5658_v34, %v5657_v29  ;;  %v9834_v44 = vld [vmem:[#allocation2 + $0x178] sm:$0xff]  ;;  %v6433_v47 = vsel %vm354_vm2, %v6137_v37, 0.0  ;;  %v7657_v48 = vpack.c.bf16 %v4086_v38, %v4086_v38  ;;  %v4084_v49 = vadd.f32 %v9738_v27, %v3821_v31  ;;  %v664_v29 = vld [vmem:[#allocation2 + $0x1a8] sm:$0xff]  ;;  %v669_v38 = vld [vmem:[#allocation2 + $0x1d0] sm:$0xff] }
 0x173   : > { %v6435_v52 = vsel %vm354_vm2, %v6138_v25, 0.0  ;;  %v6432_v53 = vadd.f32 %v6431_v28, %v6430_v40  ;;  %v5662_v54 = vsel %vm354_vm2, %v3820_v5, 0.0  ;;  %5362 = vst.msk [vmem:[%s9431_s25 + $0xa4] sm:$0xf] %vm5320_vm3, %v7652_v42  ;;  %v6139_v57 = vmul.f32 %v3820_v5, %v3820_v5  ;;  %v665_v25 = vld [vmem:[#allocation2 + $0x1b0] sm:$0xff]  ;;  %v667_v40 = vld [vmem:[#allocation2 + $0x1c0] sm:$0xff] }
 0x174   : > { %v9804_v7 = vpop.f32.mrf.mxu0  ;;  %v3822_v50 = vld [vmem:[#allocation2 + $0x168] sm:$0xff]  ;;  %v5661_v55 = vadd.f32 %v5660_v41, %v5659_v43  ;;  %5367 = vst.msk [vmem:[%s9431_s25 + $0xb8] sm:$0xf] %vm5320_vm3, %v7657_v48  ;;  %v6142_v58 = vmul.f32 %v9811_v23, %v9811_v23  ;;  %v7655_v59 = vpack.c.bf16 %v4084_v49, %v4084_v49  ;;  %v4087_v60 = vadd.f32 %v9738_v27, %v9834_v44  ;;  %v670_v41 = vld [vmem:[#allocation2 + $0x1d8] sm:$0xff]  ;;  %v673_v49 = vld [vmem:[#allocation2 + $0x1f0] sm:$0xff] }
 0x175   : > { %v6434_v1 = vadd.f32 %v6433_v47, %v6432_v53  ;;  %v5664_v3 = vsel %vm354_vm2, %v3821_v31, 0.0  ;;  %v4085_v0 = vadd.f32 %v9738_v27, %v3822_v50  ;;  %v6140_v9 = vmul.f32 %v3821_v31, %v3821_v31  ;;  %v668_v48 = vld [vmem:[#allocation2 + $0x1c8] sm:$0xff] }
 0x176   : > { %v9813_v24 = vpop.f32.mrf.mxu0  ;;  %v9853_v62 = vld [vmem:[#allocation2 + $0x190] sm:$0xff]  ;;  %v5663_v63 = vadd.f32 %v5662_v54, %v5661_v55  ;;  %5365 = vst.msk [vmem:[%s9431_s25 + $0xb0] sm:$0xf] %vm5320_vm3, %v7655_v59  ;;  %v7658_v10 = vpack.c.bf16 %v4087_v60, %v4087_v60  ;;  %v5666_v11 = vsel %vm354_vm2, %v3822_v50, 0.0  ;;  %v6141_v12 = vmul.f32 %v3822_v50, %v3822_v50  ;;  %8226 = vmatmul.mubr.msk.bf16.gmra.mxu1 %vm1815_vm1, %v8468_v13  ;;  %v674_v59 = vld [vmem:[#allocation2 + $0x1f8] sm:$0xff] }
 0x177   : > { %v6436_v14 = vadd.f32 %v6435_v52, %v6434_v1  ;;  %v7656_v45 = vpack.c.bf16 %v4085_v0, %v4085_v0  ;;  %v4090_v16 = vadd.f32 %v9738_v27, %v9853_v62  ;;  %v6437_v51 = vsel %vm354_vm2, %v6139_v57, 0.0  ;;  %v671_v52 = vld [vmem:[#allocation2 + $0x1e0] sm:$0xff]  ;;  %v8469_v60 = vld [vmem:[%s8733_s15 + $0x350] sm:$0xff]   ;;  %v8470_v1 = vld [vmem:[%s8733_s15 + $0x358] sm:$0xff]  }
 0x178   : > { %v9824_v35 = vpop.f32.mrf.mxu0  ;;  %v9857_v4 = vld [vmem:[#allocation2 + $0x180] sm:$0xff]  ;;  %v5665_v15 = vadd.f32 %v5664_v3, %v5663_v63  ;;  %v5668_v20 = vsel %vm354_vm2, %v9811_v23, 0.0  ;;  %v6443_v21 = vsel %vm354_vm2, %v6142_v58, 0.0  ;;  %5368 = vst.msk [vmem:[%s9431_s25 + $0xbc] sm:$0xf] %vm5320_vm3, %v7658_v10  ;;  %v5670_v30 = vsel %vm354_vm2, %v9834_v44, 0.0  ;;  %8229 = vmatprep.mubr.msk.bf16.mxu1 %vm1815_vm1, %v8469_v60 }
 0x179   : > { %v4088_v22 = vadd.f32 %v9738_v27, %v9857_v4  ;;  %v6438_v26 = vadd.f32 %v6437_v51, %v6436_v14  ;;  %5366 = vst.msk [vmem:[%s9431_s25 + $0xb4] sm:$0xf] %vm5320_vm3, %v7656_v45  ;;  %v7661_v23 = vpack.c.bf16 %v4090_v16, %v4090_v16  ;;  %v6439_v34 = vsel %vm354_vm2, %v6140_v9, 0.0  ;;  %v677_v13 = vld [vmem:[#allocation2 + $0x210] sm:$0xff] }
 0x17a   : > { %v9836_v46 = vpop.f32.mrf.mxu0  ;;  %v5667_v32 = vadd.f32 %v5666_v11, %v5665_v15  ;;  %v6441_v31 = vsel %vm354_vm2, %v6141_v12, 0.0  ;;  %v3312_v37 = vadd.f32 %v9783_v39, %v662_v17  ;;  %v3310_v28 = vadd.f32 %v9793_v6, %v660_v61 }
 0x17b   : > { %v7659_v36 = vpack.c.bf16 %v4088_v22, %v4088_v22  ;;  %v6440_v42 = vadd.f32 %v6439_v34, %v6438_v26  ;;  %5371 = vst.msk [vmem:[%s9431_s25 + $0xc8] sm:$0xf] %vm5320_vm3, %v7661_v23  ;;  %v3315_v47 = vadd.f32 %v9804_v7, %v665_v25  ;;  %v6143_v53 = vmul.f32 %v9834_v44, %v9834_v44 }
 0x17c   : > { %v9845_v56 = vpop.f32.mrf.mxu0  ;;  %v5669_v43 = vadd.f32 %v5668_v20, %v5667_v32  ;;  %3569 = vst.msk [vmem:[#allocation2 + $0x198] sm:$0xff] %vm354_vm2, %v3312_v37  ;;  %v3313_v39 = vadd.f32 %v9813_v24, %v663_v8  ;;  %v3316_v54 = vadd.f32 %v9824_v35, %v666_v18  ;;  %v3314_v6 = vadd.f32 %v9836_v46, %v664_v29 }
 0x17d   : > { %5369 = vst.msk [vmem:[%s9431_s25 + $0xc0] sm:$0xf] %vm5320_vm3, %v7659_v36  ;;  %v6442_v7 = vadd.f32 %v6441_v31, %v6440_v42  ;;  %v3319_v57 = vadd.f32 %v9845_v56, %v669_v38  ;;  %v6144_v0 = vmul.f32 %v9857_v4, %v9857_v4  ;;  %v6445_v2 = vsel %vm354_vm2, %v6143_v53, 0.0 }
 0x17e   : > { %v2462_v5 = vpop.f32.mrf.mxu0  ;;  %v5671_v55 = vadd.f32 %v5670_v30, %v5669_v43  ;;  %3567 = vst.msk [vmem:[#allocation2 + $0x188] sm:$0xff] %vm354_vm2, %v3310_v28  ;;  %3572 = vst.msk [vmem:[#allocation2 + $0x1b0] sm:$0xff] %vm354_vm2, %v3315_v47  ;;  %8230 = vmatmul.mubr.msk.bf16.gmra.mxu1 %vm1815_vm1, %v8470_v1  ;;  %v5672_v11 = vsel %vm354_vm2, %v9857_v4, 0.0  ;;  %v6146_v45 = vmul.f32 %v9853_v62, %v9853_v62  ;;  %v5676_v18 = vsel %vm354_vm2, %v9853_v62, 0.0  ;;  %v8471_v47 = vld [vmem:[%s8733_s15 + $0x360] sm:$0xff]  }
 0x17f   : > { %v3317_v44 = vadd.f32 %v2462_v5, %v667_v40  ;;  %3570 = vst.msk [vmem:[#allocation2 + $0x1a0] sm:$0xff] %vm354_vm2, %v3313_v39  ;;  %3573 = vst.msk [vmem:[#allocation2 + $0x1b8] sm:$0xff] %vm354_vm2, %v3316_v54  ;;  %v6444_v3 = vadd.f32 %v6443_v21, %v6442_v7  ;;  %v672_v5 = vld [vmem:[#allocation2 + $0x1e8] sm:$0xff]  ;;  %v6447_v16 = vsel %vm354_vm2, %v6144_v0, 0.0  ;;  %8233 = vmatprep.mubr.msk.bf16.mxu1 %vm1815_vm1, %v8471_v47 }
 0x180   : > { %v8076_v19 = vpop.f32.mrf.mxu0  ;;  %3571 = vst.msk [vmem:[#allocation2 + $0x1a8] sm:$0xff] %vm354_vm2, %v3314_v6  ;;  %3576 = vst.msk [vmem:[#allocation2 + $0x1d0] sm:$0xff] %vm354_vm2, %v3319_v57  ;;  %v5673_v14 = vadd.f32 %v5672_v11, %v5671_v55  ;;  %v6451_v31 = vsel %vm354_vm2, %v6146_v45, 0.0  ;;  %v8472_v39 = vld [vmem:[%s8733_s15 + $0x368] sm:$0xff]  }
 0x181   : > { %v3320_v24 = vadd.f32 %v8076_v19, %v670_v41  ;;  %3574 = vst.msk [vmem:[#allocation2 + $0x1c0] sm:$0xff] %vm354_vm2, %v3317_v44  ;;  %v6446_v10 = vadd.f32 %v6445_v2, %v6444_v3 }
 0x182   : > { %v2465_v33 = vpop.f32.mrf.mxu0 }
 0x183   : > { %v3318_v35 = vadd.f32 %v2465_v33, %v668_v48  ;;  %3577 = vst.msk [vmem:[#allocation2 + $0x1d8] sm:$0xff] %vm354_vm2, %v3320_v24  ;;  %v3828_v17 = vld [vmem:[#allocation2 + $0x198] sm:$0xff]  ;;  %v6448_v51 = vadd.f32 %v6447_v16, %v6446_v10 }
 0x184   : > { %v8079_v50 = vpop.f32.mrf.mxu0  ;;  %v4091_v20 = vadd.f32 %v9738_v27, %v3828_v17  ;;  %v6147_v21 = vmul.f32 %v3828_v17, %v3828_v17  ;;  %v5678_v48 = vsel %vm354_vm2, %v3828_v17, 0.0 }
 0x185   : > { %v3323_v46 = vadd.f32 %v8079_v50, %v673_v49  ;;  %3575 = vst.msk [vmem:[#allocation2 + $0x1c8] sm:$0xff] %vm354_vm2, %v3318_v35  ;;  %v3826_v22 = vld [vmem:[#allocation2 + $0x188] sm:$0xff]  ;;  %v3831_v61 = vld [vmem:[#allocation2 + $0x1b0] sm:$0xff] }
 0x186   : > { %v2478_v58 = vpop.f32.mrf.mxu0  ;;  %v4089_v25 = vadd.f32 %v9738_v27, %v3826_v22  ;;  %v5674_v26 = vsel %vm354_vm2, %v3826_v22, 0.0  ;;  %v6145_v30 = vmul.f32 %v3826_v22, %v3826_v22  ;;  %v4094_v32 = vadd.f32 %v9738_v27, %v3831_v61  ;;  %v3829_v23 = vld [vmem:[#allocation2 + $0x1a0] sm:$0xff]  ;;  %v3832_v34 = vld [vmem:[#allocation2 + $0x1b8] sm:$0xff]  ;;  %8234 = vmatmul.mubr.msk.bf16.gmra.mxu1 %vm1815_vm1, %v8472_v39 }
 0x187   : > { %v3321_v63 = vadd.f32 %v2478_v58, %v671_v52  ;;  %3580 = vst.msk [vmem:[#allocation2 + $0x1f0] sm:$0xff] %vm354_vm2, %v3323_v46  ;;  %v7662_v29 = vpack.c.bf16 %v4091_v20, %v4091_v20  ;;  %v5675_v33 = vadd.f32 %v5674_v26, %v5673_v14  ;;  %v6150_v42 = vmul.f32 %v3831_v61, %v3831_v61  ;;  %v3830_v28 = vld [vmem:[#allocation2 + $0x1a8] sm:$0xff]  ;;  %v3835_v57 = vld [vmem:[#allocation2 + $0x1d0] sm:$0xff]  ;;  %v8474_v26 = vld [vmem:[%s8733_s15 + $0x378] sm:$0xff]  }
 0x188   : > { %v8080_v56 = vpop.f32.mrf.mxu0  ;;  %v7660_v36 = vpack.c.bf16 %v4089_v25, %v4089_v25  ;;  %v6449_v37 = vsel %vm354_vm2, %v6145_v30, 0.0  ;;  %v7665_v38 = vpack.c.bf16 %v4094_v32, %v4094_v32  ;;  %v4092_v43 = vadd.f32 %v9738_v27, %v3829_v23  ;;  %v3833_v24 = vld [vmem:[#allocation2 + $0x1c0] sm:$0xff]  ;;  %v8473_v20 = vld [vmem:[%s8733_s15 + $0x370] sm:$0xff]  }
 0x189   : > { %3578 = vst.msk [vmem:[#allocation2 + $0x1e0] sm:$0xff] %vm354_vm2, %v3321_v63  ;;  %v3324_v9 = vadd.f32 %v8080_v56, %v674_v59  ;;  %v5677_v62 = vadd.f32 %v5676_v18, %v5675_v33  ;;  %v6450_v41 = vadd.f32 %v6449_v37, %v6448_v51  ;;  %v6453_v49 = vsel %vm354_vm2, %v6147_v21, 0.0  ;;  %8237 = vmatprep.mubr.msk.bf16.mxu1 %vm1815_vm1, %v8473_v20 }
 0x18a   : > { %v2481_v12 = vpop.f32.mrf.mxu0  ;;  %5372 = vst.msk [vmem:[%s9431_s25 + $0xcc] sm:$0xf] %vm5320_vm3, %v7662_v29  ;;  %5370 = vst.msk [vmem:[%s9431_s25 + $0xc4] sm:$0xf] %vm5320_vm3, %v7660_v36  ;;  %v6148_v50 = vmul.f32 %v3829_v23, %v3829_v23  ;;  %v4095_v52 = vadd.f32 %v9738_v27, %v3832_v34  ;;  %v5684_v55 = vsel %vm354_vm2, %v3831_v61, 0.0  ;;  %v7663_v7 = vpack.c.bf16 %v4092_v43, %v4092_v43 }
 0x18b   : > { %3581 = vst.msk [vmem:[#allocation2 + $0x1f8] sm:$0xff] %vm354_vm2, %v3324_v9  ;;  %v3322_v15 = vadd.f32 %v2481_v12, %v672_v5  ;;  %v5679_v54 = vadd.f32 %v5678_v48, %v5677_v62  ;;  %v6452_v6 = vadd.f32 %v6451_v31, %v6450_v41  ;;  %v5680_v44 = vsel %vm354_vm2, %v3829_v23, 0.0  ;;  %v3836_v9 = vld [vmem:[#allocation2 + $0x1d8] sm:$0xff] }
 0x18c   : > { %v8083_v19 = vpop.f32.mrf.mxu0  ;;  %5375 = vst.msk [vmem:[%s9431_s25 + $0xd8] sm:$0xf] %vm5320_vm3, %v7665_v38  ;;  %v7666_v58 = vpack.c.bf16 %v4095_v52, %v4095_v52  ;;  %v4093_v59 = vadd.f32 %v9738_v27, %v3830_v28  ;;  %v5682_v60 = vsel %vm354_vm2, %v3830_v28, 0.0  ;;  %v6459_v63 = vsel %vm354_vm2, %v6150_v42, 0.0  ;;  %5373 = vst.msk [vmem:[%s9431_s25 + $0xd0] sm:$0xf] %vm5320_vm3, %v7663_v7 }
 0x18d   : > { %3579 = vst.msk [vmem:[#allocation2 + $0x1e8] sm:$0xff] %vm354_vm2, %v3322_v15  ;;  %v3327_v4 = vadd.f32 %v8083_v19, %v677_v13  ;;  %v6454_v46 = vadd.f32 %v6453_v49, %v6452_v6  ;;  %v5681_v1 = vadd.f32 %v5680_v44, %v5679_v54  ;;  %v6149_v3 = vmul.f32 %v3830_v28, %v3830_v28  ;;  %v3834_v15 = vld [vmem:[#allocation2 + $0x1c8] sm:$0xff] }
 0x18e   : > { %v9925_v8 = vpop.f32.mrf.mxu0  ;;  %v6455_v0 = vsel %vm354_vm2, %v6148_v50, 0.0  ;;  %5376 = vst.msk [vmem:[%s9431_s25 + $0xdc] sm:$0xf] %vm5320_vm3, %v7666_v58  ;;  %v6151_v56 = vmul.f32 %v3832_v34, %v3832_v34  ;;  %v7664_v5 = vpack.c.bf16 %v4093_v59, %v4093_v59  ;;  %v4098_v2 = vadd.f32 %v9738_v27, %v3835_v57  ;;  %v3839_v25 = vld [vmem:[#allocation2 + $0x1f0] sm:$0xff]  ;;  %8238 = vmatmul.mubr.msk.bf16.gmra.mxu1 %vm1815_vm1, %v8474_v26  ;;  %v10028_v26 = vpop.f32.mrf.mxu1 }
 0x18f   : > { %3584 = vst.msk [vmem:[#allocation2 + $0x210] sm:$0xff] %vm354_vm2, %v3327_v4  ;;  %v6456_v11 = vadd.f32 %v6455_v0, %v6454_v46  ;;  %v5683_v12 = vadd.f32 %v5682_v60, %v5681_v1  ;;  %v6457_v13 = vsel %vm354_vm2, %v6149_v3, 0.0  ;;  %v4096_v14 = vadd.f32 %v9738_v27, %v3833_v24  ;;  %v8475_v0 = vld [vmem:[%s8733_s15 + $0x380] sm:$0xff]  }
 0x190   : > { %v9932_v40 = vpop.f32.mrf.mxu0  ;;  %v5686_v45 = vsel %vm354_vm2, %v3832_v34, 0.0  ;;  %5374 = vst.msk [vmem:[%s9431_s25 + $0xd4] sm:$0xf] %vm5320_vm3, %v7664_v5  ;;  %v7669_v16 = vpack.c.bf16 %v4098_v2, %v4098_v2  ;;  %v6154_v17 = vmul.f32 %v3835_v57, %v3835_v57  ;;  %v6152_v19 = vmul.f32 %v3833_v24, %v3833_v24  ;;  %v3837_v37 = vld [vmem:[#allocation2 + $0x1e0] sm:$0xff]  ;;  %8241 = vmatprep.mubr.msk.bf16.mxu1 %vm1815_vm1, %v8475_v0 }
 0x191   : > { %v5685_v21 = vadd.f32 %v5684_v55, %v5683_v12  ;;  %v6458_v22 = vadd.f32 %v6457_v13, %v6456_v11  ;;  %v7667_v61 = vpack.c.bf16 %v4096_v14, %v4096_v14  ;;  %v4099_v4 = vadd.f32 %v9738_v27, %v3836_v9  ;;  %v675_v11 = vld [vmem:[#allocation2 + $0x200] sm:$0xff]  ;;  %v8476_v12 = vld [vmem:[%s8733_s15 + $0x388] sm:$0xff]  }
 0x192   : > { %v9945_v53 = vpop.f32.mrf.mxu0  ;;  %v6461_v30 = vsel %vm354_vm2, %v6151_v56, 0.0  ;;  %5379 = vst.msk [vmem:[%s9431_s25 + $0xe8] sm:$0xf] %vm5320_vm3, %v7669_v16  ;;  %v5692_v32 = vsel %vm354_vm2, %v3835_v57, 0.0  ;;  %v5688_v23 = vsel %vm354_vm2, %v3833_v24, 0.0  ;;  %v4097_v18 = vadd.f32 %v9738_v27, %v3834_v15  ;;  %v3840_v50 = vld [vmem:[#allocation2 + $0x1f8] sm:$0xff] }
 0x193   : > { %v5687_v33 = vadd.f32 %v5686_v45, %v5685_v21  ;;  %v6460_v34 = vadd.f32 %v6459_v63, %v6458_v22  ;;  %5377 = vst.msk [vmem:[%s9431_s25 + $0xe0] sm:$0xf] %vm5320_vm3, %v7667_v61  ;;  %v7670_v31 = vpack.c.bf16 %v4099_v4, %v4099_v4  ;;  %v6155_v36 = vmul.f32 %v3836_v9, %v3836_v9  ;;  %v678_v16 = vld [vmem:[#allocation2 + $0x218] sm:$0xff]  ;;  %v676_v61 = vld [vmem:[#allocation2 + $0x208] sm:$0xff]  ;;  %v681_v4 = vld [vmem:[#allocation2 + $0x230] sm:$0xff] }
 0x194   : > { %v9953_v35 = vpop.f32.mrf.mxu0  ;;  %v7668_v38 = vpack.c.bf16 %v4097_v18, %v4097_v18  ;;  %v5690_v62 = vsel %vm354_vm2, %v3834_v15, 0.0  ;;  %v6153_v41 = vmul.f32 %v3834_v15, %v3834_v15  ;;  %v4102_v42 = vadd.f32 %v9738_v27, %v3839_v25  ;;  %v3838_v55 = vld [vmem:[#allocation2 + $0x1e8] sm:$0xff] }
 0x195   : > { %v6462_v28 = vadd.f32 %v6461_v30, %v6460_v34  ;;  %v6467_v47 = vsel %vm354_vm2, %v6154_v17, 0.0  ;;  %v5689_v48 = vadd.f32 %v5688_v23, %v5687_v33  ;;  %v6463_v49 = vsel %vm354_vm2, %v6152_v19, 0.0  ;;  %5380 = vst.msk [vmem:[%s9431_s25 + $0xec] sm:$0xf] %vm5320_vm3, %v7670_v31  ;;  %v682_v33 = vld [vmem:[#allocation2 + $0x238] sm:$0xff]  ;;  %v680_v34 = vld [vmem:[#allocation2 + $0x228] sm:$0xff] }
 0x196   : > { %v9963_v10 = vpop.f32.mrf.mxu0  ;;  %5378 = vst.msk [vmem:[%s9431_s25 + $0xe4] sm:$0xf] %vm5320_vm3, %v7668_v38  ;;  %v6465_v52 = vsel %vm354_vm2, %v6153_v41, 0.0  ;;  %v7673_v39 = vpack.c.bf16 %v4102_v42, %v4102_v42  ;;  %v6158_v54 = vmul.f32 %v3839_v25, %v3839_v25  ;;  %v4100_v6 = vadd.f32 %v9738_v27, %v3837_v37  ;;  %v10009_v1 = vld [vmem:[#allocation2 + $0x210] sm:$0xff]  ;;  %8242 = vmatmul.mubr.msk.bf16.gmra.mxu1 %vm1815_vm1, %v8476_v12  ;;  %v683_v42 = vld [vmem:[#allocation2 + $0x240] sm:$0xff] }
 0x197   : > { %v6464_v57 = vadd.f32 %v6463_v49, %v6462_v28  ;;  %v5694_v44 = vsel %vm354_vm2, %v3836_v9, 0.0  ;;  %v6469_v58 = vsel %vm354_vm2, %v6155_v36, 0.0  ;;  %v5691_v59 = vadd.f32 %v5690_v62, %v5689_v48  ;;  %v685_v31 = vld [vmem:[#allocation2 + $0x250] sm:$0xff]  ;;  %v686_v28 = vld [vmem:[#allocation2 + $0x258] sm:$0xff]  ;;  %v2750_v48 = vpop.f32.mrf.mxu1 }
 0x198   : > { %v9970_v51 = vpop.f32.mrf.mxu0  ;;  %5383 = vst.msk [vmem:[%s9431_s25 + $0xf8] sm:$0xf] %vm5320_vm3, %v7673_v39  ;;  %v10006_v60 = vsel %vm354_vm2, %v3839_v25, 0.0  ;;  %v7671_v24 = vpack.c.bf16 %v4100_v6, %v4100_v6  ;;  %v6156_v46 = vmul.f32 %v3837_v37, %v3837_v37  ;;  %v4103_v63 = vadd.f32 %v9738_v27, %v3840_v50  ;;  %v679_v25 = vld [vmem:[#allocation2 + $0x220] sm:$0xff]  ;;  %v689_v39 = vld [vmem:[#allocation2 + $0x270] sm:$0xff] }
 0x199   : > { %v5693_v56 = vadd.f32 %v5692_v32, %v5691_v59  ;;  %v6466_v5 = vadd.f32 %v6465_v52, %v6464_v57  ;;  %v5696_v2 = vsel %vm354_vm2, %v3837_v37, 0.0  ;;  %v4101_v9 = vadd.f32 %v9738_v27, %v3838_v55 }
 0x19a   : > { %v9981_v29 = vpop.f32.mrf.mxu0  ;;  %v10018_v13 = vsel %vm354_vm2, %v6158_v54, 0.0  ;;  %5381 = vst.msk [vmem:[%s9431_s25 + $0xf0] sm:$0xf] %vm5320_vm3, %v7671_v24  ;;  %v7674_v14 = vpack.c.bf16 %v4103_v63, %v4103_v63  ;;  %v10023_v15 = vsel %vm354_vm2, %v3840_v50, 0.0  ;;  %v6157_v45 = vmul.f32 %v3838_v55, %v3838_v55  ;;  %v687_v54 = vld [vmem:[#allocation2 + $0x260] sm:$0xff]  ;;  %v688_v63 = vld [vmem:[#allocation2 + $0x268] sm:$0xff] }
 0x19b   : > { %v5695_v19 = vadd.f32 %v5694_v44, %v5693_v56  ;;  %v6468_v20 = vadd.f32 %v6467_v47, %v6466_v5  ;;  %v7672_v21 = vpack.c.bf16 %v4101_v9, %v4101_v9  ;;  %v4106_v22 = vadd.f32 %v9738_v27, %v10009_v1  ;;  %v684_v47 = vld [vmem:[#allocation2 + $0x248] sm:$0xff]  ;;  %v742_v9 = vld [vmem:[#allocation2 + $0x418] sm:$0xff] }
 0x19c   : > { %v9988_v43 = vpop.f32.mrf.mxu0  ;;  %v6471_v30 = vsel %vm354_vm2, %v6156_v46, 0.0  ;;  %5384 = vst.msk [vmem:[%s9431_s25 + $0xfc] sm:$0xf] %vm5320_vm3, %v7674_v14  ;;  %v10033_v32 = vmul.f32 %v3840_v50, %v3840_v50  ;;  %v5698_v23 = vsel %vm354_vm2, %v3838_v55, 0.0  ;;  %v3325_v18 = vadd.f32 %v9925_v8, %v675_v11  ;;  %v693_v11 = vld [vmem:[#allocation2 + $0x290] sm:$0xff] }
 0x19d   : > { %v6470_v37 = vadd.f32 %v6469_v58, %v6468_v20  ;;  %v5697_v38 = vadd.f32 %v5696_v2, %v5695_v19  ;;  %5382 = vst.msk [vmem:[%s9431_s25 + $0xf4] sm:$0xf] %vm5320_vm3, %v7672_v21  ;;  %v7677_v62 = vpack.c.bf16 %v4106_v22, %v4106_v22  ;;  %v3328_v41 = vadd.f32 %v9932_v40, %v678_v16  ;;  %v690_v58 = vld [vmem:[#allocation2 + $0x278] sm:$0xff]  ;;  %v741_v2 = vld [vmem:[#allocation2 + $0x410] sm:$0xff]  ;;  %v740_v16 = vld [vmem:[#allocation2 + $0x408] sm:$0xff] }
 0x19e   : > { %v9999_v7 = vpop.f32.mrf.mxu0  ;;  %v6473_v8 = vsel %vm354_vm2, %v6157_v45, 0.0  ;;  %3582 = vst.msk [vmem:[#allocation2 + $0x200] sm:$0xff] %vm354_vm2, %v3325_v18  ;;  %v3326_v49 = vadd.f32 %v9945_v53, %v676_v61  ;;  %v3331_v50 = vadd.f32 %v9953_v35, %v681_v4  ;;  %v3329_v52 = vadd.f32 %v9963_v10, %v679_v25  ;;  %v8148_v53 = vpop.f32.mrf.mxu1 }
 0x19f   : > { %v6472_v55 = vadd.f32 %v6471_v30, %v6470_v37  ;;  %v5699_v57 = vadd.f32 %v5698_v23, %v5697_v38  ;;  %5387 = vst.msk [vmem:[%s9431_s25 + $0x108] sm:$0xf] %vm5320_vm3, %v7677_v62  ;;  %v3332_v40 = vadd.f32 %v9970_v51, %v682_v33  ;;  %v3330_v44 = vadd.f32 %v9981_v29, %v680_v34  ;;  %v8477_v51 = vld [vmem:[%s8733_s15 + $0x390] sm:$0xff]  }
 0x1a0   : > { %v10011_v3 = vpop.f32.mrf.mxu0  ;;  %3585 = vst.msk [vmem:[#allocation2 + $0x218] sm:$0xff] %vm354_vm2, %v3328_v41  ;;  %3583 = vst.msk [vmem:[#allocation2 + $0x208] sm:$0xff] %vm354_vm2, %v3326_v49  ;;  %v3335_v35 = vadd.f32 %v9988_v43, %v685_v31  ;;  %v3333_v10 = vadd.f32 %v9999_v7, %v683_v42  ;;  %v739_v43 = vld [vmem:[#allocation2 + $0x400] sm:$0xff]  ;;  %v2753_v7 = vpop.f32.mrf.mxu1  ;;  %v3391_v12 = vadd.f32 %v10028_v26, %v741_v2  ;;  %8245 = vmatprep.mubr.msk.bf16.mxu1 %vm1815_vm1, %v8477_v51 }
 0x1a1   : > { %3588 = vst.msk [vmem:[#allocation2 + $0x230] sm:$0xff] %vm354_vm2, %v3331_v50  ;;  %3586 = vst.msk [vmem:[#allocation2 + $0x220] sm:$0xff] %vm354_vm2, %v3329_v52  ;;  %v3336_v59 = vadd.f32 %v10011_v3, %v686_v28  ;;  %v5701_v29 = vadd.f32 %v10006_v60, %v5699_v57  ;;  %v6474_v0 = vadd.f32 %v6473_v8, %v6472_v55  ;;  %v6477_v4 = vsel %vm354_vm2, %v10033_v32, 0.0  ;;  %v8479_v49 = vld [vmem:[%s8733_s15 + $0x3a0] sm:$0xff]  }
 0x1a2   : > { %v2529_v17 = vpop.f32.mrf.mxu0  ;;  %3589 = vst.msk [vmem:[#allocation2 + $0x238] sm:$0xff] %vm354_vm2, %v3332_v40  ;;  %3587 = vst.msk [vmem:[#allocation2 + $0x228] sm:$0xff] %vm354_vm2, %v3330_v44  ;;  %v3389_v14 = vadd.f32 %v2750_v48, %v739_v43  ;;  %v3392_v45 = vadd.f32 %v8148_v53, %v742_v9  ;;  %v3390_v22 = vadd.f32 %v2753_v7, %v740_v16  ;;  %v10072_v61 = vpop.f32.mrf.mxu1  ;;  %v5708_v50 = vsel %vm354_vm2, %v10009_v1, 0.0  ;;  %v10112_v44 = vld [vmem:[%s12761_s2] ss:$0 sm:$0xff] }
 0x1a3   : > { %v3334_v24 = vadd.f32 %v2529_v17, %v684_v47  ;;  %3592 = vst.msk [vmem:[#allocation2 + $0x250] sm:$0xff] %vm354_vm2, %v3335_v35  ;;  %3590 = vst.msk [vmem:[#allocation2 + $0x240] sm:$0xff] %vm354_vm2, %v3333_v10  ;;  %v8478_v17 = vld [vmem:[%s8733_s15 + $0x398] sm:$0xff]   ;;  %v5703_v19 = vadd.f32 %v10023_v15, %v5701_v29  ;;  %v6476_v20 = vadd.f32 %v10018_v13, %v6474_v0 }
 0x1a4   : > { %v8095_v36 = vpop.f32.mrf.mxu0  ;;  %3593 = vst.msk [vmem:[#allocation2 + $0x258] sm:$0xff] %vm354_vm2, %v3336_v59  ;;  %3648 = vst.msk [vmem:[#allocation2 + $0x410] sm:$0xff] %vm354_vm2, %v3391_v12  ;;  %8246 = vmatmul.mubr.msk.bf16.gmra.mxu1 %vm1815_vm1, %v8478_v17  ;;  %v10083_v30 = vpop.f32.mrf.mxu1 }
 0x1a5   : > { %v3339_v56 = vadd.f32 %v8095_v36, %v689_v39  ;;  %3591 = vst.msk [vmem:[#allocation2 + $0x248] sm:$0xff] %vm354_vm2, %v3334_v24  ;;  %3646 = vst.msk [vmem:[#allocation2 + $0x400] sm:$0xff] %vm354_vm2, %v3389_v14  ;;  %v6478_v13 = vadd.f32 %v6477_v4, %v6476_v20  ;;  %v3841_v15 = vld [vmem:[#allocation2 + $0x200] sm:$0xff]  ;;  %8249 = vmatprep.mubr.msk.bf16.mxu1 %vm1815_vm1, %v8479_v49 }
 0x1a6   : > { %v2542_v6 = vpop.f32.mrf.mxu0  ;;  %3649 = vst.msk [vmem:[#allocation2 + $0x418] sm:$0xff] %vm354_vm2, %v3392_v45  ;;  %3647 = vst.msk [vmem:[#allocation2 + $0x408] sm:$0xff] %vm354_vm2, %v3390_v22  ;;  %v4104_v32 = vadd.f32 %v9738_v27, %v3841_v15  ;;  %v5704_v23 = vsel %vm354_vm2, %v3841_v15, 0.0  ;;  %v6160_v18 = vmul.f32 %v3841_v15, %v3841_v15  ;;  %v10091_v62 = vpop.f32.mrf.mxu1  ;;  %v8480_v45 = vld [vmem:[%s8733_s15 + $0x3a8] sm:$0xff]  }
 0x1a7   : > { %v3337_v5 = vadd.f32 %v2542_v6, %v687_v54  ;;  %3596 = vst.msk [vmem:[#allocation2 + $0x270] sm:$0xff] %vm354_vm2, %v3339_v56  ;;  %v3844_v33 = vld [vmem:[#allocation2 + $0x218] sm:$0xff]  ;;  %v5705_v31 = vadd.f32 %v5704_v23, %v5703_v19  ;;  %v3842_v37 = vld [vmem:[#allocation2 + $0x208] sm:$0xff] }
 0x1a8   : > { %v8096_v46 = vpop.f32.mrf.mxu0  ;;  %v4107_v36 = vadd.f32 %v9738_v27, %v3844_v33  ;;  %v3847_v38 = vld [vmem:[#allocation2 + $0x230] sm:$0xff]  ;;  %v7675_v41 = vpack.c.bf16 %v4104_v32, %v4104_v32  ;;  %v6479_v42 = vsel %vm354_vm2, %v6160_v18, 0.0  ;;  %v4105_v28 = vadd.f32 %v9738_v27, %v3842_v37  ;;  %v3845_v48 = vld [vmem:[#allocation2 + $0x220] sm:$0xff]  ;;  %v10103_v55 = vpop.f32.mrf.mxu1 }
 0x1a9   : > { %v3340_v60 = vadd.f32 %v8096_v46, %v690_v58  ;;  %3594 = vst.msk [vmem:[#allocation2 + $0x260] sm:$0xff] %vm354_vm2, %v3337_v5  ;;  %v5706_v47 = vsel %vm354_vm2, %v3842_v37, 0.0  ;;  %v6480_v52 = vadd.f32 %v6479_v42, %v6478_v13  ;;  %v10101_v6 = vld [vmem:[#allocation2 + $0x238] sm:$0xff]  ;;  %v6162_v27 = vmul.f32 %v10009_v1, %v10009_v1  ;;  %v3846_v29 = vld [vmem:[#allocation2 + $0x228] sm:$0xff]  ;;  %v8481_v32 = vld [vmem:[%s8733_s15 + $0x3b0] sm:$0xff]  }
 0x1aa   : > { %v2545_v3 = vpop.f32.mrf.mxu0  ;;  %v7678_v39 = vpack.c.bf16 %v4107_v36, %v4107_v36  ;;  %v5707_v54 = vadd.f32 %v5706_v47, %v5705_v31  ;;  %5385 = vst.msk [vmem:[%s9431_s25 + $0x100] sm:$0xf] %vm5320_vm3, %v7675_v41  ;;  %v7676_v57 = vpack.c.bf16 %v4105_v28, %v4105_v28  ;;  %v6161_v40 = vmul.f32 %v3842_v37, %v3842_v37  ;;  %v10122_v59 = vpop.f32.mrf.mxu1  ;;  %v10131_v9 = vld [vmem:[#allocation2 + $0x250] sm:$0xff] }
 0x1ab   : > { %v3338_v21 = vadd.f32 %v2545_v3, %v688_v63  ;;  %3597 = vst.msk [vmem:[#allocation2 + $0x278] sm:$0xff] %vm354_vm2, %v3340_v60  ;;  %v4110_v58 = vadd.f32 %v10112_v44, %v3847_v38  ;;  %v5710_v35 = vsel %vm354_vm2, %v3844_v33, 0.0  ;;  %v4108_v10 = vadd.f32 %v10112_v44, %v3845_v48  ;;  %v3852_v36 = vld [vmem:[#allocation2 + $0x258] sm:$0xff] }
 0x1ac   : > { %v8099_v25 = vpop.f32.mrf.mxu0  ;;  %5388 = vst.msk [vmem:[%s9431_s25 + $0x10c] sm:$0xf] %vm5320_vm3, %v7678_v39  ;;  %v5709_v1 = vadd.f32 %v5708_v50, %v5707_v54  ;;  %v6163_v24 = vmul.f32 %v3844_v33, %v3844_v33  ;;  %5386 = vst.msk [vmem:[%s9431_s25 + $0x104] sm:$0xf] %vm5320_vm3, %v7676_v57  ;;  %v6481_v46 = vsel %vm354_vm2, %v6161_v40, 0.0  ;;  %v4111_v51 = vadd.f32 %v10112_v44, %v10101_v6  ;;  %v10133_v7 = vpop.f32.mrf.mxu1  ;;  %v3850_v47 = vld [vmem:[#allocation2 + $0x248] sm:$0xff] }
 0x1ad   : > { %3595 = vst.msk [vmem:[#allocation2 + $0x268] sm:$0xff] %vm354_vm2, %v3338_v21  ;;  %v3343_v26 = vadd.f32 %v8099_v25, %v693_v11  ;;  %v7681_v63 = vpack.c.bf16 %v4110_v58, %v4110_v58  ;;  %v6482_v5 = vadd.f32 %v6481_v46, %v6480_v52  ;;  %v6166_v2 = vmul.f32 %v3847_v38, %v3847_v38  ;;  %v3849_v21 = vld [vmem:[#allocation2 + $0x240] sm:$0xff] }
 0x1ae   : > { %v10087_v34 = vpop.f32.mrf.mxu0  ;;  %v5711_v56 = vadd.f32 %v5710_v35, %v5709_v1  ;;  %v7679_v43 = vpack.c.bf16 %v4108_v10, %v4108_v10  ;;  %v6483_v60 = vsel %vm354_vm2, %v6162_v27, 0.0  ;;  %v5712_v3 = vsel %vm354_vm2, %v3845_v48, 0.0  ;;  %v10146_v22 = vpop.f32.mrf.mxu1  ;;  %8250 = vmatmul.mubr.msk.bf16.gmra.mxu1 %vm1815_vm1, %v8480_v45  ;;  %v3855_v35 = vld [vmem:[#allocation2 + $0x270] sm:$0xff] }
 0x1af   : > { %3600 = vst.msk [vmem:[#allocation2 + $0x290] sm:$0xff] %vm354_vm2, %v3343_v26  ;;  %v6164_v11 = vmul.f32 %v3845_v48, %v3845_v48  ;;  %v7682_v12 = vpack.c.bf16 %v4111_v51, %v4111_v51  ;;  %v6484_v16 = vadd.f32 %v6483_v60, %v6482_v5  ;;  %v4109_v19 = vadd.f32 %v10112_v44, %v3846_v29 }
 0x1b0   : > { %v10096_v8 = vpop.f32.mrf.mxu0  ;;  %5391 = vst.msk [vmem:[%s9431_s25 + $0x118] sm:$0xf] %vm5320_vm3, %v7681_v63  ;;  %5389 = vst.msk [vmem:[%s9431_s25 + $0x110] sm:$0xf] %vm5320_vm3, %v7679_v43  ;;  %v5713_v17 = vadd.f32 %v5712_v3, %v5711_v56  ;;  %v5714_v20 = vsel %vm354_vm2, %v3846_v29, 0.0  ;;  %v6485_v4 = vsel %vm354_vm2, %v6163_v24, 0.0  ;;  %v6165_v13 = vmul.f32 %v3846_v29, %v3846_v29  ;;  %v10159_v37 = vpop.f32.mrf.mxu1  ;;  %8253 = vmatprep.mubr.msk.bf16.mxu1 %vm1815_vm1, %v8481_v32 }
 0x1b1   : > { %v5716_v25 = vsel %vm354_vm2, %v3847_v38, 0.0  ;;  %5392 = vst.msk [vmem:[%s9431_s25 + $0x11c] sm:$0xf] %vm5320_vm3, %v7682_v12  ;;  %v4114_v15 = vadd.f32 %v10112_v44, %v10131_v9  ;;  %v6486_v23 = vadd.f32 %v6485_v4, %v6484_v16  ;;  %v6491_v18 = vsel %vm354_vm2, %v6166_v2, 0.0  ;;  %v3853_v51 = vld [vmem:[#allocation2 + $0x260] sm:$0xff] }
 0x1b2   : > { %v10115_v53 = vpop.f32.mrf.mxu0  ;;  %v7680_v33 = vpack.c.bf16 %v4109_v19, %v4109_v19  ;;  %v5715_v31 = vadd.f32 %v5714_v20, %v5713_v17  ;;  %v6487_v38 = vsel %vm354_vm2, %v6164_v11, 0.0  ;;  %v6489_v41 = vsel %vm354_vm2, %v6165_v13, 0.0  ;;  %v10173_v54 = vpop.f32.mrf.mxu1  ;;  %v10193_v16 = vld [vmem:[#allocation2 + $0x278] sm:$0xff]  ;;  %v8483_v13 = vld [vmem:[%s8733_s15 + $0x3c0] sm:$0xff]  }
 0x1b3   : > { %v7685_v42 = vpack.c.bf16 %v4114_v15, %v4114_v15  ;;  %v4112_v28 = vadd.f32 %v10112_v44, %v3849_v21  ;;  %v6488_v49 = vadd.f32 %v6487_v38, %v6486_v23  ;;  %v5718_v50 = vsel %vm354_vm2, %v10101_v6, 0.0 }
 0x1b4   : > { %v10129_v0 = vpop.f32.mrf.mxu0  ;;  %v6167_v52 = vmul.f32 %v10101_v6, %v10101_v6  ;;  %5390 = vst.msk [vmem:[%s9431_s25 + $0x114] sm:$0xf] %vm5320_vm3, %v7680_v33  ;;  %v5717_v39 = vadd.f32 %v5716_v25, %v5715_v31  ;;  %v6170_v27 = vmul.f32 %v10131_v9, %v10131_v9  ;;  %v5720_v40 = vsel %vm354_vm2, %v3849_v21, 0.0  ;;  %v8482_v6 = vld [vmem:[%s8733_s15 + $0x3b8] sm:$0xff]   ;;  %v10185_v29 = vpop.f32.mrf.mxu1 }
 0x1b5   : > { %5395 = vst.msk [vmem:[%s9431_s25 + $0x128] sm:$0xf] %vm5320_vm3, %v7685_v42  ;;  %v7683_v57 = vpack.c.bf16 %v4112_v28, %v4112_v28  ;;  %v4115_v58 = vadd.f32 %v10112_v44, %v3852_v36  ;;  %v6490_v24 = vadd.f32 %v6489_v41, %v6488_v49  ;;  %v6168_v46 = vmul.f32 %v3849_v21, %v3849_v21 }
 0x1b6   : > { %v10139_v14 = vpop.f32.mrf.mxu0  ;;  %v5719_v10 = vadd.f32 %v5718_v50, %v5717_v39  ;;  %v4113_v63 = vadd.f32 %v10112_v44, %v3850_v47  ;;  %v6171_v5 = vmul.f32 %v3852_v36, %v3852_v36  ;;  %v5722_v2 = vsel %vm354_vm2, %v3850_v47, 0.0  ;;  %v10195_v17 = vpop.f32.mrf.mxu1  ;;  %8254 = vmatmul.mubr.msk.bf16.gmra.mxu1 %vm1815_vm1, %v8482_v6  ;;  %v691_v6 = vld [vmem:[#allocation2 + $0x280] sm:$0xff] }
 0x1b7   : > { %5393 = vst.msk [vmem:[%s9431_s25 + $0x120] sm:$0xf] %vm5320_vm3, %v7683_v57  ;;  %v7686_v56 = vpack.c.bf16 %v4115_v58, %v4115_v58  ;;  %v6169_v43 = vmul.f32 %v3850_v47, %v3850_v47  ;;  %v6492_v3 = vadd.f32 %v6491_v18, %v6490_v24  ;;  %v4118_v45 = vadd.f32 %v10112_v44, %v3855_v35  ;;  %v8484_v24 = vld [vmem:[%s8733_s15 + $0x3c8] sm:$0xff]  }
 0x1b8   : > { %v10154_v26 = vpop.f32.mrf.mxu0  ;;  %v5721_v11 = vadd.f32 %v5720_v40, %v5719_v10  ;;  %v7684_v12 = vpack.c.bf16 %v4113_v63, %v4113_v63  ;;  %v6493_v19 = vsel %vm354_vm2, %v6167_v52, 0.0  ;;  %v5724_v20 = vsel %vm354_vm2, %v10131_v9, 0.0  ;;  %v3854_v9 = vld [vmem:[#allocation2 + $0x268] sm:$0xff]  ;;  %v10211_v33 = vpop.f32.mrf.mxu1  ;;  %8257 = vmatprep.mubr.msk.bf16.mxu1 %vm1815_vm1, %v8483_v13  ;;  %v10223_v52 = vld [vmem:[#allocation2 + $0x290] sm:$0xff] }
 0x1b9   : > { %v6499_v21 = vsel %vm354_vm2, %v6170_v27, 0.0  ;;  %5396 = vst.msk [vmem:[%s9431_s25 + $0x12c] sm:$0xf] %vm5320_vm3, %v7686_v56  ;;  %v4116_v4 = vadd.f32 %v10112_v44, %v3853_v51  ;;  %v6494_v15 = vadd.f32 %v6493_v19, %v6492_v3  ;;  %v5726_v32 = vsel %vm354_vm2, %v3852_v36, 0.0  ;;  %v697_v3 = vld [vmem:[#allocation2 + $0x2b0] sm:$0xff] }
 0x1ba   : > { %v10164_v48 = vpop.f32.mrf.mxu0  ;;  %5394 = vst.msk [vmem:[%s9431_s25 + $0x124] sm:$0xf] %vm5320_vm3, %v7684_v12  ;;  %v5723_v23 = vadd.f32 %v5722_v2, %v5721_v11  ;;  %v7689_v18 = vpack.c.bf16 %v4118_v45, %v4118_v45  ;;  %v6495_v31 = vsel %vm354_vm2, %v6168_v46, 0.0  ;;  %v6497_v38 = vsel %vm354_vm2, %v6169_v43, 0.0  ;;  %v10225_v39 = vpop.f32.mrf.mxu1  ;;  %v694_v2 = vld [vmem:[#allocation2 + $0x298] sm:$0xff]  ;;  %v692_v43 = vld [vmem:[#allocation2 + $0x288] sm:$0xff] }
 0x1bb   : > { %v7687_v41 = vpack.c.bf16 %v4116_v4, %v4116_v4  ;;  %v4119_v42 = vadd.f32 %v10112_v44, %v10193_v16  ;;  %v6496_v36 = vadd.f32 %v6495_v31, %v6494_v15  ;;  %v6501_v47 = vsel %vm354_vm2, %v6171_v5, 0.0  ;;  %12772 = vst [vmem:[#allocation9_spill] sm:$0xff] %v10225_v39  ;;  %v696_v4 = vld [vmem:[#allocation2 + $0x2a8] sm:$0xff]  ;;  %v701_v31 = vld [vmem:[#allocation2 + $0x2d0] sm:$0xff] }
 0x1bc   : > { %v10181_v1 = vpop.f32.mrf.mxu0  ;;  %v5725_v49 = vadd.f32 %v5724_v20, %v5723_v23  ;;  %5399 = vst.msk [vmem:[%s9431_s25 + $0x138] sm:$0xf] %vm5320_vm3, %v7689_v18  ;;  %v6172_v50 = vmul.f32 %v3853_v51, %v3853_v51  ;;  %v10228_v27 = vsel %vm354_vm2, %v3855_v35, 0.0  ;;  %v10230_v57 = vmul.f32 %v3855_v35, %v3855_v35  ;;  %v10239_v11 = vpop.f32.mrf.mxu1  ;;  %v698_v20 = vld [vmem:[#allocation2 + $0x2b8] sm:$0xff] }
 0x1bd   : > { %5397 = vst.msk [vmem:[%s9431_s25 + $0x130] sm:$0xf] %vm5320_vm3, %v7687_v41  ;;  %v7690_v40 = vpack.c.bf16 %v4119_v42, %v4119_v42  ;;  %v4117_v58 = vadd.f32 %v10112_v44, %v3854_v9  ;;  %v6498_v63 = vadd.f32 %v6497_v38, %v6496_v36  ;;  %v5728_v56 = vsel %vm354_vm2, %v3853_v51, 0.0  ;;  %12773 = vst [vmem:[#allocation10_spill] sm:$0xff] %v10239_v11  ;;  %v695_v51 = vld [vmem:[#allocation2 + $0x2a0] sm:$0xff]  ;;  %v702_v41 = vld [vmem:[#allocation2 + $0x2d8] sm:$0xff] }
 0x1be   : > { %v10190_v60 = vpop.f32.mrf.mxu0  ;;  %v5727_v46 = vadd.f32 %v5726_v32, %v5725_v49  ;;  %v6173_v5 = vmul.f32 %v3854_v9, %v3854_v9  ;;  %v10245_v35 = vmul.f32 %v10193_v16, %v10193_v16  ;;  %v5730_v45 = vsel %vm354_vm2, %v3854_v9, 0.0  ;;  %v699_v38 = vld [vmem:[#allocation2 + $0x2c0] sm:$0xff]  ;;  %v10252_v42 = vpop.f32.mrf.mxu1  ;;  %8258 = vmatmul.mubr.msk.bf16.gmra.mxu1 %vm1815_vm1, %v8484_v24  ;;  %v716_v11 = vld [vmem:[#allocation2 + $0x348] sm:$0xff] }
 0x1bf   : > { %5400 = vst.msk [vmem:[%s9431_s25 + $0x13c] sm:$0xf] %vm5320_vm3, %v7690_v40  ;;  %v7688_v12 = vpack.c.bf16 %v4117_v58, %v4117_v58  ;;  %v4122_v19 = vadd.f32 %v10112_v44, %v10223_v52  ;;  %v6500_v15 = vadd.f32 %v6499_v21, %v6498_v63  ;;  %v6503_v23 = vsel %vm354_vm2, %v6172_v50, 0.0  ;;  %12774 = vst [vmem:[#allocation11_spill] sm:$0xff] %v10252_v42  ;;  %v700_v40 = vld [vmem:[#allocation2 + $0x2c8] sm:$0xff]  ;;  %v705_v58 = vld [vmem:[#allocation2 + $0x2f0] sm:$0xff] }
 0x1c0   : > { %v10204_v25 = vpop.f32.mrf.mxu0  ;;  %v5729_v32 = vadd.f32 %v5728_v56, %v5727_v46  ;;  %v3341_v18 = vadd.f32 %v10087_v34, %v691_v6  ;;  %v6505_v9 = vsel %vm354_vm2, %v6173_v5, 0.0  ;;  %v3344_v49 = vadd.f32 %v10096_v8, %v694_v2  ;;  %v8485_v34 = vld [vmem:[%s8733_s15 + $0x3d0] sm:$0xff]   ;;  %v703_v5 = vld [vmem:[#allocation2 + $0x2e0] sm:$0xff]  ;;  %v704_v8 = vld [vmem:[#allocation2 + $0x2e8] sm:$0xff]  ;;  %v10264_v2 = vpop.f32.mrf.mxu1 }
 0x1c1   : > { %5398 = vst.msk [vmem:[%s9431_s25 + $0x134] sm:$0xf] %vm5320_vm3, %v7688_v12  ;;  %v7693_v36 = vpack.c.bf16 %v4122_v19, %v4122_v19  ;;  %v3342_v21 = vadd.f32 %v10115_v53, %v692_v43  ;;  %v6502_v6 = vadd.f32 %v6501_v47, %v6500_v15  ;;  %v3347_v63 = vadd.f32 %v10129_v0, %v697_v3  ;;  %v706_v12 = vld [vmem:[#allocation2 + $0x2f8] sm:$0xff]  ;;  %v709_v43 = vld [vmem:[#allocation2 + $0x310] sm:$0xff]  ;;  %v707_v15 = vld [vmem:[#allocation2 + $0x300] sm:$0xff] }
 0x1c2   : > { %v10217_v28 = vpop.f32.mrf.mxu0  ;;  %v5731_v46 = vadd.f32 %v5730_v45, %v5729_v32  ;;  %3598 = vst.msk [vmem:[#allocation2 + $0x280] sm:$0xff] %vm354_vm2, %v3341_v18  ;;  %v3345_v56 = vadd.f32 %v10139_v14, %v695_v51  ;;  %12775 = vst [vmem:[#allocation12_spill] sm:$0xff] %v10264_v2  ;;  %v3348_v53 = vadd.f32 %v10154_v26, %v698_v20  ;;  %v10274_v3 = vld [vmem:[#allocation2 + $0x410] sm:$0xff]  ;;  %8261 = vmatprep.mubr.msk.bf16.mxu1 %vm1815_vm1, %v8485_v34  ;;  %v8487_v34 = vld [vmem:[%s8733_s15 + $0x3e0] sm:$0xff]  }
 0x1c3   : > { %5403 = vst.msk [vmem:[%s9431_s25 + $0x148] sm:$0xf] %vm5320_vm3, %v7693_v36  ;;  %v3346_v47 = vadd.f32 %v10164_v48, %v696_v4  ;;  %v3351_v24 = vadd.f32 %v10181_v1, %v701_v31  ;;  %v3349_v0 = vadd.f32 %v10190_v60, %v699_v38  ;;  %v6504_v45 = vadd.f32 %v6503_v23, %v6502_v6  ;;  %v10282_v1 = vld [vmem:[#allocation2 + $0x400] sm:$0xff]  ;;  %v10284_v60 = vpop.f32.mrf.mxu1 }
 0x1c4   : > { %v10235_v10 = vpop.f32.mrf.mxu0  ;;  %3601 = vst.msk [vmem:[#allocation2 + $0x298] sm:$0xff] %vm354_vm2, %v3344_v49  ;;  %3599 = vst.msk [vmem:[#allocation2 + $0x288] sm:$0xff] %vm354_vm2, %v3342_v21  ;;  %v5733_v19 = vadd.f32 %v10228_v27, %v5731_v46  ;;  %v3352_v26 = vadd.f32 %v10204_v25, %v702_v41  ;;  %v3350_v48 = vadd.f32 %v10217_v28, %v700_v40  ;;  %v8486_v28 = vld [vmem:[%s8733_s15 + $0x3d8] sm:$0xff]   ;;  %v5734_v32 = vsel %vm354_vm2, %v10193_v16, 0.0 }
 0x1c5   : > { %3604 = vst.msk [vmem:[#allocation2 + $0x2b0] sm:$0xff] %vm354_vm2, %v3347_v63  ;;  %3602 = vst.msk [vmem:[#allocation2 + $0x2a0] sm:$0xff] %vm354_vm2, %v3345_v56  ;;  %v3355_v27 = vadd.f32 %v10235_v10, %v705_v58  ;;  %v6506_v23 = vadd.f32 %v6505_v9, %v6504_v45  ;;  %v4170_v31 = vadd.f32 %v10112_v44, %v10274_v3  ;;  %v10298_v38 = vpop.f32.mrf.mxu1  ;;  %v6507_v10 = vsel %vm354_vm2, %v10230_v57, 0.0 }
 0x1c6   : > { %v2606_v13 = vpop.f32.mrf.mxu0  ;;  %12776 = vst [vmem:[#allocation13_spill] sm:$0xff] %v10284_v60  ;;  %3605 = vst.msk [vmem:[#allocation2 + $0x2b8] sm:$0xff] %vm354_vm2, %v3348_v53  ;;  %v4168_v41 = vadd.f32 %v10112_v44, %v10282_v1  ;;  %v6509_v21 = vsel %vm354_vm2, %v10245_v35, 0.0  ;;  %8262 = vmatmul.mubr.msk.bf16.gmra.mxu1 %vm1815_vm1, %v8486_v28 }
 0x1c7   : > { %3603 = vst.msk [vmem:[#allocation2 + $0x2a8] sm:$0xff] %vm354_vm2, %v3346_v47  ;;  %3608 = vst.msk [vmem:[#allocation2 + $0x2d0] sm:$0xff] %vm354_vm2, %v3351_v24  ;;  %v3353_v51 = vadd.f32 %v2606_v13, %v703_v5  ;;  %v5735_v13 = vadd.f32 %v5734_v32, %v5733_v19  ;;  %v6508_v9 = vadd.f32 %v6507_v10, %v6506_v23  ;;  %v10309_v49 = vpop.f32.mrf.mxu1  ;;  %8265 = vmatprep.mubr.msk.bf16.mxu1 %vm1815_vm1, %v8487_v34 }
 0x1c8   : > { %v8112_v50 = vpop.f32.mrf.mxu0  ;;  %3606 = vst.msk [vmem:[#allocation2 + $0x2c0] sm:$0xff] %vm354_vm2, %v3349_v0  ;;  %3609 = vst.msk [vmem:[#allocation2 + $0x2d8] sm:$0xff] %vm354_vm2, %v3352_v26  ;;  %v7741_v57 = vpack.c.bf16 %v4170_v31, %v4170_v31 }
 0x1c9   : > { %v3356_v20 = vadd.f32 %v8112_v50, %v706_v12  ;;  %3607 = vst.msk [vmem:[#allocation2 + $0x2c8] sm:$0xff] %vm354_vm2, %v3350_v48  ;;  %12777 = vst [vmem:[#allocation14_spill] sm:$0xff] %v10298_v38  ;;  %v3857_v40 = vld [vmem:[#allocation2 + $0x280] sm:$0xff]  ;;  %v7739_v50 = vpack.c.bf16 %v4168_v41, %v4168_v41  ;;  %v6510_v6 = vadd.f32 %v6509_v21, %v6508_v9  ;;  %v10322_v35 = vpop.f32.mrf.mxu1 }
 0x1ca   : > { %v2609_v14 = vpop.f32.mrf.mxu0  ;;  %3612 = vst.msk [vmem:[#allocation2 + $0x2f0] sm:$0xff] %vm354_vm2, %v3355_v27  ;;  %3610 = vst.msk [vmem:[#allocation2 + $0x2e0] sm:$0xff] %vm354_vm2, %v3353_v51  ;;  %v4120_v46 = vadd.f32 %v10112_v44, %v3857_v40  ;;  %v5736_v63 = vsel %vm354_vm2, %v3857_v40, 0.0  ;;  %v6176_v56 = vmul.f32 %v3857_v40, %v3857_v40 }
 0x1cb   : > { %v3354_v4 = vadd.f32 %v2609_v14, %v704_v8  ;;  %3613 = vst.msk [vmem:[#allocation2 + $0x2f8] sm:$0xff] %vm354_vm2, %v3356_v20  ;;  %12778 = vst [vmem:[#allocation15_spill] sm:$0xff] %v10309_v49  ;;  %v3860_v5 = vld [vmem:[#allocation2 + $0x298] sm:$0xff]  ;;  %v3858_v12 = vld [vmem:[#allocation2 + $0x288] sm:$0xff]  ;;  %v6178_v8 = vmul.f32 %v10223_v52, %v10223_v52  ;;  %v5737_v53 = vadd.f32 %v5736_v63, %v5735_v13  ;;  %v10335_v48 = vpop.f32.mrf.mxu1 }
 0x1cc   : > { %v8115_v25 = vpop.f32.mrf.mxu0  ;;  %5451 = vst.msk [vmem:[%s9431_s25 + $0x208] sm:$0xf] %vm5320_vm3, %v7741_v57  ;;  %12779 = vst [vmem:[#allocation16_spill] sm:$0xff] %v10322_v35  ;;  %v4123_v47 = vadd.f32 %v10112_v44, %v3860_v5  ;;  %v3863_v24 = vld [vmem:[#allocation2 + $0x2b0] sm:$0xff]  ;;  %v7691_v14 = vpack.c.bf16 %v4120_v46, %v4120_v46  ;;  %v4121_v45 = vadd.f32 %v10112_v44, %v3858_v12  ;;  %v5738_v19 = vsel %vm354_vm2, %v3858_v12, 0.0  ;;  %v3861_v26 = vld [vmem:[#allocation2 + $0x2a0] sm:$0xff] }
 0x1cd   : > { %v3359_v18 = vadd.f32 %v8115_v25, %v709_v43  ;;  %3611 = vst.msk [vmem:[#allocation2 + $0x2e8] sm:$0xff] %vm354_vm2, %v3354_v4  ;;  %v6511_v43 = vsel %vm354_vm2, %v6176_v56, 0.0  ;;  %12780 = vst [vmem:[#allocation17_spill] sm:$0xff] %v10335_v48  ;;  %v5739_v20 = vadd.f32 %v5738_v19, %v5737_v53  ;;  %v10337_v4 = vld [vmem:[#allocation2 + $0x2b8] sm:$0xff]  ;;  %v6177_v32 = vmul.f32 %v3858_v12, %v3858_v12  ;;  %v713_v48 = vld [vmem:[#allocation2 + $0x330] sm:$0xff] }
 0x1ce   : > { %v2622_v16 = vpop.f32.mrf.mxu0  ;;  %5449 = vst.msk [vmem:[%s9431_s25 + $0x200] sm:$0xf] %vm5320_vm3, %v7739_v50  ;;  %v6512_v27 = vadd.f32 %v6511_v43, %v6510_v6  ;;  %v7694_v51 = vpack.c.bf16 %v4123_v47, %v4123_v47  ;;  %5401 = vst.msk [vmem:[%s9431_s25 + $0x140] sm:$0xf] %vm5320_vm3, %v7691_v14  ;;  %v7692_v28 = vpack.c.bf16 %v4121_v45, %v4121_v45  ;;  %v6515_v31 = vsel %vm354_vm2, %v6178_v8, 0.0  ;;  %v3862_v40 = vld [vmem:[#allocation2 + $0x2a8] sm:$0xff] }
 0x1cf   : > { %3616 = vst.msk [vmem:[#allocation2 + $0x310] sm:$0xff] %vm354_vm2, %v3359_v18  ;;  %v3357_v36 = vadd.f32 %v2622_v16, %v707_v15  ;;  %v5740_v15 = vsel %vm354_vm2, %v10223_v52, 0.0  ;;  %v4126_v23 = vadd.f32 %v10112_v44, %v3863_v24  ;;  %v10346_v18 = vpop.f32.mrf.mxu1  ;;  %v5742_v10 = vsel %vm354_vm2, %v3860_v5, 0.0  ;;  %v10355_v52 = vld [vmem:[#allocation2 + $0x418] sm:$0xff]  ;;  %v8488_v50 = vld [vmem:[%s8733_s15 + $0x3e8] sm:$0xff]   ;;  %v10365_v12 = vld [vmem:[#allocation2 + $0x2d0] sm:$0xff] }
 0x1d0   : > { %v10313_v58 = vpop.f32.mrf.mxu0  ;;  %12781 = vst [vmem:[#allocation18_spill] sm:$0xff] %v10346_v18  ;;  %5404 = vst.msk [vmem:[%s9431_s25 + $0x14c] sm:$0xf] %vm5320_vm3, %v7694_v51  ;;  %v5741_v13 = vadd.f32 %v5740_v15, %v5739_v20  ;;  %v4124_v16 = vadd.f32 %v10112_v44, %v3861_v26  ;;  %v6179_v9 = vmul.f32 %v3860_v5, %v3860_v5  ;;  %v8489_v8 = vld [vmem:[%s8733_s15 + $0x3f0] sm:$0xff]   ;;  %v5744_v53 = vsel %vm354_vm2, %v3861_v26, 0.0  ;;  %v3865_v15 = vld [vmem:[#allocation2 + $0x2c0] sm:$0xff] }
 0x1d1   : > { %3614 = vst.msk [vmem:[#allocation2 + $0x300] sm:$0xff] %vm354_vm2, %v3357_v36  ;;  %v6513_v36 = vsel %vm354_vm2, %v6177_v32, 0.0  ;;  %v7697_v57 = vpack.c.bf16 %v4126_v23, %v4126_v23  ;;  %v4127_v21 = vadd.f32 %v10112_v44, %v10337_v4  ;;  %v10363_v34 = vpop.f32.mrf.mxu1  ;;  %v6182_v63 = vmul.f32 %v3863_v24, %v3863_v24  ;;  %8266 = vmatmul.mubr.msk.bf16.gmra.mxu1 %vm1815_vm1, %v8488_v50 }
 0x1d2   : > { %v10327_v0 = vpop.f32.mrf.mxu0  ;;  %5402 = vst.msk [vmem:[%s9431_s25 + $0x144] sm:$0xf] %vm5320_vm3, %v7692_v28  ;;  %12782 = vst [vmem:[#allocation19_spill] sm:$0xff] %v10363_v34  ;;  %v5743_v6 = vadd.f32 %v5742_v10, %v5741_v13  ;;  %v6514_v46 = vadd.f32 %v6513_v36, %v6512_v27  ;;  %v7695_v56 = vpack.c.bf16 %v4124_v16, %v4124_v16  ;;  %v5746_v20 = vsel %vm354_vm2, %v3862_v40, 0.0 }
 0x1d3   : > { %5407 = vst.msk [vmem:[%s9431_s25 + $0x158] sm:$0xf] %vm5320_vm3, %v7697_v57  ;;  %v6180_v47 = vmul.f32 %v3861_v26, %v3861_v26  ;;  %v7698_v14 = vpack.c.bf16 %v4127_v21, %v4127_v21  ;;  %v10375_v43 = vadd.f32 %v10112_v44, %v10355_v52  ;;  %v10378_v45 = vpop.f32.mrf.mxu1  ;;  %v4125_v51 = vadd.f32 %v10112_v44, %v3862_v40  ;;  %v3868_v21 = vld [vmem:[#allocation2 + $0x2d8] sm:$0xff] }
 0x1d4   : > { %v10339_v25 = vpop.f32.mrf.mxu0  ;;  %12783 = vst [vmem:[#allocation20_spill] sm:$0xff] %v10378_v45  ;;  %v6516_v19 = vadd.f32 %v6515_v31, %v6514_v46  ;;  %5405 = vst.msk [vmem:[%s9431_s25 + $0x150] sm:$0xf] %vm5320_vm3, %v7695_v56  ;;  %v5745_v27 = vadd.f32 %v5744_v53, %v5743_v6  ;;  %8269 = vmatprep.mubr.msk.bf16.mxu1 %vm1815_vm1, %v8489_v8  ;;  %v6517_v26 = vsel %vm354_vm2, %v6179_v9, 0.0  ;;  %v5748_v32 = vsel %vm354_vm2, %v3863_v24, 0.0  ;;  %v3866_v46 = vld [vmem:[#allocation2 + $0x2c8] sm:$0xff] }
 0x1d5   : > { %5408 = vst.msk [vmem:[%s9431_s25 + $0x15c] sm:$0xf] %vm5320_vm3, %v7698_v14  ;;  %v6181_v23 = vmul.f32 %v3862_v40, %v3862_v40  ;;  %v4130_v31 = vadd.f32 %v10112_v44, %v10365_v12  ;;  %v10393_v10 = vpop.f32.mrf.mxu1  ;;  %v6523_v16 = vsel %vm354_vm2, %v6182_v63, 0.0  ;;  %v7696_v36 = vpack.c.bf16 %v4125_v51, %v4125_v51  ;;  %v8490_v56 = vld [vmem:[%s8733_s15 + $0x3f8] sm:$0xff]   ;;  %s6871_s15 = scalar_lea.sflag [#allocation5], %s8727_s11 }
 0x1d6   : > { %v10353_v41 = vpop.f32.mrf.mxu0  ;;  %12784 = vst [vmem:[#allocation21_spill] sm:$0xff] %v10393_v10  ;;  %v6518_v13 = vadd.f32 %v6517_v26, %v6516_v19  ;;  %v5747_v57 = vadd.f32 %v5746_v20, %v5745_v27  ;;  %v6519_v24 = vsel %vm354_vm2, %v6180_v47, 0.0  ;;  %v4128_v6 = vadd.f32 %v10112_v44, %v3865_v15 }
 0x1d7   : > { %v6521_v50 = vsel %vm354_vm2, %v6181_v23, 0.0  ;;  %v7701_v40 = vpack.c.bf16 %v4130_v31, %v4130_v31  ;;  %v10402_v8 = vpop.f32.mrf.mxu1  ;;  %v5750_v63 = vsel %vm354_vm2, %v10337_v4, 0.0  ;;  %v6183_v14 = vmul.f32 %v10337_v4, %v10337_v4  ;;  %5406 = vst.msk [vmem:[%s9431_s25 + $0x154] sm:$0xf] %vm5320_vm3, %v7696_v36  ;;  %v3871_v23 = vld [vmem:[#allocation2 + $0x2f0] sm:$0xff] }
 0x1d8   : > { %v10367_v5 = vpop.f32.mrf.mxu0  ;;  %12785 = vst [vmem:[#allocation22_spill] sm:$0xff] %v10402_v8  ;;  %v6520_v53 = vadd.f32 %v6519_v24, %v6518_v13  ;;  %v5749_v47 = vadd.f32 %v5748_v32, %v5747_v57  ;;  %v6186_v27 = vmul.f32 %v10365_v12, %v10365_v12  ;;  %v7699_v51 = vpack.c.bf16 %v4128_v6, %v4128_v6  ;;  %v3869_v57 = vld [vmem:[#allocation2 + $0x2e0] sm:$0xff] }
 0x1d9   : > { %5411 = vst.msk [vmem:[%s9431_s25 + $0x168] sm:$0xf] %vm5320_vm3, %v7701_v40  ;;  %v5752_v20 = vsel %vm354_vm2, %v3865_v15, 0.0  ;;  %v4131_v26 = vadd.f32 %v10112_v44, %v3868_v21  ;;  %v10418_v31 = vpop.f32.mrf.mxu1  ;;  %v6184_v36 = vmul.f32 %v3865_v15, %v3865_v15  ;;  %v4129_v32 = vadd.f32 %v10112_v44, %v3866_v46  ;;  %8270 = vmatmul.mubr.msk.bf16.gmra.mxu1 %vm1815_vm1, %v8490_v56 }
 0x1da   : > { %v10384_v28 = vpop.f32.mrf.mxu0  ;;  %12786 = vst [vmem:[#allocation23_spill] sm:$0xff] %v10418_v31  ;;  %v5751_v4 = vadd.f32 %v5750_v63, %v5749_v47  ;;  %v6522_v13 = vadd.f32 %v6521_v50, %v6520_v53  ;;  %5409 = vst.msk [vmem:[%s9431_s25 + $0x160] sm:$0xf] %vm5320_vm3, %v7699_v51  ;;  %v6187_v6 = vmul.f32 %v3868_v21, %v3868_v21  ;;  %v5754_v8 = vsel %vm354_vm2, %v3866_v46, 0.0  ;;  %v3872_v47 = vld [vmem:[#allocation2 + $0x2f8] sm:$0xff] }
 0x1db   : > { %v7702_v40 = vpack.c.bf16 %v4131_v26, %v4131_v26  ;;  %v6185_v10 = vmul.f32 %v3866_v46, %v3866_v46  ;;  %v10427_v31 = vpop.f32.mrf.mxu1  ;;  %v7700_v53 = vpack.c.bf16 %v4129_v32, %v4129_v32  ;;  %v4134_v63 = vadd.f32 %v10112_v44, %v3871_v23 }
 0x1dc   : > { %v10396_v9 = vpop.f32.mrf.mxu0  ;;  %12787 = vst [vmem:[#allocation24_spill] sm:$0xff] %v10427_v31  ;;  %v6524_v50 = vadd.f32 %v6523_v16, %v6522_v13  ;;  %v5753_v15 = vadd.f32 %v5752_v20, %v5751_v4  ;;  %v6525_v51 = vsel %vm354_vm2, %v6183_v14, 0.0  ;;  %v5756_v26 = vsel %vm354_vm2, %v10365_v12, 0.0  ;;  %v3870_v14 = vld [vmem:[#allocation2 + $0x2e8] sm:$0xff] }
 0x1dd   : > { %v6531_v46 = vsel %vm354_vm2, %v6186_v27, 0.0  ;;  %5412 = vst.msk [vmem:[%s9431_s25 + $0x16c] sm:$0xf] %vm5320_vm3, %v7702_v40  ;;  %v4132_v56 = vadd.f32 %v10112_v44, %v3869_v57  ;;  %v10439_v31 = vpop.f32.mrf.mxu1  ;;  %v6527_v20 = vsel %vm354_vm2, %v6184_v36, 0.0  ;;  %5410 = vst.msk [vmem:[%s9431_s25 + $0x164] sm:$0xf] %vm5320_vm3, %v7700_v53  ;;  %v7705_v13 = vpack.c.bf16 %v4134_v63, %v4134_v63 }
 0x1de   : > { %v10410_v19 = vpop.f32.mrf.mxu0  ;;  %12788 = vst [vmem:[#allocation25_spill] sm:$0xff] %v10439_v31  ;;  %v6526_v16 = vadd.f32 %v6525_v51, %v6524_v50  ;;  %v5755_v4 = vadd.f32 %v5754_v8, %v5753_v15  ;;  %v6529_v12 = vsel %vm354_vm2, %v6185_v10, 0.0  ;;  %v6190_v27 = vmul.f32 %v3871_v23, %v3871_v23  ;;  %v10454_v8 = vld [vmem:[#allocation2 + $0x310] sm:$0xff] }
 0x1df   : > { %v7703_v40 = vpack.c.bf16 %v4132_v56, %v4132_v56  ;;  %v4135_v34 = vadd.f32 %v10112_v44, %v3872_v47  ;;  %v10448_v18 = vpop.f32.mrf.mxu1  ;;  %v5758_v51 = vsel %vm354_vm2, %v3868_v21, 0.0  ;;  %v6533_v36 = vsel %vm354_vm2, %v6187_v6, 0.0  ;;  %5415 = vst.msk [vmem:[%s9431_s25 + $0x178] sm:$0xf] %vm5320_vm3, %v7705_v13 }
 0x1e0   : > { %v10421_v24 = vpop.f32.mrf.mxu0  ;;  %12789 = vst [vmem:[#allocation26_spill] sm:$0xff] %v10448_v18  ;;  %v6528_v50 = vadd.f32 %v6527_v20, %v6526_v16  ;;  %v5757_v53 = vadd.f32 %v5756_v26, %v5755_v4  ;;  %v5764_v10 = vsel %vm354_vm2, %v3871_v23, 0.0  ;;  %v6188_v63 = vmul.f32 %v3869_v57, %v3869_v57  ;;  %v10462_v20 = vld [vmem:[#allocation2 + $0x300] sm:$0xff] }
 0x1e1   : > { %5413 = vst.msk [vmem:[%s9431_s25 + $0x170] sm:$0xf] %vm5320_vm3, %v7703_v40  ;;  %v7706_v56 = vpack.c.bf16 %v4135_v34, %v4135_v34  ;;  %v4133_v16 = vadd.f32 %v10112_v44, %v3870_v14  ;;  %v10464_v21 = vpop.f32.mrf.mxu1  ;;  %v5760_v4 = vsel %vm354_vm2, %v3869_v57, 0.0  ;;  %v6189_v13 = vmul.f32 %v3870_v14, %v3870_v14 }
 0x1e2   : > { %v10430_v45 = vpop.f32.mrf.mxu0  ;;  %12790 = vst [vmem:[#allocation27_spill] sm:$0xff] %v10464_v21  ;;  %v5759_v6 = vadd.f32 %v5758_v51, %v5757_v53  ;;  %v6530_v26 = vadd.f32 %v6529_v12, %v6528_v50  ;;  %v10470_v31 = vsel %vm354_vm2, %v6190_v27, 0.0  ;;  %v5762_v23 = vsel %vm354_vm2, %v3870_v14, 0.0  ;;  %v710_v21 = vld [vmem:[#allocation2 + $0x318] sm:$0xff]  ;;  %v708_v53 = vld [vmem:[#allocation2 + $0x308] sm:$0xff] }
 0x1e3   : > { %5416 = vst.msk [vmem:[%s9431_s25 + $0x17c] sm:$0xf] %vm5320_vm3, %v7706_v56  ;;  %v7704_v34 = vpack.c.bf16 %v4133_v16, %v4133_v16  ;;  %v4138_v40 = vadd.f32 %v10112_v44, %v10454_v8  ;;  %v10477_v51 = vpop.f32.mrf.mxu1  ;;  %v5766_v50 = vsel %vm354_vm2, %v3872_v47, 0.0  ;;  %v4136_v27 = vadd.f32 %v10112_v44, %v10462_v20  ;;  %v711_v56 = vld [vmem:[#allocation2 + $0x320] sm:$0xff] }
 0x1e4   : > { %v10444_v32 = vpop.f32.mrf.mxu0  ;;  %12791 = vst [vmem:[#allocation28_spill] sm:$0xff] %v10477_v51  ;;  %v6532_v12 = vadd.f32 %v6531_v46, %v6530_v26  ;;  %v5761_v57 = vadd.f32 %v5760_v4, %v5759_v6  ;;  %v6535_v16 = vsel %vm354_vm2, %v6188_v63, 0.0  ;;  %v10483_v14 = vmul.f32 %v3872_v47, %v3872_v47  ;;  %v714_v6 = vld [vmem:[#allocation2 + $0x338] sm:$0xff]  ;;  %v712_v26 = vld [vmem:[#allocation2 + $0x328] sm:$0xff]  ;;  %v717_v4 = vld [vmem:[#allocation2 + $0x350] sm:$0xff] }
 0x1e5   : > { %5414 = vst.msk [vmem:[%s9431_s25 + $0x174] sm:$0xf] %vm5320_vm3, %v7704_v34  ;;  %v6537_v51 = vsel %vm354_vm2, %v6189_v13, 0.0  ;;  %v7709_v46 = vpack.c.bf16 %v4138_v40, %v4138_v40  ;;  %v10488_v49 = vpop.f32.mrf.mxu1  ;;  %v7707_v2 = vpack.c.bf16 %v4136_v27, %v4136_v27  ;;  %v3360_v42 = vadd.f32 %v10313_v58, %v710_v21  ;;  %v715_v63 = vld [vmem:[#allocation2 + $0x340] sm:$0xff]  ;;  %v718_v47 = vld [vmem:[#allocation2 + $0x358] sm:$0xff] }
 0x1e6   : > { %v10456_v15 = vpop.f32.mrf.mxu0  ;;  %12792 = vst [vmem:[#allocation29_spill] sm:$0xff] %v10488_v49  ;;  %v6534_v38 = vadd.f32 %v6533_v36, %v6532_v12  ;;  %v5763_v60 = vadd.f32 %v5762_v23, %v5761_v57  ;;  %v10495_v13 = vmul.f32 %v10462_v20, %v10462_v20  ;;  %v3358_v34 = vadd.f32 %v10327_v0, %v708_v53  ;;  %v721_v23 = vld [vmem:[#allocation2 + $0x370] sm:$0xff]  ;;  %v719_v12 = vld [vmem:[#allocation2 + $0x360] sm:$0xff]  ;;  %v722_v58 = vld [vmem:[#allocation2 + $0x378] sm:$0xff] }
 0x1e7   : > { %5419 = vst.msk [vmem:[%s9431_s25 + $0x188] sm:$0xf] %vm5320_vm3, %v7709_v46  ;;  %v3363_v40 = vadd.f32 %v10339_v25, %v713_v48  ;;  %v3361_v36 = vadd.f32 %v10353_v41, %v711_v56  ;;  %v10500_v21 = vpop.f32.mrf.mxu1  ;;  %5417 = vst.msk [vmem:[%s9431_s25 + $0x180] sm:$0xf] %vm5320_vm3, %v7707_v2  ;;  %v3364_v46 = vadd.f32 %v10367_v5, %v714_v6  ;;  %v720_v0 = vld [vmem:[#allocation2 + $0x368] sm:$0xff]  ;;  %v725_v53 = vld [vmem:[#allocation2 + $0x390] sm:$0xff] }
 0x1e8   : > { %v10467_v18 = vpop.f32.mrf.mxu0  ;;  %v6536_v57 = vadd.f32 %v6535_v16, %v6534_v38  ;;  %v5765_v27 = vadd.f32 %v5764_v10, %v5763_v60  ;;  %3617 = vst.msk [vmem:[#allocation2 + $0x318] sm:$0xff] %vm354_vm2, %v3360_v42  ;;  %v3362_v49 = vadd.f32 %v10384_v28, %v712_v26  ;;  %v723_v48 = vld [vmem:[#allocation2 + $0x380] sm:$0xff]  ;;  %3615 = vst.msk [vmem:[#allocation2 + $0x308] sm:$0xff] %vm354_vm2, %v3358_v34  ;;  %v726_v41 = vld [vmem:[#allocation2 + $0x398] sm:$0xff] }
 0x1e9   : > { %3620 = vst.msk [vmem:[#allocation2 + $0x330] sm:$0xff] %vm354_vm2, %v3363_v40  ;;  %3618 = vst.msk [vmem:[#allocation2 + $0x320] sm:$0xff] %vm354_vm2, %v3361_v36  ;;  %v3367_v60 = vadd.f32 %v10396_v9, %v717_v4  ;;  %v3365_v2 = vadd.f32 %v10410_v19, %v715_v63  ;;  %v3368_v42 = vadd.f32 %v10421_v24, %v718_v47  ;;  %v10514_v5 = vpop.f32.mrf.mxu1  ;;  %v724_v6 = vld [vmem:[#allocation2 + $0x388] sm:$0xff]  ;;  %v729_v63 = vld [vmem:[#allocation2 + $0x3b0] sm:$0xff] }
 0x1ea   : > { %v2673_v35 = vpop.f32.mrf.mxu0  ;;  %v3366_v38 = vadd.f32 %v10430_v45, %v716_v11  ;;  %v5767_v28 = vadd.f32 %v5766_v50, %v5765_v27  ;;  %v6538_v10 = vadd.f32 %v6537_v51, %v6536_v57  ;;  %3621 = vst.msk [vmem:[#allocation2 + $0x338] sm:$0xff] %vm354_vm2, %v3364_v46  ;;  %3619 = vst.msk [vmem:[#allocation2 + $0x328] sm:$0xff] %vm354_vm2, %v3362_v49  ;;  %v10520_v19 = vld [vmem:[#allocation2 + $0x408] sm:$0xff]  ;;  %v743_v47 = vld [vmem:[#allocation2 + $0x420] sm:$0xff] }
 0x1eb   : > { %v3371_v56 = vadd.f32 %v10444_v32, %v721_v23  ;;  %v3369_v16 = vadd.f32 %v10456_v15, %v719_v12  ;;  %3624 = vst.msk [vmem:[#allocation2 + $0x350] sm:$0xff] %vm354_vm2, %v3367_v60  ;;  %3622 = vst.msk [vmem:[#allocation2 + $0x340] sm:$0xff] %vm354_vm2, %v3365_v2  ;;  %v3372_v11 = vadd.f32 %v10467_v18, %v722_v58  ;;  %v745_v32 = vld [vmem:[#allocation2 + $0x430] sm:$0xff]  ;;  %v10527_v51 = vpop.f32.mrf.mxu1  ;;  %v6541_v15 = vsel %vm354_vm2, %v10483_v14, 0.0 }
 0x1ec   : > { %v8131_v39 = vpop.f32.mrf.mxu0  ;;  %3625 = vst.msk [vmem:[#allocation2 + $0x358] sm:$0xff] %vm354_vm2, %v3368_v42  ;;  %3623 = vst.msk [vmem:[#allocation2 + $0x348] sm:$0xff] %vm354_vm2, %v3366_v38  ;;  %v3370_v45 = vadd.f32 %v2673_v35, %v720_v0  ;;  %v6540_v50 = vadd.f32 %v10470_v31, %v6538_v10  ;;  %v7742_v18 = vpack.c.bf16 %v10375_v43, %v10375_v43  ;;  %v6543_v23 = vsel %vm354_vm2, %v10495_v13, 0.0 }
 0x1ed   : > { %v3375_v49 = vadd.f32 %v8131_v39, %v725_v53  ;;  %3628 = vst.msk [vmem:[#allocation2 + $0x370] sm:$0xff] %vm354_vm2, %v3371_v56  ;;  %3626 = vst.msk [vmem:[#allocation2 + $0x360] sm:$0xff] %vm354_vm2, %v3369_v16  ;;  %v5768_v39 = vsel %vm354_vm2, %v10462_v20, 0.0  ;;  %v4169_v31 = vadd.f32 %v10112_v44, %v10520_v19  ;;  %v10544_v14 = vpop.f32.mrf.mxu1  ;;  %v3395_v36 = vadd.f32 %v10072_v61, %v745_v32 }
 0x1ee   : > { %v2686_v25 = vpop.f32.mrf.mxu0  ;;  %3629 = vst.msk [vmem:[#allocation2 + $0x378] sm:$0xff] %vm354_vm2, %v3372_v11  ;;  %3627 = vst.msk [vmem:[#allocation2 + $0x368] sm:$0xff] %vm354_vm2, %v3370_v45  ;;  %v6542_v34 = vadd.f32 %v6541_v15, %v6540_v50  ;;  %v5769_v20 = vadd.f32 %v5768_v39, %v5767_v28  ;;  %v3393_v57 = vadd.f32 %v10083_v30, %v743_v47  ;;  %v10593_v50 = vld [vmem:[%s12761_s2] ss:$0 sm:$0xff] }
 0x1ef   : > { %v3373_v24 = vadd.f32 %v2686_v25, %v723_v48  ;;  %3632 = vst.msk [vmem:[#allocation2 + $0x390] sm:$0xff] %vm354_vm2, %v3375_v49  ;;  %v3876_v12 = vld [vmem:[#allocation2 + $0x318] sm:$0xff]  ;;  %v7740_v43 = vpack.c.bf16 %v4169_v31, %v4169_v31  ;;  %v10554_v27 = vpop.f32.mrf.mxu1  ;;  %v6194_v46 = vmul.f32 %v10454_v8, %v10454_v8  ;;  %v3874_v13 = vld [vmem:[#allocation2 + $0x308] sm:$0xff]  ;;  %3652 = vst.msk [vmem:[#allocation2 + $0x430] sm:$0xff] %vm354_vm2, %v3395_v36 }
 0x1f0   : > { %v8132_v9 = vpop.f32.mrf.mxu0  ;;  %5452 = vst.msk [vmem:[%s9431_s25 + $0x20c] sm:$0xf] %vm5320_vm3, %v7742_v18  ;;  %12793 = vst [vmem:[#allocation30_spill] sm:$0xff] %v10554_v27  ;;  %v6544_v0 = vadd.f32 %v6543_v23, %v6542_v34  ;;  %v4139_v61 = vadd.f32 %v10112_v44, %v3876_v12  ;;  %v6195_v53 = vmul.f32 %v3876_v12, %v3876_v12  ;;  %v10559_v48 = vld [vmem:[#allocation2 + $0x330] sm:$0xff]  ;;  %v5770_v30 = vsel %vm354_vm2, %v3874_v13, 0.0  ;;  %v3877_v38 = vld [vmem:[#allocation2 + $0x320] sm:$0xff] }
 0x1f1   : > { %v3376_v26 = vadd.f32 %v8132_v9, %v726_v41  ;;  %3630 = vst.msk [vmem:[#allocation2 + $0x380] sm:$0xff] %vm354_vm2, %v3373_v24  ;;  %v4137_v60 = vadd.f32 %v10112_v44, %v3874_v13  ;;  %v6193_v2 = vmul.f32 %v3874_v13, %v3874_v13  ;;  %v4142_v42 = vadd.f32 %v10112_v44, %v10559_v48  ;;  %v10572_v41 = vpop.f32.mrf.mxu1  ;;  %v10574_v56 = vld [vmem:[#allocation2 + $0x338] sm:$0xff] }
 0x1f2   : > { %v2689_v4 = vpop.f32.mrf.mxu0  ;;  %5450 = vst.msk [vmem:[%s9431_s25 + $0x204] sm:$0xf] %vm5320_vm3, %v7740_v43  ;;  %12794 = vst [vmem:[#allocation31_spill] sm:$0xff] %v10572_v41  ;;  %v7710_v28 = vpack.c.bf16 %v4139_v61, %v4139_v61  ;;  %v5771_v10 = vadd.f32 %v5770_v30, %v5769_v20  ;;  %v10580_v9 = vsel %vm354_vm2, %v10274_v3, 0.0  ;;  %v5772_v44 = vsel %vm354_vm2, %v10454_v8, 0.0  ;;  %v10610_v36 = vld [vmem:[#allocation2 + $0x350] sm:$0xff] }
 0x1f3   : > { %v3374_v35 = vadd.f32 %v2689_v4, %v724_v6  ;;  %3633 = vst.msk [vmem:[#allocation2 + $0x398] sm:$0xff] %vm354_vm2, %v3376_v26  ;;  %3650 = vst.msk [vmem:[#allocation2 + $0x420] sm:$0xff] %vm354_vm2, %v3393_v57  ;;  %v7708_v6 = vpack.c.bf16 %v4137_v60, %v4137_v60  ;;  %v6545_v11 = vsel %vm354_vm2, %v6193_v2, 0.0  ;;  %v7713_v45 = vpack.c.bf16 %v4142_v42, %v4142_v42  ;;  %v10585_v49 = vpop.f32.mrf.mxu1  ;;  %v3878_v26 = vld [vmem:[#allocation2 + $0x328] sm:$0xff] }
 0x1f4   : > { %v8135_v40 = vpop.f32.mrf.mxu0  ;;  %12795 = vst [vmem:[#allocation32_spill] sm:$0xff] %v10585_v49  ;;  %v6547_v24 = vsel %vm354_vm2, %v6194_v46, 0.0  ;;  %5420 = vst.msk [vmem:[%s9431_s25 + $0x18c] sm:$0xf] %vm5320_vm3, %v7710_v28  ;;  %v5773_v32 = vadd.f32 %v5772_v44, %v5771_v10  ;;  %v6546_v15 = vadd.f32 %v6545_v11, %v6544_v0  ;;  %v4140_v8 = vadd.f32 %v10593_v50, %v3877_v38  ;;  %v3881_v46 = vld [vmem:[#allocation2 + $0x340] sm:$0xff]  ;;  %v3884_v10 = vld [vmem:[#allocation2 + $0x358] sm:$0xff] }
 0x1f5   : > { %3631 = vst.msk [vmem:[#allocation2 + $0x388] sm:$0xff] %vm354_vm2, %v3374_v35  ;;  %v3379_v58 = vadd.f32 %v8135_v40, %v729_v63  ;;  %v5774_v63 = vsel %vm354_vm2, %v3876_v12, 0.0  ;;  %v6549_v47 = vsel %vm354_vm2, %v6195_v53, 0.0  ;;  %v6196_v39 = vmul.f32 %v3877_v38, %v3877_v38  ;;  %v10606_v18 = vpop.f32.mrf.mxu1  ;;  %v737_v49 = vld [vmem:[#allocation2 + $0x3f0] sm:$0xff] }
 0x1f6   : > { %v10561_v25 = vpop.f32.mrf.mxu0  ;;  %5418 = vst.msk [vmem:[%s9431_s25 + $0x184] sm:$0xf] %vm5320_vm3, %v7708_v6  ;;  %5423 = vst.msk [vmem:[%s9431_s25 + $0x198] sm:$0xf] %vm5320_vm3, %v7713_v45  ;;  %v4143_v35 = vadd.f32 %v10593_v50, %v10574_v56  ;;  %v5775_v31 = vadd.f32 %v5774_v63, %v5773_v32  ;;  %v6548_v34 = vadd.f32 %v6547_v24, %v6546_v15  ;;  %v5776_v12 = vsel %vm354_vm2, %v3877_v38, 0.0  ;;  %v3882_v24 = vld [vmem:[#allocation2 + $0x348] sm:$0xff] }
 0x1f7   : > { %3636 = vst.msk [vmem:[#allocation2 + $0x3b0] sm:$0xff] %vm354_vm2, %v3379_v58  ;;  %12796 = vst [vmem:[#allocation33_spill] sm:$0xff] %v10606_v18  ;;  %v6198_v20 = vmul.f32 %v10559_v48, %v10559_v48  ;;  %v7711_v40 = vpack.c.bf16 %v4140_v8, %v4140_v8  ;;  %v4141_v43 = vadd.f32 %v10593_v50, %v3878_v26  ;;  %v5778_v57 = vsel %vm354_vm2, %v3878_v26, 0.0  ;;  %v10617_v0 = vpop.f32.mrf.mxu1  ;;  %v732_v18 = vld [vmem:[#allocation2 + $0x3c8] sm:$0xff] }
 0x1f8   : > { %v10576_v16 = vpop.f32.mrf.mxu0  ;;  %v7714_v58 = vpack.c.bf16 %v4143_v35, %v4143_v35  ;;  %12797 = vst [vmem:[#allocation34_spill] sm:$0xff] %v10617_v0  ;;  %v6550_v61 = vadd.f32 %v6549_v47, %v6548_v34  ;;  %v5777_v53 = vadd.f32 %v5776_v12, %v5775_v31  ;;  %v6197_v13 = vmul.f32 %v3878_v26, %v3878_v26 }
 0x1f9   : > { %5421 = vst.msk [vmem:[%s9431_s25 + $0x190] sm:$0xf] %vm5320_vm3, %v7711_v40  ;;  %v10625_v30 = vmul.f32 %v10274_v3, %v10274_v3  ;;  %v6551_v2 = vsel %vm354_vm2, %v6196_v39, 0.0  ;;  %v6199_v42 = vmul.f32 %v10574_v56, %v10574_v56  ;;  %v7712_v38 = vpack.c.bf16 %v4141_v43, %v4141_v43  ;;  %v10634_v44 = vpop.f32.mrf.mxu1  ;;  %v10648_v40 = vld [vmem:[#allocation2 + $0x370] sm:$0xff] }
 0x1fa   : > { %v10596_v4 = vpop.f32.mrf.mxu0  ;;  %5424 = vst.msk [vmem:[%s9431_s25 + $0x19c] sm:$0xf] %vm5320_vm3, %v7714_v58  ;;  %v4146_v28 = vadd.f32 %v10593_v50, %v10610_v36  ;;  %12798 = vst [vmem:[#allocation35_spill] sm:$0xff] %v10634_v44  ;;  %v6552_v6 = vadd.f32 %v6551_v2, %v6550_v61  ;;  %v5779_v11 = vadd.f32 %v5778_v57, %v5777_v53  ;;  %v6553_v45 = vsel %vm354_vm2, %v6197_v13, 0.0  ;;  %v3885_v13 = vld [vmem:[#allocation2 + $0x360] sm:$0xff] }
 0x1fb   : > { %v4144_v3 = vadd.f32 %v10593_v50, %v3881_v46  ;;  %v5780_v32 = vsel %vm354_vm2, %v10559_v48, 0.0  ;;  %v6555_v15 = vsel %vm354_vm2, %v6198_v20, 0.0  ;;  %5422 = vst.msk [vmem:[%s9431_s25 + $0x194] sm:$0xf] %vm5320_vm3, %v7712_v38  ;;  %v6200_v26 = vmul.f32 %v3881_v46, %v3881_v46  ;;  %v10645_v47 = vpop.f32.mrf.mxu1 }
 0x1fc   : > { %v10612_v23 = vpop.f32.mrf.mxu0  ;;  %v7717_v8 = vpack.c.bf16 %v4146_v28, %v4146_v28  ;;  %12799 = vst [vmem:[#allocation36_spill] sm:$0xff] %v10645_v47  ;;  %v5781_v39 = vadd.f32 %v5780_v32, %v5779_v11  ;;  %v6554_v35 = vadd.f32 %v6553_v45, %v6552_v6  ;;  %v4147_v34 = vadd.f32 %v10593_v50, %v3884_v10 }
 0x1fd   : > { %v7715_v31 = vpack.c.bf16 %v4144_v3, %v4144_v3  ;;  %v5782_v48 = vsel %vm354_vm2, %v10574_v56, 0.0  ;;  %v6557_v20 = vsel %vm354_vm2, %v6199_v42, 0.0  ;;  %v6202_v12 = vmul.f32 %v10610_v36, %v10610_v36  ;;  %v10658_v43 = vpop.f32.mrf.mxu1 }
 0x1fe   : > { %v10621_v60 = vpop.f32.mrf.mxu0  ;;  %5427 = vst.msk [vmem:[%s9431_s25 + $0x1a8] sm:$0xf] %vm5320_vm3, %v7717_v8  ;;  %v4145_v58 = vadd.f32 %v10593_v50, %v3882_v24  ;;  %12800 = vst [vmem:[#allocation37_spill] sm:$0xff] %v10658_v43  ;;  %v5783_v57 = vadd.f32 %v5782_v48, %v5781_v39  ;;  %v6556_v61 = vadd.f32 %v6555_v15, %v6554_v35  ;;  %v5784_v53 = vsel %vm354_vm2, %v3881_v46, 0.0  ;;  %v3888_v46 = vld [vmem:[#allocation2 + $0x378] sm:$0xff] }
 0x1ff   : > { %5425 = vst.msk [vmem:[%s9431_s25 + $0x1a0] sm:$0xf] %vm5320_vm3, %v7715_v31  ;;  %v7718_v56 = vpack.c.bf16 %v4147_v34, %v4147_v34  ;;  %v5786_v42 = vsel %vm354_vm2, %v3882_v24, 0.0  ;;  %v6201_v38 = vmul.f32 %v3882_v24, %v3882_v24  ;;  %v4150_v28 = vadd.f32 %v10593_v50, %v10648_v40  ;;  %v10668_v11 = vpop.f32.mrf.mxu1  ;;  %v3886_v31 = vld [vmem:[#allocation2 + $0x368] sm:$0xff] }
 0x200   : > { %v10643_v63 = vpop.f32.mrf.mxu0  ;;  %v7716_v2 = vpack.c.bf16 %v4145_v58, %v4145_v58  ;;  %12801 = vst [vmem:[#allocation38_spill] sm:$0xff] %v10668_v11  ;;  %v6558_v45 = vadd.f32 %v6557_v20, %v6556_v61  ;;  %v5785_v3 = vadd.f32 %v5784_v53, %v5783_v57  ;;  %v6559_v32 = vsel %vm354_vm2, %v6200_v26, 0.0 }
 0x201   : > { %5428 = vst.msk [vmem:[%s9431_s25 + $0x1ac] sm:$0xf] %vm5320_vm3, %v7718_v56  ;;  %v10675_v15 = vsel %vm354_vm2, %v10282_v1, 0.0  ;;  %v6203_v24 = vmul.f32 %v3884_v10, %v3884_v10  ;;  %v6561_v8 = vsel %vm354_vm2, %v6201_v38, 0.0  ;;  %v7721_v39 = vpack.c.bf16 %v4150_v28, %v4150_v28  ;;  %v10681_v34 = vpop.f32.mrf.mxu1 }
 0x202   : > { %v10666_v6 = vpop.f32.mrf.mxu0  ;;  %5426 = vst.msk [vmem:[%s9431_s25 + $0x1a4] sm:$0xf] %vm5320_vm3, %v7716_v2  ;;  %v4148_v35 = vadd.f32 %v10593_v50, %v3885_v13  ;;  %12802 = vst [vmem:[#allocation39_spill] sm:$0xff] %v10681_v34  ;;  %v5788_v26 = vsel %vm354_vm2, %v10610_v36, 0.0  ;;  %v6560_v48 = vadd.f32 %v6559_v32, %v6558_v45  ;;  %v5787_v20 = vadd.f32 %v5786_v42, %v5785_v3  ;;  %v10694_v2 = vld [vmem:[#allocation2 + $0x390] sm:$0xff] }
 0x203   : > { %v10687_v58 = vmul.f32 %v10282_v1, %v10282_v1  ;;  %v6563_v57 = vsel %vm354_vm2, %v6202_v12, 0.0  ;;  %v5790_v61 = vsel %vm354_vm2, %v3884_v10, 0.0  ;;  %5431 = vst.msk [vmem:[%s9431_s25 + $0x1b8] sm:$0xf] %vm5320_vm3, %v7721_v39  ;;  %v4151_v56 = vadd.f32 %v10593_v50, %v3888_v46  ;;  %v10698_v36 = vpop.f32.mrf.mxu1  ;;  %v3889_v12 = vld [vmem:[#allocation2 + $0x380] sm:$0xff] }
 0x204   : > { %v7719_v53 = vpack.c.bf16 %v4148_v35, %v4148_v35  ;;  %v10696_v38 = vpop.f32.mrf.mxu0  ;;  %12803 = vst [vmem:[#allocation40_spill] sm:$0xff] %v10698_v36  ;;  %v5789_v42 = vadd.f32 %v5788_v26, %v5787_v20  ;;  %v6562_v28 = vadd.f32 %v6561_v8, %v6560_v48  ;;  %v6204_v1 = vmul.f32 %v3885_v13, %v3885_v13  ;;  %v10710_v20 = vld [vmem:[#allocation2 + $0x398] sm:$0xff] }
 0x205   : > { %v4149_v45 = vadd.f32 %v10593_v50, %v3886_v31  ;;  %v6565_v10 = vsel %vm354_vm2, %v6203_v24, 0.0  ;;  %v6206_v3 = vmul.f32 %v10648_v40, %v10648_v40  ;;  %v7722_v32 = vpack.c.bf16 %v4151_v56, %v4151_v56  ;;  %v10706_v35 = vpop.f32.mrf.mxu1 }
 0x206   : > { %5429 = vst.msk [vmem:[%s9431_s25 + $0x1b0] sm:$0xf] %vm5320_vm3, %v7719_v53  ;;  %v6205_v39 = vmul.f32 %v3886_v31, %v3886_v31  ;;  %12804 = vst [vmem:[#allocation41_spill] sm:$0xff] %v10706_v35  ;;  %v5791_v36 = vadd.f32 %v5790_v61, %v5789_v42  ;;  %v6564_v26 = vadd.f32 %v6563_v57, %v6562_v28  ;;  %v5792_v24 = vsel %vm354_vm2, %v3885_v13, 0.0  ;;  %v10717_v11 = vpop.f32.mrf.mxu0  ;;  %v3890_v28 = vld [vmem:[#allocation2 + $0x388] sm:$0xff] }
 0x207   : > { %v7720_v8 = vpack.c.bf16 %v4149_v45, %v4149_v45  ;;  %v4154_v48 = vadd.f32 %v10593_v50, %v10694_v2  ;;  %5432 = vst.msk [vmem:[%s9431_s25 + $0x1bc] sm:$0xf] %vm5320_vm3, %v7722_v32  ;;  %v6207_v34 = vmul.f32 %v3888_v46, %v3888_v46  ;;  %v5794_v53 = vsel %vm354_vm2, %v3886_v31, 0.0  ;;  %v10719_v35 = vpop.f32.mrf.mxu1 }
 0x208   : > { %v4152_v56 = vadd.f32 %v10593_v50, %v3889_v12  ;;  %12805 = vst [vmem:[#allocation42_spill] sm:$0xff] %v10719_v35  ;;  %v6566_v57 = vadd.f32 %v6565_v10, %v6564_v26  ;;  %v5793_v61 = vadd.f32 %v5792_v24, %v5791_v36  ;;  %v6567_v42 = vsel %vm354_vm2, %v6204_v1, 0.0 }
 0x209   : > { %5430 = vst.msk [vmem:[%s9431_s25 + $0x1b4] sm:$0xf] %vm5320_vm3, %v7720_v8  ;;  %v7725_v13 = vpack.c.bf16 %v4154_v48, %v4154_v48  ;;  %v6569_v45 = vsel %vm354_vm2, %v6205_v39, 0.0  ;;  %v6208_v31 = vmul.f32 %v3889_v12, %v3889_v12  ;;  %v4155_v43 = vadd.f32 %v10593_v50, %v10710_v20  ;;  %v10727_v47 = vpop.f32.mrf.mxu1  ;;  %v10734_v8 = vld [vmem:[#allocation2 + $0x3b0] sm:$0xff] }
 0x20a   : > { %v7723_v32 = vpack.c.bf16 %v4152_v56, %v4152_v56  ;;  %12806 = vst [vmem:[#allocation43_spill] sm:$0xff] %v10727_v47  ;;  %v5796_v10 = vsel %vm354_vm2, %v10648_v40, 0.0  ;;  %v6571_v36 = vsel %vm354_vm2, %v6206_v3, 0.0  ;;  %v6568_v1 = vadd.f32 %v6567_v42, %v6566_v57  ;;  %v727_v47 = vld [vmem:[#allocation2 + $0x3a0] sm:$0xff]  ;;  %v8144_v40 = vpop.f32.mrf.mxu0  ;;  %v728_v42 = vld [vmem:[#allocation2 + $0x3a8] sm:$0xff] }
 0x20b   : > { %v5795_v26 = vadd.f32 %v5794_v53, %v5793_v61  ;;  %5435 = vst.msk [vmem:[%s9431_s25 + $0x1c8] sm:$0xf] %vm5320_vm3, %v7725_v13  ;;  %v5798_v39 = vsel %vm354_vm2, %v3888_v46, 0.0  ;;  %v6573_v48 = vsel %vm354_vm2, %v6207_v34, 0.0  ;;  %v7726_v24 = vpack.c.bf16 %v4155_v43, %v4155_v43  ;;  %v10741_v35 = vpop.f32.mrf.mxu1  ;;  %v730_v46 = vld [vmem:[#allocation2 + $0x3b8] sm:$0xff] }
 0x20c   : > { %5433 = vst.msk [vmem:[%s9431_s25 + $0x1c0] sm:$0xf] %vm5320_vm3, %v7723_v32  ;;  %v4153_v56 = vadd.f32 %v10593_v50, %v3890_v28  ;;  %12807 = vst [vmem:[#allocation44_spill] sm:$0xff] %v10741_v35  ;;  %v6570_v53 = vadd.f32 %v6569_v45, %v6568_v1  ;;  %v10745_v57 = vmul.f32 %v10694_v2, %v10694_v2  ;;  %v5800_v34 = vsel %vm354_vm2, %v3889_v12, 0.0  ;;  %v731_v45 = vld [vmem:[#allocation2 + $0x3c0] sm:$0xff]  ;;  %v734_v1 = vld [vmem:[#allocation2 + $0x3d8] sm:$0xff] }
 0x20d   : > { %v5797_v3 = vadd.f32 %v5796_v10, %v5795_v26  ;;  %v6209_v61 = vmul.f32 %v3890_v28, %v3890_v28  ;;  %v6575_v43 = vsel %vm354_vm2, %v6208_v31, 0.0  ;;  %5436 = vst.msk [vmem:[%s9431_s25 + $0x1cc] sm:$0xf] %vm5320_vm3, %v7726_v24  ;;  %v4158_v32 = vadd.f32 %v10593_v50, %v10734_v8  ;;  %v733_v10 = vld [vmem:[#allocation2 + $0x3d0] sm:$0xff]  ;;  %v10753_v26 = vpop.f32.mrf.mxu1  ;;  %v735_v31 = vld [vmem:[#allocation2 + $0x3e0] sm:$0xff] }
 0x20e   : > { %v7724_v13 = vpack.c.bf16 %v4153_v56, %v4153_v56  ;;  %12808 = vst [vmem:[#allocation45_spill] sm:$0xff] %v10753_v26  ;;  %v6572_v44 = vadd.f32 %v6571_v36, %v6570_v53  ;;  %v5802_v0 = vsel %vm354_vm2, %v3890_v28, 0.0  ;;  %v3377_v12 = vadd.f32 %v10561_v25, %v727_v47  ;;  %v738_v26 = vld [vmem:[#allocation2 + $0x3f8] sm:$0xff]  ;;  %v2737_v36 = vpop.f32.mrf.mxu0 }
 0x20f   : > { %v5799_v35 = vadd.f32 %v5798_v39, %v5797_v3  ;;  %v6577_v24 = vsel %vm354_vm2, %v6209_v61, 0.0  ;;  %v7729_v56 = vpack.c.bf16 %v4158_v32, %v4158_v32  ;;  %v3380_v41 = vadd.f32 %v10576_v16, %v730_v46  ;;  %v736_v39 = vld [vmem:[#allocation2 + $0x3e8] sm:$0xff]  ;;  %v10762_v3 = vpop.f32.mrf.mxu1  ;;  %v746_v46 = vld [vmem:[#allocation2 + $0x438] sm:$0xff] }
 0x210   : > { %5434 = vst.msk [vmem:[%s9431_s25 + $0x1c4] sm:$0xf] %vm5320_vm3, %v7724_v13  ;;  %v3378_v27 = vadd.f32 %v10596_v4, %v728_v42  ;;  %v6574_v28 = vadd.f32 %v6573_v48, %v6572_v44  ;;  %v3383_v47 = vadd.f32 %v10612_v23, %v733_v10  ;;  %v3381_v53 = vadd.f32 %v10621_v60, %v731_v45  ;;  %v10767_v13 = vld [vmem:[#allocation2 + $0x430] sm:$0xff]  ;;  %v10777_v48 = vld [vmem:[#allocation2 + $0x420] sm:$0xff] }
 0x211   : > { %v5801_v25 = vadd.f32 %v5800_v34, %v5799_v35  ;;  %3634 = vst.msk [vmem:[#allocation2 + $0x3a0] sm:$0xff] %vm354_vm2, %v3377_v12  ;;  %3637 = vst.msk [vmem:[#allocation2 + $0x3b8] sm:$0xff] %vm354_vm2, %v3380_v41  ;;  %v3384_v16 = vadd.f32 %v10643_v63, %v734_v1  ;;  %v3382_v4 = vadd.f32 %v10666_v6, %v732_v18  ;;  %v10779_v23 = vpop.f32.mrf.mxu1  ;;  %v5804_v18 = vsel %vm354_vm2, %v10694_v2, 0.0  ;;  %v744_v6 = vld [vmem:[#allocation2 + $0x428] sm:$0xff]  ;;  %v749_v42 = vld [vmem:[#allocation2 + $0x450] sm:$0xff] }
 0x212   : > { %5439 = vst.msk [vmem:[%s9431_s25 + $0x1d8] sm:$0xf] %vm5320_vm3, %v7729_v56  ;;  %v3387_v44 = vadd.f32 %v10696_v38, %v737_v49  ;;  %v3385_v35 = vadd.f32 %v10717_v11, %v735_v31  ;;  %v6576_v60 = vadd.f32 %v6575_v43, %v6574_v28  ;;  %v3388_v41 = vadd.f32 %v8144_v40, %v738_v26  ;;  %v747_v34 = vld [vmem:[#allocation2 + $0x440] sm:$0xff]  ;;  %v750_v43 = vld [vmem:[#allocation2 + $0x458] sm:$0xff] }
 0x213   : > { %3635 = vst.msk [vmem:[#allocation2 + $0x3a8] sm:$0xff] %vm354_vm2, %v3378_v27  ;;  %v5803_v61 = vadd.f32 %v5802_v0, %v5801_v25  ;;  %3640 = vst.msk [vmem:[#allocation2 + $0x3d0] sm:$0xff] %vm354_vm2, %v3383_v47  ;;  %v3386_v27 = vadd.f32 %v2737_v36, %v736_v39  ;;  %v6211_v49 = vmul.f32 %v10710_v20, %v10710_v20  ;;  %v10793_v0 = vsel %vm354_vm2, %v10625_v30, 0.0  ;;  %v10797_v11 = vpop.f32.mrf.mxu1 }
 0x214   : > { %3638 = vst.msk [vmem:[#allocation2 + $0x3c0] sm:$0xff] %vm354_vm2, %v3381_v53  ;;  %3641 = vst.msk [vmem:[#allocation2 + $0x3d8] sm:$0xff] %vm354_vm2, %v3384_v16  ;;  %v4174_v63 = vadd.f32 %v10593_v50, %v10767_v13  ;;  %v6578_v38 = vadd.f32 %v6577_v24, %v6576_v60  ;;  %v10803_v40 = vsel %vm354_vm2, %v10355_v52, 0.0  ;;  %v4172_v30 = vadd.f32 %v10593_v50, %v10777_v48 }
 0x215   : > { %3639 = vst.msk [vmem:[#allocation2 + $0x3c8] sm:$0xff] %vm354_vm2, %v3382_v4  ;;  %3644 = vst.msk [vmem:[#allocation2 + $0x3f0] sm:$0xff] %vm354_vm2, %v3387_v44  ;;  %v5805_v2 = vadd.f32 %v5804_v18, %v5803_v61  ;;  %v6579_v32 = vsel %vm354_vm2, %v10745_v57, 0.0  ;;  %v5806_v10 = vsel %vm354_vm2, %v10710_v20, 0.0  ;;  %v3396_v1 = vadd.f32 %v10091_v62, %v746_v46  ;;  %v10812_v26 = vpop.f32.mrf.mxu1 }
 0x216   : > { %3642 = vst.msk [vmem:[#allocation2 + $0x3e0] sm:$0xff] %vm354_vm2, %v3385_v35  ;;  %3645 = vst.msk [vmem:[#allocation2 + $0x3f8] sm:$0xff] %vm354_vm2, %v3388_v41  ;;  %v7745_v45 = vpack.c.bf16 %v4174_v63, %v4174_v63  ;;  %v6580_v31 = vadd.f32 %v6579_v32, %v6578_v38  ;;  %v7743_v24 = vpack.c.bf16 %v4172_v30, %v4172_v30  ;;  %v6581_v39 = vsel %vm354_vm2, %v6211_v49, 0.0 }
 0x217   : > { %3643 = vst.msk [vmem:[#allocation2 + $0x3e8] sm:$0xff] %vm354_vm2, %v3386_v27  ;;  %v5807_v12 = vadd.f32 %v5806_v10, %v5805_v2  ;;  %v3394_v56 = vadd.f32 %v10103_v55, %v744_v6  ;;  %3653 = vst.msk [vmem:[#allocation2 + $0x438] sm:$0xff] %vm354_vm2, %v3396_v1  ;;  %v3399_v20 = vadd.f32 %v10122_v59, %v749_v42  ;;  %v10822_v28 = vpop.f32.mrf.mxu1  ;;  %v5812_v38 = vsel %vm354_vm2, %v10734_v8, 0.0 }
 0x218   : > { %v3893_v36 = vld [vmem:[#allocation2 + $0x3a0] sm:$0xff]  ;;  %5455 = vst.msk [vmem:[%s9431_s25 + $0x218] sm:$0xf] %vm5320_vm3, %v7745_v45  ;;  %v3397_v57 = vadd.f32 %v10133_v7, %v747_v34  ;;  %v3400_v62 = vadd.f32 %v10146_v22, %v750_v43  ;;  %v6582_v25 = vadd.f32 %v6581_v39, %v6580_v31  ;;  %v3896_v16 = vld [vmem:[#allocation2 + $0x3b8] sm:$0xff]  ;;  %5453 = vst.msk [vmem:[%s9431_s25 + $0x210] sm:$0xf] %vm5320_vm3, %v7743_v24 }
 0x219   : > { %v4156_v47 = vadd.f32 %v10593_v50, %v3893_v36  ;;  %v5808_v55 = vsel %vm354_vm2, %v3893_v36, 0.0  ;;  %v6212_v53 = vmul.f32 %v3893_v36, %v3893_v36  ;;  %3651 = vst.msk [vmem:[#allocation2 + $0x428] sm:$0xff] %vm354_vm2, %v3394_v56  ;;  %v4159_v59 = vadd.f32 %v10593_v50, %v3896_v16  ;;  %3656 = vst.msk [vmem:[#allocation2 + $0x450] sm:$0xff] %vm354_vm2, %v3399_v20  ;;  %v10841_v60 = vpop.f32.mrf.mxu1 }
 0x21a   : > { %v3894_v4 = vld [vmem:[#allocation2 + $0x3a8] sm:$0xff]  ;;  %v5809_v44 = vadd.f32 %v5808_v55, %v5807_v12  ;;  %v3899_v7 = vld [vmem:[#allocation2 + $0x3d0] sm:$0xff]  ;;  %v10832_v22 = vsel %vm354_vm2, %v10687_v58, 0.0  ;;  %v10836_v35 = vmul.f32 %v10355_v52, %v10355_v52  ;;  %3654 = vst.msk [vmem:[#allocation2 + $0x440] sm:$0xff] %vm354_vm2, %v3397_v57  ;;  %3657 = vst.msk [vmem:[#allocation2 + $0x458] sm:$0xff] %vm354_vm2, %v3400_v62  ;;  %v6214_v52 = vmul.f32 %v10734_v8, %v10734_v8 }
 0x21b   : > { %v7727_v61 = vpack.c.bf16 %v4156_v47, %v4156_v47  ;;  %v6583_v41 = vsel %vm354_vm2, %v6212_v53, 0.0  ;;  %v4157_v58 = vadd.f32 %v10593_v50, %v3894_v4  ;;  %v5810_v27 = vsel %vm354_vm2, %v3894_v4, 0.0  ;;  %v3897_v46 = vld [vmem:[#allocation2 + $0x3c0] sm:$0xff]  ;;  %v3900_v6 = vld [vmem:[#allocation2 + $0x3d8] sm:$0xff]  ;;  %v10848_v2 = vpop.f32.mrf.mxu1 }
 0x21c   : > { %v6584_v18 = vadd.f32 %v6583_v41, %v6582_v25  ;;  %v7730_v49 = vpack.c.bf16 %v4159_v59, %v4159_v59  ;;  %v5811_v63 = vadd.f32 %v5810_v27, %v5809_v44  ;;  %v6213_v42 = vmul.f32 %v3894_v4, %v3894_v4  ;;  %v3898_v56 = vld [vmem:[#allocation2 + $0x3c8] sm:$0xff]  ;;  %v3903_v62 = vld [vmem:[#allocation2 + $0x3f0] sm:$0xff] }
 0x21d   : > { %5437 = vst.msk [vmem:[%s9431_s25 + $0x1d0] sm:$0xf] %vm5320_vm3, %v7727_v61  ;;  %v7728_v30 = vpack.c.bf16 %v4157_v58, %v4157_v58  ;;  %v4162_v34 = vadd.f32 %v10593_v50, %v3899_v7  ;;  %v5814_v43 = vsel %vm354_vm2, %v3896_v16, 0.0  ;;  %v4160_v10 = vadd.f32 %v10593_v50, %v3897_v46  ;;  %v10863_v1 = vpop.f32.mrf.mxu1  ;;  %v3901_v41 = vld [vmem:[#allocation2 + $0x3e0] sm:$0xff] }
 0x21e   : > { %5440 = vst.msk [vmem:[%s9431_s25 + $0x1dc] sm:$0xf] %vm5320_vm3, %v7730_v49  ;;  %v5813_v32 = vadd.f32 %v5812_v38, %v5811_v63  ;;  %v10861_v45 = vsel %vm354_vm2, %v10520_v19, 0.0  ;;  %v6215_v8 = vmul.f32 %v3896_v16, %v3896_v16  ;;  %v6585_v12 = vsel %vm354_vm2, %v6213_v42, 0.0  ;;  %v3904_v42 = vld [vmem:[#allocation2 + $0x3f8] sm:$0xff] }
 0x21f   : > { %5438 = vst.msk [vmem:[%s9431_s25 + $0x1d4] sm:$0xf] %vm5320_vm3, %v7728_v30  ;;  %v7733_v31 = vpack.c.bf16 %v4162_v34, %v4162_v34  ;;  %v4163_v24 = vadd.f32 %v10593_v50, %v3900_v6  ;;  %v6587_v39 = vsel %vm354_vm2, %v6214_v52, 0.0  ;;  %v6586_v20 = vadd.f32 %v6585_v12, %v6584_v18  ;;  %v10870_v25 = vpop.f32.mrf.mxu1  ;;  %v3902_v12 = vld [vmem:[#allocation2 + $0x3e8] sm:$0xff] }
 0x220   : > { %v5815_v36 = vadd.f32 %v5814_v43, %v5813_v32  ;;  %v7731_v57 = vpack.c.bf16 %v4160_v10, %v4160_v10  ;;  %v6218_v47 = vmul.f32 %v3899_v7, %v3899_v7  ;;  %v5816_v55 = vsel %vm354_vm2, %v3897_v46, 0.0 }
 0x221   : > { %5443 = vst.msk [vmem:[%s9431_s25 + $0x1e8] sm:$0xf] %vm5320_vm3, %v7733_v31  ;;  %v6216_v53 = vmul.f32 %v3897_v46, %v3897_v46  ;;  %v7734_v16 = vpack.c.bf16 %v4163_v24, %v4163_v24  ;;  %v6588_v4 = vadd.f32 %v6587_v39, %v6586_v20  ;;  %v4161_v59 = vadd.f32 %v10593_v50, %v3898_v56  ;;  %v10879_v58 = vpop.f32.mrf.mxu1 }
 0x222   : > { %5441 = vst.msk [vmem:[%s9431_s25 + $0x1e0] sm:$0xf] %vm5320_vm3, %v7731_v57  ;;  %v5817_v44 = vadd.f32 %v5816_v55, %v5815_v36  ;;  %v5818_v61 = vsel %vm354_vm2, %v3898_v56, 0.0  ;;  %v6589_v27 = vsel %vm354_vm2, %v6215_v8, 0.0  ;;  %v6217_v52 = vmul.f32 %v3898_v56, %v3898_v56 }
 0x223   : > { %5444 = vst.msk [vmem:[%s9431_s25 + $0x1ec] sm:$0xf] %vm5320_vm3, %v7734_v16  ;;  %v4166_v46 = vadd.f32 %v10593_v50, %v3903_v62  ;;  %v6225_v18 = vmul.f32 %v10520_v19, %v10520_v19  ;;  %v6590_v49 = vadd.f32 %v6589_v27, %v6588_v4  ;;  %v5820_v63 = vsel %vm354_vm2, %v3899_v7, 0.0  ;;  %v10888_v34 = vpop.f32.mrf.mxu1 }
 0x224   : > { %v7732_v38 = vpack.c.bf16 %v4161_v59, %v4161_v59  ;;  %v5819_v30 = vadd.f32 %v5818_v61, %v5817_v44  ;;  %v6591_v43 = vsel %vm354_vm2, %v6216_v53, 0.0  ;;  %v6593_v32 = vsel %vm354_vm2, %v6217_v52, 0.0 }
 0x225   : > { %v7737_v10 = vpack.c.bf16 %v4166_v46, %v4166_v46  ;;  %v4164_v8 = vadd.f32 %v10593_v50, %v3901_v41  ;;  %v6595_v31 = vsel %vm354_vm2, %v6218_v47, 0.0  ;;  %v6592_v19 = vadd.f32 %v6591_v43, %v6590_v49  ;;  %v10900_v56 = vpop.f32.mrf.mxu1  ;;  %v10906_v47 = vld [vmem:[#allocation2 + $0x438] sm:$0xff] }
 0x226   : > { %5442 = vst.msk [vmem:[%s9431_s25 + $0x1e4] sm:$0xf] %vm5320_vm3, %v7732_v38  ;;  %v5821_v7 = vadd.f32 %v5820_v63, %v5819_v30  ;;  %v10898_v24 = vsel %vm354_vm2, %v10836_v35, 0.0  ;;  %12809 = vst [vmem:[#allocation46_spill] sm:$0xff] %v10900_v56  ;;  %v5822_v39 = vsel %vm354_vm2, %v3900_v6, 0.0  ;;  %v6219_v36 = vmul.f32 %v3900_v6, %v3900_v6  ;;  %v10910_v35 = vld [vmem:[#allocation2 + $0x428] sm:$0xff] }
 0x227   : > { %5447 = vst.msk [vmem:[%s9431_s25 + $0x1f8] sm:$0xf] %vm5320_vm3, %v7737_v10  ;;  %v7735_v20 = vpack.c.bf16 %v4164_v8, %v4164_v8  ;;  %v4167_v57 = vadd.f32 %v10593_v50, %v3904_v42  ;;  %v6594_v53 = vadd.f32 %v6593_v32, %v6592_v19  ;;  %v5824_v16 = vsel %vm354_vm2, %v3901_v41, 0.0  ;;  %v10912_v44 = vpop.f32.mrf.mxu1  ;;  %v10919_v38 = vld [vmem:[#allocation2 + $0x450] sm:$0xff]  ;;  %v763_v56 = vld [vmem:[#allocation2 + $0x4c0] sm:$0xff] }
 0x228   : > { %v5823_v55 = vadd.f32 %v5822_v39, %v5821_v7  ;;  %v4165_v4 = vadd.f32 %v10593_v50, %v3902_v12  ;;  %12810 = vst [vmem:[#allocation47_spill] sm:$0xff] %v10912_v44  ;;  %v6220_v6 = vmul.f32 %v3901_v41, %v3901_v41  ;;  %v5826_v61 = vsel %vm354_vm2, %v3902_v12, 0.0  ;;  %v10931_v7 = vld [vmem:[#allocation2 + $0x440] sm:$0xff]  ;;  %v760_v44 = vld [vmem:[#allocation2 + $0x4a8] sm:$0xff] }
 0x229   : > { %5445 = vst.msk [vmem:[%s9431_s25 + $0x1f0] sm:$0xf] %vm5320_vm3, %v7735_v20  ;;  %v7738_v59 = vpack.c.bf16 %v4167_v57, %v4167_v57  ;;  %v6221_v27 = vmul.f32 %v3902_v12, %v3902_v12  ;;  %v6596_v52 = vadd.f32 %v6595_v31, %v6594_v53  ;;  %v4175_v63 = vadd.f32 %v10593_v50, %v10906_v47  ;;  %v10921_v30 = vpop.f32.mrf.mxu1 }
 0x22a   : > { %v5825_v46 = vadd.f32 %v5824_v16, %v5823_v55  ;;  %v7736_v49 = vpack.c.bf16 %v4165_v4, %v4165_v4  ;;  %12811 = vst [vmem:[#allocation48_spill] sm:$0xff] %v10921_v30  ;;  %v6597_v43 = vsel %vm354_vm2, %v6219_v36, 0.0  ;;  %v5828_v32 = vsel %vm354_vm2, %v3903_v62, 0.0 }
 0x22b   : > { %v6222_v41 = vmul.f32 %v3903_v62, %v3903_v62  ;;  %5448 = vst.msk [vmem:[%s9431_s25 + $0x1fc] sm:$0xf] %vm5320_vm3, %v7738_v59  ;;  %v4173_v10 = vadd.f32 %v10593_v50, %v10910_v35  ;;  %v6598_v8 = vadd.f32 %v6597_v43, %v6596_v52  ;;  %v6223_v12 = vmul.f32 %v3904_v42, %v3904_v42  ;;  %v10933_v39 = vpop.f32.mrf.mxu1  ;;  %v10948_v59 = vld [vmem:[#allocation2 + $0x458] sm:$0xff] }
 0x22c   : > { %5446 = vst.msk [vmem:[%s9431_s25 + $0x1f4] sm:$0xf] %vm5320_vm3, %v7736_v49  ;;  %v5827_v31 = vadd.f32 %v5826_v61, %v5825_v46  ;;  %v7746_v19 = vpack.c.bf16 %v4175_v63, %v4175_v63  ;;  %12812 = vst [vmem:[#allocation49_spill] sm:$0xff] %v10933_v39  ;;  %v6599_v36 = vsel %vm354_vm2, %v6220_v6, 0.0  ;;  %v6601_v62 = vsel %vm354_vm2, %v6221_v27, 0.0  ;;  %v748_v46 = vld [vmem:[#allocation2 + $0x448] sm:$0xff] }
 0x22d   : > { %v7744_v20 = vpack.c.bf16 %v4173_v10, %v4173_v10  ;;  %v4178_v57 = vadd.f32 %v10593_v50, %v10919_v38  ;;  %v6600_v55 = vadd.f32 %v6599_v36, %v6598_v8  ;;  %v10940_v16 = vsel %vm354_vm2, %v6225_v18, 0.0  ;;  %v10950_v6 = vpop.f32.mrf.mxu1  ;;  %v751_v10 = vld [vmem:[#allocation2 + $0x460] sm:$0xff] }
 0x22e   : > { %v5829_v53 = vadd.f32 %v5828_v32, %v5827_v31  ;;  %v10944_v4 = vmul.f32 %v10767_v13, %v10767_v13  ;;  %5456 = vst.msk [vmem:[%s9431_s25 + $0x21c] sm:$0xf] %vm5320_vm3, %v7746_v19  ;;  %12813 = vst [vmem:[#allocation50_spill] sm:$0xff] %v10950_v6  ;;  %v5830_v61 = vsel %vm354_vm2, %v3904_v42, 0.0  ;;  %v10955_v27 = vsel %vm354_vm2, %v10777_v48, 0.0  ;;  %v753_v42 = vld [vmem:[#allocation2 + $0x470] sm:$0xff] }
 0x22f   : > { %5454 = vst.msk [vmem:[%s9431_s25 + $0x214] sm:$0xf] %vm5320_vm3, %v7744_v20  ;;  %v7749_v18 = vpack.c.bf16 %v4178_v57, %v4178_v57  ;;  %v4176_v52 = vadd.f32 %v10593_v50, %v10931_v7  ;;  %v6603_v49 = vsel %vm354_vm2, %v6222_v41, 0.0  ;;  %v6602_v43 = vadd.f32 %v6601_v62, %v6600_v55  ;;  %v10966_v8 = vpop.f32.mrf.mxu1  ;;  %v754_v62 = vld [vmem:[#allocation2 + $0x478] sm:$0xff]  ;;  %v757_v20 = vld [vmem:[#allocation2 + $0x490] sm:$0xff]  ;;  %v756_v6 = vld [vmem:[#allocation2 + $0x488] sm:$0xff] }
 0x230   : > { %v5831_v63 = vadd.f32 %v5830_v61, %v5829_v53  ;;  %v10964_v32 = vmul.f32 %v10777_v48, %v10777_v48  ;;  %12814 = vst [vmem:[#allocation51_spill] sm:$0xff] %v10966_v8  ;;  %v6605_v31 = vsel %vm354_vm2, %v6223_v12, 0.0  ;;  %v10971_v19 = vmul.f32 %v10906_v47, %v10906_v47  ;;  %v752_v48 = vld [vmem:[#allocation2 + $0x468] sm:$0xff]  ;;  %v755_v61 = vld [vmem:[#allocation2 + $0x480] sm:$0xff]  ;;  %v758_v8 = vld [vmem:[#allocation2 + $0x498] sm:$0xff] }
 0x231   : > { %5459 = vst.msk [vmem:[%s9431_s25 + $0x228] sm:$0xf] %vm5320_vm3, %v7749_v18  ;;  %v7747_v41 = vpack.c.bf16 %v4176_v52, %v4176_v52  ;;  %v4179_v36 = vadd.f32 %v10593_v50, %v10948_v59  ;;  %v6604_v55 = vadd.f32 %v6603_v49, %v6602_v43  ;;  %v10980_v12 = vsel %vm354_vm2, %v10910_v35, 0.0  ;;  %v10983_v18 = vpop.f32.mrf.mxu1  ;;  %v761_v43 = vld [vmem:[#allocation2 + $0x4b0] sm:$0xff]  ;;  %v759_v39 = vld [vmem:[#allocation2 + $0x4a0] sm:$0xff] }
 0x232   : > { %v5833_v57 = vadd.f32 %v10675_v15, %v5831_v63  ;;  %v3398_v53 = vadd.f32 %v10159_v37, %v748_v46  ;;  %12815 = vst [vmem:[#allocation52_spill] sm:$0xff] %v10983_v18  ;;  %v10987_v52 = vmul.f32 %v10910_v35, %v10910_v35  ;;  %v3403_v49 = vadd.f32 %v10173_v54, %v753_v42  ;;  %v762_v37 = vld [vmem:[#allocation2 + $0x4b8] sm:$0xff]  ;;  %v12816_v54 = vld [vmem:[#allocation9_spill] sm:$0xff] }
 0x233   : > { %5457 = vst.msk [vmem:[%s9431_s25 + $0x220] sm:$0xf] %vm5320_vm3, %v7747_v41  ;;  %v7750_v15 = vpack.c.bf16 %v4179_v36, %v4179_v36  ;;  %v3401_v63 = vadd.f32 %v10185_v29, %v751_v10  ;;  %v6606_v46 = vadd.f32 %v6605_v31, %v6604_v55  ;;  %v3404_v18 = vadd.f32 %v10195_v17, %v754_v62  ;;  %v765_v41 = vld [vmem:[#allocation2 + $0x4d0] sm:$0xff]  ;;  %v10997_v36 = vpop.f32.mrf.mxu1  ;;  %v12819_v17 = vld [vmem:[#allocation12_spill] sm:$0xff] }
 0x234   : > { %v5835_v30 = vadd.f32 %v10861_v45, %v5833_v57  ;;  %3655 = vst.msk [vmem:[#allocation2 + $0x448] sm:$0xff] %vm354_vm2, %v3398_v53  ;;  %v3402_v35 = vadd.f32 %v10211_v33, %v752_v48  ;;  %3660 = vst.msk [vmem:[#allocation2 + $0x470] sm:$0xff] %vm354_vm2, %v3403_v49  ;;  %v3407_v29 = vadd.f32 %v12816_v54, %v757_v20  ;;  %v12817_v45 = vld [vmem:[#allocation10_spill] sm:$0xff]  ;;  %v12818_v10 = vld [vmem:[#allocation11_spill] sm:$0xff] }
 0x235   : > { %5460 = vst.msk [vmem:[%s9431_s25 + $0x22c] sm:$0xf] %vm5320_vm3, %v7750_v15  ;;  %v3405_v42 = vadd.f32 %v12817_v45, %v755_v61  ;;  %v3408_v31 = vadd.f32 %v12818_v10, %v758_v8  ;;  %v3406_v62 = vadd.f32 %v12819_v17, %v756_v6  ;;  %v766_v33 = vld [vmem:[#allocation2 + $0x4d8] sm:$0xff]  ;;  %v764_v48 = vld [vmem:[#allocation2 + $0x4c8] sm:$0xff]  ;;  %v769_v57 = vld [vmem:[#allocation2 + $0x4f0] sm:$0xff]  ;;  %v6608_v55 = vadd.f32 %v10832_v22, %v6606_v46  ;;  %v11013_v45 = vpop.f32.mrf.mxu1 }
 0x236   : > { %3658 = vst.msk [vmem:[#allocation2 + $0x460] sm:$0xff] %vm354_vm2, %v3401_v63  ;;  %v5837_v53 = vadd.f32 %v10580_v9, %v5835_v30  ;;  %3661 = vst.msk [vmem:[#allocation2 + $0x478] sm:$0xff] %vm354_vm2, %v3404_v18  ;;  %v12820_v15 = vld [vmem:[#allocation13_spill] sm:$0xff]  ;;  %v12821_v20 = vld [vmem:[#allocation14_spill] sm:$0xff] }
 0x237   : > { %3659 = vst.msk [vmem:[#allocation2 + $0x468] sm:$0xff] %vm354_vm2, %v3402_v35  ;;  %v3411_v49 = vadd.f32 %v12820_v15, %v761_v43  ;;  %v3409_v63 = vadd.f32 %v12821_v20, %v759_v39  ;;  %v767_v61 = vld [vmem:[#allocation2 + $0x4e0] sm:$0xff]  ;;  %v770_v54 = vld [vmem:[#allocation2 + $0x4f8] sm:$0xff]  ;;  %v768_v8 = vld [vmem:[#allocation2 + $0x4e8] sm:$0xff] }
 0x238   : > { %3664 = vst.msk [vmem:[#allocation2 + $0x490] sm:$0xff] %vm354_vm2, %v3407_v29  ;;  %3662 = vst.msk [vmem:[#allocation2 + $0x480] sm:$0xff] %vm354_vm2, %v3405_v42  ;;  %v12822_v9 = vld [vmem:[#allocation15_spill] sm:$0xff]  ;;  %v12823_v30 = vld [vmem:[#allocation16_spill] sm:$0xff]  ;;  %v5839_v15 = vadd.f32 %v10803_v40, %v5837_v53  ;;  %v6610_v29 = vadd.f32 %v10940_v16, %v6608_v55 }
 0x239   : > { %3665 = vst.msk [vmem:[#allocation2 + $0x498] sm:$0xff] %vm354_vm2, %v3408_v31  ;;  %3663 = vst.msk [vmem:[#allocation2 + $0x488] sm:$0xff] %vm354_vm2, %v3406_v62  ;;  %v3412_v22 = vadd.f32 %v12822_v9, %v762_v37  ;;  %v3410_v6 = vadd.f32 %v12823_v30, %v760_v44  ;;  %v12824_v18 = vld [vmem:[#allocation17_spill] sm:$0xff]  ;;  %v12825_v39 = vld [vmem:[#allocation18_spill] sm:$0xff]  ;;  %v11029_v9 = vpop.f32.mrf.mxu1 }
 0x23a   : > { %v3415_v43 = vadd.f32 %v12824_v18, %v765_v41  ;;  %v3413_v46 = vadd.f32 %v12825_v39, %v763_v56  ;;  %v773_v35 = vld [vmem:[#allocation2 + $0x510] sm:$0xff]  ;;  %v771_v10 = vld [vmem:[#allocation2 + $0x500] sm:$0xff]  ;;  %v774_v17 = vld [vmem:[#allocation2 + $0x518] sm:$0xff]  ;;  %3668 = vst.msk [vmem:[#allocation2 + $0x4b0] sm:$0xff] %vm354_vm2, %v3411_v49  ;;  %v5841_v30 = vadd.f32 %v10955_v27, %v5839_v15 }
 0x23b   : > { %3666 = vst.msk [vmem:[#allocation2 + $0x4a0] sm:$0xff] %vm354_vm2, %v3409_v63  ;;  %v12826_v42 = vld [vmem:[#allocation19_spill] sm:$0xff]  ;;  %v12827_v37 = vld [vmem:[#allocation20_spill] sm:$0xff]  ;;  %v772_v44 = vld [vmem:[#allocation2 + $0x508] sm:$0xff]  ;;  %v6612_v63 = vadd.f32 %v10793_v0, %v6610_v29 }
 0x23c   : > { %v3416_v31 = vadd.f32 %v12826_v42, %v766_v33  ;;  %v3414_v62 = vadd.f32 %v12827_v37, %v764_v48  ;;  %v777_v20 = vld [vmem:[#allocation2 + $0x530] sm:$0xff]  ;;  %v775_v41 = vld [vmem:[#allocation2 + $0x520] sm:$0xff]  ;;  %3669 = vst.msk [vmem:[#allocation2 + $0x4b8] sm:$0xff] %vm354_vm2, %v3412_v22  ;;  %3667 = vst.msk [vmem:[#allocation2 + $0x4a8] sm:$0xff] %vm354_vm2, %v3410_v6 }
 0x23d   : > { %3672 = vst.msk [vmem:[#allocation2 + $0x4d0] sm:$0xff] %vm354_vm2, %v3415_v43  ;;  %3670 = vst.msk [vmem:[#allocation2 + $0x4c0] sm:$0xff] %vm354_vm2, %v3413_v46  ;;  %v12828_v40 = vld [vmem:[#allocation21_spill] sm:$0xff]  ;;  %v12829_v16 = vld [vmem:[#allocation22_spill] sm:$0xff]  ;;  %v3425_v46 = vadd.f32 %v10500_v21, %v775_v41  ;;  %v6619_v21 = vsel %vm354_vm2, %v10944_v4, 0.0  ;;  %v6621_v41 = vsel %vm354_vm2, %v10971_v19, 0.0  ;;  %v6232_v19 = vmul.f32 %v10931_v7, %v10931_v7 }
 0x23e   : > { %v3419_v56 = vadd.f32 %v12828_v40, %v769_v57  ;;  %v3417_v55 = vadd.f32 %v12829_v16, %v767_v61  ;;  %v12830_v33 = vld [vmem:[#allocation23_spill] sm:$0xff]  ;;  %v12831_v48 = vld [vmem:[#allocation24_spill] sm:$0xff]  ;;  %3673 = vst.msk [vmem:[#allocation2 + $0x4d8] sm:$0xff] %vm354_vm2, %v3416_v31  ;;  %3671 = vst.msk [vmem:[#allocation2 + $0x4c8] sm:$0xff] %vm354_vm2, %v3414_v62  ;;  %v5844_v31 = vsel %vm354_vm2, %v10767_v13, 0.0  ;;  %v6617_v40 = vsel %vm354_vm2, %v10987_v52, 0.0 }
 0x23f   : > { %v3420_v53 = vadd.f32 %v12830_v33, %v770_v54  ;;  %v3418_v49 = vadd.f32 %v12831_v48, %v768_v8  ;;  %v12832_v22 = vld [vmem:[#allocation25_spill] sm:$0xff]  ;;  %v12833_v18 = vld [vmem:[#allocation26_spill] sm:$0xff]  ;;  %v12834_v0 = vld [vmem:[#allocation27_spill] sm:$0xff]  ;;  %3682 = vst.msk [vmem:[#allocation2 + $0x520] sm:$0xff] %vm354_vm2, %v3425_v46  ;;  %v6234_v33 = vmul.f32 %v10919_v38, %v10919_v38 }
 0x240   : > { %v3423_v6 = vadd.f32 %v12832_v22, %v773_v35  ;;  %v3421_v43 = vadd.f32 %v12833_v18, %v771_v10  ;;  %v3914_v39 = vld [vmem:[#allocation2 + $0x448] sm:$0xff]  ;;  %3676 = vst.msk [vmem:[#allocation2 + $0x4f0] sm:$0xff] %vm354_vm2, %v3419_v56  ;;  %3674 = vst.msk [vmem:[#allocation2 + $0x4e0] sm:$0xff] %vm354_vm2, %v3417_v55  ;;  %v3424_v57 = vadd.f32 %v12834_v0, %v774_v17  ;;  %v12835_v27 = vld [vmem:[#allocation28_spill] sm:$0xff]  ;;  %v11062_v17 = vpop.f32.mrf.mxu1  ;;  %v5852_v22 = vsel %vm354_vm2, %v10919_v38, 0.0 }
 0x241   : > { %3677 = vst.msk [vmem:[#allocation2 + $0x4f8] sm:$0xff] %vm354_vm2, %v3420_v53  ;;  %3675 = vst.msk [vmem:[#allocation2 + $0x4e8] sm:$0xff] %vm354_vm2, %v3418_v49  ;;  %v3422_v61 = vadd.f32 %v12835_v27, %v772_v44  ;;  %v12836_v54 = vld [vmem:[#allocation29_spill] sm:$0xff]  ;;  %v6614_v35 = vadd.f32 %v10898_v24, %v6612_v63  ;;  %v5843_v10 = vadd.f32 %v10980_v12, %v5841_v30  ;;  %v11056_v29 = vld [vmem:[#allocation2 + $0x470] sm:$0xff]  ;;  %v6615_v24 = vsel %vm354_vm2, %v10964_v32, 0.0 }
 0x242   : > { %v3427_v8 = vadd.f32 %v12836_v54, %v777_v20  ;;  %v4177_v15 = vadd.f32 %v10593_v50, %v3914_v39  ;;  %v11058_v42 = vld [vmem:[#allocation2 + $0x460] sm:$0xff]  ;;  %3680 = vst.msk [vmem:[#allocation2 + $0x510] sm:$0xff] %vm354_vm2, %v3423_v6  ;;  %3678 = vst.msk [vmem:[#allocation2 + $0x500] sm:$0xff] %vm354_vm2, %v3421_v43  ;;  %v4182_v12 = vadd.f32 %v10593_v50, %v11056_v29  ;;  %v11078_v32 = vld [vmem:[#allocation2 + $0x478] sm:$0xff]  ;;  %v5846_v20 = vsel %vm354_vm2, %v10906_v47, 0.0  ;;  %v11092_v48 = vpop.f32.mrf.mxu1 }
 0x243   : > { %3681 = vst.msk [vmem:[#allocation2 + $0x518] sm:$0xff] %vm354_vm2, %v3424_v57  ;;  %3679 = vst.msk [vmem:[#allocation2 + $0x508] sm:$0xff] %vm354_vm2, %v3422_v61  ;;  %v6616_v37 = vadd.f32 %v6615_v24, %v6614_v35  ;;  %v5845_v13 = vadd.f32 %v5844_v31, %v5843_v10  ;;  %v4180_v4 = vadd.f32 %v10593_v50, %v11058_v42  ;;  %v11080_v44 = vld [vmem:[#allocation2 + $0x468] sm:$0xff]  ;;  %v5848_v47 = vsel %vm354_vm2, %v10931_v7, 0.0  ;;  %v11104_v63 = vld [vmem:[#allocation2 + $0x490] sm:$0xff] }
 0x244   : > { %3684 = vst.msk [vmem:[#allocation2 + $0x530] sm:$0xff] %vm354_vm2, %v3427_v8  ;;  %v7748_v62 = vpack.c.bf16 %v4177_v15, %v4177_v15  ;;  %v7753_v56 = vpack.c.bf16 %v4182_v12, %v4182_v12  ;;  %v4183_v52 = vadd.f32 %v10593_v50, %v11078_v32  ;;  %v4181_v49 = vadd.f32 %v10593_v50, %v11080_v44  ;;  %v11112_v7 = vld [vmem:[#allocation2 + $0x480] sm:$0xff]  ;;  %v11124_v46 = vld [vmem:[#allocation2 + $0x498] sm:$0xff]  ;;  %v11126_v35 = vpop.f32.mrf.mxu1 }
 0x245   : > { %v5847_v16 = vadd.f32 %v5846_v20, %v5845_v13  ;;  %v6618_v55 = vadd.f32 %v6617_v40, %v6616_v37  ;;  %v7751_v53 = vpack.c.bf16 %v4180_v4, %v4180_v4  ;;  %v6235_v18 = vmul.f32 %v10948_v59, %v10948_v59  ;;  %v11120_v54 = vld [vmem:[%s12761_s2] ss:$0 sm:$0xff]  ;;  %12837 = vst [vmem:[#allocation9_spill] sm:$0xff] %v11126_v35  ;;  %v11139_v13 = vld [vmem:[#allocation2 + $0x488] sm:$0xff] }
 0x246   : > { %5458 = vst.msk [vmem:[%s9431_s25 + $0x224] sm:$0xf] %vm5320_vm3, %v7748_v62  ;;  %5463 = vst.msk [vmem:[%s9431_s25 + $0x238] sm:$0xf] %vm5320_vm3, %v7753_v56  ;;  %v5850_v43 = vsel %vm354_vm2, %v3914_v39, 0.0  ;;  %v6233_v0 = vmul.f32 %v3914_v39, %v3914_v39  ;;  %v7754_v50 = vpack.c.bf16 %v4183_v52, %v4183_v52  ;;  %v7752_v57 = vpack.c.bf16 %v4181_v49, %v4181_v49  ;;  %v788_v35 = vld [vmem:[#allocation2 + $0x588] sm:$0xff] }
 0x247   : > { %v6620_v30 = vadd.f32 %v6619_v21, %v6618_v55  ;;  %v5849_v6 = vadd.f32 %v5848_v47, %v5847_v16  ;;  %5461 = vst.msk [vmem:[%s9431_s25 + $0x230] sm:$0xf] %vm5320_vm3, %v7751_v53  ;;  %v6238_v38 = vmul.f32 %v11056_v29, %v11056_v29  ;;  %v4186_v8 = vadd.f32 %v11120_v54, %v11104_v63 }
 0x248   : > { %v6627_v39 = vsel %vm354_vm2, %v6234_v33, 0.0  ;;  %v6623_v10 = vsel %vm354_vm2, %v6232_v19, 0.0  ;;  %v5854_v15 = vsel %vm354_vm2, %v10948_v59, 0.0  ;;  %5464 = vst.msk [vmem:[%s9431_s25 + $0x23c] sm:$0xf] %vm5320_vm3, %v7754_v50  ;;  %v4184_v31 = vadd.f32 %v11120_v54, %v11112_v7  ;;  %v11153_v33 = vpop.f32.mrf.mxu1 }
 0x249   : > { %v6622_v27 = vadd.f32 %v6621_v41, %v6620_v30  ;;  %v5851_v61 = vadd.f32 %v5850_v43, %v5849_v6  ;;  %5462 = vst.msk [vmem:[%s9431_s25 + $0x234] sm:$0xf] %vm5320_vm3, %v7752_v57  ;;  %v6629_v24 = vsel %vm354_vm2, %v6235_v18, 0.0  ;;  %v7757_v37 = vpack.c.bf16 %v4186_v8, %v4186_v8  ;;  %v11146_v41 = vld [vmem:[#allocation2 + $0x4b0] sm:$0xff]  ;;  %12838 = vst [vmem:[#allocation10_spill] sm:$0xff] %v11153_v33  ;;  %v790_v33 = vld [vmem:[#allocation2 + $0x598] sm:$0xff] }
 0x24a   : > { %v6625_v62 = vsel %vm354_vm2, %v6233_v0, 0.0  ;;  %v6236_v59 = vmul.f32 %v11058_v42, %v11058_v42  ;;  %v7755_v4 = vpack.c.bf16 %v4184_v31, %v4184_v31  ;;  %v4187_v20 = vadd.f32 %v11120_v54, %v11124_v46  ;;  %v11182_v8 = vpop.f32.mrf.mxu1 }
 0x24b   : > { %v6624_v21 = vadd.f32 %v6623_v10, %v6622_v27  ;;  %v5853_v12 = vadd.f32 %v5852_v22, %v5851_v61  ;;  %v5860_v16 = vsel %vm354_vm2, %v11056_v29, 0.0  ;;  %v6635_v55 = vsel %vm354_vm2, %v6238_v38, 0.0  ;;  %5467 = vst.msk [vmem:[%s9431_s25 + $0x248] sm:$0xf] %vm5320_vm3, %v7757_v37  ;;  %v11163_v29 = vld [vmem:[#allocation2 + $0x4a0] sm:$0xff]  ;;  %v11180_v38 = vld [vmem:[#allocation2 + $0x4a8] sm:$0xff] }
 0x24c   : > { %v5856_v53 = vsel %vm354_vm2, %v11058_v42, 0.0  ;;  %v6239_v47 = vmul.f32 %v11078_v32, %v11078_v32  ;;  %5465 = vst.msk [vmem:[%s9431_s25 + $0x240] sm:$0xf] %vm5320_vm3, %v7755_v4  ;;  %v7758_v19 = vpack.c.bf16 %v4187_v20, %v4187_v20  ;;  %v4185_v52 = vadd.f32 %v11120_v54, %v11139_v13  ;;  %v11169_v42 = vld [vmem:[#allocation2 + $0x4b8] sm:$0xff]  ;;  %12839 = vst [vmem:[#allocation11_spill] sm:$0xff] %v11182_v8  ;;  %v11197_v37 = vld [vmem:[#allocation2 + $0x4d0] sm:$0xff] }
 0x24d   : > { %v5855_v40 = vadd.f32 %v5854_v15, %v5853_v12  ;;  %v6626_v56 = vadd.f32 %v6625_v62, %v6624_v21  ;;  %v5862_v22 = vsel %vm354_vm2, %v11078_v32, 0.0  ;;  %v4190_v6 = vadd.f32 %v11120_v54, %v11146_v41 }
 0x24e   : > { %v6631_v18 = vsel %vm354_vm2, %v6236_v59, 0.0  ;;  %v5858_v43 = vsel %vm354_vm2, %v11080_v44, 0.0  ;;  %v6237_v0 = vmul.f32 %v11080_v44, %v11080_v44  ;;  %5468 = vst.msk [vmem:[%s9431_s25 + $0x24c] sm:$0xf] %vm5320_vm3, %v7758_v19  ;;  %v7756_v50 = vpack.c.bf16 %v4185_v52, %v4185_v52 }
 0x24f   : > { %v6628_v49 = vadd.f32 %v6627_v39, %v6626_v56  ;;  %v5857_v30 = vadd.f32 %v5856_v53, %v5855_v40  ;;  %v7761_v27 = vpack.c.bf16 %v4190_v6, %v4190_v6  ;;  %v4188_v61 = vadd.f32 %v11120_v54, %v11163_v29  ;;  %v11210_v53 = vld [vmem:[#allocation2 + $0x4c0] sm:$0xff] }
 0x250   : > { %v6637_v39 = vsel %vm354_vm2, %v6239_v47, 0.0  ;;  %v5868_v10 = vsel %vm354_vm2, %v11104_v63, 0.0  ;;  %v6242_v44 = vmul.f32 %v11104_v63, %v11104_v63  ;;  %5466 = vst.msk [vmem:[%s9431_s25 + $0x244] sm:$0xf] %vm5320_vm3, %v7756_v50  ;;  %v4191_v15 = vadd.f32 %v11120_v54, %v11169_v42  ;;  %v11212_v47 = vpop.f32.mrf.mxu1 }
 0x251   : > { %v6630_v57 = vadd.f32 %v6629_v24, %v6628_v49  ;;  %v5859_v32 = vadd.f32 %v5858_v43, %v5857_v30  ;;  %v6240_v24 = vmul.f32 %v11112_v7, %v11112_v7  ;;  %5471 = vst.msk [vmem:[%s9431_s25 + $0x258] sm:$0xf] %vm5320_vm3, %v7761_v27  ;;  %v7759_v12 = vpack.c.bf16 %v4188_v61, %v4188_v61  ;;  %v11221_v30 = vld [vmem:[#allocation2 + $0x4d8] sm:$0xff]  ;;  %v11233_v27 = vld [vmem:[#allocation2 + $0x4c8] sm:$0xff] }
 0x252   : > { %v6633_v62 = vsel %vm354_vm2, %v6237_v0, 0.0  ;;  %v6243_v63 = vmul.f32 %v11124_v46, %v11124_v46  ;;  %v7762_v59 = vpack.c.bf16 %v4191_v15, %v4191_v15  ;;  %v4189_v4 = vadd.f32 %v11120_v54, %v11180_v38  ;;  %12840 = vst [vmem:[#allocation12_spill] sm:$0xff] %v11212_v47  ;;  %v11238_v15 = vld [vmem:[#allocation2 + $0x4f0] sm:$0xff] }
 0x253   : > { %v6632_v31 = vadd.f32 %v6631_v18, %v6630_v57  ;;  %v5861_v21 = vadd.f32 %v5860_v16, %v5859_v32  ;;  %v5864_v56 = vsel %vm354_vm2, %v11112_v7, 0.0  ;;  %v6241_v16 = vmul.f32 %v11139_v13, %v11139_v13  ;;  %5469 = vst.msk [vmem:[%s9431_s25 + $0x250] sm:$0xf] %vm5320_vm3, %v7759_v12 }
 0x254   : > { %v6643_v19 = vsel %vm354_vm2, %v6242_v44, 0.0  ;;  %v6246_v52 = vmul.f32 %v11146_v41, %v11146_v41  ;;  %5472 = vst.msk [vmem:[%s9431_s25 + $0x25c] sm:$0xf] %vm5320_vm3, %v7762_v59  ;;  %v7760_v49 = vpack.c.bf16 %v4189_v4, %v4189_v4  ;;  %v4194_v7 = vadd.f32 %v11120_v54, %v11197_v37  ;;  %v11253_v4 = vld [vmem:[#allocation2 + $0x4e0] sm:$0xff] }
 0x255   : > { %v5863_v20 = vadd.f32 %v5862_v22, %v5861_v21  ;;  %v6634_v40 = vadd.f32 %v6633_v62, %v6632_v31  ;;  %v6639_v18 = vsel %vm354_vm2, %v6240_v24, 0.0  ;;  %v5870_v43 = vsel %vm354_vm2, %v11124_v46, 0.0  ;;  %v11240_v31 = vpop.f32.mrf.mxu1 }
 0x256   : > { %v6645_v0 = vsel %vm354_vm2, %v6243_v63, 0.0  ;;  %v5866_v50 = vsel %vm354_vm2, %v11139_v13, 0.0  ;;  %5470 = vst.msk [vmem:[%s9431_s25 + $0x254] sm:$0xf] %vm5320_vm3, %v7760_v49  ;;  %v7765_v57 = vpack.c.bf16 %v4194_v7, %v4194_v7  ;;  %v4192_v32 = vadd.f32 %v11120_v54, %v11210_v53  ;;  %12841 = vst [vmem:[#allocation13_spill] sm:$0xff] %v11240_v31  ;;  %v11269_v49 = vld [vmem:[#allocation2 + $0x4f8] sm:$0xff] }
 0x257   : > { %v6636_v22 = vadd.f32 %v6635_v55, %v6634_v40  ;;  %v5865_v6 = vadd.f32 %v5864_v56, %v5863_v20  ;;  %v6641_v44 = vsel %vm354_vm2, %v6241_v16, 0.0  ;;  %v4195_v46 = vadd.f32 %v11120_v54, %v11221_v30  ;;  %v11271_v7 = vpop.f32.mrf.mxu1 }
 0x258   : > { %v5876_v13 = vsel %vm354_vm2, %v11146_v41, 0.0  ;;  %v11245_v21 = vsel %vm354_vm2, %v6246_v52, 0.0  ;;  %5475 = vst.msk [vmem:[%s9431_s25 + $0x268] sm:$0xf] %vm5320_vm3, %v7765_v57  ;;  %v7763_v24 = vpack.c.bf16 %v4192_v32, %v4192_v32  ;;  %v4193_v59 = vadd.f32 %v11120_v54, %v11233_v27  ;;  %12842 = vst [vmem:[#allocation14_spill] sm:$0xff] %v11271_v7 }
 0x259   : > { %v6638_v55 = vadd.f32 %v6637_v39, %v6636_v22  ;;  %v5867_v61 = vadd.f32 %v5866_v50, %v5865_v6  ;;  %v6244_v39 = vmul.f32 %v11163_v29, %v11163_v29  ;;  %v7766_v63 = vpack.c.bf16 %v4195_v46, %v4195_v46 }
 0x25a   : > { %v5872_v41 = vsel %vm354_vm2, %v11163_v29, 0.0  ;;  %v5878_v20 = vsel %vm354_vm2, %v11169_v42, 0.0  ;;  %v6247_v40 = vmul.f32 %v11169_v42, %v11169_v42  ;;  %5473 = vst.msk [vmem:[%s9431_s25 + $0x260] sm:$0xf] %vm5320_vm3, %v7763_v24  ;;  %v6245_v52 = vmul.f32 %v11180_v38, %v11180_v38 }
 0x25b   : > { %v6640_v12 = vadd.f32 %v6639_v18, %v6638_v55  ;;  %v5869_v62 = vadd.f32 %v5868_v10, %v5867_v61  ;;  %v4198_v10 = vadd.f32 %v11120_v54, %v11238_v15  ;;  %5476 = vst.msk [vmem:[%s9431_s25 + $0x26c] sm:$0xf] %vm5320_vm3, %v7766_v63  ;;  %v7764_v29 = vpack.c.bf16 %v4193_v59, %v4193_v59  ;;  %v11284_v55 = vld [vmem:[#allocation2 + $0x4e8] sm:$0xff]  ;;  %v11298_v63 = vpop.f32.mrf.mxu1 }
 0x25c   : > { %v6647_v42 = vsel %vm354_vm2, %v6244_v39, 0.0  ;;  %v6250_v22 = vmul.f32 %v11197_v37, %v11197_v37  ;;  %v4196_v18 = vadd.f32 %v11120_v54, %v11253_v4  ;;  %v5874_v57 = vsel %vm354_vm2, %v11180_v38, 0.0  ;;  %v11293_v38 = vld [vmem:[#allocation2 + $0x510] sm:$0xff]  ;;  %12843 = vst [vmem:[#allocation15_spill] sm:$0xff] %v11298_v63  ;;  %v786_v63 = vld [vmem:[#allocation2 + $0x578] sm:$0xff] }
 0x25d   : > { %v5871_v56 = vadd.f32 %v5870_v43, %v5869_v62  ;;  %v6642_v16 = vadd.f32 %v6641_v44, %v6640_v12  ;;  %v7769_v6 = vpack.c.bf16 %v4198_v10, %v4198_v10  ;;  %v6248_v32 = vmul.f32 %v11210_v53, %v11210_v53  ;;  %5474 = vst.msk [vmem:[%s9431_s25 + $0x264] sm:$0xf] %vm5320_vm3, %v7764_v29 }
 0x25e   : > { %v6653_v61 = vsel %vm354_vm2, %v6247_v40, 0.0  ;;  %v5884_v44 = vsel %vm354_vm2, %v11197_v37, 0.0  ;;  %v4199_v46 = vadd.f32 %v11120_v54, %v11269_v49  ;;  %v6649_v12 = vsel %vm354_vm2, %v6245_v52, 0.0  ;;  %v11309_v40 = vld [vmem:[#allocation2 + $0x500] sm:$0xff]  ;;  %v11314_v52 = vld [vmem:[#allocation2 + $0x518] sm:$0xff] }
 0x25f   : > { %v6644_v43 = vadd.f32 %v6643_v19, %v6642_v16  ;;  %v5873_v50 = vadd.f32 %v5872_v41, %v5871_v56  ;;  %5479 = vst.msk [vmem:[%s9431_s25 + $0x278] sm:$0xf] %vm5320_vm3, %v7769_v6  ;;  %v7767_v19 = vpack.c.bf16 %v4196_v18, %v4196_v18  ;;  %v5880_v62 = vsel %vm354_vm2, %v11210_v53, 0.0 }
 0x260   : > { %v11301_v37 = vsel %vm354_vm2, %v6250_v22, 0.0  ;;  %v6251_v59 = vmul.f32 %v11221_v30, %v11221_v30  ;;  %v7770_v41 = vpack.c.bf16 %v4199_v46, %v4199_v46  ;;  %v6655_v53 = vsel %vm354_vm2, %v6248_v32, 0.0  ;;  %v11328_v32 = vpop.f32.mrf.mxu1 }
 0x261   : > { %v6646_v39 = vadd.f32 %v6645_v0, %v6644_v43  ;;  %v5875_v24 = vadd.f32 %v5874_v57, %v5873_v50  ;;  %5477 = vst.msk [vmem:[%s9431_s25 + $0x270] sm:$0xf] %vm5320_vm3, %v7767_v19  ;;  %v4197_v0 = vadd.f32 %v11120_v54, %v11284_v55  ;;  %v4202_v16 = vadd.f32 %v11120_v54, %v11293_v38  ;;  %v11326_v57 = vld [vmem:[#allocation2 + $0x508] sm:$0xff] }
 0x262   : > { %v5886_v29 = vsel %vm354_vm2, %v11221_v30, 0.0  ;;  %v6249_v22 = vmul.f32 %v11233_v27, %v11233_v27  ;;  %v6254_v6 = vmul.f32 %v11238_v15, %v11238_v15  ;;  %5480 = vst.msk [vmem:[%s9431_s25 + $0x27c] sm:$0xf] %vm5320_vm3, %v7770_v41  ;;  %v4200_v50 = vadd.f32 %v11120_v54, %v11309_v40  ;;  %12844 = vst [vmem:[#allocation16_spill] sm:$0xff] %v11328_v32  ;;  %v783_v32 = vld [vmem:[#allocation2 + $0x560] sm:$0xff] }
 0x263   : > { %v6648_v10 = vadd.f32 %v6647_v42, %v6646_v39  ;;  %v5877_v56 = vadd.f32 %v5876_v13, %v5875_v24  ;;  %v7768_v13 = vpack.c.bf16 %v4197_v0, %v4197_v0  ;;  %v7773_v43 = vpack.c.bf16 %v4202_v16, %v4202_v16 }
 0x264   : > { %v11331_v30 = vsel %vm354_vm2, %v6251_v59, 0.0  ;;  %v5882_v19 = vsel %vm354_vm2, %v11233_v27, 0.0  ;;  %v6252_v46 = vmul.f32 %v11253_v4, %v11253_v4  ;;  %v7771_v27 = vpack.c.bf16 %v4200_v50, %v4200_v50  ;;  %v11348_v59 = vld [vmem:[#allocation2 + $0x530] sm:$0xff] }
 0x265   : > { %v5879_v42 = vadd.f32 %v5878_v20, %v5877_v56  ;;  %v6650_v18 = vadd.f32 %v6649_v12, %v6648_v10  ;;  %5478 = vst.msk [vmem:[%s9431_s25 + $0x274] sm:$0xf] %vm5320_vm3, %v7768_v13  ;;  %v4203_v20 = vadd.f32 %v11120_v54, %v11314_v52  ;;  %v11344_v12 = vsel %vm354_vm2, %v11238_v15, 0.0  ;;  %5483 = vst.msk [vmem:[%s9431_s25 + $0x288] sm:$0xf] %vm5320_vm3, %v7773_v43  ;;  %v11362_v13 = vld [vmem:[#allocation2 + $0x520] sm:$0xff] }
 0x266   : > { %v6657_v41 = vsel %vm354_vm2, %v6249_v22, 0.0  ;;  %v6253_v0 = vmul.f32 %v11284_v55, %v11284_v55  ;;  %v11356_v15 = vsel %vm354_vm2, %v6254_v6, 0.0  ;;  %v5888_v16 = vsel %vm354_vm2, %v11253_v4, 0.0  ;;  %5481 = vst.msk [vmem:[%s9431_s25 + $0x280] sm:$0xf] %vm5320_vm3, %v7771_v27  ;;  %v11364_v22 = vpop.f32.mrf.mxu1 }
 0x267   : > { %v6652_v39 = vadd.f32 %v11245_v21, %v6650_v18  ;;  %v5881_v24 = vadd.f32 %v5880_v62, %v5879_v42  ;;  %v7774_v10 = vpack.c.bf16 %v4203_v20, %v4203_v20  ;;  %v4201_v21 = vadd.f32 %v11120_v54, %v11326_v57  ;;  %12845 = vst [vmem:[#allocation17_spill] sm:$0xff] %v11364_v22  ;;  %v778_v18 = vld [vmem:[#allocation2 + $0x538] sm:$0xff]  ;;  %v776_v20 = vld [vmem:[#allocation2 + $0x528] sm:$0xff]  ;;  %v785_v22 = vld [vmem:[#allocation2 + $0x570] sm:$0xff] }
 0x268   : > { %v11367_v42 = vsel %vm354_vm2, %v6252_v46, 0.0  ;;  %v4206_v4 = vadd.f32 %v11120_v54, %v11348_v59  ;;  %v5890_v46 = vsel %vm354_vm2, %v11284_v55, 0.0  ;;  %v11388_v27 = vmul.f32 %v11293_v38, %v11293_v38  ;;  %v11399_v7 = vpop.f32.mrf.mxu1 }
 0x269   : > { %v6654_v62 = vadd.f32 %v6653_v61, %v6652_v39  ;;  %v5883_v56 = vadd.f32 %v5882_v19, %v5881_v24  ;;  %v11371_v61 = vsel %vm354_vm2, %v11269_v49, 0.0  ;;  %5484 = vst.msk [vmem:[%s9431_s25 + $0x28c] sm:$0xf] %vm5320_vm3, %v7774_v10  ;;  %v7772_v6 = vpack.c.bf16 %v4201_v21, %v4201_v21  ;;  %v781_v39 = vld [vmem:[#allocation2 + $0x550] sm:$0xff]  ;;  %v782_v10 = vld [vmem:[#allocation2 + $0x558] sm:$0xff]  ;;  %v780_v21 = vld [vmem:[#allocation2 + $0x548] sm:$0xff] }
 0x26a   : > { %v11379_v19 = vmul.f32 %v11269_v49, %v11269_v49  ;;  %v11384_v24 = vsel %vm354_vm2, %v6253_v0, 0.0  ;;  %v4204_v49 = vadd.f32 %v11120_v54, %v11362_v13  ;;  %v11396_v0 = vsel %vm354_vm2, %v11309_v40, 0.0  ;;  %12846 = vst [vmem:[#allocation18_spill] sm:$0xff] %v11399_v7  ;;  %v12847_v7 = vld [vmem:[#allocation30_spill] sm:$0xff] }
 0x26b   : > { %v6656_v43 = vadd.f32 %v6655_v53, %v6654_v62  ;;  %v5885_v50 = vadd.f32 %v5884_v44, %v5883_v56  ;;  %5482 = vst.msk [vmem:[%s9431_s25 + $0x284] sm:$0xf] %vm5320_vm3, %v7772_v6  ;;  %v7777_v44 = vpack.c.bf16 %v4206_v4, %v4206_v4  ;;  %v779_v53 = vld [vmem:[#allocation2 + $0x540] sm:$0xff]  ;;  %v3428_v56 = vadd.f32 %v10514_v5, %v778_v18 }
 0x26c   : > { %v11403_v6 = vmul.f32 %v11309_v40, %v11309_v40  ;;  %v3431_v4 = vadd.f32 %v10544_v14, %v781_v39  ;;  %v787_v5 = vld [vmem:[#allocation2 + $0x580] sm:$0xff]  ;;  %v3429_v47 = vadd.f32 %v12847_v7, %v779_v53  ;;  %v12848_v40 = vld [vmem:[#allocation31_spill] sm:$0xff]  ;;  %v794_v53 = vld [vmem:[#allocation2 + $0x5b8] sm:$0xff] }
 0x26d   : > { %v5887_v55 = vadd.f32 %v5886_v29, %v5885_v50  ;;  %v6658_v62 = vadd.f32 %v6657_v41, %v6656_v43  ;;  %5487 = vst.msk [vmem:[%s9431_s25 + $0x298] sm:$0xf] %vm5320_vm3, %v7777_v44  ;;  %v7775_v29 = vpack.c.bf16 %v4204_v49, %v4204_v49  ;;  %v3426_v41 = vadd.f32 %v10527_v51, %v776_v20  ;;  %v784_v43 = vld [vmem:[#allocation2 + $0x568] sm:$0xff]  ;;  %v789_v50 = vld [vmem:[#allocation2 + $0x590] sm:$0xff]  ;;  %v12849_v51 = vld [vmem:[#allocation32_spill] sm:$0xff] }
 0x26e   : > { %3685 = vst.msk [vmem:[#allocation2 + $0x538] sm:$0xff] %vm354_vm2, %v3428_v56  ;;  %v3432_v8 = vadd.f32 %v12848_v40, %v782_v10  ;;  %v793_v44 = vld [vmem:[#allocation2 + $0x5b0] sm:$0xff]  ;;  %3688 = vst.msk [vmem:[#allocation2 + $0x550] sm:$0xff] %vm354_vm2, %v3431_v4  ;;  %v3430_v14 = vadd.f32 %v12849_v51, %v780_v21  ;;  %v12850_v20 = vld [vmem:[#allocation33_spill] sm:$0xff] }
 0x26f   : > { %v6660_v18 = vadd.f32 %v11301_v37, %v6658_v62  ;;  %v5889_v31 = vadd.f32 %v5888_v16, %v5887_v55  ;;  %5485 = vst.msk [vmem:[%s9431_s25 + $0x290] sm:$0xf] %vm5320_vm3, %v7775_v29  ;;  %v3435_v37 = vadd.f32 %v12850_v20, %v785_v22  ;;  %v12851_v16 = vld [vmem:[#allocation34_spill] sm:$0xff]  ;;  %v12852_v49 = vld [vmem:[#allocation35_spill] sm:$0xff]  ;;  %v791_v7 = vld [vmem:[#allocation2 + $0x5a0] sm:$0xff] }
 0x270   : > { %3683 = vst.msk [vmem:[#allocation2 + $0x528] sm:$0xff] %vm354_vm2, %v3426_v41  ;;  %v3433_v39 = vadd.f32 %v12851_v16, %v783_v32  ;;  %v3436_v55 = vadd.f32 %v12852_v49, %v786_v63  ;;  %v792_v10 = vld [vmem:[#allocation2 + $0x5a8] sm:$0xff]  ;;  %3686 = vst.msk [vmem:[#allocation2 + $0x540] sm:$0xff] %vm354_vm2, %v3429_v47  ;;  %v12853_v29 = vld [vmem:[#allocation36_spill] sm:$0xff]  ;;  %v11426_v32 = vpop.f32.mrf.mxu1 }
 0x271   : > { %v6662_v62 = vadd.f32 %v11331_v30, %v6660_v18  ;;  %v5891_v56 = vadd.f32 %v5890_v46, %v5889_v31  ;;  %3689 = vst.msk [vmem:[#allocation2 + $0x558] sm:$0xff] %vm354_vm2, %v3432_v8  ;;  %v3434_v41 = vadd.f32 %v12853_v29, %v784_v43  ;;  %v12854_v4 = vld [vmem:[#allocation37_spill] sm:$0xff]  ;;  %v797_v40 = vld [vmem:[#allocation2 + $0x5d0] sm:$0xff]  ;;  %v798_v51 = vld [vmem:[#allocation2 + $0x5d8] sm:$0xff] }
 0x272   : > { %v3439_v21 = vadd.f32 %v12854_v4, %v789_v50  ;;  %v795_v22 = vld [vmem:[#allocation2 + $0x5c0] sm:$0xff]  ;;  %3687 = vst.msk [vmem:[#allocation2 + $0x548] sm:$0xff] %vm354_vm2, %v3430_v14  ;;  %3692 = vst.msk [vmem:[#allocation2 + $0x570] sm:$0xff] %vm354_vm2, %v3435_v37  ;;  %v12855_v47 = vld [vmem:[#allocation38_spill] sm:$0xff] }
 0x273   : > { %3690 = vst.msk [vmem:[#allocation2 + $0x560] sm:$0xff] %vm354_vm2, %v3433_v39  ;;  %3693 = vst.msk [vmem:[#allocation2 + $0x578] sm:$0xff] %vm354_vm2, %v3436_v55  ;;  %v3437_v31 = vadd.f32 %v12855_v47, %v787_v5  ;;  %v12856_v8 = vld [vmem:[#allocation39_spill] sm:$0xff]  ;;  %v12857_v30 = vld [vmem:[#allocation40_spill] sm:$0xff]  ;;  %v6664_v49 = vadd.f32 %v11367_v42, %v6662_v62  ;;  %v5893_v14 = vadd.f32 %v11344_v12, %v5891_v56  ;;  %v11456_v47 = vpop.f32.mrf.mxu1 }
 0x274   : > { %v3440_v63 = vadd.f32 %v12856_v8, %v790_v33  ;;  %v3438_v46 = vadd.f32 %v12857_v30, %v788_v35  ;;  %v12858_v43 = vld [vmem:[#allocation41_spill] sm:$0xff]  ;;  %v796_v18 = vld [vmem:[#allocation2 + $0x5c8] sm:$0xff]  ;;  %v801_v20 = vld [vmem:[#allocation2 + $0x5f0] sm:$0xff]  ;;  %3691 = vst.msk [vmem:[#allocation2 + $0x568] sm:$0xff] %vm354_vm2, %v3434_v41  ;;  %v3445_v56 = vadd.f32 %v10762_v3, %v795_v22 }
 0x275   : > { %v3443_v50 = vadd.f32 %v12858_v43, %v793_v44  ;;  %v799_v16 = vld [vmem:[#allocation2 + $0x5e0] sm:$0xff]  ;;  %3696 = vst.msk [vmem:[#allocation2 + $0x590] sm:$0xff] %vm354_vm2, %v3439_v21  ;;  %v12859_v37 = vld [vmem:[#allocation42_spill] sm:$0xff]  ;;  %v12860_v5 = vld [vmem:[#allocation43_spill] sm:$0xff]  ;;  %v6666_v41 = vadd.f32 %v11384_v24, %v6664_v49  ;;  %v3446_v4 = vadd.f32 %v10797_v11, %v796_v18  ;;  %v3451_v21 = vadd.f32 %v10812_v26, %v801_v20  ;;  %v11495_v30 = vpop.f32.mrf.mxu1 }
 0x276   : > { %v3441_v39 = vadd.f32 %v12859_v37, %v791_v7  ;;  %v3444_v55 = vadd.f32 %v12860_v5, %v794_v53  ;;  %v802_v33 = vld [vmem:[#allocation2 + $0x5f8] sm:$0xff]  ;;  %v800_v29 = vld [vmem:[#allocation2 + $0x5e8] sm:$0xff]  ;;  %v805_v35 = vld [vmem:[#allocation2 + $0x610] sm:$0xff]  ;;  %3694 = vst.msk [vmem:[#allocation2 + $0x580] sm:$0xff] %vm354_vm2, %v3437_v31  ;;  %v3448_v7 = vadd.f32 %v10779_v23, %v798_v51  ;;  %v5895_v53 = vadd.f32 %v11371_v61, %v5893_v14 }
 0x277   : > { %3697 = vst.msk [vmem:[#allocation2 + $0x598] sm:$0xff] %vm354_vm2, %v3440_v63  ;;  %3695 = vst.msk [vmem:[#allocation2 + $0x588] sm:$0xff] %vm354_vm2, %v3438_v46  ;;  %v12861_v12 = vld [vmem:[#allocation44_spill] sm:$0xff]  ;;  %v12862_v44 = vld [vmem:[#allocation45_spill] sm:$0xff]  ;;  %v3449_v3 = vadd.f32 %v10822_v28, %v799_v16  ;;  %v3452_v23 = vadd.f32 %v10841_v60, %v802_v33  ;;  %v3450_v11 = vadd.f32 %v10848_v2, %v800_v29  ;;  %v6669_v61 = vsel %vm354_vm2, %v11379_v19, 0.0 }
 0x278   : > { %3700 = vst.msk [vmem:[#allocation2 + $0x5b0] sm:$0xff] %vm354_vm2, %v3443_v50  ;;  %v3442_v42 = vadd.f32 %v12861_v12, %v792_v10  ;;  %v3447_v62 = vadd.f32 %v12862_v44, %v797_v40  ;;  %3698 = vst.msk [vmem:[#allocation2 + $0x5a0] sm:$0xff] %vm354_vm2, %v3441_v39  ;;  %v11458_v10 = vld [vmem:[#allocation2 + $0x538] sm:$0xff]  ;;  %v3455_v26 = vadd.f32 %v10863_v1, %v805_v35  ;;  %v3942_v51 = vld [vmem:[#allocation2 + $0x528] sm:$0xff]  ;;  %v5898_v60 = vsel %vm354_vm2, %v11326_v57, 0.0  ;;  %v11523_v35 = vpop.f32.mrf.mxu1 }
 0x279   : > { %3701 = vst.msk [vmem:[#allocation2 + $0x5b8] sm:$0xff] %vm354_vm2, %v3444_v55  ;;  %3702 = vst.msk [vmem:[#allocation2 + $0x5c0] sm:$0xff] %vm354_vm2, %v3445_v56  ;;  %v6668_v24 = vadd.f32 %v11356_v15, %v6666_v41  ;;  %v5897_v40 = vadd.f32 %v11396_v0, %v5895_v53  ;;  %v4207_v22 = vadd.f32 %v11120_v54, %v11458_v10  ;;  %v11474_v31 = vld [vmem:[#allocation2 + $0x550] sm:$0xff]  ;;  %v11491_v63 = vld [vmem:[#allocation2 + $0x540] sm:$0xff]  ;;  %v5900_v46 = vsel %vm354_vm2, %v11293_v38, 0.0 }
 0x27a   : > { %3699 = vst.msk [vmem:[#allocation2 + $0x5a8] sm:$0xff] %vm354_vm2, %v3442_v42  ;;  %3704 = vst.msk [vmem:[#allocation2 + $0x5d0] sm:$0xff] %vm354_vm2, %v3447_v62  ;;  %v6259_v28 = vmul.f32 %v11314_v52, %v11314_v52  ;;  %v6257_v2 = vmul.f32 %v11326_v57, %v11326_v57  ;;  %v4205_v1 = vadd.f32 %v11120_v54, %v3942_v51  ;;  %v11493_v57 = vld [vmem:[#allocation2 + $0x558] sm:$0xff]  ;;  %v6675_v43 = vsel %vm354_vm2, %v11388_v27, 0.0  ;;  %v3946_v39 = vld [vmem:[#allocation2 + $0x548] sm:$0xff] }
 0x27b   : > { %3705 = vst.msk [vmem:[#allocation2 + $0x5d8] sm:$0xff] %vm354_vm2, %v3448_v7  ;;  %3703 = vst.msk [vmem:[#allocation2 + $0x5c8] sm:$0xff] %vm354_vm2, %v3446_v4  ;;  %v6670_v15 = vadd.f32 %v6669_v61, %v6668_v24  ;;  %v5899_v19 = vadd.f32 %v5898_v60, %v5897_v40  ;;  %v7778_v0 = vpack.c.bf16 %v4207_v22, %v4207_v22  ;;  %v6671_v50 = vsel %vm354_vm2, %v11403_v6, 0.0  ;;  %v11521_v29 = vld [vmem:[#allocation2 + $0x570] sm:$0xff]  ;;  %v11530_v4 = vld [vmem:[#allocation2 + $0x560] sm:$0xff] }
 0x27c   : > { %3708 = vst.msk [vmem:[#allocation2 + $0x5f0] sm:$0xff] %vm354_vm2, %v3451_v21  ;;  %3706 = vst.msk [vmem:[#allocation2 + $0x5e0] sm:$0xff] %vm354_vm2, %v3449_v3  ;;  %v4210_v8 = vadd.f32 %v11120_v54, %v11474_v31  ;;  %v7776_v18 = vpack.c.bf16 %v4205_v1, %v4205_v1  ;;  %v5902_v16 = vsel %vm354_vm2, %v11314_v52, 0.0  ;;  %v6673_v37 = vsel %vm354_vm2, %v6257_v2, 0.0  ;;  %v11543_v40 = vld [vmem:[#allocation2 + $0x578] sm:$0xff]  ;;  %v11553_v2 = vld [vmem:[#allocation2 + $0x568] sm:$0xff] }
 0x27d   : > { %3709 = vst.msk [vmem:[#allocation2 + $0x5f8] sm:$0xff] %vm354_vm2, %v3452_v23  ;;  %3707 = vst.msk [vmem:[#allocation2 + $0x5e8] sm:$0xff] %vm354_vm2, %v3450_v11  ;;  %v6672_v20 = vadd.f32 %v6671_v50, %v6670_v15  ;;  %v5901_v49 = vadd.f32 %v5900_v46, %v5899_v19  ;;  %v6262_v38 = vmul.f32 %v11348_v59, %v11348_v59  ;;  %v6677_v52 = vsel %vm354_vm2, %v6259_v28, 0.0  ;;  %v11567_v50 = vld [vmem:[#allocation2 + $0x590] sm:$0xff] }
 0x27e   : > { %3712 = vst.msk [vmem:[#allocation2 + $0x610] sm:$0xff] %vm354_vm2, %v3455_v26  ;;  %v7781_v14 = vpack.c.bf16 %v4210_v8, %v4210_v8  ;;  %v4208_v27 = vadd.f32 %v11120_v54, %v11491_v63  ;;  %v4211_v6 = vadd.f32 %v11120_v54, %v11493_v57  ;;  %v6260_v33 = vmul.f32 %v11362_v13, %v11362_v13 }
 0x27f   : > { %5488 = vst.msk [vmem:[%s9431_s25 + $0x29c] sm:$0xf] %vm5320_vm3, %v7778_v0  ;;  %5486 = vst.msk [vmem:[%s9431_s25 + $0x294] sm:$0xf] %vm5320_vm3, %v7776_v18  ;;  %v5903_v5 = vadd.f32 %v5902_v16, %v5901_v49  ;;  %v6674_v55 = vadd.f32 %v6673_v37, %v6672_v20  ;;  %v5904_v12 = vsel %vm354_vm2, %v11362_v13, 0.0  ;;  %v6263_v42 = vmul.f32 %v11458_v10, %v11458_v10 }
 0x280   : > { %5491 = vst.msk [vmem:[%s9431_s25 + $0x2a8] sm:$0xf] %vm5320_vm3, %v7781_v14  ;;  %v7779_v44 = vpack.c.bf16 %v4208_v27, %v4208_v27  ;;  %v7782_v62 = vpack.c.bf16 %v4211_v6, %v4211_v6  ;;  %v6261_v53 = vmul.f32 %v3942_v51, %v3942_v51  ;;  %v4209_v41 = vadd.f32 %v11120_v54, %v3946_v39 }
 0x281   : > { %v6676_v56 = vadd.f32 %v6675_v43, %v6674_v55  ;;  %v5905_v7 = vadd.f32 %v5904_v12, %v5903_v5  ;;  %v5908_v21 = vsel %vm354_vm2, %v11348_v59, 0.0  ;;  %v6683_v3 = vsel %vm354_vm2, %v6262_v38, 0.0  ;;  %v11545_v59 = vpop.f32.mrf.mxu1 }
 0x282   : > { %v5906_v23 = vsel %vm354_vm2, %v3942_v51, 0.0  ;;  %5489 = vst.msk [vmem:[%s9431_s25 + $0x2a0] sm:$0xf] %vm5320_vm3, %v7779_v44  ;;  %5492 = vst.msk [vmem:[%s9431_s25 + $0x2ac] sm:$0xf] %vm5320_vm3, %v7782_v62  ;;  %v4214_v13 = vadd.f32 %v11120_v54, %v11521_v29  ;;  %v6679_v26 = vsel %vm354_vm2, %v6260_v33, 0.0  ;;  %v7780_v24 = vpack.c.bf16 %v4209_v41, %v4209_v41 }
 0x283   : > { %v6678_v11 = vadd.f32 %v6677_v52, %v6676_v56  ;;  %v5907_v61 = vadd.f32 %v5906_v23, %v5905_v7  ;;  %v5910_v22 = vsel %vm354_vm2, %v11458_v10, 0.0  ;;  %v6266_v51 = vmul.f32 %v11474_v31, %v11474_v31  ;;  %v11575_v14 = vpop.f32.mrf.mxu1  ;;  %v11586_v33 = vld [vmem:[#allocation2 + $0x598] sm:$0xff]  ;;  %v11598_v41 = vld [vmem:[#allocation2 + $0x588] sm:$0xff] }
 0x284   : > { %v7785_v28 = vpack.c.bf16 %v4214_v13, %v4214_v13  ;;  %v4212_v60 = vadd.f32 %v11120_v54, %v11530_v4  ;;  %v6685_v15 = vsel %vm354_vm2, %v6263_v42, 0.0  ;;  %v6681_v0 = vsel %vm354_vm2, %v6261_v53, 0.0  ;;  %5490 = vst.msk [vmem:[%s9431_s25 + $0x2a4] sm:$0xf] %vm5320_vm3, %v7780_v24 }
 0x285   : > { %v6680_v1 = vadd.f32 %v6679_v26, %v6678_v11  ;;  %v5909_v19 = vadd.f32 %v5908_v21, %v5907_v61  ;;  %v5916_v10 = vsel %vm354_vm2, %v11474_v31, 0.0  ;;  %v6264_v8 = vmul.f32 %v11491_v63, %v11491_v63  ;;  %v11573_v31 = vld [vmem:[#allocation2 + $0x580] sm:$0xff]  ;;  %v11600_v21 = vpop.f32.mrf.mxu1 }
 0x286   : > { %5495 = vst.msk [vmem:[%s9431_s25 + $0x2b8] sm:$0xf] %vm5320_vm3, %v7785_v28  ;;  %v7783_v46 = vpack.c.bf16 %v4212_v60, %v4212_v60  ;;  %v4215_v43 = vadd.f32 %v11120_v54, %v11543_v40  ;;  %v5912_v16 = vsel %vm354_vm2, %v11491_v63, 0.0  ;;  %v4213_v49 = vadd.f32 %v11120_v54, %v11553_v2 }
 0x287   : > { %v5911_v18 = vadd.f32 %v5910_v22, %v5909_v19  ;;  %v6682_v20 = vadd.f32 %v6681_v0, %v6680_v1  ;;  %v6691_v37 = vsel %vm354_vm2, %v6266_v51, 0.0  ;;  %v5918_v38 = vsel %vm354_vm2, %v11493_v57, 0.0  ;;  %v11613_v22 = vld [vmem:[#allocation2 + $0x5b0] sm:$0xff] }
 0x288   : > { %v6267_v27 = vmul.f32 %v11493_v57, %v11493_v57  ;;  %5493 = vst.msk [vmem:[%s9431_s25 + $0x2b0] sm:$0xf] %vm5320_vm3, %v7783_v46  ;;  %v7786_v63 = vpack.c.bf16 %v4215_v43, %v4215_v43  ;;  %v7784_v5 = vpack.c.bf16 %v4213_v49, %v4213_v49  ;;  %v4218_v55 = vadd.f32 %v11120_v54, %v11567_v50 }
 0x289   : > { %v6684_v6 = vadd.f32 %v6683_v3, %v6682_v20  ;;  %v5913_v52 = vadd.f32 %v5912_v16, %v5911_v18  ;;  %v6687_v12 = vsel %vm354_vm2, %v6264_v8, 0.0  ;;  %v5914_v42 = vsel %vm354_vm2, %v3946_v39, 0.0  ;;  %v11627_v8 = vpop.f32.mrf.mxu1  ;;  %v11636_v16 = vld [vmem:[#allocation2 + $0x5b8] sm:$0xff] }
 0x28a   : > { %v6265_v44 = vmul.f32 %v3946_v39, %v3946_v39  ;;  %5496 = vst.msk [vmem:[%s9431_s25 + $0x2bc] sm:$0xf] %vm5320_vm3, %v7786_v63  ;;  %v4216_v57 = vadd.f32 %v11120_v54, %v11573_v31  ;;  %v6270_v7 = vmul.f32 %v11521_v29, %v11521_v29  ;;  %5494 = vst.msk [vmem:[%s9431_s25 + $0x2b4] sm:$0xf] %vm5320_vm3, %v7784_v5  ;;  %v6693_v39 = vsel %vm354_vm2, %v6267_v27, 0.0  ;;  %v11641_v63 = vld [vmem:[#allocation2 + $0x5a8] sm:$0xff] }
 0x28b   : > { %v6686_v62 = vadd.f32 %v6685_v15, %v6684_v6  ;;  %v5915_v56 = vadd.f32 %v5914_v42, %v5913_v52  ;;  %v7789_v53 = vpack.c.bf16 %v4218_v55, %v4218_v55  ;;  %v6268_v3 = vmul.f32 %v11530_v4, %v11530_v4 }
 0x28c   : > { %v7787_v23 = vpack.c.bf16 %v4216_v57, %v4216_v57  ;;  %v4219_v13 = vadd.f32 %v11120_v54, %v11586_v33  ;;  %v5924_v61 = vsel %vm354_vm2, %v11521_v29, 0.0  ;;  %v6271_v24 = vmul.f32 %v11543_v40, %v11543_v40  ;;  %v11622_v29 = vld [vmem:[#allocation2 + $0x5a0] sm:$0xff]  ;;  %v11654_v57 = vpop.f32.mrf.mxu1 }
 0x28d   : > { %v6688_v11 = vadd.f32 %v6687_v12, %v6686_v62  ;;  %v5917_v26 = vadd.f32 %v5916_v10, %v5915_v56  ;;  %5499 = vst.msk [vmem:[%s9431_s25 + $0x2c8] sm:$0xf] %vm5320_vm3, %v7789_v53  ;;  %v6689_v51 = vsel %vm354_vm2, %v6265_v44, 0.0  ;;  %v6269_v28 = vmul.f32 %v11553_v2, %v11553_v2  ;;  %v11652_v44 = vld [vmem:[#allocation2 + $0x5d0] sm:$0xff] }
 0x28e   : > { %5497 = vst.msk [vmem:[%s9431_s25 + $0x2c0] sm:$0xf] %vm5320_vm3, %v7787_v23  ;;  %v7790_v60 = vpack.c.bf16 %v4219_v13, %v4219_v13  ;;  %v4217_v1 = vadd.f32 %v11120_v54, %v11598_v41  ;;  %v6699_v0 = vsel %vm354_vm2, %v6270_v7, 0.0  ;;  %v5920_v10 = vsel %vm354_vm2, %v11530_v4, 0.0  ;;  %v11670_v23 = vld [vmem:[#allocation2 + $0x5c0] sm:$0xff] }
 0x28f   : > { %v5919_v15 = vadd.f32 %v5918_v38, %v5917_v26  ;;  %v6690_v19 = vadd.f32 %v6689_v51, %v6688_v11  ;;  %v6695_v46 = vsel %vm354_vm2, %v6268_v3, 0.0  ;;  %v5926_v43 = vsel %vm354_vm2, %v11543_v40, 0.0 }
 0x290   : > { %5500 = vst.msk [vmem:[%s9431_s25 + $0x2cc] sm:$0xf] %vm5320_vm3, %v7790_v60  ;;  %v7788_v18 = vpack.c.bf16 %v4217_v1, %v4217_v1  ;;  %v4222_v20 = vadd.f32 %v11120_v54, %v11613_v22  ;;  %v6701_v4 = vsel %vm354_vm2, %v6271_v24, 0.0  ;;  %v4220_v27 = vadd.f32 %v11120_v54, %v11622_v29  ;;  %v11683_v60 = vld [vmem:[#allocation2 + $0x5d8] sm:$0xff]  ;;  %v11685_v1 = vpop.f32.mrf.mxu1 }
 0x291   : > { %v6692_v49 = vadd.f32 %v6691_v37, %v6690_v19  ;;  %v5921_v38 = vadd.f32 %v5920_v10, %v5919_v15  ;;  %v5922_v40 = vsel %vm354_vm2, %v11553_v2, 0.0  ;;  %v6697_v6 = vsel %vm354_vm2, %v6269_v28, 0.0 }
 0x292   : > { %v6274_v52 = vmul.f32 %v11567_v50, %v11567_v50  ;;  %5498 = vst.msk [vmem:[%s9431_s25 + $0x2c4] sm:$0xf] %vm5320_vm3, %v7788_v18  ;;  %v7793_v37 = vpack.c.bf16 %v4222_v20, %v4222_v20  ;;  %v7791_v12 = vpack.c.bf16 %v4220_v27, %v4220_v27  ;;  %v4223_v42 = vadd.f32 %v11120_v54, %v11636_v16 }
 0x293   : > { %v6694_v5 = vadd.f32 %v6693_v39, %v6692_v49  ;;  %v5923_v55 = vadd.f32 %v5922_v40, %v5921_v38  ;;  %v5932_v2 = vsel %vm354_vm2, %v11567_v50, 0.0  ;;  %v5928_v62 = vsel %vm354_vm2, %v11573_v31, 0.0 }
 0x294   : > { %v6272_v56 = vmul.f32 %v11573_v31, %v11573_v31  ;;  %5503 = vst.msk [vmem:[%s9431_s25 + $0x2d8] sm:$0xf] %vm5320_vm3, %v7793_v37  ;;  %v4221_v7 = vadd.f32 %v11120_v54, %v11641_v63  ;;  %v6275_v3 = vmul.f32 %v11586_v33, %v11586_v33  ;;  %5501 = vst.msk [vmem:[%s9431_s25 + $0x2d0] sm:$0xf] %vm5320_vm3, %v7791_v12  ;;  %v6707_v13 = vsel %vm354_vm2, %v6274_v52, 0.0 }
 0x295   : > { %v6696_v53 = vadd.f32 %v6695_v46, %v6694_v5  ;;  %v5925_v39 = vadd.f32 %v5924_v61, %v5923_v55  ;;  %v7794_v50 = vpack.c.bf16 %v4223_v42, %v4223_v42  ;;  %v6273_v31 = vmul.f32 %v11598_v41, %v11598_v41  ;;  %v11694_v46 = vld [vmem:[#allocation2 + $0x5c8] sm:$0xff]  ;;  %v11715_v5 = vld [vmem:[#allocation2 + $0x5e0] sm:$0xff]  ;;  %v11717_v55 = vpop.f32.mrf.mxu1 }
 0x296   : > { %v7792_v11 = vpack.c.bf16 %v4221_v7, %v4221_v7  ;;  %v4226_v26 = vadd.f32 %v11120_v54, %v11652_v44  ;;  %v5934_v51 = vsel %vm354_vm2, %v11586_v33, 0.0  ;;  %v6278_v28 = vmul.f32 %v11613_v22, %v11613_v22 }
 0x297   : > { %v5927_v24 = vadd.f32 %v5926_v43, %v5925_v39  ;;  %v6698_v61 = vadd.f32 %v6697_v6, %v6696_v53  ;;  %5504 = vst.msk [vmem:[%s9431_s25 + $0x2dc] sm:$0xf] %vm5320_vm3, %v7794_v50  ;;  %v6703_v15 = vsel %vm354_vm2, %v6272_v56, 0.0  ;;  %v5930_v19 = vsel %vm354_vm2, %v11598_v41, 0.0 }
 0x298   : > { %5502 = vst.msk [vmem:[%s9431_s25 + $0x2d4] sm:$0xf] %vm5320_vm3, %v7792_v11  ;;  %v7797_v10 = vpack.c.bf16 %v4226_v26, %v4226_v26  ;;  %v4224_v33 = vadd.f32 %v11120_v54, %v11670_v23  ;;  %v6709_v20 = vsel %vm354_vm2, %v6275_v3, 0.0  ;;  %v11699_v49 = vsel %vm354_vm2, %v11613_v22, 0.0  ;;  %v11729_v3 = vld [vmem:[#allocation2 + $0x5f8] sm:$0xff] }
 0x299   : > { %v6700_v43 = vadd.f32 %v6699_v0, %v6698_v61  ;;  %v5929_v18 = vadd.f32 %v5928_v62, %v5927_v24  ;;  %v6705_v38 = vsel %vm354_vm2, %v6273_v31, 0.0  ;;  %v6276_v41 = vmul.f32 %v11622_v29, %v11622_v29  ;;  %v11708_v0 = vld [vmem:[#allocation2 + $0x5f0] sm:$0xff] }
 0x29a   : > { %5507 = vst.msk [vmem:[%s9431_s25 + $0x2e8] sm:$0xf] %vm5320_vm3, %v7797_v10  ;;  %v7795_v27 = vpack.c.bf16 %v4224_v33, %v4224_v33  ;;  %v4227_v40 = vadd.f32 %v11120_v54, %v11683_v60  ;;  %v11711_v37 = vsel %vm354_vm2, %v6278_v28, 0.0  ;;  %v4225_v22 = vadd.f32 %v11120_v54, %v11694_v46  ;;  %v11744_v28 = vld [vmem:[#allocation2 + $0x5e8] sm:$0xff] }
 0x29b   : > { %v6702_v6 = vadd.f32 %v6701_v4, %v6700_v43  ;;  %v5931_v52 = vadd.f32 %v5930_v19, %v5929_v18  ;;  %v5936_v12 = vsel %vm354_vm2, %v11622_v29, 0.0  ;;  %v6279_v42 = vmul.f32 %v11636_v16, %v11636_v16 }
 0x29c   : > { %v6277_v4 = vmul.f32 %v11641_v63, %v11641_v63  ;;  %5505 = vst.msk [vmem:[%s9431_s25 + $0x2e0] sm:$0xf] %vm5320_vm3, %v7795_v27  ;;  %v7798_v62 = vpack.c.bf16 %v4227_v40, %v4227_v40  ;;  %v7796_v53 = vpack.c.bf16 %v4225_v22, %v4225_v22  ;;  %v4230_v39 = vadd.f32 %v11120_v54, %v11708_v0  ;;  %v803_v40 = vld [vmem:[#allocation2 + $0x600] sm:$0xff] }
 0x29d   : > { %v6704_v56 = vadd.f32 %v6703_v15, %v6702_v6  ;;  %v5933_v7 = vadd.f32 %v5932_v2, %v5931_v52  ;;  %v6711_v29 = vsel %vm354_vm2, %v6276_v41, 0.0  ;;  %v5942_v50 = vsel %vm354_vm2, %v11636_v16, 0.0  ;;  %v11746_v16 = vpop.f32.mrf.mxu1 }
 0x29e   : > { %v5938_v31 = vsel %vm354_vm2, %v11641_v63, 0.0  ;;  %5508 = vst.msk [vmem:[%s9431_s25 + $0x2ec] sm:$0xf] %vm5320_vm3, %v7798_v62  ;;  %v4228_v11 = vadd.f32 %v11120_v54, %v11715_v5  ;;  %v6282_v24 = vmul.f32 %v11652_v44, %v11652_v44  ;;  %5506 = vst.msk [vmem:[%s9431_s25 + $0x2e4] sm:$0xf] %vm5320_vm3, %v7796_v53  ;;  %v7801_v61 = vpack.c.bf16 %v4230_v39, %v4230_v39  ;;  %v809_v53 = vld [vmem:[#allocation2 + $0x630] sm:$0xff] }
 0x29f   : > { %v5935_v2 = vadd.f32 %v5934_v51, %v5933_v7  ;;  %v6706_v26 = vadd.f32 %v6705_v38, %v6704_v56  ;;  %12863 = vst [vmem:[#allocation19_spill] sm:$0xff] %v11746_v16  ;;  %v11749_v63 = vsel %vm354_vm2, %v6279_v42, 0.0  ;;  %v6280_v15 = vmul.f32 %v11670_v23, %v11670_v23  ;;  %v11762_v38 = vld [vmem:[#allocation2 + $0x610] sm:$0xff]  ;;  %v804_v42 = vld [vmem:[#allocation2 + $0x608] sm:$0xff]  ;;  %v807_v39 = vld [vmem:[#allocation2 + $0x620] sm:$0xff] }
 0x2a0   : > { %v7799_v19 = vpack.c.bf16 %v4228_v11, %v4228_v11  ;;  %v4231_v51 = vadd.f32 %v11120_v54, %v11729_v3  ;;  %v6713_v43 = vsel %vm354_vm2, %v6277_v4, 0.0  ;;  %v11758_v18 = vsel %vm354_vm2, %v11652_v44, 0.0  ;;  %5511 = vst.msk [vmem:[%s9431_s25 + $0x2f8] sm:$0xf] %vm5320_vm3, %v7801_v61  ;;  %v11784_v4 = vpop.f32.mrf.mxu1  ;;  %v808_v61 = vld [vmem:[#allocation2 + $0x628] sm:$0xff] }
 0x2a1   : > { %v6708_v10 = vadd.f32 %v6707_v13, %v6706_v26  ;;  %v5937_v33 = vadd.f32 %v5936_v12, %v5935_v2  ;;  %v5944_v41 = vsel %vm354_vm2, %v11670_v23, 0.0  ;;  %v6281_v27 = vmul.f32 %v11694_v46, %v11694_v46  ;;  %v11773_v13 = vld [vmem:[%s12761_s2] ss:$0 sm:$0xff]  ;;  %v806_v12 = vld [vmem:[#allocation2 + $0x618] sm:$0xff]  ;;  %12864 = vst [vmem:[#allocation20_spill] sm:$0xff] %v11784_v4 }
 0x2a2   : > { %5509 = vst.msk [vmem:[%s9431_s25 + $0x2f0] sm:$0xf] %vm5320_vm3, %v7799_v19  ;;  %v7802_v54 = vpack.c.bf16 %v4231_v51, %v4231_v51  ;;  %v4229_v44 = vadd.f32 %v11773_v13, %v11744_v28  ;;  %v11778_v23 = vsel %vm354_vm2, %v6282_v24, 0.0  ;;  %v11782_v22 = vsel %vm354_vm2, %v11683_v60, 0.0  ;;  %v818_v4 = vld [vmem:[#allocation2 + $0x678] sm:$0xff]  ;;  %v11811_v16 = vpop.f32.mrf.mxu1 }
 0x2a3   : > { %v6710_v6 = vadd.f32 %v6709_v20, %v6708_v10  ;;  %v5939_v52 = vadd.f32 %v5938_v31, %v5937_v33  ;;  %v11787_v62 = vsel %vm354_vm2, %v6280_v15, 0.0  ;;  %v11791_v56 = vmul.f32 %v11683_v60, %v11683_v60  ;;  %v810_v31 = vld [vmem:[#allocation2 + $0x638] sm:$0xff]  ;;  %v813_v60 = vld [vmem:[#allocation2 + $0x650] sm:$0xff]  ;;  %v811_v15 = vld [vmem:[#allocation2 + $0x640] sm:$0xff] }
 0x2a4   : > { %5512 = vst.msk [vmem:[%s9431_s25 + $0x2fc] sm:$0xf] %vm5320_vm3, %v7802_v54  ;;  %v7800_v20 = vpack.c.bf16 %v4229_v44, %v4229_v44  ;;  %v4234_v7 = vadd.f32 %v11773_v13, %v11762_v38  ;;  %v5946_v26 = vsel %vm354_vm2, %v11694_v46, 0.0  ;;  %v3453_v24 = vadd.f32 %v10870_v25, %v803_v40  ;;  %v812_v33 = vld [vmem:[#allocation2 + $0x648] sm:$0xff]  ;;  %v817_v54 = vld [vmem:[#allocation2 + $0x670] sm:$0xff] }
 0x2a5   : > { %v6712_v11 = vadd.f32 %v6711_v29, %v6710_v6  ;;  %v5941_v2 = vadd.f32 %v11699_v49, %v5939_v52  ;;  %v11802_v19 = vsel %vm354_vm2, %v6281_v27, 0.0  ;;  %v3456_v10 = vadd.f32 %v10879_v58, %v806_v12  ;;  %v814_v49 = vld [vmem:[#allocation2 + $0x658] sm:$0xff]  ;;  %v12865_v25 = vld [vmem:[#allocation46_spill] sm:$0xff]  ;;  %v12866_v6 = vld [vmem:[#allocation47_spill] sm:$0xff] }
 0x2a6   : > { %5510 = vst.msk [vmem:[%s9431_s25 + $0x2f4] sm:$0xf] %vm5320_vm3, %v7800_v20  ;;  %v7805_v51 = vpack.c.bf16 %v4234_v7, %v4234_v7  ;;  %v3454_v29 = vadd.f32 %v10888_v34, %v804_v42  ;;  %v3459_v40 = vadd.f32 %v12865_v25, %v809_v53  ;;  %v3457_v27 = vadd.f32 %v12866_v6, %v807_v39  ;;  %v815_v52 = vld [vmem:[#allocation2 + $0x660] sm:$0xff]  ;;  %v816_v20 = vld [vmem:[#allocation2 + $0x668] sm:$0xff]  ;;  %v12867_v58 = vld [vmem:[#allocation48_spill] sm:$0xff] }
 0x2a7   : > { %v5943_v46 = vadd.f32 %v5942_v50, %v5941_v2  ;;  %v6714_v44 = vadd.f32 %v6713_v43, %v6712_v11  ;;  %3710 = vst.msk [vmem:[#allocation2 + $0x600] sm:$0xff] %vm354_vm2, %v3453_v24  ;;  %3713 = vst.msk [vmem:[#allocation2 + $0x618] sm:$0xff] %vm354_vm2, %v3456_v10  ;;  %v3460_v34 = vadd.f32 %v12867_v58, %v810_v31  ;;  %v12868_v50 = vld [vmem:[#allocation49_spill] sm:$0xff]  ;;  %v12869_v12 = vld [vmem:[#allocation50_spill] sm:$0xff] }
 0x2a8   : > { %5515 = vst.msk [vmem:[%s9431_s25 + $0x308] sm:$0xf] %vm5320_vm3, %v7805_v51  ;;  %v3458_v43 = vadd.f32 %v12868_v50, %v808_v61  ;;  %v3463_v42 = vadd.f32 %v12869_v12, %v813_v60  ;;  %v12870_v7 = vld [vmem:[#allocation51_spill] sm:$0xff]  ;;  %v819_v11 = vld [vmem:[#allocation2 + $0x680] sm:$0xff]  ;;  %v822_v2 = vld [vmem:[#allocation2 + $0x698] sm:$0xff]  ;;  %v3462_v31 = vadd.f32 %v10997_v36, %v812_v33  ;;  %v3468_v60 = vadd.f32 %v11062_v17, %v818_v4  ;;  %v11839_v17 = vpop.f32.mrf.mxu1 }
 0x2a9   : > { %3711 = vst.msk [vmem:[#allocation2 + $0x608] sm:$0xff] %vm354_vm2, %v3454_v29  ;;  %v3461_v53 = vadd.f32 %v12870_v7, %v811_v15  ;;  %v821_v39 = vld [vmem:[#allocation2 + $0x690] sm:$0xff]  ;;  %v6716_v24 = vadd.f32 %v11711_v37, %v6714_v44  ;;  %v5945_v25 = vadd.f32 %v5944_v41, %v5943_v46  ;;  %3716 = vst.msk [vmem:[#allocation2 + $0x630] sm:$0xff] %vm354_vm2, %v3459_v40  ;;  %v12871_v51 = vld [vmem:[#allocation52_spill] sm:$0xff] }
 0x2aa   : > { %3714 = vst.msk [vmem:[#allocation2 + $0x620] sm:$0xff] %vm354_vm2, %v3457_v27  ;;  %v3464_v10 = vadd.f32 %v12871_v51, %v814_v49  ;;  %v820_v29 = vld [vmem:[#allocation2 + $0x688] sm:$0xff]  ;;  %v825_v61 = vld [vmem:[#allocation2 + $0x6b0] sm:$0xff]  ;;  %v823_v6 = vld [vmem:[#allocation2 + $0x6a0] sm:$0xff]  ;;  %v3467_v37 = vadd.f32 %v11013_v45, %v817_v54  ;;  %v3465_v41 = vadd.f32 %v11029_v9, %v815_v52  ;;  %v3466_v15 = vadd.f32 %v11092_v48, %v816_v20 }
 0x2ab   : > { %3717 = vst.msk [vmem:[#allocation2 + $0x638] sm:$0xff] %vm354_vm2, %v3460_v34  ;;  %3715 = vst.msk [vmem:[#allocation2 + $0x628] sm:$0xff] %vm354_vm2, %v3458_v43  ;;  %v826_v36 = vld [vmem:[#allocation2 + $0x6b8] sm:$0xff]  ;;  %v824_v49 = vld [vmem:[#allocation2 + $0x6a8] sm:$0xff]  ;;  %v6718_v46 = vadd.f32 %v11749_v63, %v6716_v24  ;;  %v5947_v44 = vadd.f32 %v5946_v26, %v5945_v25 }
 0x2ac   : > { %3720 = vst.msk [vmem:[#allocation2 + $0x650] sm:$0xff] %vm354_vm2, %v3463_v42  ;;  %3718 = vst.msk [vmem:[#allocation2 + $0x640] sm:$0xff] %vm354_vm2, %v3461_v53  ;;  %v829_v33 = vld [vmem:[#allocation2 + $0x6d0] sm:$0xff]  ;;  %v12872_v40 = vld [vmem:[#allocation9_spill] sm:$0xff] }
 0x2ad   : > { %3721 = vst.msk [vmem:[#allocation2 + $0x658] sm:$0xff] %vm354_vm2, %v3464_v10  ;;  %3719 = vst.msk [vmem:[#allocation2 + $0x648] sm:$0xff] %vm354_vm2, %v3462_v31  ;;  %v3471_v27 = vadd.f32 %v12872_v40, %v821_v39  ;;  %v12873_v58 = vld [vmem:[#allocation10_spill] sm:$0xff]  ;;  %v827_v54 = vld [vmem:[#allocation2 + $0x6c0] sm:$0xff]  ;;  %v6720_v12 = vadd.f32 %v11787_v62, %v6718_v46  ;;  %v5949_v42 = vadd.f32 %v11758_v18, %v5947_v44  ;;  %v6725_v31 = vsel %vm354_vm2, %v11791_v56, 0.0 }
 0x2ae   : > { %v3469_v45 = vadd.f32 %v12873_v58, %v819_v11  ;;  %v830_v9 = vld [vmem:[#allocation2 + $0x6d8] sm:$0xff]  ;;  %v828_v52 = vld [vmem:[#allocation2 + $0x6c8] sm:$0xff]  ;;  %3724 = vst.msk [vmem:[#allocation2 + $0x670] sm:$0xff] %vm354_vm2, %v3467_v37  ;;  %3722 = vst.msk [vmem:[#allocation2 + $0x660] sm:$0xff] %vm354_vm2, %v3465_v41  ;;  %v6284_v56 = vmul.f32 %v11715_v5, %v11715_v5  ;;  %v6287_v46 = vmul.f32 %v11729_v3, %v11729_v3  ;;  %v5954_v44 = vsel %vm354_vm2, %v11744_v28, 0.0 }
 0x2af   : > { %3725 = vst.msk [vmem:[#allocation2 + $0x678] sm:$0xff] %vm354_vm2, %v3468_v60  ;;  %3723 = vst.msk [vmem:[#allocation2 + $0x668] sm:$0xff] %vm354_vm2, %v3466_v15  ;;  %v12874_v48 = vld [vmem:[#allocation11_spill] sm:$0xff]  ;;  %v12875_v4 = vld [vmem:[#allocation12_spill] sm:$0xff]  ;;  %v3480_v51 = vadd.f32 %v11426_v32, %v830_v9  ;;  %v3478_v10 = vadd.f32 %v11456_v47, %v828_v52  ;;  %v11875_v32 = vpop.f32.mrf.mxu1  ;;  %v6286_v47 = vmul.f32 %v11708_v0, %v11708_v0  ;;  %v5956_v9 = vsel %vm354_vm2, %v11708_v0, 0.0 }
 0x2b0   : > { %v3472_v63 = vadd.f32 %v12874_v48, %v822_v2  ;;  %v3470_v26 = vadd.f32 %v12875_v4, %v820_v29  ;;  %v12876_v20 = vld [vmem:[#allocation13_spill] sm:$0xff]  ;;  %v12877_v50 = vld [vmem:[#allocation14_spill] sm:$0xff]  ;;  %3728 = vst.msk [vmem:[#allocation2 + $0x690] sm:$0xff] %vm354_vm2, %v3471_v27  ;;  %3726 = vst.msk [vmem:[#allocation2 + $0x680] sm:$0xff] %vm354_vm2, %v3469_v45  ;;  %v5951_v29 = vadd.f32 %v11782_v22, %v5949_v42  ;;  %v5952_v22 = vsel %vm354_vm2, %v11715_v5, 0.0 }
 0x2b1   : > { %v3475_v34 = vadd.f32 %v12876_v20, %v825_v61  ;;  %v3473_v43 = vadd.f32 %v12877_v50, %v823_v6  ;;  %v12878_v7 = vld [vmem:[#allocation15_spill] sm:$0xff]  ;;  %v12879_v39 = vld [vmem:[#allocation16_spill] sm:$0xff]  ;;  %v11855_v24 = vld [vmem:[#allocation2 + $0x600] sm:$0xff]  ;;  %v6722_v61 = vadd.f32 %v11802_v19, %v6720_v12  ;;  %3737 = vst.msk [vmem:[#allocation2 + $0x6d8] sm:$0xff] %vm354_vm2, %v3480_v51  ;;  %v6285_v40 = vmul.f32 %v11744_v28, %v11744_v28 }
 0x2b2   : > { %v3476_v53 = vadd.f32 %v12878_v7, %v826_v36  ;;  %v3474_v11 = vadd.f32 %v12879_v39, %v824_v49  ;;  %3729 = vst.msk [vmem:[#allocation2 + $0x698] sm:$0xff] %vm354_vm2, %v3472_v63  ;;  %3727 = vst.msk [vmem:[#allocation2 + $0x688] sm:$0xff] %vm354_vm2, %v3470_v26  ;;  %v12880_v62 = vld [vmem:[#allocation17_spill] sm:$0xff]  ;;  %v12881_v2 = vld [vmem:[#allocation18_spill] sm:$0xff]  ;;  %v4232_v6 = vadd.f32 %v11773_v13, %v11855_v24  ;;  %v6727_v52 = vsel %vm354_vm2, %v6284_v56, 0.0 }
 0x2b3   : > { %3732 = vst.msk [vmem:[#allocation2 + $0x6b0] sm:$0xff] %vm354_vm2, %v3475_v34  ;;  %3730 = vst.msk [vmem:[#allocation2 + $0x6a0] sm:$0xff] %vm354_vm2, %v3473_v43  ;;  %v3479_v18 = vadd.f32 %v12880_v62, %v829_v33  ;;  %v3477_v25 = vadd.f32 %v12881_v2, %v827_v54  ;;  %v11871_v37 = vld [vmem:[#allocation2 + $0x618] sm:$0xff]  ;;  %v3970_v41 = vld [vmem:[#allocation2 + $0x608] sm:$0xff]  ;;  %v6724_v60 = vadd.f32 %v11778_v23, %v6722_v61  ;;  %v11903_v54 = vpop.f32.mrf.mxu1  ;;  %v6731_v4 = vsel %vm354_vm2, %v6286_v47, 0.0 }
 0x2b4   : > { %3733 = vst.msk [vmem:[#allocation2 + $0x6b8] sm:$0xff] %vm354_vm2, %v3476_v53  ;;  %3731 = vst.msk [vmem:[#allocation2 + $0x6a8] sm:$0xff] %vm354_vm2, %v3474_v11  ;;  %v4235_v19 = vadd.f32 %v11773_v13, %v11871_v37  ;;  %v5953_v15 = vadd.f32 %v5952_v22, %v5951_v29  ;;  %v7803_v36 = vpack.c.bf16 %v4232_v6, %v4232_v6  ;;  %v11891_v5 = vld [vmem:[#allocation2 + $0x630] sm:$0xff]  ;;  %v11893_v33 = vld [vmem:[#allocation2 + $0x620] sm:$0xff]  ;;  %v5958_v20 = vsel %vm354_vm2, %v11729_v3, 0.0 }
 0x2b5   : > { %3736 = vst.msk [vmem:[#allocation2 + $0x6d0] sm:$0xff] %vm354_vm2, %v3479_v18  ;;  %3734 = vst.msk [vmem:[#allocation2 + $0x6c0] sm:$0xff] %vm354_vm2, %v3477_v25  ;;  %v4233_v49 = vadd.f32 %v11773_v13, %v3970_v41  ;;  %v6726_v23 = vadd.f32 %v6725_v31, %v6724_v60  ;;  %v4238_v48 = vadd.f32 %v11773_v13, %v11891_v5  ;;  %v11914_v63 = vld [vmem:[#allocation2 + $0x638] sm:$0xff]  ;;  %v11921_v0 = vld [vmem:[#allocation2 + $0x628] sm:$0xff]  ;;  %v6733_v50 = vsel %vm354_vm2, %v6287_v46, 0.0  ;;  %v11931_v62 = vpop.f32.mrf.mxu1 }
 0x2b6   : > { %3735 = vst.msk [vmem:[#allocation2 + $0x6c8] sm:$0xff] %vm354_vm2, %v3478_v10  ;;  %v7806_v27 = vpack.c.bf16 %v4235_v19, %v4235_v19  ;;  %v5955_v58 = vadd.f32 %v5954_v44, %v5953_v15  ;;  %v4236_v28 = vadd.f32 %v11773_v13, %v11893_v33  ;;  %v6729_v43 = vsel %vm354_vm2, %v6285_v40, 0.0  ;;  %v11929_v11 = vld [vmem:[#allocation2 + $0x650] sm:$0xff]  ;;  %v11947_v61 = vld [vmem:[#allocation2 + $0x640] sm:$0xff]  ;;  %v11952_v56 = vld [vmem:[#allocation2 + $0x658] sm:$0xff] }
 0x2b7   : > { %5513 = vst.msk [vmem:[%s9431_s25 + $0x300] sm:$0xf] %vm5320_vm3, %v7803_v36  ;;  %v7804_v45 = vpack.c.bf16 %v4233_v49, %v4233_v49  ;;  %v6728_v26 = vadd.f32 %v6727_v52, %v6726_v23  ;;  %v7809_v12 = vpack.c.bf16 %v4238_v48, %v4238_v48  ;;  %v6290_v39 = vmul.f32 %v11762_v38, %v11762_v38  ;;  %v11959_v49 = vpop.f32.mrf.mxu1 }
 0x2b8   : > { %5516 = vst.msk [vmem:[%s9431_s25 + $0x30c] sm:$0xf] %vm5320_vm3, %v7806_v27  ;;  %v5957_v34 = vadd.f32 %v5956_v9, %v5955_v58  ;;  %v7807_v42 = vpack.c.bf16 %v4236_v28, %v4236_v28  ;;  %v4239_v3 = vadd.f32 %v11773_v13, %v11914_v63  ;;  %v5964_v18 = vsel %vm354_vm2, %v11762_v38, 0.0  ;;  %v11968_v27 = vld [vmem:[#allocation2 + $0x648] sm:$0xff]  ;;  %v11973_v9 = vld [vmem:[#allocation2 + $0x670] sm:$0xff] }
 0x2b9   : > { %5514 = vst.msk [vmem:[%s9431_s25 + $0x304] sm:$0xf] %vm5320_vm3, %v7804_v45  ;;  %v6730_v53 = vadd.f32 %v6729_v43, %v6728_v26  ;;  %v5960_v2 = vsel %vm354_vm2, %v11855_v24, 0.0  ;;  %v6288_v25 = vmul.f32 %v11855_v24, %v11855_v24  ;;  %5519 = vst.msk [vmem:[%s9431_s25 + $0x318] sm:$0xf] %vm5320_vm3, %v7809_v12  ;;  %v4237_v51 = vadd.f32 %v11773_v13, %v11921_v0  ;;  %v11984_v43 = vld [vmem:[#allocation2 + $0x660] sm:$0xff]  ;;  %v11986_v12 = vpop.f32.mrf.mxu1 }
 0x2ba   : > { %v5959_v7 = vadd.f32 %v5958_v20, %v5957_v34  ;;  %5517 = vst.msk [vmem:[%s9431_s25 + $0x310] sm:$0xf] %vm5320_vm3, %v7807_v42  ;;  %v6291_v29 = vmul.f32 %v11871_v37, %v11871_v37  ;;  %v7810_v38 = vpack.c.bf16 %v4239_v3, %v4239_v3  ;;  %v5962_v6 = vsel %vm354_vm2, %v3970_v41, 0.0 }
 0x2bb   : > { %v6732_v10 = vadd.f32 %v6731_v4, %v6730_v53  ;;  %v6289_v24 = vmul.f32 %v3970_v41, %v3970_v41  ;;  %v7808_v47 = vpack.c.bf16 %v4237_v51, %v4237_v51  ;;  %v4242_v22 = vadd.f32 %v11773_v13, %v11929_v11 }
 0x2bc   : > { %v5961_v31 = vadd.f32 %v5960_v2, %v5959_v7  ;;  %v6739_v60 = vsel %vm354_vm2, %v6290_v39, 0.0  ;;  %v5966_v15 = vsel %vm354_vm2, %v11871_v37, 0.0  ;;  %5520 = vst.msk [vmem:[%s9431_s25 + $0x31c] sm:$0xf] %vm5320_vm3, %v7810_v38  ;;  %v6735_v41 = vsel %vm354_vm2, %v6288_v25, 0.0  ;;  %v12001_v25 = vld [vmem:[#allocation2 + $0x678] sm:$0xff] }
 0x2bd   : > { %v6734_v19 = vadd.f32 %v6733_v50, %v6732_v10  ;;  %v6294_v46 = vmul.f32 %v11891_v5, %v11891_v5  ;;  %5518 = vst.msk [vmem:[%s9431_s25 + $0x314] sm:$0xf] %vm5320_vm3, %v7808_v47  ;;  %v7813_v44 = vpack.c.bf16 %v4242_v22, %v4242_v22  ;;  %v4240_v40 = vadd.f32 %v11773_v13, %v11947_v61  ;;  %v12014_v47 = vld [vmem:[#allocation2 + $0x668] sm:$0xff] }
 0x2be   : > { %v5963_v36 = vadd.f32 %v5962_v6, %v5961_v31  ;;  %v6741_v23 = vsel %vm354_vm2, %v6291_v29, 0.0  ;;  %v4243_v45 = vadd.f32 %v11773_v13, %v11952_v56  ;;  %v6737_v52 = vsel %vm354_vm2, %v6289_v24, 0.0 }
 0x2bf   : > { %v6736_v37 = vadd.f32 %v6735_v41, %v6734_v19  ;;  %v5972_v48 = vsel %vm354_vm2, %v11891_v5, 0.0  ;;  %v6292_v28 = vmul.f32 %v11893_v33, %v11893_v33  ;;  %5523 = vst.msk [vmem:[%s9431_s25 + $0x328] sm:$0xf] %vm5320_vm3, %v7813_v44  ;;  %v7811_v4 = vpack.c.bf16 %v4240_v40, %v4240_v40 }
 0x2c0   : > { %v5965_v58 = vadd.f32 %v5964_v18, %v5963_v36  ;;  %v7814_v34 = vpack.c.bf16 %v4243_v45, %v4243_v45  ;;  %v4241_v50 = vadd.f32 %v11773_v13, %v11968_v27  ;;  %v6747_v42 = vsel %vm354_vm2, %v6294_v46, 0.0  ;;  %v12038_v45 = vld [vmem:[#allocation2 + $0x680] sm:$0xff] }
 0x2c1   : > { %v6738_v20 = vadd.f32 %v6737_v52, %v6736_v37  ;;  %v5968_v5 = vsel %vm354_vm2, %v11893_v33, 0.0  ;;  %v6295_v7 = vmul.f32 %v11914_v63, %v11914_v63  ;;  %5521 = vst.msk [vmem:[%s9431_s25 + $0x320] sm:$0xf] %vm5320_vm3, %v7811_v4  ;;  %v4246_v53 = vadd.f32 %v11773_v13, %v11973_v9 }
 0x2c2   : > { %v5967_v26 = vadd.f32 %v5966_v15, %v5965_v58  ;;  %v6293_v18 = vmul.f32 %v11921_v0, %v11921_v0  ;;  %5524 = vst.msk [vmem:[%s9431_s25 + $0x32c] sm:$0xf] %vm5320_vm3, %v7814_v34  ;;  %v7812_v2 = vpack.c.bf16 %v4241_v50, %v4241_v50  ;;  %v5974_v33 = vsel %vm354_vm2, %v11914_v63, 0.0  ;;  %v12016_v63 = vpop.f32.mrf.mxu1  ;;  %v12025_v15 = vld [vmem:[#allocation2 + $0x690] sm:$0xff] }
 0x2c3   : > { %v6740_v39 = vadd.f32 %v6739_v60, %v6738_v20  ;;  %v5970_v51 = vsel %vm354_vm2, %v11921_v0, 0.0  ;;  %v7817_v10 = vpack.c.bf16 %v4246_v53, %v4246_v53  ;;  %v4244_v31 = vadd.f32 %v11773_v13, %v11984_v43 }
 0x2c4   : > { %v5969_v3 = vadd.f32 %v5968_v5, %v5967_v26  ;;  %v6743_v38 = vsel %vm354_vm2, %v6292_v28, 0.0  ;;  %v6298_v24 = vmul.f32 %v11929_v11, %v11929_v11  ;;  %5522 = vst.msk [vmem:[%s9431_s25 + $0x324] sm:$0xf] %vm5320_vm3, %v7812_v2  ;;  %v6749_v0 = vsel %vm354_vm2, %v6295_v7, 0.0  ;;  %v12045_v4 = vpop.f32.mrf.mxu1 }
 0x2c5   : > { %v6742_v29 = vadd.f32 %v6741_v23, %v6740_v39  ;;  %v6296_v22 = vmul.f32 %v11947_v61, %v11947_v61  ;;  %5527 = vst.msk [vmem:[%s9431_s25 + $0x338] sm:$0xf] %vm5320_vm3, %v7817_v10  ;;  %v7815_v19 = vpack.c.bf16 %v4244_v31, %v4244_v31  ;;  %v4247_v60 = vadd.f32 %v11773_v13, %v12001_v25 }
 0x2c6   : > { %v5971_v6 = vadd.f32 %v5970_v51, %v5969_v3  ;;  %v6745_v46 = vsel %vm354_vm2, %v6293_v18, 0.0  ;;  %v5980_v44 = vsel %vm354_vm2, %v11929_v11, 0.0  ;;  %v5976_v40 = vsel %vm354_vm2, %v11947_v61, 0.0  ;;  %v12043_v61 = vld [vmem:[#allocation2 + $0x698] sm:$0xff]  ;;  %v12056_v3 = vld [vmem:[#allocation2 + $0x688] sm:$0xff] }
 0x2c7   : > { %v6744_v36 = vadd.f32 %v6743_v38, %v6742_v29  ;;  %v6299_v37 = vmul.f32 %v11952_v56, %v11952_v56  ;;  %5525 = vst.msk [vmem:[%s9431_s25 + $0x330] sm:$0xf] %vm5320_vm3, %v7815_v19  ;;  %v7818_v23 = vpack.c.bf16 %v4247_v60, %v4247_v60  ;;  %v4245_v58 = vadd.f32 %v11773_v13, %v12014_v47  ;;  %v12071_v29 = vld [vmem:[#allocation2 + $0x6b0] sm:$0xff] }
 0x2c8   : > { %v5973_v41 = vadd.f32 %v5972_v48, %v5971_v6  ;;  %v6755_v48 = vsel %vm354_vm2, %v6298_v24, 0.0  ;;  %v4250_v11 = vadd.f32 %v11773_v13, %v12025_v15  ;;  %v6751_v26 = vsel %vm354_vm2, %v6296_v22, 0.0 }
 0x2c9   : > { %v6746_v52 = vadd.f32 %v6745_v46, %v6744_v36  ;;  %v5982_v20 = vsel %vm354_vm2, %v11952_v56, 0.0  ;;  %v6297_v34 = vmul.f32 %v11968_v27, %v11968_v27  ;;  %5528 = vst.msk [vmem:[%s9431_s25 + $0x33c] sm:$0xf] %vm5320_vm3, %v7818_v23  ;;  %v7816_v50 = vpack.c.bf16 %v4245_v58, %v4245_v58 }
 0x2ca   : > { %v5975_v28 = vadd.f32 %v5974_v33, %v5973_v41  ;;  %v7821_v53 = vpack.c.bf16 %v4250_v11, %v4250_v11  ;;  %v4248_v39 = vadd.f32 %v11773_v13, %v12038_v45  ;;  %v6757_v18 = vsel %vm354_vm2, %v6299_v37, 0.0  ;;  %v12086_v41 = vld [vmem:[#allocation2 + $0x6a0] sm:$0xff] }
 0x2cb   : > { %v6748_v5 = vadd.f32 %v6747_v42, %v6746_v52  ;;  %v5978_v56 = vsel %vm354_vm2, %v11968_v27, 0.0  ;;  %v6302_v2 = vmul.f32 %v11973_v9, %v11973_v9  ;;  %5526 = vst.msk [vmem:[%s9431_s25 + $0x334] sm:$0xf] %vm5320_vm3, %v7816_v50  ;;  %v4251_v42 = vadd.f32 %v11773_v13, %v12043_v61  ;;  %v12073_v27 = vpop.f32.mrf.mxu1  ;;  %v12110_v50 = vld [vmem:[#allocation2 + $0x6a8] sm:$0xff] }
 0x2cc   : > { %v5977_v7 = vadd.f32 %v5976_v40, %v5975_v28  ;;  %v6300_v10 = vmul.f32 %v11984_v43, %v11984_v43  ;;  %5531 = vst.msk [vmem:[%s9431_s25 + $0x348] sm:$0xf] %vm5320_vm3, %v7821_v53  ;;  %v7819_v31 = vpack.c.bf16 %v4248_v39, %v4248_v39  ;;  %v6753_v38 = vsel %vm354_vm2, %v6297_v34, 0.0 }
 0x2cd   : > { %v6750_v33 = vadd.f32 %v6749_v0, %v6748_v5  ;;  %v5988_v6 = vsel %vm354_vm2, %v11973_v9, 0.0  ;;  %v7822_v24 = vpack.c.bf16 %v4251_v42, %v4251_v42  ;;  %v4249_v0 = vadd.f32 %v11773_v13, %v12056_v3  ;;  %v12100_v28 = vpop.f32.mrf.mxu1 }
 0x2ce   : > { %v5979_v51 = vadd.f32 %v5978_v56, %v5977_v7  ;;  %v5984_v60 = vsel %vm354_vm2, %v11984_v43, 0.0  ;;  %v6303_v36 = vmul.f32 %v12001_v25, %v12001_v25  ;;  %5529 = vst.msk [vmem:[%s9431_s25 + $0x340] sm:$0xf] %vm5320_vm3, %v7819_v31  ;;  %v6763_v46 = vsel %vm354_vm2, %v6302_v2, 0.0  ;;  %v12095_v43 = vld [vmem:[#allocation2 + $0x6b8] sm:$0xff]  ;;  %v12128_v31 = vld [vmem:[#allocation2 + $0x6c0] sm:$0xff] }
 0x2cf   : > { %v6752_v22 = vadd.f32 %v6751_v26, %v6750_v33  ;;  %v6301_v9 = vmul.f32 %v12014_v47, %v12014_v47  ;;  %5532 = vst.msk [vmem:[%s9431_s25 + $0x34c] sm:$0xf] %vm5320_vm3, %v7822_v24  ;;  %v7820_v40 = vpack.c.bf16 %v4249_v0, %v4249_v0  ;;  %v6759_v58 = vsel %vm354_vm2, %v6300_v10, 0.0 }
 0x2d0   : > { %v5981_v19 = vadd.f32 %v5980_v44, %v5979_v51  ;;  %v4254_v44 = vadd.f32 %v11773_v13, %v12071_v29  ;;  %v5990_v52 = vsel %vm354_vm2, %v12001_v25, 0.0  ;;  %v5986_v11 = vsel %vm354_vm2, %v12014_v47, 0.0  ;;  %v12115_v47 = vld [vmem:[#allocation2 + $0x6d0] sm:$0xff] }
 0x2d1   : > { %v6754_v37 = vadd.f32 %v6753_v38, %v6752_v22  ;;  %v6306_v26 = vmul.f32 %v12025_v15, %v12025_v15  ;;  %5530 = vst.msk [vmem:[%s9431_s25 + $0x344] sm:$0xf] %vm5320_vm3, %v7820_v40  ;;  %v6765_v25 = vsel %vm354_vm2, %v6303_v36, 0.0  ;;  %v4255_v53 = vadd.f32 %v11773_v13, %v12095_v43  ;;  %v12130_v38 = vpop.f32.mrf.mxu1 }
 0x2d2   : > { %v5983_v23 = vadd.f32 %v5982_v20, %v5981_v19  ;;  %v7825_v34 = vpack.c.bf16 %v4254_v44, %v4254_v44  ;;  %v4252_v20 = vadd.f32 %v11773_v13, %v12086_v41  ;;  %v6761_v39 = vsel %vm354_vm2, %v6301_v9, 0.0  ;;  %v12147_v9 = vld [vmem:[#allocation2 + $0x6d8] sm:$0xff] }
 0x2d3   : > { %v6756_v5 = vadd.f32 %v6755_v48, %v6754_v37  ;;  %v12120_v56 = vsel %vm354_vm2, %v12025_v15, 0.0  ;;  %v6304_v2 = vmul.f32 %v12038_v45, %v12038_v45  ;;  %v7826_v51 = vpack.c.bf16 %v4255_v53, %v4255_v53  ;;  %12882 = vst [vmem:[#allocation21_spill] sm:$0xff] %v12147_v9 }
 0x2d4   : > { %v5985_v7 = vadd.f32 %v5984_v60, %v5983_v23  ;;  %5535 = vst.msk [vmem:[%s9431_s25 + $0x358] sm:$0xf] %vm5320_vm3, %v7825_v34  ;;  %v7823_v48 = vpack.c.bf16 %v4252_v20, %v4252_v20  ;;  %v4253_v10 = vadd.f32 %v11773_v13, %v12110_v50  ;;  %v12133_v15 = vsel %vm354_vm2, %v6306_v26, 0.0  ;;  %v12162_v26 = vld [vmem:[#allocation2 + $0x6c8] sm:$0xff] }
 0x2d5   : > { %v6758_v42 = vadd.f32 %v6757_v18, %v6756_v5  ;;  %v5992_v24 = vsel %vm354_vm2, %v12038_v45, 0.0  ;;  %v6307_v0 = vmul.f32 %v12043_v61, %v12043_v61  ;;  %v4258_v18 = vadd.f32 %v11773_v13, %v12115_v47  ;;  %5536 = vst.msk [vmem:[%s9431_s25 + $0x35c] sm:$0xf] %vm5320_vm3, %v7826_v51  ;;  %v833_v5 = vld [vmem:[#allocation2 + $0x6f0] sm:$0xff] }
 0x2d6   : > { %v5987_v33 = vadd.f32 %v5986_v11, %v5985_v7  ;;  %5533 = vst.msk [vmem:[%s9431_s25 + $0x350] sm:$0xf] %vm5320_vm3, %v7823_v48  ;;  %v6305_v60 = vmul.f32 %v12056_v3, %v12056_v3  ;;  %v7824_v36 = vpack.c.bf16 %v4253_v10, %v4253_v10  ;;  %v12151_v45 = vsel %vm354_vm2, %v12043_v61, 0.0  ;;  %v12164_v61 = vpop.f32.mrf.mxu1  ;;  %v831_v48 = vld [vmem:[#allocation2 + $0x6e0] sm:$0xff] }
 0x2d7   : > { %v6760_v22 = vadd.f32 %v6759_v58, %v6758_v42  ;;  %v6308_v40 = vmul.f32 %v12086_v41, %v12086_v41  ;;  %v7829_v44 = vpack.c.bf16 %v4258_v18, %v4258_v18  ;;  %v6767_v58 = vsel %vm354_vm2, %v6304_v2, 0.0  ;;  %v834_v42 = vld [vmem:[#allocation2 + $0x6f8] sm:$0xff] }
 0x2d8   : > { %v5989_v19 = vadd.f32 %v5988_v6, %v5987_v33  ;;  %v4256_v6 = vadd.f32 %v11773_v13, %v12128_v31  ;;  %v5994_v11 = vsel %vm354_vm2, %v12056_v3, 0.0  ;;  %5534 = vst.msk [vmem:[%s9431_s25 + $0x354] sm:$0xf] %vm5320_vm3, %v7824_v36  ;;  %v12167_v34 = vsel %vm354_vm2, %v6307_v0, 0.0  ;;  %v837_v0 = vld [vmem:[#allocation2 + $0x710] sm:$0xff]  ;;  %v836_v36 = vld [vmem:[#allocation2 + $0x708] sm:$0xff] }
 0x2d9   : > { %v6762_v37 = vadd.f32 %v6761_v39, %v6760_v22  ;;  %v12171_v20 = vsel %vm354_vm2, %v12071_v29, 0.0  ;;  %5539 = vst.msk [vmem:[%s9431_s25 + $0x368] sm:$0xf] %vm5320_vm3, %v7829_v44  ;;  %v4259_v3 = vadd.f32 %v11773_v13, %v12147_v9  ;;  %v6769_v39 = vsel %vm354_vm2, %v6305_v60, 0.0  ;;  %v838_v60 = vld [vmem:[#allocation2 + $0x718] sm:$0xff]  ;;  %v12198_v44 = vpop.f32.mrf.mxu1  ;;  %v843_v9 = vld [vmem:[#allocation2 + $0x740] sm:$0xff] }
 0x2da   : > { %v5991_v23 = vadd.f32 %v5990_v52, %v5989_v19  ;;  %v7827_v52 = vpack.c.bf16 %v4256_v6, %v4256_v6  ;;  %v12180_v2 = vmul.f32 %v12071_v29, %v12071_v29  ;;  %v12184_v33 = vsel %vm354_vm2, %v12086_v41, 0.0  ;;  %v835_v29 = vld [vmem:[#allocation2 + $0x700] sm:$0xff] }
 0x2db   : > { %v6764_v7 = vadd.f32 %v6763_v46, %v6762_v37  ;;  %v12187_v51 = vsel %vm354_vm2, %v6308_v40, 0.0  ;;  %v7830_v46 = vpack.c.bf16 %v4259_v3, %v4259_v3  ;;  %v4257_v10 = vadd.f32 %v11773_v13, %v12162_v26  ;;  %v841_v40 = vld [vmem:[#allocation2 + $0x730] sm:$0xff] }
 0x2dc   : > { %v5993_v53 = vadd.f32 %v5992_v24, %v5991_v23  ;;  %5537 = vst.msk [vmem:[%s9431_s25 + $0x360] sm:$0xf] %vm5320_vm3, %v7827_v52  ;;  %v832_v24 = vld [vmem:[#allocation2 + $0x6e8] sm:$0xff]  ;;  %v12195_v19 = vsel %vm354_vm2, %v12110_v50, 0.0  ;;  %v3483_v41 = vadd.f32 %v11495_v30, %v833_v5  ;;  %v12202_v6 = vmul.f32 %v12110_v50, %v12110_v50  ;;  %v842_v52 = vld [vmem:[#allocation2 + $0x738] sm:$0xff] }
 0x2dd   : > { %v6766_v18 = vadd.f32 %v6765_v25, %v6764_v7  ;;  %5540 = vst.msk [vmem:[%s9431_s25 + $0x36c] sm:$0xf] %vm5320_vm3, %v7830_v46  ;;  %v7828_v25 = vpack.c.bf16 %v4257_v10, %v4257_v10  ;;  %v3481_v37 = vadd.f32 %v11523_v35, %v831_v48  ;;  %v3484_v23 = vadd.f32 %v11545_v59, %v834_v42  ;;  %v840_v30 = vld [vmem:[#allocation2 + $0x728] sm:$0xff]  ;;  %v846_v46 = vld [vmem:[#allocation2 + $0x758] sm:$0xff]  ;;  %v849_v48 = vld [vmem:[#allocation2 + $0x770] sm:$0xff] }
 0x2de   : > { %v5995_v22 = vadd.f32 %v5994_v11, %v5993_v53  ;;  %v839_v11 = vld [vmem:[#allocation2 + $0x720] sm:$0xff]  ;;  %3740 = vst.msk [vmem:[#allocation2 + $0x6f0] sm:$0xff] %vm354_vm2, %v3483_v41  ;;  %v3482_v7 = vadd.f32 %v11575_v14, %v832_v24  ;;  %v3487_v50 = vadd.f32 %v11600_v21, %v837_v0  ;;  %v845_v53 = vld [vmem:[#allocation2 + $0x750] sm:$0xff]  ;;  %v3485_v35 = vadd.f32 %v11627_v8, %v835_v29  ;;  %v844_v14 = vld [vmem:[#allocation2 + $0x748] sm:$0xff] }
 0x2df   : > { %v6768_v3 = vadd.f32 %v6767_v58, %v6766_v18  ;;  %5538 = vst.msk [vmem:[%s9431_s25 + $0x364] sm:$0xf] %vm5320_vm3, %v7828_v25  ;;  %v3488_v59 = vadd.f32 %v11654_v57, %v838_v60  ;;  %v3491_v58 = vadd.f32 %v11717_v55, %v841_v40  ;;  %v847_v21 = vld [vmem:[#allocation2 + $0x760] sm:$0xff]  ;;  %v12883_v24 = vld [vmem:[#allocation19_spill] sm:$0xff]  ;;  %v12884_v18 = vld [vmem:[#allocation20_spill] sm:$0xff]  ;;  %v3490_v55 = vadd.f32 %v11811_v16, %v840_v30 }
 0x2e0   : > { %v5997_v5 = vadd.f32 %v12120_v56, %v5995_v22  ;;  %3738 = vst.msk [vmem:[#allocation2 + $0x6e0] sm:$0xff] %vm354_vm2, %v3481_v37  ;;  %3741 = vst.msk [vmem:[#allocation2 + $0x6f8] sm:$0xff] %vm354_vm2, %v3484_v23  ;;  %v3486_v56 = vadd.f32 %v11685_v1, %v836_v36  ;;  %v3489_v0 = vadd.f32 %v12883_v24, %v839_v11  ;;  %v850_v29 = vld [vmem:[#allocation2 + $0x778] sm:$0xff]  ;;  %v848_v57 = vld [vmem:[#allocation2 + $0x768] sm:$0xff]  ;;  %v3214_v1 = vpop.f32.mrf.mxu1  ;;  %v6010_v24 = vsel %vm354_vm2, %v12162_v26, 0.0 }
 0x2e1   : > { %v6770_v42 = vadd.f32 %v6769_v39, %v6768_v3  ;;  %3739 = vst.msk [vmem:[#allocation2 + $0x6e8] sm:$0xff] %vm354_vm2, %v3482_v7  ;;  %3744 = vst.msk [vmem:[#allocation2 + $0x710] sm:$0xff] %vm354_vm2, %v3487_v50  ;;  %v3492_v8 = vadd.f32 %v12884_v18, %v842_v52  ;;  %v853_v22 = vld [vmem:[#allocation2 + $0x790] sm:$0xff]  ;;  %v3493_v39 = vadd.f32 %v11875_v32, %v843_v9  ;;  %v851_v60 = vld [vmem:[#allocation2 + $0x780] sm:$0xff] }
 0x2e2   : > { %v5999_v10 = vadd.f32 %v12151_v45, %v5997_v5  ;;  %3742 = vst.msk [vmem:[#allocation2 + $0x700] sm:$0xff] %vm354_vm2, %v3485_v35  ;;  %3745 = vst.msk [vmem:[#allocation2 + $0x718] sm:$0xff] %vm354_vm2, %v3488_v59  ;;  %v3495_v45 = vadd.f32 %v11839_v17, %v845_v53  ;;  %v3496_v41 = vadd.f32 %v11903_v54, %v846_v46  ;;  %v854_v36 = vld [vmem:[#allocation2 + $0x798] sm:$0xff]  ;;  %v852_v40 = vld [vmem:[#allocation2 + $0x788] sm:$0xff]  ;;  %v8264_v3 = vpop.f32.mrf.mxu1  ;;  %v6779_v59 = vsel %vm354_vm2, %v12180_v2, 0.0 }
 0x2e3   : > { %3743 = vst.msk [vmem:[#allocation2 + $0x708] sm:$0xff] %vm354_vm2, %v3486_v56  ;;  %3748 = vst.msk [vmem:[#allocation2 + $0x730] sm:$0xff] %vm354_vm2, %v3491_v58  ;;  %v6772_v25 = vadd.f32 %v12133_v15, %v6770_v42  ;;  %v3494_v23 = vadd.f32 %v11931_v62, %v844_v14  ;;  %v3499_v16 = vadd.f32 %v11959_v49, %v849_v48  ;;  %v857_v17 = vld [vmem:[#allocation2 + $0x7b0] sm:$0xff]  ;;  %v855_v11 = vld [vmem:[#allocation2 + $0x7a0] sm:$0xff]  ;;  %v6008_v56 = vsel %vm354_vm2, %v12128_v31, 0.0 }
 0x2e4   : > { %v6001_v37 = vadd.f32 %v12184_v33, %v5999_v10  ;;  %3746 = vst.msk [vmem:[#allocation2 + $0x720] sm:$0xff] %vm354_vm2, %v3489_v0  ;;  %3749 = vst.msk [vmem:[#allocation2 + $0x738] sm:$0xff] %vm354_vm2, %v3492_v8  ;;  %v858_v32 = vld [vmem:[#allocation2 + $0x7b8] sm:$0xff]  ;;  %v3497_v54 = vadd.f32 %v11986_v12, %v847_v21  ;;  %v3500_v15 = vadd.f32 %v12016_v63, %v850_v29 }
 0x2e5   : > { %3747 = vst.msk [vmem:[#allocation2 + $0x728] sm:$0xff] %vm354_vm2, %v3490_v55  ;;  %3752 = vst.msk [vmem:[#allocation2 + $0x750] sm:$0xff] %vm354_vm2, %v3495_v45  ;;  %v3498_v9 = vadd.f32 %v12045_v4, %v848_v57  ;;  %v3503_v62 = vadd.f32 %v12073_v27, %v853_v22  ;;  %v6774_v49 = vadd.f32 %v12167_v34, %v6772_v25  ;;  %v12253_v12 = vld [vmem:[#allocation2 + $0x6f0] sm:$0xff] }
 0x2e6   : > { %3750 = vst.msk [vmem:[#allocation2 + $0x740] sm:$0xff] %vm354_vm2, %v3493_v39  ;;  %3753 = vst.msk [vmem:[#allocation2 + $0x758] sm:$0xff] %vm354_vm2, %v3496_v41  ;;  %v6003_v33 = vadd.f32 %v12195_v19, %v6001_v37  ;;  %v3501_v52 = vadd.f32 %v12100_v28, %v851_v60  ;;  %v3504_v30 = vadd.f32 %v12130_v38, %v854_v36  ;;  %v12885_v41 = vld [vmem:[#allocation21_spill] sm:$0xff] }
 0x2e7   : > { %3751 = vst.msk [vmem:[#allocation2 + $0x748] sm:$0xff] %vm354_vm2, %v3494_v23  ;;  %3756 = vst.msk [vmem:[#allocation2 + $0x770] sm:$0xff] %vm354_vm2, %v3499_v16  ;;  %v3502_v63 = vadd.f32 %v12164_v61, %v852_v40  ;;  %v3507_v4 = vadd.f32 %v12198_v44, %v857_v17  ;;  %v3505_v27 = vadd.f32 %v3214_v1, %v855_v11  ;;  %v3997_v7 = vld [vmem:[#allocation2 + $0x6e0] sm:$0xff]  ;;  %v12267_v50 = vld [vmem:[#allocation2 + $0x6f8] sm:$0xff]  ;;  %v6006_v61 = vsel %vm354_vm2, %v12095_v43, 0.0 }
 0x2e8   : > { %3754 = vst.msk [vmem:[#allocation2 + $0x760] sm:$0xff] %vm354_vm2, %v3497_v54  ;;  %3757 = vst.msk [vmem:[#allocation2 + $0x778] sm:$0xff] %vm354_vm2, %v3500_v15  ;;  %v3508_v34 = vadd.f32 %v8264_v3, %v858_v32  ;;  %v6776_v28 = vadd.f32 %v12187_v51, %v6774_v49  ;;  %v6311_v38 = vmul.f32 %v12095_v43, %v12095_v43  ;;  %v6777_v51 = vsel %vm354_vm2, %v12202_v6, 0.0  ;;  %v3998_v35 = vld [vmem:[#allocation2 + $0x6e8] sm:$0xff]  ;;  %v12282_v6 = vld [vmem:[#allocation2 + $0x710] sm:$0xff] }
 0x2e9   : > { %3755 = vst.msk [vmem:[#allocation2 + $0x768] sm:$0xff] %vm354_vm2, %v3498_v9  ;;  %3760 = vst.msk [vmem:[#allocation2 + $0x790] sm:$0xff] %vm354_vm2, %v3503_v62  ;;  %v6005_v19 = vadd.f32 %v12171_v20, %v6003_v33  ;;  %v4262_v5 = vadd.f32 %v11773_v13, %v12253_v12  ;;  %v4260_v44 = vadd.f32 %v11773_v13, %v3997_v7  ;;  %v12302_v18 = vld [vmem:[#allocation2 + $0x700] sm:$0xff]  ;;  %v12308_v22 = vld [vmem:[#allocation2 + $0x718] sm:$0xff]  ;;  %v6014_v37 = vsel %vm354_vm2, %v12885_v41, 0.0 }
 0x2ea   : > { %3758 = vst.msk [vmem:[#allocation2 + $0x780] sm:$0xff] %vm354_vm2, %v3501_v52  ;;  %3761 = vst.msk [vmem:[#allocation2 + $0x798] sm:$0xff] %vm354_vm2, %v3504_v30  ;;  %v6778_v20 = vadd.f32 %v6777_v51, %v6776_v28  ;;  %v4263_v43 = vadd.f32 %v11773_v13, %v12267_v50  ;;  %v6312_v58 = vmul.f32 %v12128_v31, %v12128_v31  ;;  %v6781_v48 = vsel %vm354_vm2, %v6311_v38, 0.0  ;;  %v12317_v25 = vld [vmem:[#allocation2 + $0x708] sm:$0xff]  ;;  %v12329_v54 = vld [vmem:[#allocation2 + $0x730] sm:$0xff] }
 0x2eb   : > { %3759 = vst.msk [vmem:[#allocation2 + $0x788] sm:$0xff] %vm354_vm2, %v3502_v63  ;;  %3764 = vst.msk [vmem:[#allocation2 + $0x7b0] sm:$0xff] %vm354_vm2, %v3507_v4  ;;  %v6007_v53 = vadd.f32 %v6006_v61, %v6005_v19  ;;  %v7833_v46 = vpack.c.bf16 %v4262_v5, %v4262_v5  ;;  %v7831_v14 = vpack.c.bf16 %v4260_v44, %v4260_v44  ;;  %v6016_v15 = vsel %vm354_vm2, %v3997_v7, 0.0  ;;  %v12334_v33 = vld [vmem:[#allocation2 + $0x720] sm:$0xff]  ;;  %v12339_v63 = vpop.f32.mrf.mxu1  ;;  %v12351_v38 = vld [vmem:[#allocation2 + $0x738] sm:$0xff] }
 0x2ec   : > { %3762 = vst.msk [vmem:[#allocation2 + $0x7a0] sm:$0xff] %vm354_vm2, %v3505_v27  ;;  %3765 = vst.msk [vmem:[#allocation2 + $0x7b8] sm:$0xff] %vm354_vm2, %v3508_v34  ;;  %v6780_v21 = vadd.f32 %v6779_v59, %v6778_v20  ;;  %v7834_v10 = vpack.c.bf16 %v4263_v43, %v4263_v43  ;;  %v6313_v2 = vmul.f32 %v12162_v26, %v12162_v26  ;;  %v6012_v26 = vsel %vm354_vm2, %v12115_v47, 0.0  ;;  %v12357_v51 = vld [vmem:[#allocation2 + $0x728] sm:$0xff] }
 0x2ed   : > { %v6009_v42 = vadd.f32 %v6008_v56, %v6007_v53  ;;  %5543 = vst.msk [vmem:[%s9431_s25 + $0x378] sm:$0xf] %vm5320_vm3, %v7833_v46  ;;  %5541 = vst.msk [vmem:[%s9431_s25 + $0x370] sm:$0xf] %vm5320_vm3, %v7831_v14  ;;  %v4261_v0 = vadd.f32 %v11773_v13, %v3998_v35  ;;  %v4266_v31 = vadd.f32 %v11773_v13, %v12282_v6  ;;  %v6783_v1 = vsel %vm354_vm2, %v6312_v58, 0.0  ;;  %v12368_v58 = vld [vmem:[#allocation2 + $0x750] sm:$0xff]  ;;  %v12370_v14 = vpop.f32.mrf.mxu1 }
 0x2ee   : > { %v6314_v8 = vmul.f32 %v12115_v47, %v12115_v47  ;;  %v6782_v29 = vadd.f32 %v6781_v48, %v6780_v21  ;;  %5544 = vst.msk [vmem:[%s9431_s25 + $0x37c] sm:$0xf] %vm5320_vm3, %v7834_v10  ;;  %v6315_v60 = vmul.f32 %v12885_v41, %v12885_v41  ;;  %v4264_v40 = vadd.f32 %v11773_v13, %v12302_v18 }
 0x2ef   : > { %v6011_v57 = vadd.f32 %v6010_v24, %v6009_v42  ;;  %v7832_v55 = vpack.c.bf16 %v4261_v0, %v4261_v0  ;;  %v7837_v45 = vpack.c.bf16 %v4266_v31, %v4266_v31  ;;  %v6785_v23 = vsel %vm354_vm2, %v6313_v2, 0.0  ;;  %v12382_v0 = vld [vmem:[#allocation2 + $0x740] sm:$0xff] }
 0x2f0   : > { %v6784_v39 = vadd.f32 %v6783_v1, %v6782_v29  ;;  %v4267_v47 = vadd.f32 %v11773_v13, %v12308_v22  ;;  %v6787_v16 = vsel %vm354_vm2, %v6314_v8, 0.0  ;;  %v7835_v32 = vpack.c.bf16 %v4264_v40, %v4264_v40  ;;  %v12407_v40 = vld [vmem:[#allocation2 + $0x748] sm:$0xff] }
 0x2f1   : > { %v6013_v36 = vadd.f32 %v6012_v26, %v6011_v57  ;;  %5542 = vst.msk [vmem:[%s9431_s25 + $0x374] sm:$0xf] %vm5320_vm3, %v7832_v55  ;;  %5547 = vst.msk [vmem:[%s9431_s25 + $0x388] sm:$0xf] %vm5320_vm3, %v7837_v45  ;;  %v6316_v9 = vmul.f32 %v3997_v7, %v3997_v7  ;;  %v4265_v49 = vadd.f32 %v11773_v13, %v12317_v25  ;;  %v6789_v52 = vsel %vm354_vm2, %v6315_v60, 0.0  ;;  %v12395_v45 = vld [vmem:[#allocation2 + $0x758] sm:$0xff] }
 0x2f2   : > { %v6786_v17 = vadd.f32 %v6785_v23, %v6784_v39  ;;  %v7838_v62 = vpack.c.bf16 %v4267_v47, %v4267_v47  ;;  %5545 = vst.msk [vmem:[%s9431_s25 + $0x380] sm:$0xf] %vm5320_vm3, %v7835_v32  ;;  %v6018_v4 = vsel %vm354_vm2, %v3998_v35, 0.0  ;;  %v6317_v27 = vmul.f32 %v3998_v35, %v3998_v35  ;;  %v12347_v13 = vld [vmem:[%s12761_s2] ss:$0 sm:$0xff]  ;;  %v12397_v39 = vpop.f32.mrf.mxu1  ;;  %v12418_v32 = vld [vmem:[#allocation2 + $0x770] sm:$0xff] }
 0x2f3   : > { %v6015_v11 = vadd.f32 %v6014_v37, %v6013_v36  ;;  %v7836_v34 = vpack.c.bf16 %v4265_v49, %v4265_v49  ;;  %v4270_v28 = vadd.f32 %v12347_v13, %v12329_v54  ;;  %v6318_v19 = vmul.f32 %v12253_v12, %v12253_v12 }
 0x2f4   : > { %v6788_v30 = vadd.f32 %v6787_v16, %v6786_v17  ;;  %5548 = vst.msk [vmem:[%s9431_s25 + $0x38c] sm:$0xf] %vm5320_vm3, %v7838_v62  ;;  %v4268_v61 = vadd.f32 %v12347_v13, %v12334_v33  ;;  %v6020_v44 = vsel %vm354_vm2, %v12253_v12, 0.0  ;;  %v6791_v20 = vsel %vm354_vm2, %v6316_v9, 0.0  ;;  %v12422_v62 = vld [vmem:[#allocation2 + $0x760] sm:$0xff]  ;;  %v12424_v49 = vpop.f32.mrf.mxu1 }
 0x2f5   : > { %v6017_v3 = vadd.f32 %v6016_v15, %v6015_v11  ;;  %v6319_v53 = vmul.f32 %v12267_v50, %v12267_v50  ;;  %5546 = vst.msk [vmem:[%s9431_s25 + $0x384] sm:$0xf] %vm5320_vm3, %v7836_v34  ;;  %v7841_v46 = vpack.c.bf16 %v4270_v28, %v4270_v28  ;;  %v4271_v56 = vadd.f32 %v12347_v13, %v12351_v38 }
 0x2f6   : > { %v6790_v5 = vadd.f32 %v6789_v52, %v6788_v30  ;;  %v7839_v59 = vpack.c.bf16 %v4268_v61, %v4268_v61  ;;  %v6022_v12 = vsel %vm354_vm2, %v12267_v50, 0.0  ;;  %v6793_v48 = vsel %vm354_vm2, %v6317_v27, 0.0 }
 0x2f7   : > { %v6019_v7 = vadd.f32 %v6018_v4, %v6017_v3  ;;  %5551 = vst.msk [vmem:[%s9431_s25 + $0x398] sm:$0xf] %vm5320_vm3, %v7841_v46  ;;  %v4269_v21 = vadd.f32 %v12347_v13, %v12357_v51  ;;  %v6795_v42 = vsel %vm354_vm2, %v6318_v19, 0.0  ;;  %v7842_v2 = vpack.c.bf16 %v4271_v56, %v4271_v56 }
 0x2f8   : > { %v6792_v43 = vadd.f32 %v6791_v20, %v6790_v5  ;;  %5549 = vst.msk [vmem:[%s9431_s25 + $0x390] sm:$0xf] %vm5320_vm3, %v7839_v59  ;;  %v6024_v50 = vsel %vm354_vm2, %v12302_v18, 0.0  ;;  %v6320_v31 = vmul.f32 %v12302_v18, %v12302_v18  ;;  %v4274_v29 = vadd.f32 %v12347_v13, %v12368_v58  ;;  %v12434_v5 = vld [vmem:[#allocation2 + $0x778] sm:$0xff]  ;;  %v12451_v59 = vpop.f32.mrf.mxu1 }
 0x2f9   : > { %v6021_v35 = vadd.f32 %v6020_v44, %v6019_v7  ;;  %v7840_v8 = vpack.c.bf16 %v4269_v21, %v4269_v21  ;;  %v6797_v57 = vsel %vm354_vm2, %v6319_v53, 0.0  ;;  %v6322_v1 = vmul.f32 %v12282_v6, %v12282_v6  ;;  %5552 = vst.msk [vmem:[%s9431_s25 + $0x39c] sm:$0xf] %vm5320_vm3, %v7842_v2 }
 0x2fa   : > { %v6794_v10 = vadd.f32 %v6793_v48, %v6792_v43  ;;  %v6026_v18 = vsel %vm354_vm2, %v12317_v25, 0.0  ;;  %v6321_v41 = vmul.f32 %v12317_v25, %v12317_v25  ;;  %v7845_v60 = vpack.c.bf16 %v4274_v29, %v4274_v29 }
 0x2fb   : > { %v6023_v24 = vadd.f32 %v6022_v12, %v6021_v35  ;;  %5550 = vst.msk [vmem:[%s9431_s25 + $0x394] sm:$0xf] %vm5320_vm3, %v7840_v8  ;;  %v4272_v36 = vadd.f32 %v12347_v13, %v12382_v0  ;;  %v6028_v37 = vsel %vm354_vm2, %v12282_v6, 0.0  ;;  %v6799_v16 = vsel %vm354_vm2, %v6320_v31, 0.0  ;;  %v12449_v35 = vld [vmem:[#allocation2 + $0x768] sm:$0xff]  ;;  %v12472_v8 = vld [vmem:[#allocation2 + $0x780] sm:$0xff] }
 0x2fc   : > { %v6796_v26 = vadd.f32 %v6795_v42, %v6794_v10  ;;  %v6323_v17 = vmul.f32 %v12308_v22, %v12308_v22  ;;  %5555 = vst.msk [vmem:[%s9431_s25 + $0x3a8] sm:$0xf] %vm5320_vm3, %v7845_v60  ;;  %v4275_v11 = vadd.f32 %v12347_v13, %v12395_v45  ;;  %v4273_v6 = vadd.f32 %v12347_v13, %v12407_v40  ;;  %v12484_v60 = vld [vmem:[#allocation2 + $0x798] sm:$0xff] }
 0x2fd   : > { %v6025_v55 = vadd.f32 %v6024_v50, %v6023_v24  ;;  %v7843_v25 = vpack.c.bf16 %v4272_v36, %v4272_v36  ;;  %v6803_v52 = vsel %vm354_vm2, %v6322_v1, 0.0  ;;  %v6030_v30 = vsel %vm354_vm2, %v12308_v22, 0.0  ;;  %v12463_v24 = vld [vmem:[#allocation2 + $0x790] sm:$0xff]  ;;  %v12475_v1 = vpop.f32.mrf.mxu1 }
 0x2fe   : > { %v6798_v23 = vadd.f32 %v6797_v57, %v6796_v26  ;;  %v6801_v3 = vsel %vm354_vm2, %v6321_v41, 0.0  ;;  %v7846_v4 = vpack.c.bf16 %v4275_v11, %v4275_v11  ;;  %v7844_v28 = vpack.c.bf16 %v4273_v6, %v4273_v6 }
 0x2ff   : > { %v6027_v47 = vadd.f32 %v6026_v18, %v6025_v55  ;;  %5553 = vst.msk [vmem:[%s9431_s25 + $0x3a0] sm:$0xf] %vm5320_vm3, %v7843_v25  ;;  %v4278_v19 = vadd.f32 %v12347_v13, %v12418_v32  ;;  %v6805_v7 = vsel %vm354_vm2, %v6323_v17, 0.0  ;;  %v6032_v61 = vsel %vm354_vm2, %v12334_v33, 0.0 }
 0x300   : > { %v6800_v15 = vadd.f32 %v6799_v16, %v6798_v23  ;;  %v6324_v22 = vmul.f32 %v12334_v33, %v12334_v33  ;;  %5556 = vst.msk [vmem:[%s9431_s25 + $0x3ac] sm:$0xf] %vm5320_vm3, %v7846_v4  ;;  %v4276_v44 = vadd.f32 %v12347_v13, %v12422_v62  ;;  %v6326_v53 = vmul.f32 %v12329_v54, %v12329_v54  ;;  %v12489_v16 = vld [vmem:[#allocation2 + $0x788] sm:$0xff] }
 0x301   : > { %v6029_v9 = vadd.f32 %v6028_v37, %v6027_v47  ;;  %5554 = vst.msk [vmem:[%s9431_s25 + $0x3a4] sm:$0xf] %vm5320_vm3, %v7844_v28  ;;  %v7849_v43 = vpack.c.bf16 %v4278_v19, %v4278_v19  ;;  %v6034_v33 = vsel %vm354_vm2, %v12357_v51, 0.0  ;;  %v6325_v56 = vmul.f32 %v12357_v51, %v12357_v51 }
 0x302   : > { %v6802_v27 = vadd.f32 %v6801_v3, %v6800_v15  ;;  %v7847_v12 = vpack.c.bf16 %v4276_v44, %v4276_v44  ;;  %v4279_v48 = vadd.f32 %v12347_v13, %v12434_v5  ;;  %v6327_v42 = vmul.f32 %v12351_v38, %v12351_v38  ;;  %v12503_v3 = vpop.f32.mrf.mxu1 }
 0x303   : > { %v6031_v34 = vadd.f32 %v6030_v30, %v6029_v9  ;;  %5559 = vst.msk [vmem:[%s9431_s25 + $0x3b8] sm:$0xf] %vm5320_vm3, %v7849_v43  ;;  %v6036_v2 = vsel %vm354_vm2, %v12329_v54, 0.0  ;;  %v6807_v50 = vsel %vm354_vm2, %v6324_v22, 0.0  ;;  %v4277_v31 = vadd.f32 %v12347_v13, %v12449_v35  ;;  %v12501_v30 = vld [vmem:[#allocation2 + $0x7b0] sm:$0xff]  ;;  %v12519_v22 = vld [vmem:[#allocation2 + $0x7a0] sm:$0xff] }
 0x304   : > { %v6804_v20 = vadd.f32 %v6803_v52, %v6802_v27  ;;  %5557 = vst.msk [vmem:[%s9431_s25 + $0x3b0] sm:$0xf] %vm5320_vm3, %v7847_v12  ;;  %v7850_v51 = vpack.c.bf16 %v4279_v48, %v4279_v48  ;;  %v6811_v29 = vsel %vm354_vm2, %v6326_v53, 0.0  ;;  %v6038_v54 = vsel %vm354_vm2, %v12351_v38, 0.0  ;;  %v8272_v12 = vpop.f32.mrf.mxu1 }
 0x305   : > { %v6033_v46 = vadd.f32 %v6032_v61, %v6031_v34  ;;  %v6809_v55 = vsel %vm354_vm2, %v6325_v56, 0.0  ;;  %v7848_v18 = vpack.c.bf16 %v4277_v31, %v4277_v31  ;;  %v4282_v41 = vadd.f32 %v12347_v13, %v12463_v24  ;;  %v12531_v56 = vld [vmem:[#allocation2 + $0x7b8] sm:$0xff] }
 0x306   : > { %v6806_v21 = vadd.f32 %v6805_v7, %v6804_v20  ;;  %5560 = vst.msk [vmem:[%s9431_s25 + $0x3bc] sm:$0xf] %vm5320_vm3, %v7850_v51  ;;  %v6813_v36 = vsel %vm354_vm2, %v6327_v42, 0.0  ;;  %v4280_v47 = vadd.f32 %v12347_v13, %v12472_v8  ;;  %v6330_v38 = vmul.f32 %v12368_v58, %v12368_v58 }
 0x307   : > { %v6035_v10 = vadd.f32 %v6034_v33, %v6033_v46  ;;  %v6040_v17 = vsel %vm354_vm2, %v12382_v0, 0.0  ;;  %v6328_v25 = vmul.f32 %v12382_v0, %v12382_v0  ;;  %5558 = vst.msk [vmem:[%s9431_s25 + $0x3b4] sm:$0xf] %vm5320_vm3, %v7848_v18  ;;  %v7853_v11 = vpack.c.bf16 %v4282_v41, %v4282_v41  ;;  %v862_v41 = vld [vmem:[#allocation2 + $0x7d8] sm:$0xff] }
 0x308   : > { %v6808_v57 = vadd.f32 %v6807_v50, %v6806_v21  ;;  %v7851_v6 = vpack.c.bf16 %v4280_v47, %v4280_v47  ;;  %v4283_v52 = vadd.f32 %v12347_v13, %v12484_v60  ;;  %v6331_v4 = vmul.f32 %v12395_v45, %v12395_v45 }
 0x309   : > { %v6037_v26 = vadd.f32 %v6036_v2, %v6035_v10  ;;  %v6042_v0 = vsel %vm354_vm2, %v12407_v40, 0.0  ;;  %v6329_v27 = vmul.f32 %v12407_v40, %v12407_v40  ;;  %5563 = vst.msk [vmem:[%s9431_s25 + $0x3c8] sm:$0xf] %vm5320_vm3, %v7853_v11  ;;  %v4281_v34 = vadd.f32 %v12347_v13, %v12489_v16  ;;  %v856_v2 = vld [vmem:[#allocation2 + $0x7a8] sm:$0xff]  ;;  %v3249_v11 = vpop.f32.mrf.mxu1 }
 0x30a   : > { %v6810_v37 = vadd.f32 %v6809_v55, %v6808_v57  ;;  %v6044_v28 = vsel %vm354_vm2, %v12368_v58, 0.0  ;;  %5561 = vst.msk [vmem:[%s9431_s25 + $0x3c0] sm:$0xf] %vm5320_vm3, %v7851_v6  ;;  %v7854_v61 = vpack.c.bf16 %v4283_v52, %v4283_v52  ;;  %v6815_v44 = vsel %vm354_vm2, %v6328_v25, 0.0  ;;  %v859_v57 = vld [vmem:[#allocation2 + $0x7c0] sm:$0xff]  ;;  %v864_v25 = vld [vmem:[#allocation2 + $0x7e8] sm:$0xff] }
 0x30b   : > { %v6039_v23 = vadd.f32 %v6038_v54, %v6037_v26  ;;  %v6332_v40 = vmul.f32 %v12422_v62, %v12422_v62  ;;  %v7852_v20 = vpack.c.bf16 %v4281_v34, %v4281_v34  ;;  %v4286_v53 = vadd.f32 %v12347_v13, %v12501_v30 }
 0x30c   : > { %v6812_v15 = vadd.f32 %v6811_v29, %v6810_v37  ;;  %v6819_v46 = vsel %vm354_vm2, %v6330_v38, 0.0  ;;  %v6046_v43 = vsel %vm354_vm2, %v12395_v45, 0.0  ;;  %5564 = vst.msk [vmem:[%s9431_s25 + $0x3cc] sm:$0xf] %vm5320_vm3, %v7854_v61  ;;  %v6821_v48 = vsel %vm354_vm2, %v6331_v4, 0.0  ;;  %v861_v29 = vld [vmem:[#allocation2 + $0x7d0] sm:$0xff] }
 0x30d   : > { %v6041_v9 = vadd.f32 %v6040_v17, %v6039_v23  ;;  %v6817_v21 = vsel %vm354_vm2, %v6329_v27, 0.0  ;;  %5562 = vst.msk [vmem:[%s9431_s25 + $0x3c4] sm:$0xf] %vm5320_vm3, %v7852_v20  ;;  %v7857_v42 = vpack.c.bf16 %v4286_v53, %v4286_v53  ;;  %v4284_v10 = vadd.f32 %v12347_v13, %v12519_v22  ;;  %v865_v37 = vld [vmem:[#allocation2 + $0x7f0] sm:$0xff]  ;;  %v863_v38 = vld [vmem:[#allocation2 + $0x7e0] sm:$0xff]  ;;  %v866_v17 = vld [vmem:[#allocation2 + $0x7f8] sm:$0xff] }
 0x30e   : > { %v6814_v19 = vadd.f32 %v6813_v36, %v6812_v15  ;;  %v6052_v45 = vsel %vm354_vm2, %v12418_v32, 0.0  ;;  %v6334_v51 = vmul.f32 %v12418_v32, %v12418_v32  ;;  %v6048_v26 = vsel %vm354_vm2, %v12422_v62, 0.0  ;;  %v860_v36 = vld [vmem:[#allocation2 + $0x7c8] sm:$0xff] }
 0x30f   : > { %v6043_v7 = vadd.f32 %v6042_v0, %v6041_v9  ;;  %v6823_v54 = vsel %vm354_vm2, %v6332_v40, 0.0  ;;  %5567 = vst.msk [vmem:[%s9431_s25 + $0x3d8] sm:$0xf] %vm5320_vm3, %v7857_v42  ;;  %v7855_v55 = vpack.c.bf16 %v4284_v10, %v4284_v10  ;;  %v4287_v18 = vadd.f32 %v12347_v13, %v12531_v56 }
 0x310   : > { %v6816_v58 = vadd.f32 %v6815_v44, %v6814_v19  ;;  %v6050_v47 = vsel %vm354_vm2, %v12449_v35, 0.0  ;;  %v3506_v62 = vadd.f32 %v12339_v63, %v856_v2  ;;  %v6333_v15 = vmul.f32 %v12449_v35, %v12449_v35 }
 0x311   : > { %v6045_v33 = vadd.f32 %v6044_v28, %v6043_v7  ;;  %5565 = vst.msk [vmem:[%s9431_s25 + $0x3d0] sm:$0xf] %vm5320_vm3, %v7855_v55  ;;  %v7858_v9 = vpack.c.bf16 %v4287_v18, %v4287_v18  ;;  %v3511_v6 = vadd.f32 %v12370_v14, %v861_v29  ;;  %v3509_v52 = vadd.f32 %v12397_v39, %v859_v57 }
 0x312   : > { %v6818_v50 = vadd.f32 %v6817_v21, %v6816_v58  ;;  %3763 = vst.msk [vmem:[#allocation2 + $0x7a8] sm:$0xff] %vm354_vm2, %v3506_v62  ;;  %v3512_v63 = vadd.f32 %v12424_v49, %v862_v41  ;;  %v3510_v27 = vadd.f32 %v12451_v59, %v860_v36  ;;  %v3515_v35 = vadd.f32 %v12475_v1, %v865_v37 }
 0x313   : > { %v6047_v31 = vadd.f32 %v6046_v43, %v6045_v33  ;;  %5568 = vst.msk [vmem:[%s9431_s25 + $0x3dc] sm:$0xf] %vm5320_vm3, %v7858_v9  ;;  %v3513_v14 = vadd.f32 %v12503_v3, %v863_v38  ;;  %v3516_v34 = vadd.f32 %v8272_v12, %v866_v17  ;;  %v3514_v39 = vadd.f32 %v3249_v11, %v864_v25 }
 0x314   : > { %v6820_v23 = vadd.f32 %v6819_v46, %v6818_v50  ;;  %3768 = vst.msk [vmem:[#allocation2 + $0x7d0] sm:$0xff] %vm354_vm2, %v3511_v6  ;;  %3766 = vst.msk [vmem:[#allocation2 + $0x7c0] sm:$0xff] %vm354_vm2, %v3509_v52  ;;  %v6054_v49 = vsel %vm354_vm2, %v12434_v5, 0.0  ;;  %v6335_v59 = vmul.f32 %v12434_v5, %v12434_v5  ;;  %v6825_v7 = vsel %vm354_vm2, %v6333_v15, 0.0 }
 0x315   : > { %v6049_v32 = vadd.f32 %v6048_v26, %v6047_v31  ;;  %3769 = vst.msk [vmem:[#allocation2 + $0x7d8] sm:$0xff] %vm354_vm2, %v3512_v63  ;;  %3767 = vst.msk [vmem:[#allocation2 + $0x7c8] sm:$0xff] %vm354_vm2, %v3510_v27  ;;  %v6827_v61 = vsel %vm354_vm2, %v6334_v51, 0.0  ;;  %v6056_v44 = vsel %vm354_vm2, %v12472_v8, 0.0  ;;  %v6336_v5 = vmul.f32 %v12472_v8, %v12472_v8 }
 0x316   : > { %v6822_v4 = vadd.f32 %v6821_v48, %v6820_v23  ;;  %3772 = vst.msk [vmem:[#allocation2 + $0x7f0] sm:$0xff] %vm354_vm2, %v3515_v35  ;;  %3770 = vst.msk [vmem:[#allocation2 + $0x7e0] sm:$0xff] %vm354_vm2, %v3513_v14  ;;  %v6829_v53 = vsel %vm354_vm2, %v6335_v59, 0.0  ;;  %v6058_v46 = vsel %vm354_vm2, %v12489_v16, 0.0  ;;  %v6337_v58 = vmul.f32 %v12489_v16, %v12489_v16 }
 0x317   : > { %v6051_v0 = vadd.f32 %v6050_v47, %v6049_v32  ;;  %3773 = vst.msk [vmem:[#allocation2 + $0x7f8] sm:$0xff] %vm354_vm2, %v3516_v34  ;;  %3771 = vst.msk [vmem:[#allocation2 + $0x7e8] sm:$0xff] %vm354_vm2, %v3514_v39  ;;  %v6338_v33 = vmul.f32 %v12463_v24, %v12463_v24  ;;  %v6060_v10 = vsel %vm354_vm2, %v12463_v24, 0.0  ;;  %v6831_v2 = vsel %vm354_vm2, %v6336_v5, 0.0 }
 0x318   : > { %v6824_v28 = vadd.f32 %v6823_v54, %v6822_v4  ;;  %v6339_v16 = vmul.f32 %v12484_v60, %v12484_v60  ;;  %v6062_v24 = vsel %vm354_vm2, %v12484_v60, 0.0  ;;  %v6833_v54 = vsel %vm354_vm2, %v6337_v58, 0.0 }
 0x319   : > { %v6053_v19 = vadd.f32 %v6052_v45, %v6051_v0  ;;  %v4022_v43 = vld [vmem:[#allocation2 + $0x7a8] sm:$0xff]  ;;  %v6835_v18 = vsel %vm354_vm2, %v6338_v33, 0.0  ;;  %v6064_v23 = vsel %vm354_vm2, %v12519_v22, 0.0  ;;  %v6340_v32 = vmul.f32 %v12519_v22, %v12519_v22 }
 0x31a   : > { %v6826_v1 = vadd.f32 %v6825_v7, %v6824_v28  ;;  %v4285_v21 = vadd.f32 %v12347_v13, %v4022_v43  ;;  %v6837_v38 = vsel %vm354_vm2, %v6339_v16, 0.0  ;;  %v6066_v22 = vsel %vm354_vm2, %v4022_v43, 0.0 }
 0x31b   : > { %v6055_v3 = vadd.f32 %v6054_v49, %v6053_v19  ;;  %v12592_v42 = vld [vmem:[#allocation2 + $0x7d0] sm:$0xff]  ;;  %v4025_v8 = vld [vmem:[#allocation2 + $0x7c0] sm:$0xff]  ;;  %v6341_v15 = vmul.f32 %v4022_v43, %v4022_v43  ;;  %v6342_v52 = vmul.f32 %v12501_v30, %v12501_v30  ;;  %v6068_v35 = vsel %vm354_vm2, %v12501_v30, 0.0 }
 0x31c   : > { %v6828_v40 = vadd.f32 %v6827_v61, %v6826_v1  ;;  %v4290_v50 = vadd.f32 %v12347_v13, %v12592_v42  ;;  %v7856_v31 = vpack.c.bf16 %v4285_v21, %v4285_v21  ;;  %v4288_v29 = vadd.f32 %v12347_v13, %v4025_v8  ;;  %v12602_v57 = vld [vmem:[#allocation2 + $0x7d8] sm:$0xff]  ;;  %v4026_v26 = vld [vmem:[#allocation2 + $0x7c8] sm:$0xff] }
 0x31d   : > { %v6057_v20 = vadd.f32 %v6056_v44, %v6055_v3  ;;  %v4291_v60 = vadd.f32 %v12347_v13, %v12602_v57  ;;  %v4289_v47 = vadd.f32 %v12347_v13, %v4026_v26  ;;  %v12619_v62 = vld [vmem:[#allocation2 + $0x7f0] sm:$0xff]  ;;  %v12624_v11 = vld [vmem:[#allocation2 + $0x7e0] sm:$0xff]  ;;  %v6839_v14 = vsel %vm354_vm2, %v6340_v32, 0.0 }
 0x31e   : > { %v6830_v12 = vadd.f32 %v6829_v53, %v6828_v40  ;;  %v7861_v55 = vpack.c.bf16 %v4290_v50, %v4290_v50  ;;  %5566 = vst.msk [vmem:[%s9431_s25 + $0x3d4] sm:$0xf] %vm5320_vm3, %v7856_v31  ;;  %v7859_v37 = vpack.c.bf16 %v4288_v29, %v4288_v29  ;;  %v4294_v63 = vadd.f32 %v12347_v13, %v12619_v62  ;;  %v12631_v27 = vld [vmem:[#allocation2 + $0x7f8] sm:$0xff]  ;;  %v12644_v59 = vld [vmem:[#allocation2 + $0x7e8] sm:$0xff] }
 0x31f   : > { %v6059_v48 = vadd.f32 %v6058_v46, %v6057_v20  ;;  %v7862_v9 = vpack.c.bf16 %v4291_v60, %v4291_v60  ;;  %v7860_v6 = vpack.c.bf16 %v4289_v47, %v4289_v47  ;;  %v4292_v34 = vadd.f32 %v12347_v13, %v12624_v11 }
 0x320   : > { %v6832_v45 = vadd.f32 %v6831_v2, %v6830_v12  ;;  %5571 = vst.msk [vmem:[%s9431_s25 + $0x3e8] sm:$0xf] %vm5320_vm3, %v7861_v55  ;;  %5569 = vst.msk [vmem:[%s9431_s25 + $0x3e0] sm:$0xf] %vm5320_vm3, %v7859_v37  ;;  %v6070_v28 = vsel %vm354_vm2, %v12531_v56, 0.0  ;;  %v7865_v49 = vpack.c.bf16 %v4294_v63, %v4294_v63  ;;  %v6343_v30 = vmul.f32 %v12531_v56, %v12531_v56 }
 0x321   : > { %v6061_v51 = vadd.f32 %v6060_v10, %v6059_v48  ;;  %5572 = vst.msk [vmem:[%s9431_s25 + $0x3ec] sm:$0xf] %vm5320_vm3, %v7862_v9  ;;  %5570 = vst.msk [vmem:[%s9431_s25 + $0x3e4] sm:$0xf] %vm5320_vm3, %v7860_v6  ;;  %v6841_v7 = vsel %vm354_vm2, %v6341_v15, 0.0  ;;  %v7863_v1 = vpack.c.bf16 %v4292_v34, %v4292_v34  ;;  %v4295_v3 = vadd.f32 %v12347_v13, %v12631_v27 }
 0x322   : > { %v6834_v41 = vadd.f32 %v6833_v54, %v6832_v45  ;;  %v6843_v61 = vsel %vm354_vm2, %v6342_v52, 0.0  ;;  %5575 = vst.msk [vmem:[%s9431_s25 + $0x3f8] sm:$0xf] %vm5320_vm3, %v7865_v49  ;;  %v6072_v40 = vsel %vm354_vm2, %v4025_v8, 0.0  ;;  %v6344_v20 = vmul.f32 %v4025_v8, %v4025_v8 }
 0x323   : > { %v6063_v36 = vadd.f32 %v6062_v24, %v6061_v51  ;;  %5573 = vst.msk [vmem:[%s9431_s25 + $0x3f0] sm:$0xf] %vm5320_vm3, %v7863_v1  ;;  %v7866_v56 = vpack.c.bf16 %v4295_v3, %v4295_v3  ;;  %v4293_v53 = vadd.f32 %v12347_v13, %v12644_v59  ;;  %v6845_v43 = vsel %vm354_vm2, %v6343_v30, 0.0 }
 0x324   : > { %v6836_v17 = vadd.f32 %v6835_v18, %v6834_v41  ;;  %v6074_v33 = vsel %vm354_vm2, %v4026_v26, 0.0  ;;  %v6345_v12 = vmul.f32 %v4026_v26, %v4026_v26  ;;  %v6076_v8 = vsel %vm354_vm2, %v12592_v42, 0.0 }
 0x325   : > { %v6065_v25 = vadd.f32 %v6064_v23, %v6063_v36  ;;  %5576 = vst.msk [vmem:[%s9431_s25 + $0x3fc] sm:$0xf] %vm5320_vm3, %v7866_v56  ;;  %v7864_v13 = vpack.c.bf16 %v4293_v53, %v4293_v53  ;;  %v6346_v10 = vmul.f32 %v12592_v42, %v12592_v42  ;;  %v6847_v2 = vsel %vm354_vm2, %v6344_v20, 0.0 }
 0x326   : > { %v6838_v4 = vadd.f32 %v6837_v38, %v6836_v17 }
 0x327   : > { %v6067_v0 = vadd.f32 %v6066_v22, %v6065_v25  ;;  %5574 = vst.msk [vmem:[%s9431_s25 + $0x3f4] sm:$0xf] %vm5320_vm3, %v7864_v13 }
 0x328   : > { %v6840_v39 = vadd.f32 %v6839_v14, %v6838_v4 }
 0x329   : > { %v6069_v19 = vadd.f32 %v6068_v35, %v6067_v0 }
 0x32a   : > { %v6842_v44 = vadd.f32 %v6841_v7, %v6840_v39 }
 0x32b   : > { %v6071_v5 = vadd.f32 %v6070_v28, %v6069_v19 }
 0x32c   : > { %v6844_v46 = vadd.f32 %v6843_v61, %v6842_v44 }
 0x32d   : > { %v6073_v58 = vadd.f32 %v6072_v40, %v6071_v5 }
 0x32e   : > { %v6846_v48 = vadd.f32 %v6845_v43, %v6844_v46 }
 0x32f   : > { %v6075_v21 = vadd.f32 %v6074_v33, %v6073_v58 }
 0x330   : > { %v6848_v16 = vadd.f32 %v6847_v2, %v6846_v48 }
 0x331   : > { %v6077_v50 = vadd.f32 %v6076_v8, %v6075_v21 }
 0x332   : > { %8538 = shalt.err (!%p8535_p6)
}
 0x333   : > { %s8539_s25 = scalar_lea.hbm %s12664_s29, 16384  ;;  %s8543_s17 = scalar_lea.hbm %s12762_s3, 3211264 }
 0x334   : > { %p8540_p7 = scmp.ne.s32.totalorder %s12664_s29, %s8539_s25  ;;  %p8544_p12 = scmp.lt.s32.totalorder %s12664_s29, %s12762_s3 }
 0x335   : > { %p8545_p1 = scmp.lt.s32.totalorder %s8543_s17, %s8539_s25 }
 0x336   : > { %p8541_p10 = pnand %p8540_p7, %p8695_p9 }
 0x337   : > { %p8546_p8 = por %p8545_p1, %p8544_p12 }
 0x338   : > { %p8542_p4 = pneg %p8541_p10 }
 0x33a   : > { %p8547_p13 = pnand %p8546_p8, %p8542_p4 }
 0x33c   : > { %8550 = shalt.err (!%p8547_p13)
}
 0x33d   : > { %s8612_s30 = smov 64   ;;  %s8613_s10 = smov 4   ;;  %v6078_v42 = vsel %vm354_vm2, %v12602_v57, 0.0  ;;  %v6347_v45 = vmul.f32 %v12602_v57, %v12602_v57  ;;  %v6849_v51 = vsel %vm354_vm2, %v6345_v12, 0.0  ;;  %v6851_v26 = vsel %vm354_vm2, %v6346_v10, 0.0 }
 0x33e   : > { %8291 = dma.vmem_to_hbm [thread:$0]  (%p8695_p9), %s12666_s12, 16384, %s12664_s29, %s6871_s15, %s8612_s30, %s8612_s30, %s8613_s10   ;;  %v6850_v31 = vadd.f32 %v6849_v51, %v6848_v16  ;;  %v6079_v29 = vadd.f32 %v6078_v42, %v6077_v50  ;;  %v6080_v24 = vsel %vm354_vm2, %v12624_v11, 0.0  ;;  %v6348_v54 = vmul.f32 %v12624_v11, %v12624_v11 }
 0x33f   : > { %v6853_v41 = vsel %vm354_vm2, %v6347_v45, 0.0  ;;  %v6082_v36 = vsel %vm354_vm2, %v12644_v59, 0.0  ;;  %v6349_v57 = vmul.f32 %v12644_v59, %v12644_v59  ;;  %v6084_v32 = vsel %vm354_vm2, %v12619_v62, 0.0  ;;  %p337_p9 = scmp.lt.s32.totalorder %s8597_s21, 195 }
 0x340   : > { %v6852_v55 = vadd.f32 %v6851_v26, %v6850_v31  ;;  %v6081_v18 = vadd.f32 %v6080_v24, %v6079_v29  ;;  %v6350_v60 = vmul.f32 %v12619_v62, %v12619_v62  ;;  %v6855_v47 = vsel %vm354_vm2, %v6348_v54, 0.0 }
 0x341   : > { %v6086_v25 = vsel %vm354_vm2, %v12631_v27, 0.0  ;;  %v6351_v11 = vmul.f32 %v12631_v27, %v12631_v27  ;;  %v6857_v22 = vsel %vm354_vm2, %v6349_v57, 0.0  ;;  %s12894_s21 = smov (!%p337_p9, %s8597_s21), 195  ;;  %vm6094_vm4 = vcmask 122880  }
 0x342   : > { %v6854_v37 = vadd.f32 %v6853_v41, %v6852_v55  ;;  %v6083_v23 = vadd.f32 %v6082_v36, %v6081_v18  ;;  %v6859_v6 = vsel %vm354_vm2, %v6350_v60, 0.0  ;;  %s342_s12 = scalar_lea.vmem %s12763_s4, %s12894_s21  ;;  %s348_s28 = scalar_lea.vmem %s12764_s5, %s12894_s21 }
 0x343   : > { %v6861_v62 = vsel %vm354_vm2, %v6351_v11, 0.0 }
 0x344   : > { %v6856_v38 = vadd.f32 %v6855_v47, %v6854_v37  ;;  %v6085_v17 = vadd.f32 %v6084_v32, %v6083_v23 }
 0x346   : > { %v6087_v15 = vadd.f32 %v6086_v25, %v6085_v17  ;;  %v6858_v9 = vadd.f32 %v6857_v22, %v6856_v38 }
 0x348   : > { %v6088_v52 = vrot.slane %v6087_v15, 4  ;;  %v6860_v4 = vadd.f32 %v6859_v6, %v6858_v9 }
 0x34a   : > { %v6089_v0 = vadd.f32 %v6088_v52, %v6087_v15  ;;  %v6862_v63 = vadd.f32 %v6861_v62, %v6860_v4 }
 0x34c   : > { %v6090_v35 = vrot.slane %v6089_v0, 2  ;;  %v6863_v14 = vrot.slane %v6862_v63, 4 }
 0x34e   : > { %v6091_v34 = vadd.f32 %v6090_v35, %v6089_v0  ;;  %v6864_v39 = vadd.f32 %v6863_v14, %v6862_v63 }
 0x350   : > { %v6092_v28 = vrot.slane %v6091_v34, 1  ;;  %v6865_v27 = vrot.slane %v6864_v39, 2 }
 0x352   : > { %v6093_v19 = vadd.f32 %v6092_v28, %v6091_v34  ;;  %v6866_v49 = vadd.f32 %v6865_v27, %v6864_v39 }
 0x354   : > { %6095 = vst.msk [vmem:[%s342_s12] sm:$0x1] %vm6094_vm4, %v6093_v19  ;;  %v6867_v59 = vrot.slane %v6866_v49, 1 }
 0x356   : > { %v6868_v30 = vadd.f32 %v6867_v59, %v6866_v49 }
 0x358   : > { %6869 = vst.msk [vmem:[%s348_s28] sm:$0x1] %vm6094_vm4, %v6868_v30 }
 0x359 PF: > { %p8302_p0 = scmp.ge.s32.totalorder %s8605_s23, 2  ;;  %s6918_s9 = sand.u32 1, %s8585_s18  }
 0x35a   : > { %s6919_s13 = scalar_lea.sflag [#allocation5], %s6918_s9 }
 0x35b   : > { %p8298_p2 = pnand %p8302_p0, %p8702_p11 }
 0x35d   : > { %p8299_p3 = pneg %p8298_p2 }
 0x35f   : > { %8580 = dma.done.wait (%p8299_p3), %s6919_s13, 16384  }
 0x360   : > { %8582 = vsyncadd (%p8299_p3), %s6919_s13, 4294950912  ;;  %s22_s23 = sadd.s32 1, %s8605_s23   ;;  %s12886_s18 = smov %s8589_s19 }
 0x361   : > { %p19_p5 = scmp.ge.s32.totalorder %s22_s23, 198   ;;  %s12887_s19 = smov %s8593_s20 }
 0x362   : > { %s12888_s20 = smov %s8700_s7  ;;  %s12889_s21 = smov %s8601_s22 }
 0x363   : > { %s12890_s22 = smov %s12892_s26  ;;  %21 = sbr.rel (!%p19_p5) target bundleno = 6 (0x6), region = 115 }
 0x368   :  { %6942 = vsyncpa [#allocation4], 1 }
 0x369   :  { %6944 = vsyncpa [#allocation4 + $0x1], 1 }
 0x36a   :  { %6945 = vsyncpa [#allocation5], 1 }
 0x36b   :  { %6947 = vsyncpa [#allocation5 + $0x1], 1 }

</bundles_post_ra>
